<compile_context>
chip_gen: v7x
topology: tpu7x:2x2x1
jax: 0.10.0
libtpu: 0.0.40
codegen_flags: <defaults>
</compile_context>

<pallas_src>
import functools

import jax
import jax.numpy as jnp
from jax.experimental import pallas as pl
from jax.experimental.pallas import tpu as pltpu


# ----------------------------------------------------------------------------
# Generation-aware VMEM configuration
# ----------------------------------------------------------------------------
def _vmem_config():
    """(block_budget_bytes, vmem_limit_bytes, two_tensorcores)."""
    vmem_cap = 128 * 2**20
    try:
        vmem_cap = int(pltpu.get_tpu_info().vmem_capacity_bytes)
    except Exception:
        pass
    # v7x: 64 MiB VMEM per TensorCore and 2 TCs/chip; v5e/v6e: 128 MiB, 1 TC.
    two_tc = vmem_cap <= 64 * 2**20
    budget = min(vmem_cap * 3 // 8, 48 * 2**20)
    if two_tc:
        budget = min(budget, 24 * 2**20)
    vmem_limit = int(min(vmem_cap * 3 // 4, 96 * 2**20))
    return budget, vmem_limit, two_tc


def _choose_window_block(Nw, S, C, in_b, out_b, cd_b, head_dim, budget, two_tc,
                         target=64):
    """Windows per grid step for the fused kernel, sized to the VMEM budget."""
    # Per-window footprint: double-buffered in/out blocks + q/k/v values +
    # f32 scores/probs + per-head f32 PV + f32 proj accumulator.
    per_win = (2 * S * C * in_b + 2 * S * C * out_b + 3 * S * C * cd_b
               + 4 * (2 * S * S + S * head_dim + S * C))
    resident = 4 * C * C * cd_b + 4 * C            # wq/wk/wv/wp (resident) + bias
    cap = max(1, int((budget - resident) // max(per_win, 1)))
    Wb = max(1, min(Nw, target, cap))
    # Only 2-TC chips (v7x) benefit from forcing >= 2 grid steps.
    if two_tc and Wb >= Nw and Nw > 1:
        Wb = (Nw + 1) // 2
    return Wb


# ----------------------------------------------------------------------------
# Fused kernel: qkv 1x1 conv -> window attention -> proj 1x1 conv (+bias)
# ----------------------------------------------------------------------------
def _fused_window_attention_kernel(x_ref, wq_ref, wk_ref, wv_ref, wp_ref, bp_ref,
                                   o_ref, *, num_heads, head_dim):
    # x_ref : (Wb, S, C)  input windows, channels-last (lane-dense)
    # wq/wk/wv/wp : (C, C) resident weights (scale pre-folded into wq)
    # bp_ref : (1, C) f32 proj bias
    # o_ref : (Wb, S, C)
    Wb, S, C = x_ref.shape
    cd = x_ref.dtype
    x2 = x_ref[...].reshape(Wb * S, C)

    # qkv projections: low-precision operands on the MXU, f32 accumulation.
    def _proj(w_ref):
        y = jnp.dot(x2, w_ref[...], preferred_element_type=jnp.float32)
        return y.astype(cd).reshape(Wb, S, C)

    q = _proj(wq_ref)            # scale already folded into the weight columns
    k = _proj(wk_ref)
    v = _proj(wv_ref)
    wp = wp_ref[...]             # (C, C), resident

    # Output-projection accumulator starts at the bias; each head's PV output is
    # cast to the compute dtype and folded straight into the projection
    # (out = b + sum_h o_h @ W_proj[h*hd:(h+1)*hd, :]) — no f32 concat, one acc.
    acc = jnp.broadcast_to(bp_ref[...].astype(jnp.float32), (Wb * S, C))

    for h in range(num_heads):                    # static unroll over heads
        lo = h * head_dim
        qh = q[:, :, lo:lo + head_dim]
        kh = k[:, :, lo:lo + head_dim]
        vh = v[:, :, lo:lo + head_dim]
        s = jnp.einsum('wid,wjd->wij', qh, kh,
                       preferred_element_type=jnp.float32)
        s = s - jnp.max(s, axis=-1, keepdims=True)
        p = jnp.exp(s)
        p = p * pl.reciprocal(jnp.sum(p, axis=-1, keepdims=True), approx=True)
        oh = jnp.einsum('wij,wjd->wid', p.astype(cd), vh,
                        preferred_element_type=jnp.float32)
        oh = oh.astype(cd).reshape(Wb * S, head_dim)
        acc = acc + jnp.dot(oh, wp[lo:lo + head_dim, :],
                            preferred_element_type=jnp.float32)

    # Single dense store of the full channel dim.
    o_ref[...] = acc.reshape(Wb, S, C).astype(o_ref.dtype)


def fused_window_attention(x_win, wq, wk, wv, wp, bp, num_heads, out_dtype):
    """x_win: (Nw, S, C) channels-last windows -> (Nw, S, C) projected output."""
    Nw, S, C = x_win.shape
    head_dim = C // num_heads
    out_dtype = jnp.dtype(out_dtype)
    cd = x_win.dtype

    budget, vmem_limit, two_tc = _vmem_config()
    Wb = _choose_window_block(Nw, S, C, cd.itemsize, out_dtype.itemsize,
                              cd.itemsize, head_dim, budget, two_tc)
    # Pad with dummy windows (discarded) instead of falling back to tiny blocks.
    Nw_pad = pl.cdiv(Nw, Wb) * Wb
    if Nw_pad != Nw:
        x_win = jnp.pad(x_win, ((0, Nw_pad - Nw), (0, 0), (0, 0)))

    kern = functools.partial(_fused_window_attention_kernel,
                             num_heads=num_heads, head_dim=head_dim)
    out = pl.pallas_call(
        kern,
        out_shape=jax.ShapeDtypeStruct((Nw_pad, S, C), out_dtype),
        grid=(Nw_pad // Wb,),
        in_specs=[pl.BlockSpec((Wb, S, C), lambda i: (i, 0, 0)),
                  pl.BlockSpec((C, C), lambda i: (0, 0)),
                  pl.BlockSpec((C, C), lambda i: (0, 0)),
                  pl.BlockSpec((C, C), lambda i: (0, 0)),
                  pl.BlockSpec((C, C), lambda i: (0, 0)),
                  pl.BlockSpec((1, C), lambda i: (0, 0))],
        out_specs=pl.BlockSpec((Wb, S, C), lambda i: (i, 0, 0)),
        compiler_params=pltpu.CompilerParams(
            dimension_semantics=("parallel",),
            vmem_limit_bytes=vmem_limit),
    )(x_win, wq, wk, wv, wp, bp)
    return out[:Nw] if Nw_pad != Nw else out


# ----------------------------------------------------------------------------
# Channels-last window partition / reverse (single XLA transpose each, C-wide)
# ----------------------------------------------------------------------------
def _partition_windows(x_nhwc, wh, ww):
    # (B, H, W, K) -> (B*nH*nW, wh*ww, K)
    B, H, W, K = x_nhwc.shape
    nH, nW = H // wh, W // ww
    t = x_nhwc.reshape(B, nH, wh, nW, ww, K)
    t = jnp.transpose(t, (0, 1, 3, 2, 4, 5))
    return t.reshape(B * nH * nW, wh * ww, K)


def _unpartition_windows(win, B, H, W, wh, ww):
    # (B*nH*nW, wh*ww, C) -> (B, H, W, C)
    nH, nW = H // wh, W // ww
    C = win.shape[-1]
    t = win.reshape(B, nH, nW, wh, ww, C)
    t = jnp.transpose(t, (0, 1, 3, 2, 4, 5))
    return t.reshape(B, H, W, C)


# ----------------------------------------------------------------------------
# Forward pass
# ----------------------------------------------------------------------------
def shuffle_attention_forward(x, w_qkv, w_proj, b_proj, num_heads, window_size,
                              compute_dtype=jnp.bfloat16):
    """ShuffleAttention forward. x: (B, C, H, W) NCHW; returns (B, C, H, W)."""
    B, C, H, W = x.shape
    head_dim = C // num_heads
    scale = head_dim ** (-0.5)
    cd = jnp.dtype(compute_dtype)

    # Host-side weight prep: split q/k/v slabs, fold `scale` into the q columns.
    w_qkv_f32 = w_qkv.astype(jnp.float32)
    wq = (w_qkv_f32[:, :C] * scale).astype(cd)
    wk = w_qkv_f32[:, C:2 * C].astype(cd)
    wv = w_qkv_f32[:, 2 * C:3 * C].astype(cd)
    wp = w_proj.astype(cd)
    bp = b_proj.reshape(1, C).astype(jnp.float32)

    if H <= window_size and W <= window_size:
        wh, ww = H, W                      # whole image is a single window
    else:
        if (H % 2) or (W % 2) or ((H // 2) % window_size) or ((W // 2) % window_size):
            raise ValueError(
                "ShuffleAttention requires each half-image to be a multiple of "
                f"window_size (got H={H}, W={W}, window_size={window_size}).")
        wh = ww = window_size

    # One NCHW -> NHWC transpose and a C-wide window partition; the 3C-wide qkv
    # tensor and the attention output stay entirely in VMEM (fused kernel).
    # Quadrant edges (H/2, W/2) fall on window boundaries, so the reference's
    # per-quadrant window partition equals the full-image window partition.
    x_nhwc = jnp.transpose(x, (0, 2, 3, 1)).astype(cd)
    x_win = _partition_windows(x_nhwc, wh, ww)                 # (Nw, S, C)

    out_win = fused_window_attention(x_win, wq, wk, wv, wp, bp,
                                     num_heads, out_dtype=x.dtype)

    out_nhwc = _unpartition_windows(out_win, B, H, W, wh, ww)
    # attn_drop is never applied in the reference forward; proj_drop(0.0) = id.
    return jnp.transpose(out_nhwc, (0, 3, 1, 2))


# ----------------------------------------------------------------------------
# Pure-JAX f32 reference (mirrors the PyTorch quadrant implementation)
# ----------------------------------------------------------------------------
def _ref_partition_qkv(qkv_region, num_heads, win_h, win_w):
    B, C3, Rh, Rw = qkv_region.shape
    dim = C3 // 3
    d = dim // num_heads
    hh, ww = Rh // win_h, Rw // win_w
    t = qkv_region.reshape(B, 3, num_heads, d, hh, win_h, ww, win_w)
    t = jnp.transpose(t, (1, 0, 4, 6, 2, 5, 7, 3))
    t = t.reshape(3, B * hh * ww, num_heads, win_h * win_w, d)
    return t[0], t[1], t[2]


def _ref_unpartition_out(out, B, num_heads, win_h, win_w, hh, ww):
    d = out.shape[-1]
    t = out.reshape(B, hh, ww, num_heads, win_h, win_w, d)
    t = jnp.transpose(t, (0, 3, 6, 1, 4, 2, 5))
    return t.reshape(B, num_heads * d, hh * win_h, ww * win_w)


def _ref_forward(x, w_qkv, w_proj, b_proj, num_heads, window_size):
    hi = jax.lax.Precision.HIGHEST
    B, C, H, W = x.shape
    d = C // num_heads
    scale = d ** (-0.5)

    def conv1x1(t, w, b):
        return jnp.einsum('bchw,co->bohw', t, w, precision=hi) + b[None, :, None, None]

    qkv = conv1x1(x, w_qkv, jnp.zeros((3 * C,), x.dtype))

    def attn_block(region, wh, ww_):
        q, k, v = _ref_partition_qkv(region, num_heads, wh, ww_)
        dots = jnp.einsum('whqd,whkd->whqk', q, k, precision=hi) * scale
        a = jax.nn.softmax(dots, axis=-1)
        return jnp.einsum('whqk,whkd->whqd', a, v, precision=hi)

    if H <= window_size and W <= window_size:
        o = attn_block(qkv, H, W)
        out = _ref_unpartition_out(o, B, num_heads, H, W, 1, 1)
    else:
        rh, rw = H // 2, W // 2
        regions = [qkv[:, :, :rh, :rw], qkv[:, :, :rh, rw:],
                   qkv[:, :, rh:, :rw], qkv[:, :, rh:, rw:]]
        outs = []
        for r in regions:
            hh, ww_ = r.shape[2] // window_size, r.shape[3] // window_size
            o = attn_block(r, window_size, window_size)
            outs.append(_ref_unpartition_out(o, B, num_heads,
                                             window_size, window_size, hh, ww_))
        top = jnp.concatenate([outs[0], outs[1]], axis=-1)
        bottom = jnp.concatenate([outs[2], outs[3]], axis=-1)
        out = jnp.concatenate([top, bottom], axis=-2)

    return conv1x1(out, w_proj, b_proj)


# ----------------------------------------------------------------------------
if __name__ == "__main__":
    # dim=4, num_heads=2, window_size=4: a 16x16 input exercises the quadrant
    # ("else") branch; a 4x4 input exercises the single-window branch.
    dim, num_heads, window_size = 4, 2, 4

    key = jax.random.PRNGKey(0)
    k_qkv, k_proj_w, k_proj_b, k_x = jax.random.split(key, 4)
    w_qkv = 0.2 * jax.random.normal(k_qkv, (dim, 3 * dim), jnp.float32)
    w_proj = 0.2 * jax.random.normal(k_proj_w, (dim, dim), jnp.float32)
    b_proj = 0.1 * jax.random.normal(k_proj_b, (dim,), jnp.float32)
    x = jax.random.normal(k_x, (2, dim, 16, 16), jnp.float32)

    fwd = jax.jit(functools.partial(shuffle_attention_forward,
                                    num_heads=num_heads,
                                    window_size=window_size))

    out = jax.block_until_ready(fwd(x, w_qkv, w_proj, b_proj))
    ref = _ref_forward(x, w_qkv, w_proj, b_proj, num_heads, window_size)
    assert out.shape == (2, dim, 16, 16), out.shape
    assert jnp.allclose(out, ref, rtol=5e-2, atol=5e-2), \
        float(jnp.max(jnp.abs(out - ref)))

    # Single-window branch (h <= ws, w <= ws).
    x_small = jax.random.normal(jax.random.PRNGKey(1), (2, dim, 4, 4), jnp.float32)
    out_small = jax.block_until_ready(fwd(x_small, w_qkv, w_proj, b_proj))
    ref_small = _ref_forward(x_small, w_qkv, w_proj, b_proj,
                             num_heads, window_size)
    assert jnp.allclose(out_small, ref_small, rtol=5e-2, atol=5e-2), \
        float(jnp.max(jnp.abs(out_small - ref_small)))

    print("KERNEL_OK")
</pallas_src>

<mosaic_0001>
module attributes {stable_mosaic.version = 11 : i64} {
  func.func @_fused_window_attention_kernel(%arg0: i32, %arg1: memref<32x16x4xbf16, #tpu.memory_space<vmem>>, %arg2: memref<4x4xbf16, #tpu.memory_space<vmem>>, %arg3: memref<4x4xbf16, #tpu.memory_space<vmem>>, %arg4: memref<4x4xbf16, #tpu.memory_space<vmem>>, %arg5: memref<4x4xbf16, #tpu.memory_space<vmem>>, %arg6: memref<1x4xf32, #tpu.memory_space<vmem>>, %arg7: memref<32x16x4xf32, #tpu.memory_space<vmem>>) attributes {dimension_semantics = [#tpu.dimension_semantics<parallel>], iteration_bounds = array<i64: 1>, scalar_prefetch = 0 : i64, scratch_operands = 0 : i64, tpu.core_type = #tpu.core_type<tc>, window_params = [{transform_indices = @transform_0, window_bounds = array<i64: 32, 16, 4>}, {pipeline_mode = #tpu.pipeline_mode<synchronous>, transform_indices = @transform_1, window_bounds = array<i64: 4, 4>}, {pipeline_mode = #tpu.pipeline_mode<synchronous>, transform_indices = @transform_2, window_bounds = array<i64: 4, 4>}, {pipeline_mode = #tpu.pipeline_mode<synchronous>, transform_indices = @transform_3, window_bounds = array<i64: 4, 4>}, {pipeline_mode = #tpu.pipeline_mode<synchronous>, transform_indices = @transform_4, window_bounds = array<i64: 4, 4>}, {pipeline_mode = #tpu.pipeline_mode<synchronous>, transform_indices = @transform_5, window_bounds = array<i64: 1, 4>}, {transform_indices = @transform_6, window_bounds = array<i64: 32, 16, 4>}]} {
    %c0 = arith.constant 0 : index
    %c0_0 = arith.constant 0 : index
    %c0_1 = arith.constant 0 : index
    %0 = vector.load %arg1[%c0, %c0_0, %c0_1] : memref<32x16x4xbf16, #tpu.memory_space<vmem>>, vector<32x16x4xbf16>
    %1 = vector.shape_cast %0 : vector<32x16x4xbf16> to vector<512x4xbf16>
    %c0_2 = arith.constant 0 : index
    %c0_3 = arith.constant 0 : index
    %2 = vector.load %arg2[%c0_2, %c0_3] : memref<4x4xbf16, #tpu.memory_space<vmem>>, vector<4x4xbf16>
    %cst = arith.constant dense<0.000000e+00> : vector<512x4xf32>
    %3 = tpu.matmul %1, %2, %cst {dimension_numbers = #tpu.dot_dimension_numbers<[1], [0], [0], [1], [0, 0, 1, 1], [], []>} : vector<512x4xbf16>, vector<4x4xbf16>, vector<512x4xf32> -> vector<512x4xf32>
    %4 = arith.truncf %3 : vector<512x4xf32> to vector<512x4xbf16>
    %5 = vector.shape_cast %4 : vector<512x4xbf16> to vector<32x16x4xbf16>
    %c0_4 = arith.constant 0 : index
    %c0_5 = arith.constant 0 : index
    %6 = vector.load %arg3[%c0_4, %c0_5] : memref<4x4xbf16, #tpu.memory_space<vmem>>, vector<4x4xbf16>
    %cst_6 = arith.constant dense<0.000000e+00> : vector<512x4xf32>
    %7 = tpu.matmul %1, %6, %cst_6 {dimension_numbers = #tpu.dot_dimension_numbers<[1], [0], [0], [1], [0, 0, 1, 1], [], []>} : vector<512x4xbf16>, vector<4x4xbf16>, vector<512x4xf32> -> vector<512x4xf32>
    %8 = arith.truncf %7 : vector<512x4xf32> to vector<512x4xbf16>
    %9 = vector.shape_cast %8 : vector<512x4xbf16> to vector<32x16x4xbf16>
    %c0_7 = arith.constant 0 : index
    %c0_8 = arith.constant 0 : index
    %10 = vector.load %arg4[%c0_7, %c0_8] : memref<4x4xbf16, #tpu.memory_space<vmem>>, vector<4x4xbf16>
    %cst_9 = arith.constant dense<0.000000e+00> : vector<512x4xf32>
    %11 = tpu.matmul %1, %10, %cst_9 {dimension_numbers = #tpu.dot_dimension_numbers<[1], [0], [0], [1], [0, 0, 1, 1], [], []>} : vector<512x4xbf16>, vector<4x4xbf16>, vector<512x4xf32> -> vector<512x4xf32>
    %12 = arith.truncf %11 : vector<512x4xf32> to vector<512x4xbf16>
    %13 = vector.shape_cast %12 : vector<512x4xbf16> to vector<32x16x4xbf16>
    %c0_10 = arith.constant 0 : index
    %c0_11 = arith.constant 0 : index
    %14 = vector.load %arg5[%c0_10, %c0_11] : memref<4x4xbf16, #tpu.memory_space<vmem>>, vector<4x4xbf16>
    %c0_12 = arith.constant 0 : index
    %c0_13 = arith.constant 0 : index
    %15 = vector.load %arg6[%c0_12, %c0_13] : memref<1x4xf32, #tpu.memory_space<vmem>>, vector<1x4xf32>
    %16 = vector.shape_cast %15 : vector<1x4xf32> to vector<1x4xf32>
    %17 = vector.broadcast %16 : vector<1x4xf32> to vector<512x4xf32>
    %18 = vector.extract_strided_slice %5 {offsets = [0, 0, 0], sizes = [32, 16, 2], strides = [1, 1, 1]} : vector<32x16x4xbf16> to vector<32x16x2xbf16>
    %19 = vector.extract_strided_slice %9 {offsets = [0, 0, 0], sizes = [32, 16, 2], strides = [1, 1, 1]} : vector<32x16x4xbf16> to vector<32x16x2xbf16>
    %20 = vector.extract_strided_slice %13 {offsets = [0, 0, 0], sizes = [32, 16, 2], strides = [1, 1, 1]} : vector<32x16x4xbf16> to vector<32x16x2xbf16>
    "tpu.trace_start"() <{level = 10 : i32, message = "wid,wjd->wij"}> : () -> ()
    %cst_14 = arith.constant dense<0.000000e+00> : vector<32x16x16xf32>
    %21 = tpu.matmul %18, %19, %cst_14 {dimension_numbers = #tpu.dot_dimension_numbers<[2], [2], [1], [1], [0, 0, 0, 1, 1, 1], [0], [0]>} : vector<32x16x2xbf16>, vector<32x16x2xbf16>, vector<32x16x16xf32> -> vector<32x16x16xf32>
    "tpu.trace_stop"() : () -> ()
    %cst_15 = arith.constant dense<0xFF800000> : vector<32x16xf32>
    %22 = vector.multi_reduction <maximumf>, %21, %cst_15 [2] : vector<32x16x16xf32> to vector<32x16xf32>
    %23 = vector.shape_cast %22 : vector<32x16xf32> to vector<32x16x1xf32>
    %24 = vector.broadcast %23 : vector<32x16x1xf32> to vector<32x16x16xf32>
    %25 = arith.subf %21, %24 : vector<32x16x16xf32>
    %26 = math.exp %25 : vector<32x16x16xf32>
    %cst_16 = arith.constant dense<0.000000e+00> : vector<32x16xf32>
    %27 = vector.multi_reduction <add>, %26, %cst_16 [2] : vector<32x16x16xf32> to vector<32x16xf32>
    %28 = vector.shape_cast %27 : vector<32x16xf32> to vector<32x16x1xf32>
    %29 = tpu.reciprocal %28 {approx = true} : vector<32x16x1xf32> -> vector<32x16x1xf32>
    %30 = vector.broadcast %29 : vector<32x16x1xf32> to vector<32x16x16xf32>
    %31 = arith.mulf %26, %30 : vector<32x16x16xf32>
    %32 = arith.truncf %31 : vector<32x16x16xf32> to vector<32x16x16xbf16>
    "tpu.trace_start"() <{level = 10 : i32, message = "wij,wjd->wid"}> : () -> ()
    %cst_17 = arith.constant dense<0.000000e+00> : vector<32x16x2xf32>
    %33 = tpu.matmul %32, %20, %cst_17 {dimension_numbers = #tpu.dot_dimension_numbers<[2], [1], [1], [2], [0, 0, 0, 1, 1, 2], [0], [0]>} : vector<32x16x16xbf16>, vector<32x16x2xbf16>, vector<32x16x2xf32> -> vector<32x16x2xf32>
    "tpu.trace_stop"() : () -> ()
    %34 = arith.truncf %33 : vector<32x16x2xf32> to vector<32x16x2xbf16>
    %35 = vector.shape_cast %34 : vector<32x16x2xbf16> to vector<512x2xbf16>
    %36 = vector.extract_strided_slice %14 {offsets = [0, 0], sizes = [2, 4], strides = [1, 1]} : vector<4x4xbf16> to vector<2x4xbf16>
    %cst_18 = arith.constant dense<0.000000e+00> : vector<512x4xf32>
    %37 = tpu.matmul %35, %36, %cst_18 {dimension_numbers = #tpu.dot_dimension_numbers<[1], [0], [0], [1], [0, 0, 1, 1], [], []>} : vector<512x2xbf16>, vector<2x4xbf16>, vector<512x4xf32> -> vector<512x4xf32>
    %38 = arith.addf %17, %37 : vector<512x4xf32>
    %39 = vector.extract_strided_slice %5 {offsets = [0, 0, 2], sizes = [32, 16, 2], strides = [1, 1, 1]} : vector<32x16x4xbf16> to vector<32x16x2xbf16>
    %40 = vector.extract_strided_slice %9 {offsets = [0, 0, 2], sizes = [32, 16, 2], strides = [1, 1, 1]} : vector<32x16x4xbf16> to vector<32x16x2xbf16>
    %41 = vector.extract_strided_slice %13 {offsets = [0, 0, 2], sizes = [32, 16, 2], strides = [1, 1, 1]} : vector<32x16x4xbf16> to vector<32x16x2xbf16>
    "tpu.trace_start"() <{level = 10 : i32, message = "wid,wjd->wij"}> : () -> ()
    %cst_19 = arith.constant dense<0.000000e+00> : vector<32x16x16xf32>
    %42 = tpu.matmul %39, %40, %cst_19 {dimension_numbers = #tpu.dot_dimension_numbers<[2], [2], [1], [1], [0, 0, 0, 1, 1, 1], [0], [0]>} : vector<32x16x2xbf16>, vector<32x16x2xbf16>, vector<32x16x16xf32> -> vector<32x16x16xf32>
    "tpu.trace_stop"() : () -> ()
    %cst_20 = arith.constant dense<0xFF800000> : vector<32x16xf32>
    %43 = vector.multi_reduction <maximumf>, %42, %cst_20 [2] : vector<32x16x16xf32> to vector<32x16xf32>
    %44 = vector.shape_cast %43 : vector<32x16xf32> to vector<32x16x1xf32>
    %45 = vector.broadcast %44 : vector<32x16x1xf32> to vector<32x16x16xf32>
    %46 = arith.subf %42, %45 : vector<32x16x16xf32>
    %47 = math.exp %46 : vector<32x16x16xf32>
    %cst_21 = arith.constant dense<0.000000e+00> : vector<32x16xf32>
    %48 = vector.multi_reduction <add>, %47, %cst_21 [2] : vector<32x16x16xf32> to vector<32x16xf32>
    %49 = vector.shape_cast %48 : vector<32x16xf32> to vector<32x16x1xf32>
    %50 = tpu.reciprocal %49 {approx = true} : vector<32x16x1xf32> -> vector<32x16x1xf32>
    %51 = vector.broadcast %50 : vector<32x16x1xf32> to vector<32x16x16xf32>
    %52 = arith.mulf %47, %51 : vector<32x16x16xf32>
    %53 = arith.truncf %52 : vector<32x16x16xf32> to vector<32x16x16xbf16>
    "tpu.trace_start"() <{level = 10 : i32, message = "wij,wjd->wid"}> : () -> ()
    %cst_22 = arith.constant dense<0.000000e+00> : vector<32x16x2xf32>
    %54 = tpu.matmul %53, %41, %cst_22 {dimension_numbers = #tpu.dot_dimension_numbers<[2], [1], [1], [2], [0, 0, 0, 1, 1, 2], [0], [0]>} : vector<32x16x16xbf16>, vector<32x16x2xbf16>, vector<32x16x2xf32> -> vector<32x16x2xf32>
    "tpu.trace_stop"() : () -> ()
    %55 = arith.truncf %54 : vector<32x16x2xf32> to vector<32x16x2xbf16>
    %56 = vector.shape_cast %55 : vector<32x16x2xbf16> to vector<512x2xbf16>
    %57 = vector.extract_strided_slice %14 {offsets = [2, 0], sizes = [2, 4], strides = [1, 1]} : vector<4x4xbf16> to vector<2x4xbf16>
    %cst_23 = arith.constant dense<0.000000e+00> : vector<512x4xf32>
    %58 = tpu.matmul %56, %57, %cst_23 {dimension_numbers = #tpu.dot_dimension_numbers<[1], [0], [0], [1], [0, 0, 1, 1], [], []>} : vector<512x2xbf16>, vector<2x4xbf16>, vector<512x4xf32> -> vector<512x4xf32>
    %59 = arith.addf %38, %58 : vector<512x4xf32>
    %60 = vector.shape_cast %59 : vector<512x4xf32> to vector<32x16x4xf32>
    %c0_24 = arith.constant 0 : index
    %c0_25 = arith.constant 0 : index
    %c0_26 = arith.constant 0 : index
    %61 = vector.load %arg7[%c0_24, %c0_25, %c0_26] : memref<32x16x4xf32, #tpu.memory_space<vmem>>, vector<32x16x4xf32>
    tpu.vector_store %arg7[%c0_24, %c0_25, %c0_26], %60 {strides = array<i32>} : memref<32x16x4xf32, #tpu.memory_space<vmem>>, vector<32x16x4xf32>,
    return
  }
  func.func @transform_0(%arg0: i32) -> (i32, i32, i32) {
    %c0_i32 = arith.constant 0 : i32
    %c0_i32_0 = arith.constant 0 : i32
    %c0_i32_1 = arith.constant 0 : i32
    return %arg0, %c0_i32, %c0_i32_0 : i32, i32, i32
  }
  func.func @transform_1(%arg0: i32) -> (i32, i32) {
    %c0_i32 = arith.constant 0 : i32
    %c0_i32_0 = arith.constant 0 : i32
    %c0_i32_1 = arith.constant 0 : i32
    return %c0_i32, %c0_i32_0 : i32, i32
  }
  func.func @transform_2(%arg0: i32) -> (i32, i32) {
    %c0_i32 = arith.constant 0 : i32
    %c0_i32_0 = arith.constant 0 : i32
    %c0_i32_1 = arith.constant 0 : i32
    return %c0_i32, %c0_i32_0 : i32, i32
  }
  func.func @transform_3(%arg0: i32) -> (i32, i32) {
    %c0_i32 = arith.constant 0 : i32
    %c0_i32_0 = arith.constant 0 : i32
    %c0_i32_1 = arith.constant 0 : i32
    return %c0_i32, %c0_i32_0 : i32, i32
  }
  func.func @transform_4(%arg0: i32) -> (i32, i32) {
    %c0_i32 = arith.constant 0 : i32
    %c0_i32_0 = arith.constant 0 : i32
    %c0_i32_1 = arith.constant 0 : i32
    return %c0_i32, %c0_i32_0 : i32, i32
  }
  func.func @transform_5(%arg0: i32) -> (i32, i32) {
    %c0_i32 = arith.constant 0 : i32
    %c0_i32_0 = arith.constant 0 : i32
    %c0_i32_1 = arith.constant 0 : i32
    return %c0_i32, %c0_i32_0 : i32, i32
  }
  func.func @transform_6(%arg0: i32) -> (i32, i32, i32) {
    %c0_i32 = arith.constant 0 : i32
    %c0_i32_0 = arith.constant 0 : i32
    %c0_i32_1 = arith.constant 0 : i32
    return %arg0, %c0_i32, %c0_i32_0 : i32, i32, i32
  }
}

</mosaic_0001>

<bundles_post_ra>
// kernel: shuffle_attention_forward.1
= control target key start
LH: loop header
LB: loop body
LE: loop exit
PB: predicated region body
PF: predicated region fallthrough
CT: control target
= control target key end

     0   :  { %11 = vsyncpa [#allocation3], 0  ;;  %s15973_s0 = inlined_call_operand.hbm [shape: bf16[32,16,4], index: 0, kind: input, shape index: {}]   ;;  %s15974_s1 = inlined_call_operand.hbm [shape: bf16[4,4], index: 1, kind: input, shape index: {}]   ;;  %s15975_s2 = inlined_call_operand.hbm [shape: bf16[4,4], index: 2, kind: input, shape index: {}]   ;;  %s15976_s3 = inlined_call_operand.hbm [shape: bf16[4,4], index: 3, kind: input, shape index: {}]   ;;  %s15977_s4 = inlined_call_operand.hbm [shape: bf16[4,4], index: 4, kind: input, shape index: {}]   ;;  %s15978_s5 = inlined_call_operand.hbm [shape: f32[1,4], index: 5, kind: input, shape index: {}]   ;;  %s15979_s6 = inlined_call_operand.hbm [shape: f32[32,16,4], index: 6, kind: output, shape index: {}]  }
   0x1   :  { %12 = vsyncpa [#allocation6], 0 }
   0x2   :  { %13 = vsyncpa [#allocation9], 0 }
   0x3   :  { %14 = vsyncpa [#allocation12], 0 }
   0x4   :  { %15 = vsyncpa [#allocation4], 0  ;;  %s12783_s21 = smov [#allocation5]   ;;  %s12784_s23 = smov [#allocation8]  }
   0x5   :  { %s34_s22 = sshll.u32 %s12783_s21, 4  ;;  %s54_s24 = sshll.u32 %s12784_s23, 4  ;;  %s35_s22 = int_to_ptr.vmem [resolvable:$true] %s34_s22  ;;  %s55_s24 = int_to_ptr.vmem [resolvable:$true] %s54_s24 }
   0x6   :  { %s12619_s27 = scalar_lea.hbm %s15974_s1, 32 }
   0x7   :  { %p12620_p0 = scmp.ne.s32.totalorder %s15974_s1, %s12619_s27  ;;  %p12623_p1 = scmp.lt.u32.totalorder %s12619_s27, %s15974_s1 }
   0x9   :  { %p12625_p2 = pnand %p12623_p1, %p12620_p0 }
   0xb   :  { %12628 = shalt.err (!%p12625_p2)
}
   0xc   :  { %s12629_s8 = scalar_lea.vmem %s35_s22, 32  ;;  %p12634_p4 = scmp.lt.s32.totalorder %s35_s22, %s35_s22 }
   0xd   :  { %p12630_p3 = scmp.ne.s32.totalorder %s35_s22, %s12629_s8  ;;  %p12635_p5 = scmp.lt.s32.totalorder %s12629_s8, %s12629_s8 }
   0xf   :  { %p12636_p6 = por %p12635_p5, %p12634_p4 }
  0x11   :  { %p12637_p7 = pnand %p12636_p6, %p12630_p3 }
  0x13   :  { %12640 = shalt.err (!%p12637_p7)
}
  0x14   :  { %37 = dma.hbm_to_vmem [thread:$0]  %s15974_s1, 32, %s35_s22, [#allocation6]  }
  0x15   :  { %s12641_s13 = scalar_lea.hbm %s15976_s3, 32 }
  0x16   :  { %p12642_p8 = scmp.ne.s32.totalorder %s15976_s3, %s12641_s13  ;;  %p12645_p9 = scmp.lt.u32.totalorder %s12641_s13, %s15976_s3 }
  0x18   :  { %p12647_p10 = pnand %p12645_p9, %p12642_p8 }
  0x1a   :  { %12650 = shalt.err (!%p12647_p10)
}
  0x1b   :  { %s12651_s18 = scalar_lea.vmem %s55_s24, 32  ;;  %p12656_p12 = scmp.lt.s32.totalorder %s55_s24, %s55_s24 }
  0x1c   :  { %p12652_p11 = scmp.ne.s32.totalorder %s55_s24, %s12651_s18  ;;  %p12657_p13 = scmp.lt.s32.totalorder %s12651_s18, %s12651_s18 }
  0x1e   :  { %p12658_p0 = por %p12657_p13, %p12656_p12 }
  0x20   :  { %p12659_p1 = pnand %p12658_p0, %p12652_p11 }
  0x22   :  { %12662 = shalt.err (!%p12659_p1)
}
  0x23   :  { %57 = dma.hbm_to_vmem [thread:$0]  %s15976_s3, 32, %s55_s24, [#allocation9]  }
  0x24   :  { %s12785_s20 = smov [#allocation2]   ;;  %s12663_s25 = scalar_lea.hbm %s15973_s0, 4096 }
  0x25   :  { %s21_s21 = sshll.u32 %s12785_s20, 4  ;;  %p12664_p2 = scmp.ne.s32.totalorder %s15973_s0, %s12663_s25  ;;  %s22_s21 = int_to_ptr.vmem [resolvable:$true] %s21_s21 }
  0x26   :  { %p12667_p3 = scmp.lt.u32.totalorder %s12663_s25, %s15973_s0 }
  0x28   :  { %p12669_p4 = pnand %p12667_p3, %p12664_p2 }
  0x2a   :  { %12672 = shalt.err (!%p12669_p4)
}
  0x2b   :  { %s12673_s30 = scalar_lea.vmem %s22_s21, 4096  ;;  %p12678_p6 = scmp.lt.s32.totalorder %s22_s21, %s22_s21 }
  0x2c   :  { %p12674_p5 = scmp.ne.s32.totalorder %s22_s21, %s12673_s30  ;;  %p12679_p7 = scmp.lt.s32.totalorder %s12673_s30, %s12673_s30 }
  0x2e   :  { %p12680_p8 = por %p12679_p7, %p12678_p6 }
  0x30   :  { %p12681_p9 = pnand %p12680_p8, %p12674_p5 }
  0x32   :  { %12684 = shalt.err (!%p12681_p9)
}
  0x33   :  { %s12786_s3 = smov 64   ;;  %s12787_s24 = smov 4  }
  0x34   :  { %27 = dma.hbm_to_vmem [thread:$0]  %s15973_s0, 4096, %s22_s21, [#allocation3], %s12786_s3, %s12786_s3, %s12787_s24  }
  0x35   :  { %s12788_s9 = smov [#allocation7]   ;;  %s12789_s11 = smov [#allocation10]  }
  0x36   :  { %s44_s10 = sshll.u32 %s12788_s9, 4  ;;  %s64_s12 = sshll.u32 %s12789_s11, 4  ;;  %s45_s10 = int_to_ptr.vmem [resolvable:$true] %s44_s10  ;;  %s65_s12 = int_to_ptr.vmem [resolvable:$true] %s64_s12 }
  0x37   :  { %s12685_s15 = scalar_lea.hbm %s15975_s2, 32 }
  0x38   :  { %p12686_p10 = scmp.ne.s32.totalorder %s15975_s2, %s12685_s15  ;;  %p12689_p11 = scmp.lt.u32.totalorder %s12685_s15, %s15975_s2 }
  0x3a   :  { %p12691_p12 = pnand %p12689_p11, %p12686_p10 }
  0x3c   :  { %12694 = shalt.err (!%p12691_p12)
}
  0x3d   :  { %s12695_s0 = scalar_lea.vmem %s45_s10, 32  ;;  %p12700_p0 = scmp.lt.s32.totalorder %s45_s10, %s45_s10 }
  0x3e   :  { %p12696_p13 = scmp.ne.s32.totalorder %s45_s10, %s12695_s0  ;;  %p12701_p1 = scmp.lt.s32.totalorder %s12695_s0, %s12695_s0 }
  0x40   :  { %p12702_p2 = por %p12701_p1, %p12700_p0 }
  0x42   :  { %p12703_p3 = pnand %p12702_p2, %p12696_p13 }
  0x44   :  { %12706 = shalt.err (!%p12703_p3)
}
  0x45   :  { %47 = dma.hbm_to_vmem [thread:$0]  %s15975_s2, 32, %s45_s10, [#allocation6]  }
  0x46   :  { %s12707_s23 = scalar_lea.hbm %s15977_s4, 32 }
  0x47   :  { %p12708_p4 = scmp.ne.s32.totalorder %s15977_s4, %s12707_s23  ;;  %p12711_p5 = scmp.lt.u32.totalorder %s12707_s23, %s15977_s4 }
  0x49   :  { %p12713_p6 = pnand %p12711_p5, %p12708_p4 }
  0x4b   :  { %12716 = shalt.err (!%p12713_p6)
}
  0x4c   :  { %s12717_s29 = scalar_lea.vmem %s65_s12, 32  ;;  %p12722_p8 = scmp.lt.s32.totalorder %s65_s12, %s65_s12 }
  0x4d   :  { %p12718_p7 = scmp.ne.s32.totalorder %s65_s12, %s12717_s29  ;;  %p12723_p9 = scmp.lt.s32.totalorder %s12717_s29, %s12717_s29 }
  0x4f   :  { %p12724_p10 = por %p12723_p9, %p12722_p8 }
  0x51   :  { %p12725_p11 = pnand %p12724_p10, %p12718_p7 }
  0x53   :  { %12728 = shalt.err (!%p12725_p11)
}
  0x54   :  { %67 = dma.hbm_to_vmem [thread:$0]  %s15977_s4, 32, %s65_s12, [#allocation9]  }
  0x55   :  { %s12790_s3 = smov [#allocation11]   ;;  %s12729_s9 = scalar_lea.hbm %s15978_s5, 16 }
  0x56   :  { %s74_s24 = sshll.u32 %s12790_s3, 4  ;;  %p12730_p12 = scmp.ne.s32.totalorder %s15978_s5, %s12729_s9  ;;  %s75_s24 = int_to_ptr.vmem [resolvable:$true] %s74_s24 }
  0x57   :  { %p12733_p13 = scmp.lt.u32.totalorder %s12729_s9, %s15978_s5 }
  0x59   :  { %p12735_p0 = pnand %p12733_p13, %p12730_p12 }
  0x5b   :  { %12738 = shalt.err (!%p12735_p0)
}
  0x5c   :  { %s12739_s15 = scalar_lea.vmem %s75_s24, 16  ;;  %s12743_s4 = scalar_lea.vmem %s75_s24, 32 }
  0x5d   :  { %p12740_p1 = scmp.ne.s32.totalorder %s75_s24, %s12739_s15  ;;  %p12744_p2 = scmp.lt.s32.totalorder %s75_s24, %s75_s24 }
  0x5e   :  { %p12745_p3 = scmp.lt.s32.totalorder %s12743_s4, %s12739_s15 }
  0x60   :  { %p12746_p4 = por %p12745_p3, %p12744_p2 }
  0x62   :  { %p12747_p5 = pnand %p12746_p4, %p12740_p1 }
  0x64   :  { %12750 = shalt.err (!%p12747_p5)
}
  0x65   :  { %77 = dma.hbm_to_vmem [thread:$0]  %s15978_s5, 16, %s75_s24, [#allocation12]  }
  0x66   :  { %12773 = dma.done.wait [#allocation3], 4096  }
  0x67   :  { %12774 = vsyncadd [#allocation3], 4294963200 }
  0x68   :  { %12775 = dma.done.wait [#allocation6], 64  }
  0x69   :  { %12776 = vsyncadd [#allocation6], 4294967232 }
  0x6a   :  { %12777 = dma.done.wait [#allocation9], 64  }
  0x6b   :  { %12778 = vsyncadd [#allocation9], 4294967232 }
  0x6c   :  { %12779 = dma.done.wait [#allocation12], 16  }
  0x6d   :  { %12780 = vsyncadd [#allocation12], 4294967280  ;;  %vm419_vm0 = vcmask 1041408   ;;  %vm322_vm1 = vcmask 31744   ;;  %v161_v0 = vld [vmem:[#allocation5] sm:$0x3] }
  0x6e   :  { %12053 = vmatprep.subr.msk.bf16.mxu1 %vm419_vm0, %v161_v0  ;;  %v421_v1 = vsel %vm419_vm0, %v161_v0, 0  ;;  %v12906_v2 = vld [vmem:[#allocation2 + $0x80] sm:$0xff]   ;;  %12052 = vmatprep.subr.msk.bf16.mxu0 %vm419_vm0, %v161_v0  ;;  %v12909_v3 = vld [vmem:[#allocation2 + $0x88] sm:$0xff]   ;;  %v12913_v4 = vld [vmem:[#allocation2 + $0x90] sm:$0xff]   ;;  %v15980_v38 = vmov 0.0   ;;  %vm12792_vm2 = vmmov 0  }
  0x6f   :  { %11923 = vmatpush3.bf16.msra.mxu1 %v421_v1  ;;  %10825 = vmatpush3.bf16.msra.mxu0 %v421_v1  ;;  %v12919_v5 = vld [vmem:[#allocation2 + $0x98] sm:$0xff]   ;;  %v12921_v6 = vld [vmem:[#allocation2 + $0xa0] sm:$0xff]   ;;  %v12927_v7 = vld [vmem:[#allocation2 + $0xa8] sm:$0xff]   ;;  %vm1402_vm3 = vcmask 15360   ;;  %vm2907_vm4 = vcmask 130048   ;;  %s12793_s5 = smov 126  }
  0x70   :  { %10858 = vmatprep.mubr.msk.bf16.mxu1 %vm322_vm1, %v12906_v2  ;;  %v12929_v8 = vld [vmem:[#allocation2 + $0xb0] sm:$0xff]   ;;  %v744_v9 = vld [vmem:[#allocation7] sm:$0x3]  ;;  %v12933_v12 = vld [vmem:[#allocation2 + $0x8] sm:$0xff]   ;;  %vm5180_vm5 = vcmask 1040384   ;;  %s12794_s17 = smov [#allocation13]  }
  0x71   :  { %12054 = vmatprep.subr.msk.bf16.mxu1 %vm419_vm0, %v744_v9  ;;  %v746_v10 = vsel %vm419_vm0, %v744_v9, 0  ;;  %v12089_v11 = vld [vmem:[#allocation2] sm:$0xff]   ;;  %v12936_v13 = vld [vmem:[#allocation2 + $0x10] sm:$0xff]   ;;  %v12946_v14 = vld [vmem:[#allocation2 + $0xb8] sm:$0xff]   ;;  %s10067_s18 = sshll.u32 %s12794_s17, 4  ;;  %s10068_s18 = int_to_ptr.vmem [resolvable:$true] %s10067_s18 }
  0x72   :  { %10859 = vmatmul.mubr.msk.bf16.vlgmr.msra.gmra.mrb[0].mxu1 %vm322_vm1, %v12909_v3  ;;  %10826 = vmatprep.mubr.msk.bf16.mxu0 %vm322_vm1, %v12089_v11  ;;  %v12948_v15 = vld [vmem:[#allocation2 + $0xc0] sm:$0xff]   ;;  %v12092_v16 = vld [vmem:[#allocation2 + $0x18] sm:$0xff]   ;;  %v12956_v18 = vld [vmem:[#allocation2 + $0xc8] sm:$0xff]   ;;  %s12751_s1 = scalar_lea.vmem %s10068_s18, 8192  ;;  %p12756_p7 = scmp.lt.s32.totalorder %s10068_s18, %s10068_s18 }
  0x73   :  { %10862 = vmatprep.mubr.msk.bf16.mxu1 %vm322_vm1, %v12913_v4  ;;  %10891 = vmatpush3.bf16.msra.mxu1 %v746_v10  ;;  %v12093_v17 = vld [vmem:[#allocation2 + $0x20] sm:$0xff]   ;;  %v12958_v19 = vld [vmem:[#allocation2 + $0xd0] sm:$0xff]   ;;  %v12094_v20 = vld [vmem:[#allocation2 + $0x28] sm:$0xff]   ;;  %p12752_p6 = scmp.ne.s32.totalorder %s10068_s18, %s12751_s1  ;;  %p12757_p8 = scmp.lt.s32.totalorder %s12751_s1, %s12751_s1 }
  0x74   :  { %10827 = vmatmul.mubr.msk.bf16.vlgmr.msra.gmra.mrb[0].mxu0 %vm322_vm1, %v12933_v12  ;;  %v12095_v21 = vld [vmem:[#allocation2 + $0x30] sm:$0xff]   ;;  %v12966_v22 = vld [vmem:[#allocation2 + $0xd8] sm:$0xff]   ;;  %v12968_v23 = vld [vmem:[#allocation2 + $0xe0] sm:$0xff]   ;;  %11022 = vmatprep.subr.bf16.mxu1 %v15980_v38 }
  0x75   :  { %10830 = vmatprep.mubr.msk.bf16.mxu0 %vm322_vm1, %v12936_v13  ;;  %v12096_v24 = vld [vmem:[#allocation2 + $0x38] sm:$0xff]   ;;  %v12097_v25 = vld [vmem:[#allocation2 + $0x40] sm:$0xff]   ;;  %v12976_v26 = vld [vmem:[#allocation2 + $0xe8] sm:$0xff]   ;;  %p12758_p9 = por %p12757_p8, %p12756_p7 }
  0x76   :  { %v12978_v27 = vld [vmem:[#allocation2 + $0xf0] sm:$0xff]   ;;  %v12098_v28 = vld [vmem:[#allocation2 + $0x48] sm:$0xff]   ;;  %v12986_v30 = vld [vmem:[#allocation2 + $0xf8] sm:$0xff]  }
  0x77   :  { %v12099_v29 = vld [vmem:[#allocation2 + $0x50] sm:$0xff]   ;;  %v12100_v31 = vld [vmem:[#allocation2 + $0x58] sm:$0xff]   ;;  %v12101_v32 = vld [vmem:[#allocation2 + $0x60] sm:$0xff]   ;;  %p12759_p10 = pnand %p12758_p9, %p12752_p6 }
  0x78   :  { %v12102_v33 = vld [vmem:[#allocation2 + $0x68] sm:$0xff]   ;;  %v12103_v34 = vld [vmem:[#allocation2 + $0x70] sm:$0xff]   ;;  %v12104_v35 = vld [vmem:[#allocation2 + $0x78] sm:$0xff]  }
  0x79   :  { %v1069_v36 = vld [vmem:[#allocation8] sm:$0x3] }
  0x7a   :  { %10863 = vmatmul.mubr.msk.bf16.gmra.mrb[4].mxu1 %vm322_vm1, %v12919_v5  ;;  %12055 = vmatprep.subr.msk.bf16.mxu0 %vm419_vm0, %v1069_v36  ;;  %v1071_v37 = vsel %vm419_vm0, %v1069_v36, 0 }
  0x7b   :  { %10866 = vmatprep.mubr.msk.bf16.mxu1 %vm322_vm1, %v12921_v6  ;;  %10957 = vmatpush3.bf16.msra.mxu0 %v1071_v37 }
  0x7c   :  { %10831 = vmatmul.mubr.msk.bf16.gmra.mrb[4].mxu0 %vm322_vm1, %v12092_v16  ;;  %11118 = vmatprep.subr.bf16.mxu0 %v15980_v38 }
  0x7d   :  { %10834 = vmatprep.mubr.msk.bf16.mxu0 %vm322_vm1, %v12093_v17 }
  0x82   :  { %10867 = vmatmul.mubr.msk.bf16.gmra.mrb[8].mxu1 %vm322_vm1, %v12927_v7 }
  0x83   :  { %10870 = vmatprep.mubr.msk.bf16.mxu1 %vm322_vm1, %v12929_v8 }
  0x84   :  { %10835 = vmatmul.mubr.msk.bf16.gmra.mrb[8].mxu0 %vm322_vm1, %v12094_v20 }
  0x85   :  { %10838 = vmatprep.mubr.msk.bf16.mxu0 %vm322_vm1, %v12095_v21 }
  0x8a   :  { %10871 = vmatmul.mubr.msk.bf16.gmra.mrb[12].mxu1 %vm322_vm1, %v12946_v14 }
  0x8b   :  { %10874 = vmatprep.mubr.msk.bf16.mxu1 %vm322_vm1, %v12948_v15 }
  0x8c   :  { %10839 = vmatmul.mubr.msk.bf16.gmra.mrb[12].mxu0 %vm322_vm1, %v12096_v24 }
  0x8d   :  { %10842 = vmatprep.mubr.msk.bf16.mxu0 %vm322_vm1, %v12097_v25 }
  0x92   :  { %10875 = vmatmul.mubr.msk.bf16.gmra.mrb[16].mxu1 %vm322_vm1, %v12956_v18 }
  0x93   :  { %10878 = vmatprep.mubr.msk.bf16.mxu1 %vm322_vm1, %v12958_v19 }
  0x94   :  { %10843 = vmatmul.mubr.msk.bf16.gmra.mrb[16].mxu0 %vm322_vm1, %v12098_v28 }
  0x95   :  { %10846 = vmatprep.mubr.msk.bf16.mxu0 %vm322_vm1, %v12099_v29 }
  0x9a   :  { %10879 = vmatmul.mubr.msk.bf16.gmra.mrb[20].mxu1 %vm322_vm1, %v12966_v22 }
  0x9b   :  { %10882 = vmatprep.mubr.msk.bf16.mxu1 %vm322_vm1, %v12968_v23 }
  0x9c   :  { %10847 = vmatmul.mubr.msk.bf16.gmra.mrb[20].mxu0 %vm322_vm1, %v12100_v31 }
  0x9d   :  { %10850 = vmatprep.mubr.msk.bf16.mxu0 %vm322_vm1, %v12101_v32 }
  0xa2   :  { %10883 = vmatmul.mubr.msk.bf16.gmra.mrb[24].mxu1 %vm322_vm1, %v12976_v26 }
  0xa3   :  { %10886 = vmatprep.mubr.msk.bf16.mxu1 %vm322_vm1, %v12978_v27 }
  0xa4   :  { %10851 = vmatmul.mubr.msk.bf16.gmra.mrb[24].mxu0 %vm322_vm1, %v12102_v33 }
  0xa5   :  { %10854 = vmatprep.mubr.msk.bf16.mxu0 %vm322_vm1, %v12103_v34 }
  0xaa   :  { %10887 = vmatmul.mubr.msk.bf16.gmra.mrb[28].mxu1 %vm322_vm1, %v12986_v30 }
  0xab   :  { %10892 = vmatprep.mubr.msk.bf16.mxu1 %vm322_vm1, %v12089_v11 }
  0xac   :  { %10855 = vmatmul.mubr.msk.bf16.gmra.mrb[28].mxu0 %vm322_vm1, %v12104_v35 }
  0xad   :  { %10958 = vmatprep.mubr.msk.bf16.mxu0 %vm322_vm1, %v12089_v11 }
  0xb2   :  { %10893 = vmatmul.mubr.msk.bf16.vlgmr.msra.gmra.mrb[32].mxu1 %vm322_vm1, %v12933_v12 }
  0xb3   :  { %10896 = vmatprep.mubr.msk.bf16.mxu1 %vm322_vm1, %v12936_v13 }
  0xb4   :  { %10959 = vmatmul.mubr.msk.bf16.vlgmr.msra.gmra.mrb[32].mxu0 %vm322_vm1, %v12933_v12 }
  0xb5   :  { %10962 = vmatprep.mubr.msk.bf16.mxu0 %vm322_vm1, %v12936_v13 }
  0xba   :  { %10897 = vmatmul.mubr.msk.bf16.gmra.mrb[36].mxu1 %vm322_vm1, %v12092_v16 }
  0xbb   :  { %10900 = vmatprep.mubr.msk.bf16.mxu1 %vm322_vm1, %v12093_v17 }
  0xbc   :  { %10963 = vmatmul.mubr.msk.bf16.gmra.mrb[36].mxu0 %vm322_vm1, %v12092_v16 }
  0xbd   :  { %10966 = vmatprep.mubr.msk.bf16.mxu0 %vm322_vm1, %v12093_v17 }
  0xc2   :  { %10901 = vmatmul.mubr.msk.bf16.gmra.mrb[40].mxu1 %vm322_vm1, %v12094_v20 }
  0xc3   :  { %10904 = vmatprep.mubr.msk.bf16.mxu1 %vm322_vm1, %v12095_v21 }
  0xc4   :  { %10967 = vmatmul.mubr.msk.bf16.gmra.mrb[40].mxu0 %vm322_vm1, %v12094_v20 }
  0xc5   :  { %10970 = vmatprep.mubr.msk.bf16.mxu0 %vm322_vm1, %v12095_v21 }
  0xca   :  { %10905 = vmatmul.mubr.msk.bf16.gmra.mrb[44].mxu1 %vm322_vm1, %v12096_v24 }
  0xcb   :  { %10908 = vmatprep.mubr.msk.bf16.mxu1 %vm322_vm1, %v12097_v25 }
  0xcc   :  { %10971 = vmatmul.mubr.msk.bf16.gmra.mrb[44].mxu0 %vm322_vm1, %v12096_v24 }
  0xcd   :  { %10974 = vmatprep.mubr.msk.bf16.mxu0 %vm322_vm1, %v12097_v25 }
  0xd2   :  { %10909 = vmatmul.mubr.msk.bf16.gmra.mrb[48].mxu1 %vm322_vm1, %v12098_v28 }
  0xd3   :  { %10912 = vmatprep.mubr.msk.bf16.mxu1 %vm322_vm1, %v12099_v29 }
  0xd4   :  { %10975 = vmatmul.mubr.msk.bf16.gmra.mrb[48].mxu0 %vm322_vm1, %v12098_v28 }
  0xd5   :  { %10978 = vmatprep.mubr.msk.bf16.mxu0 %vm322_vm1, %v12099_v29 }
  0xda   :  { %10913 = vmatmul.mubr.msk.bf16.gmra.mrb[52].mxu1 %vm322_vm1, %v12100_v31 }
  0xdb   :  { %10916 = vmatprep.mubr.msk.bf16.mxu1 %vm322_vm1, %v12101_v32 }
  0xdc   :  { %10979 = vmatmul.mubr.msk.bf16.gmra.mrb[52].mxu0 %vm322_vm1, %v12100_v31 }
  0xdd   :  { %10982 = vmatprep.mubr.msk.bf16.mxu0 %vm322_vm1, %v12101_v32 }
  0xe2   :  { %10917 = vmatmul.mubr.msk.bf16.gmra.mrb[56].mxu1 %vm322_vm1, %v12102_v33 }
  0xe3   :  { %10920 = vmatprep.mubr.msk.bf16.mxu1 %vm322_vm1, %v12103_v34 }
  0xe4   :  { %10983 = vmatmul.mubr.msk.bf16.gmra.mrb[56].mxu0 %vm322_vm1, %v12102_v33 }
  0xe5   :  { %10986 = vmatprep.mubr.msk.bf16.mxu0 %vm322_vm1, %v12103_v34 }
  0xea   :  { %10921 = vmatmul.mubr.msk.bf16.gmra.mrb[60].mxu1 %vm322_vm1, %v12104_v35 }
  0xeb   :  { %10924 = vmatprep.mubr.msk.bf16.mxu1 %vm322_vm1, %v12906_v2 }
  0xec   :  { %10987 = vmatmul.mubr.msk.bf16.gmra.mrb[60].mxu0 %vm322_vm1, %v12104_v35 }
  0xed   :  { %10990 = vmatprep.mubr.msk.bf16.mxu0 %vm322_vm1, %v12906_v2 }
  0xf2   :  { %10925 = vmatmul.mubr.msk.bf16.gmra.mrb[64].mxu1 %vm322_vm1, %v12909_v3 }
  0xf3   :  { %10928 = vmatprep.mubr.msk.bf16.mxu1 %vm322_vm1, %v12913_v4 }
  0xf4   :  { %10991 = vmatmul.mubr.msk.bf16.gmra.mrb[64].mxu0 %vm322_vm1, %v12909_v3 }
  0xf5   :  { %10994 = vmatprep.mubr.msk.bf16.mxu0 %vm322_vm1, %v12913_v4 }
  0xfa   :  { %10929 = vmatmul.mubr.msk.bf16.gmra.mrb[68].mxu1 %vm322_vm1, %v12919_v5 }
  0xfb   :  { %10932 = vmatprep.mubr.msk.bf16.mxu1 %vm322_vm1, %v12921_v6 }
  0xfc   :  { %10995 = vmatmul.mubr.msk.bf16.gmra.mrb[68].mxu0 %vm322_vm1, %v12919_v5 }
  0xfd   :  { %10998 = vmatprep.mubr.msk.bf16.mxu0 %vm322_vm1, %v12921_v6 }
 0x102   :  { %10933 = vmatmul.mubr.msk.bf16.gmra.mrb[72].mxu1 %vm322_vm1, %v12927_v7 }
 0x103   :  { %10936 = vmatprep.mubr.msk.bf16.mxu1 %vm322_vm1, %v12929_v8 }
 0x104   :  { %10999 = vmatmul.mubr.msk.bf16.gmra.mrb[72].mxu0 %vm322_vm1, %v12927_v7 }
 0x105   :  { %11002 = vmatprep.mubr.msk.bf16.mxu0 %vm322_vm1, %v12929_v8 }
 0x10a   :  { %10937 = vmatmul.mubr.msk.bf16.gmra.mrb[76].mxu1 %vm322_vm1, %v12946_v14 }
 0x10b   :  { %10940 = vmatprep.mubr.msk.bf16.mxu1 %vm322_vm1, %v12948_v15 }
 0x10c   :  { %11003 = vmatmul.mubr.msk.bf16.gmra.mrb[76].mxu0 %vm322_vm1, %v12946_v14 }
 0x10d   :  { %11006 = vmatprep.mubr.msk.bf16.mxu0 %vm322_vm1, %v12948_v15 }
 0x112   :  { %10941 = vmatmul.mubr.msk.bf16.gmra.mrb[80].mxu1 %vm322_vm1, %v12956_v18 }
 0x113   :  { %10944 = vmatprep.mubr.msk.bf16.mxu1 %vm322_vm1, %v12958_v19 }
 0x114   :  { %11007 = vmatmul.mubr.msk.bf16.gmra.mrb[80].mxu0 %vm322_vm1, %v12956_v18 }
 0x115   :  { %11010 = vmatprep.mubr.msk.bf16.mxu0 %vm322_vm1, %v12958_v19 }
 0x11a   :  { %10945 = vmatmul.mubr.msk.bf16.gmra.mrb[84].mxu1 %vm322_vm1, %v12966_v22 }
 0x11b   :  { %10948 = vmatprep.mubr.msk.bf16.mxu1 %vm322_vm1, %v12968_v23 }
 0x11c   :  { %11011 = vmatmul.mubr.msk.bf16.gmra.mrb[84].mxu0 %vm322_vm1, %v12966_v22 }
 0x11d   :  { %11014 = vmatprep.mubr.msk.bf16.mxu0 %vm322_vm1, %v12968_v23 }
 0x122   :  { %10949 = vmatmul.mubr.msk.bf16.gmra.mrb[88].mxu1 %vm322_vm1, %v12976_v26 }
 0x123   :  { %10952 = vmatprep.mubr.msk.bf16.mxu1 %vm322_vm1, %v12978_v27 }
 0x124   :  { %11015 = vmatmul.mubr.msk.bf16.gmra.mrb[88].mxu0 %vm322_vm1, %v12976_v26 }
 0x125   :  { %11018 = vmatprep.mubr.msk.bf16.mxu0 %vm322_vm1, %v12978_v27 }
 0x12a   :  { %10953 = vmatmul.mubr.msk.bf16.gmra.mrb[92].mxu1 %vm322_vm1, %v12986_v30 }
 0x12b   :  { %11024 = vmatprep.mubr.msk.bf16.mxu1 %vm12792_vm2, %v15980_v38 }
 0x12c   :  { %11019 = vmatmul.mubr.msk.bf16.gmra.mrb[92].mxu0 %vm322_vm1, %v12986_v30 }
 0x12d   :  { %11120 = vmatprep.mubr.msk.bf16.mxu0 %vm12792_vm2, %v15980_v38 }
 0x145   :  { %v10860_v39 = vpop.f32.mrb[0].mxu1 }
 0x146   :  { %v585_v40 = vpop.f32.mrb[1].mxu1 }
 0x147   :  { %v10861_v41 = vpop.f32.mrb[2].mxu1  ;;  %v10828_v51 = vpop.f32.mrb[0].mxu0 }
 0x148   :  { %v13099_v42 = vpack.c.bf16 %v10861_v41, %v10860_v39  ;;  %v588_v43 = vpop.f32.mrb[3].mxu1  ;;  %v457_v53 = vpop.f32.mrb[1].mxu0 }
 0x149   :  { %v13101_v44 = vpack.c.bf16 %v588_v43, %v585_v40  ;;  %v10829_v55 = vpop.f32.mrb[2].mxu0 }
 0x14a   :  { %16121 = vst [vmem:[#allocation19_spill] sm:$0xff] %v13099_v42  ;;  %v13111_v57 = vpack.c.bf16 %v10829_v55, %v10828_v51  ;;  %v460_v58 = vpop.f32.mrb[3].mxu0 }
 0x14b   :  { %16122 = vst [vmem:[#allocation20_spill] sm:$0xff] %v13101_v44  ;;  %v13115_v61 = vpack.c.bf16 %v460_v58, %v457_v53 }
 0x14c   :  { %16125 = vst [vmem:[#allocation23_spill] sm:$0xff] %v13111_v57 }
 0x14d   :  { %v10864_v45 = vpop.f32.mrb[4].mxu1  ;;  %16127 = vst [vmem:[#allocation25_spill] sm:$0xff] %v13115_v61 }
 0x14e   :  { %v601_v46 = vpop.f32.mrb[5].mxu1 }
 0x14f   :  { %v10865_v47 = vpop.f32.mrb[6].mxu1  ;;  %v10832_v63 = vpop.f32.mrb[4].mxu0 }
 0x150   :  { %v13107_v48 = vpack.c.bf16 %v10865_v47, %v10864_v45  ;;  %v604_v49 = vpop.f32.mrb[7].mxu1  ;;  %v473_v1 = vpop.f32.mrb[5].mxu0 }
 0x151   :  { %v13109_v50 = vpack.c.bf16 %v604_v49, %v601_v46  ;;  %v10833_v3 = vpop.f32.mrb[6].mxu0 }
 0x152   :  { %16123 = vst [vmem:[#allocation21_spill] sm:$0xff] %v13107_v48  ;;  %v13119_v5 = vpack.c.bf16 %v10833_v3, %v10832_v63  ;;  %v476_v6 = vpop.f32.mrb[7].mxu0 }
 0x153   :  { %16124 = vst [vmem:[#allocation22_spill] sm:$0xff] %v13109_v50  ;;  %v13123_v9 = vpack.c.bf16 %v476_v6, %v473_v1 }
 0x154   :  { %16129 = vst [vmem:[#allocation27_spill] sm:$0xff] %v13119_v5 }
 0x155   :  { %v10868_v52 = vpop.f32.mrb[8].mxu1  ;;  %16131 = vst [vmem:[#allocation29_spill] sm:$0xff] %v13123_v9 }
 0x156   :  { %v617_v54 = vpop.f32.mrb[9].mxu1 }
 0x157   :  { %v10869_v56 = vpop.f32.mrb[10].mxu1  ;;  %v10836_v11 = vpop.f32.mrb[8].mxu0 }
 0x158   :  { %v13113_v59 = vpack.c.bf16 %v10869_v56, %v10868_v52  ;;  %v620_v60 = vpop.f32.mrb[11].mxu1  ;;  %v489_v13 = vpop.f32.mrb[9].mxu0 }
 0x159   :  { %v13117_v62 = vpack.c.bf16 %v620_v60, %v617_v54  ;;  %v10837_v15 = vpop.f32.mrb[10].mxu0 }
 0x15a   :  { %16126 = vst [vmem:[#allocation24_spill] sm:$0xff] %v13113_v59  ;;  %v13127_v17 = vpack.c.bf16 %v10837_v15, %v10836_v11  ;;  %v492_v18 = vpop.f32.mrb[11].mxu0 }
 0x15b   :  { %16128 = vst [vmem:[#allocation26_spill] sm:$0xff] %v13117_v62  ;;  %v13131_v21 = vpack.c.bf16 %v492_v18, %v489_v13 }
 0x15c   :  { %16133 = vst [vmem:[#allocation31_spill] sm:$0xff] %v13127_v17 }
 0x15d   :  { %v10872_v0 = vpop.f32.mrb[12].mxu1  ;;  %16135 = vst [vmem:[#allocation33_spill] sm:$0xff] %v13131_v21 }
 0x15e   :  { %v633_v2 = vpop.f32.mrb[13].mxu1 }
 0x15f   :  { %v10873_v4 = vpop.f32.mrb[14].mxu1  ;;  %v10840_v23 = vpop.f32.mrb[12].mxu0 }
 0x160   :  { %v13121_v7 = vpack.c.bf16 %v10873_v4, %v10872_v0  ;;  %v636_v8 = vpop.f32.mrb[15].mxu1  ;;  %v505_v25 = vpop.f32.mrb[13].mxu0 }
 0x161   :  { %v13125_v10 = vpack.c.bf16 %v636_v8, %v633_v2  ;;  %v10841_v27 = vpop.f32.mrb[14].mxu0 }
 0x162   :  { %16130 = vst [vmem:[#allocation28_spill] sm:$0xff] %v13121_v7  ;;  %v13135_v29 = vpack.c.bf16 %v10841_v27, %v10840_v23  ;;  %v508_v30 = vpop.f32.mrb[15].mxu0 }
 0x163   :  { %16132 = vst [vmem:[#allocation30_spill] sm:$0xff] %v13125_v10  ;;  %v13139_v33 = vpack.c.bf16 %v508_v30, %v505_v25 }
 0x164   :  { %16137 = vst [vmem:[#allocation35_spill] sm:$0xff] %v13135_v29 }
 0x165   :  { %v10876_v12 = vpop.f32.mrb[16].mxu1  ;;  %16139 = vst [vmem:[#allocation37_spill] sm:$0xff] %v13139_v33 }
 0x166   :  { %v649_v14 = vpop.f32.mrb[17].mxu1 }
 0x167   :  { %v10877_v16 = vpop.f32.mrb[18].mxu1  ;;  %v10844_v35 = vpop.f32.mrb[16].mxu0 }
 0x168   :  { %v13129_v19 = vpack.c.bf16 %v10877_v16, %v10876_v12  ;;  %v652_v20 = vpop.f32.mrb[19].mxu1  ;;  %v521_v37 = vpop.f32.mrb[17].mxu0 }
 0x169   :  { %v13133_v22 = vpack.c.bf16 %v652_v20, %v649_v14  ;;  %v10845_v40 = vpop.f32.mrb[18].mxu0 }
 0x16a   :  { %16134 = vst [vmem:[#allocation32_spill] sm:$0xff] %v13129_v19  ;;  %v13143_v43 = vpack.c.bf16 %v10845_v40, %v10844_v35  ;;  %v524_v45 = vpop.f32.mrb[19].mxu0 }
 0x16b   :  { %16136 = vst [vmem:[#allocation34_spill] sm:$0xff] %v13133_v22  ;;  %v13147_v49 = vpack.c.bf16 %v524_v45, %v521_v37 }
 0x16c   :  { %16141 = vst [vmem:[#allocation39_spill] sm:$0xff] %v13143_v43 }
 0x16d   :  { %v10880_v24 = vpop.f32.mrb[20].mxu1  ;;  %16143 = vst [vmem:[#allocation41_spill] sm:$0xff] %v13147_v49 }
 0x16e   :  { %v665_v26 = vpop.f32.mrb[21].mxu1 }
 0x16f   :  { %v10881_v28 = vpop.f32.mrb[22].mxu1  ;;  %v10848_v52 = vpop.f32.mrb[20].mxu0 }
 0x170   :  { %v13137_v31 = vpack.c.bf16 %v10881_v28, %v10880_v24  ;;  %v668_v32 = vpop.f32.mrb[23].mxu1  ;;  %v537_v54 = vpop.f32.mrb[21].mxu0 }
 0x171   :  { %v13141_v34 = vpack.c.bf16 %v668_v32, %v665_v26  ;;  %v10849_v56 = vpop.f32.mrb[22].mxu0 }
 0x172   :  { %16138 = vst [vmem:[#allocation36_spill] sm:$0xff] %v13137_v31  ;;  %v13151_v60 = vpack.c.bf16 %v10849_v56, %v10848_v52  ;;  %v540_v63 = vpop.f32.mrb[23].mxu0 }
 0x173   :  { %16140 = vst [vmem:[#allocation38_spill] sm:$0xff] %v13141_v34  ;;  %v13155_v2 = vpack.c.bf16 %v540_v63, %v537_v54 }
 0x174   :  { %16145 = vst [vmem:[#allocation43_spill] sm:$0xff] %v13151_v60 }
 0x175   :  { %v10884_v36 = vpop.f32.mrb[24].mxu1  ;;  %16147 = vst [vmem:[#allocation45_spill] sm:$0xff] %v13155_v2 }
 0x176   :  { %v681_v39 = vpop.f32.mrb[25].mxu1 }
 0x177   :  { %v10885_v41 = vpop.f32.mrb[26].mxu1  ;;  %v10852_v4 = vpop.f32.mrb[24].mxu0 }
 0x178   :  { %v13145_v46 = vpack.c.bf16 %v10885_v41, %v10884_v36  ;;  %v684_v47 = vpop.f32.mrb[27].mxu1  ;;  %v553_v8 = vpop.f32.mrb[25].mxu0 }
 0x179   :  { %v13149_v51 = vpack.c.bf16 %v684_v47, %v681_v39  ;;  %v10853_v12 = vpop.f32.mrb[26].mxu0 }
 0x17a   :  { %16142 = vst [vmem:[#allocation40_spill] sm:$0xff] %v13145_v46  ;;  %v13159_v14 = vpack.c.bf16 %v10853_v12, %v10852_v4  ;;  %v556_v15 = vpop.f32.mrb[27].mxu0 }
 0x17b   :  { %16144 = vst [vmem:[#allocation42_spill] sm:$0xff] %v13149_v51  ;;  %v13163_v20 = vpack.c.bf16 %v556_v15, %v553_v8 }
 0x17c   :  { %16149 = vst [vmem:[#allocation47_spill] sm:$0xff] %v13159_v14 }
 0x17d   :  { %v10888_v53 = vpop.f32.mrb[28].mxu1  ;;  %16151 = vst [vmem:[#allocation49_spill] sm:$0xff] %v13163_v20 }
 0x17e   :  { %v697_v55 = vpop.f32.mrb[29].mxu1 }
 0x17f   :  { %v10889_v58 = vpop.f32.mrb[30].mxu1  ;;  %v10856_v25 = vpop.f32.mrb[28].mxu0 }
 0x180   :  { %v13153_v0 = vpack.c.bf16 %v10889_v58, %v10888_v53  ;;  %v700_v1 = vpop.f32.mrb[31].mxu1  ;;  %v569_v27 = vpop.f32.mrb[29].mxu0 }
 0x181   :  { %v13157_v3 = vpack.c.bf16 %v700_v1, %v697_v55  ;;  %v10857_v30 = vpop.f32.mrb[30].mxu0 }
 0x182   :  { %16146 = vst [vmem:[#allocation44_spill] sm:$0xff] %v13153_v0  ;;  %v13170_v35 = vpack.c.bf16 %v10857_v30, %v10856_v25  ;;  %v572_v36 = vpop.f32.mrb[31].mxu0 }
 0x183   :  { %16148 = vst [vmem:[#allocation46_spill] sm:$0xff] %v13157_v3  ;;  %v13174_v40 = vpack.c.bf16 %v572_v36, %v569_v27 }
 0x184   :  { %16153 = vst [vmem:[#allocation51_spill] sm:$0xff] %v13170_v35 }
 0x185   :  { %v10894_v6 = vpop.f32.mrb[32].mxu1  ;;  %16155 = vst [vmem:[#allocation53_spill] sm:$0xff] %v13174_v40 }
 0x186   :  { %v782_v11 = vpop.f32.mrb[33].mxu1 }
 0x187   :  { %v10895_v13 = vpop.f32.mrb[34].mxu1 }
 0x188   :  { %v13161_v16 = vpack.c.bf16 %v10895_v13, %v10894_v6  ;;  %v785_v18 = vpop.f32.mrb[35].mxu1 }
 0x189   :  { %v13165_v23 = vpack.c.bf16 %v785_v18, %v782_v11 }
 0x18a   :  { %16150 = vst [vmem:[#allocation48_spill] sm:$0xff] %v13161_v16  ;;  %v1454_v45 = vsel %vm1402_vm3, %v13161_v16, 0 }
 0x18b   :  { %16152 = vst [vmem:[#allocation50_spill] sm:$0xff] %v13165_v23  ;;  %v1407_v24 = vsel %vm1402_vm3, %v13165_v23, 0 }
 0x18c   :  { %11023 = vmatpush3.bf16.xpose.msra.mxu1 %v1407_v24 }
 0x18d   :  { %v10898_v26 = vpop.f32.mrb[36].mxu1  ;;  %11028 = vmatprep.subr.bf16.mxu1 %v15980_v38 }
 0x18e   :  { %v798_v28 = vpop.f32.mrb[37].mxu1 }
 0x18f   :  { %v10899_v32 = vpop.f32.mrb[38].mxu1 }
 0x190   :  { %v13172_v37 = vpack.c.bf16 %v10899_v32, %v10898_v26  ;;  %v801_v39 = vpop.f32.mrb[39].mxu1 }
 0x191   :  { %v13176_v41 = vpack.c.bf16 %v801_v39, %v798_v28  ;;  %v10960_v28 = vpop.f32.mrb[32].mxu0 }
 0x192   :  { %16154 = vst [vmem:[#allocation52_spill] sm:$0xff] %v13172_v37  ;;  %v1548_v12 = vsel %vm1402_vm3, %v13172_v37, 0  ;;  %v1107_v30 = vpop.f32.mrb[33].mxu0 }
 0x193   :  { %16156 = vst [vmem:[#allocation54_spill] sm:$0xff] %v13176_v41  ;;  %11025 = vmatmul.mubr.msk.bf16.vlgmr.msra.gmra.mrb[96].mxu1 %vm1402_vm3, %v13115_v61  ;;  %v1501_v58 = vsel %vm1402_vm3, %v13176_v41, 0  ;;  %v10961_v36 = vpop.f32.mrb[34].mxu0 }
 0x194   :  { %11029 = vmatpush3.bf16.xpose.msra.mxu1 %v1454_v45  ;;  %11030 = vmatprep.mubr.msk.bf16.mxu1 %vm12792_vm2, %v15980_v38  ;;  %v1110_v45 = vpop.f32.mrb[35].mxu0 }
 0x195   :  { %v10902_v47 = vpop.f32.mrb[40].mxu1  ;;  %11034 = vmatprep.subr.bf16.mxu1 %v15980_v38 }
 0x196   :  { %v814_v52 = vpop.f32.mrb[41].mxu1 }
 0x197   :  { %v10903_v53 = vpop.f32.mrb[42].mxu1 }
 0x198   :  { %v13185_v54 = vpack.c.bf16 %v10903_v53, %v10902_v47  ;;  %v817_v55 = vpop.f32.mrb[43].mxu1  ;;  %v13220_v53 = vpack.c.bf16 %v1110_v45, %v1107_v30 }
 0x199   :  { %v13187_v56 = vpack.c.bf16 %v817_v55, %v814_v52  ;;  %v13218_v52 = vpack.c.bf16 %v10961_v36, %v10960_v28 }
 0x19a   :  { %16157 = vst [vmem:[#allocation55_spill] sm:$0xff] %v13185_v54  ;;  %16164 = vst [vmem:[#allocation62_spill] sm:$0xff] %v13220_v53 }
 0x19b   :  { %16158 = vst [vmem:[#allocation56_spill] sm:$0xff] %v13187_v56  ;;  %11031 = vmatmul.mubr.msk.bf16.vlgmr.msra.gmra.mrb[100].mxu1 %vm1402_vm3, %v13111_v57  ;;  %v1595_v27 = vsel %vm1402_vm3, %v13187_v56, 0  ;;  %16163 = vst [vmem:[#allocation61_spill] sm:$0xff] %v13218_v52 }
 0x19c   :  { %11035 = vmatpush3.bf16.xpose.msra.mxu1 %v1501_v58  ;;  %11036 = vmatprep.mubr.msk.bf16.mxu1 %vm12792_vm2, %v15980_v38 }
 0x19d   :  { %v10906_v63 = vpop.f32.mrb[44].mxu1  ;;  %11040 = vmatprep.subr.bf16.mxu1 %v15980_v38 }
 0x19e   :  { %v830_v1 = vpop.f32.mrb[45].mxu1 }
 0x19f   :  { %v10907_v4 = vpop.f32.mrb[46].mxu1 }
 0x1a0   :  { %v13196_v6 = vpack.c.bf16 %v10907_v4, %v10906_v63  ;;  %v833_v8 = vpop.f32.mrb[47].mxu1  ;;  %v10964_v4 = vpop.f32.mrb[36].mxu0 }
 0x1a1   :  { %v13198_v11 = vpack.c.bf16 %v833_v8, %v830_v1  ;;  %v1642_v1 = vsel %vm1402_vm3, %v13185_v54, 0  ;;  %v1123_v8 = vpop.f32.mrb[37].mxu0 }
 0x1a2   :  { %16159 = vst [vmem:[#allocation57_spill] sm:$0xff] %v13196_v6 }
 0x1a3   :  { %16160 = vst [vmem:[#allocation58_spill] sm:$0xff] %v13198_v11  ;;  %11037 = vmatmul.mubr.msk.bf16.vlgmr.msra.gmra.mrb[104].mxu1 %vm1402_vm3, %v13123_v9 }
 0x1a4   :  { %11041 = vmatpush3.bf16.xpose.msra.mxu1 %v1548_v12  ;;  %11042 = vmatprep.mubr.msk.bf16.mxu1 %vm12792_vm2, %v15980_v38 }
 0x1a5   :  { %v10910_v13 = vpop.f32.mrb[48].mxu1  ;;  %11046 = vmatprep.subr.bf16.mxu1 %v15980_v38 }
 0x1a6   :  { %v846_v15 = vpop.f32.mrb[49].mxu1 }
 0x1a7   :  { %v10911_v18 = vpop.f32.mrb[50].mxu1 }
 0x1a8   :  { %v13207_v24 = vpack.c.bf16 %v10911_v18, %v10910_v13  ;;  %v849_v25 = vpop.f32.mrb[51].mxu1  ;;  %v10965_v13 = vpop.f32.mrb[38].mxu0 }
 0x1a9   :  { %v13209_v26 = vpack.c.bf16 %v849_v25, %v846_v15  ;;  %v1126_v18 = vpop.f32.mrb[39].mxu0 }
 0x1aa   :  { %16161 = vst [vmem:[#allocation59_spill] sm:$0xff] %v13207_v24  ;;  %v13235_v28 = vpack.c.bf16 %v1126_v18, %v1123_v8  ;;  %v10968_v45 = vpop.f32.mrb[40].mxu0 }
 0x1ab   :  { %16162 = vst [vmem:[#allocation60_spill] sm:$0xff] %v13209_v26  ;;  %11043 = vmatmul.mubr.msk.bf16.vlgmr.msra.gmra.mrb[108].mxu1 %vm1402_vm3, %v13119_v5 }
 0x1ac   :  { %11047 = vmatpush3.bf16.xpose.msra.mxu1 %v1595_v27  ;;  %11048 = vmatprep.mubr.msk.bf16.mxu1 %vm12792_vm2, %v15980_v38  ;;  %v13233_v27 = vpack.c.bf16 %v10965_v13, %v10964_v4  ;;  %16168 = vst [vmem:[#allocation66_spill] sm:$0xff] %v13235_v28 }
 0x1ad   :  { %v10914_v32 = vpop.f32.mrb[52].mxu1  ;;  %11052 = vmatprep.subr.bf16.mxu1 %v15980_v38 }
 0x1ae   :  { %v862_v39 = vpop.f32.mrb[53].mxu1  ;;  %16167 = vst [vmem:[#allocation65_spill] sm:$0xff] %v13233_v27 }
 0x1af   :  { %v10915_v47 = vpop.f32.mrb[54].mxu1 }
 0x1b0   :  { %v13222_v55 = vpack.c.bf16 %v10915_v47, %v10914_v32  ;;  %v865_v58 = vpop.f32.mrb[55].mxu1  ;;  %v1139_v47 = vpop.f32.mrb[41].mxu0 }
 0x1b1   :  { %v13224_v63 = vpack.c.bf16 %v865_v58, %v862_v39  ;;  %v1689_v39 = vsel %vm1402_vm3, %v13198_v11, 0 }
 0x1b2   :  { %16165 = vst [vmem:[#allocation63_spill] sm:$0xff] %v13222_v55 }
 0x1b3   :  { %16166 = vst [vmem:[#allocation64_spill] sm:$0xff] %v13224_v63  ;;  %11049 = vmatmul.mubr.msk.bf16.vlgmr.msra.gmra.mrb[112].mxu1 %vm1402_vm3, %v13131_v21 }
 0x1b4   :  { %11053 = vmatpush3.bf16.xpose.msra.mxu1 %v1642_v1  ;;  %11054 = vmatprep.mubr.msk.bf16.mxu1 %vm12792_vm2, %v15980_v38  ;;  %v10969_v1 = vpop.f32.mrb[42].mxu0 }
 0x1b5   :  { %v10918_v12 = vpop.f32.mrb[56].mxu1  ;;  %11058 = vmatprep.subr.bf16.mxu1 %v15980_v38  ;;  %v1142_v8 = vpop.f32.mrb[43].mxu0  ;;  %v13248_v13 = vpack.c.bf16 %v10969_v1, %v10968_v45 }
 0x1b6   :  { %v878_v15 = vpop.f32.mrb[57].mxu1 }
 0x1b7   :  { %v10919_v25 = vpop.f32.mrb[58].mxu1  ;;  %16171 = vst [vmem:[#allocation69_spill] sm:$0xff] %v13248_v13 }
 0x1b8   :  { %v13237_v30 = vpack.c.bf16 %v10919_v25, %v10918_v12  ;;  %v881_v32 = vpop.f32.mrb[59].mxu1 }
 0x1b9   :  { %v13239_v36 = vpack.c.bf16 %v881_v32, %v878_v15  ;;  %v13250_v15 = vpack.c.bf16 %v1142_v8, %v1139_v47 }
 0x1ba   :  { %16169 = vst [vmem:[#allocation67_spill] sm:$0xff] %v13237_v30 }
 0x1bb   :  { %16170 = vst [vmem:[#allocation68_spill] sm:$0xff] %v13239_v36  ;;  %11055 = vmatmul.mubr.msk.bf16.vlgmr.msra.gmra.mrb[116].mxu1 %vm1402_vm3, %v13127_v17  ;;  %16172 = vst [vmem:[#allocation70_spill] sm:$0xff] %v13250_v15  ;;  %v16175_v17 = vmov 0.0  }
 0x1bc   :  { %11059 = vmatpush3.bf16.xpose.msra.mxu1 %v1689_v39  ;;  %11060 = vmatprep.mubr.msk.bf16.mxu1 %vm12792_vm2, %v15980_v38  ;;  %v1736_v39 = vsel %vm1402_vm3, %v13196_v6, 0 }
 0x1bd   :  { %v10922_v58 = vpop.f32.mrb[60].mxu1  ;;  %11064 = vmatprep.subr.bf16.mxu1 %v15980_v38  ;;  %v10972_v38 = vpop.f32.mrb[44].mxu0 }
 0x1be   :  { %v894_v4 = vpop.f32.mrb[61].mxu1  ;;  %v1155_v45 = vpop.f32.mrb[45].mxu0 }
 0x1bf   :  { %v10923_v12 = vpop.f32.mrb[62].mxu1  ;;  %v10973_v47 = vpop.f32.mrb[46].mxu0 }
 0x1c0   :  { %v13252_v18 = vpack.c.bf16 %v10923_v12, %v10922_v58  ;;  %v897_v25 = vpop.f32.mrb[63].mxu1  ;;  %v1158_v8 = vpop.f32.mrb[47].mxu0  ;;  %v13263_v12 = vpack.c.bf16 %v10973_v47, %v10972_v38 }
 0x1c1   :  { %v13254_v32 = vpack.c.bf16 %v897_v25, %v894_v4  ;;  %v13265_v25 = vpack.c.bf16 %v1158_v8, %v1155_v45  ;;  %v10976_v54 = vpop.f32.mrb[48].mxu0 }
 0x1c2   :  { %16173 = vst [vmem:[#allocation71_spill] sm:$0xff] %v13252_v18  ;;  %16176 = vst [vmem:[#allocation73_spill] sm:$0xff] %v13263_v12  ;;  %v1171_v38 = vpop.f32.mrb[49].mxu0 }
 0x1c3   :  { %16174 = vst [vmem:[#allocation72_spill] sm:$0xff] %v13254_v32  ;;  %11061 = vmatmul.mubr.msk.bf16.vlgmr.msra.gmra.mrb[120].mxu1 %vm1402_vm3, %v13139_v33  ;;  %16177 = vst [vmem:[#allocation74_spill] sm:$0xff] %v13265_v25 }
 0x1c4   :  { %11065 = vmatpush3.bf16.xpose.msra.mxu1 %v1736_v39  ;;  %11066 = vmatprep.mubr.msk.bf16.mxu1 %vm12792_vm2, %v16175_v17  ;;  %v1783_v39 = vsel %vm1402_vm3, %v13209_v26, 0 }
 0x1c5   :  { %v10926_v1 = vpop.f32.mrb[64].mxu1  ;;  %11070 = vmatprep.subr.bf16.mxu1 %v16175_v17 }
 0x1c6   :  { %v910_v58 = vpop.f32.mrb[65].mxu1 }
 0x1c7   :  { %v10927_v4 = vpop.f32.mrb[66].mxu1 }
 0x1c8   :  { %v13267_v33 = vpack.c.bf16 %v10927_v4, %v10926_v1  ;;  %v913_v6 = vpop.f32.mrb[67].mxu1 }
 0x1c9   :  { %v13269_v11 = vpack.c.bf16 %v913_v6, %v910_v58  ;;  %v10977_v6 = vpop.f32.mrb[50].mxu0 }
 0x1ca   :  { %16178 = vst [vmem:[#allocation75_spill] sm:$0xff] %v13267_v33  ;;  %v1174_v47 = vpop.f32.mrb[51].mxu0  ;;  %v13281_v8 = vpack.c.bf16 %v10977_v6, %v10976_v54 }
 0x1cb   :  { %16179 = vst [vmem:[#allocation76_spill] sm:$0xff] %v13269_v11  ;;  %11067 = vmatmul.mubr.msk.bf16.vlgmr.msra.gmra.mrb[124].mxu1 %vm1402_vm3, %v13135_v29  ;;  %v2159_v21 = vsel %vm1402_vm3, %v13269_v11, 0  ;;  %v13283_v4 = vpack.c.bf16 %v1174_v47, %v1171_v38  ;;  %v1830_v29 = vsel %vm1402_vm3, %v13207_v24, 0  ;;  %v10980_v6 = vpop.f32.mrb[52].mxu0  ;;  %v1877_v24 = vsel %vm1402_vm3, %v13224_v63, 0 }
 0x1cc   :  { %11071 = vmatpush3.bf16.xpose.msra.mxu1 %v1783_v39  ;;  %11119 = vmatpush3.bf16.xpose.msra.mxu0 %v2159_v21  ;;  %16180 = vst [vmem:[#allocation77_spill] sm:$0xff] %v13281_v8  ;;  %v1187_v38 = vpop.f32.mrb[53].mxu0  ;;  %v1924_v63 = vsel %vm1402_vm3, %v13222_v55, 0  ;;  %v1971_v55 = vsel %vm1402_vm3, %v13239_v36, 0 }
 0x1cd   :  { %v10930_v45 = vpop.f32.mrb[68].mxu1  ;;  %11072 = vmatprep.mubr.msk.bf16.mxu1 %vm12792_vm2, %v16175_v17  ;;  %11076 = vmatprep.subr.bf16.mxu1 %v16175_v17  ;;  %16181 = vst [vmem:[#allocation78_spill] sm:$0xff] %v13283_v4 }
 0x1ce   :  { %v926_v1 = vpop.f32.mrb[69].mxu1  ;;  %11130 = vmatprep.subr.bf16.mxu0 %v16175_v17 }
 0x1cf   :  { %v10931_v58 = vpop.f32.mrb[70].mxu1 }
 0x1d0   :  { %v13285_v11 = vpack.c.bf16 %v10931_v58, %v10930_v45  ;;  %v929_v21 = vpop.f32.mrb[71].mxu1 }
 0x1d1   :  { %v13287_v39 = vpack.c.bf16 %v929_v21, %v926_v1  ;;  %v10981_v1 = vpop.f32.mrb[54].mxu0 }
 0x1d2   :  { %16182 = vst [vmem:[#allocation79_spill] sm:$0xff] %v13285_v11  ;;  %v1190_v58 = vpop.f32.mrb[55].mxu0 }
 0x1d3   :  { %16183 = vst [vmem:[#allocation80_spill] sm:$0xff] %v13287_v39  ;;  %11073 = vmatmul.mubr.msk.bf16.vlgmr.msra.gmra.mrb[128].mxu1 %vm1402_vm3, %v13147_v49  ;;  %11121 = vmatmul.mubr.msk.bf16.vlgmr.msra.gmra.mrb[96].mxu0 %vm1402_vm3, %v13101_v44  ;;  %v2253_v54 = vsel %vm1402_vm3, %v13287_v39, 0  ;;  %v13303_v39 = vpack.c.bf16 %v10981_v1, %v10980_v6  ;;  %v10984_v1 = vpop.f32.mrb[56].mxu0 }
 0x1d4   :  { %11077 = vmatpush3.bf16.xpose.msra.mxu1 %v1830_v29  ;;  %11131 = vmatpush3.bf16.xpose.msra.mxu0 %v2253_v54  ;;  %v13305_v29 = vpack.c.bf16 %v1190_v58, %v1187_v38  ;;  %v1203_v38 = vpop.f32.mrb[57].mxu0 }
 0x1d5   :  { %v10934_v45 = vpop.f32.mrb[72].mxu1  ;;  %11078 = vmatprep.mubr.msk.bf16.mxu1 %vm12792_vm2, %v16175_v17  ;;  %11132 = vmatprep.mubr.msk.bf16.mxu0 %vm12792_vm2, %v16175_v17  ;;  %16184 = vst [vmem:[#allocation81_spill] sm:$0xff] %v13303_v39 }
 0x1d6   :  { %v942_v47 = vpop.f32.mrb[73].mxu1  ;;  %11082 = vmatprep.subr.bf16.mxu1 %v16175_v17  ;;  %11142 = vmatprep.subr.bf16.mxu0 %v16175_v17  ;;  %16185 = vst [vmem:[#allocation82_spill] sm:$0xff] %v13305_v29 }
 0x1d7   :  { %v10935_v21 = vpop.f32.mrb[74].mxu1 }
 0x1d8   :  { %v13307_v54 = vpack.c.bf16 %v10935_v21, %v10934_v45  ;;  %v945_v44 = vpop.f32.mrb[75].mxu1 }
 0x1d9   :  { %v13309_v49 = vpack.c.bf16 %v945_v44, %v942_v47  ;;  %v10985_v44 = vpop.f32.mrb[58].mxu0 }
 0x1da   :  { %16186 = vst [vmem:[#allocation83_spill] sm:$0xff] %v13307_v54  ;;  %v1206_v58 = vpop.f32.mrb[59].mxu0 }
 0x1db   :  { %16187 = vst [vmem:[#allocation84_spill] sm:$0xff] %v13309_v49  ;;  %11079 = vmatmul.mubr.msk.bf16.vlgmr.msra.gmra.mrb[132].mxu1 %vm1402_vm3, %v13143_v43  ;;  %11133 = vmatmul.mubr.msk.bf16.vlgmr.msra.gmra.mrb[100].mxu0 %vm1402_vm3, %v13109_v50  ;;  %v2347_v6 = vsel %vm1402_vm3, %v13309_v49, 0  ;;  %v13325_v49 = vpack.c.bf16 %v10985_v44, %v10984_v1  ;;  %v10988_v44 = vpop.f32.mrb[60].mxu0 }
 0x1dc   :  { %11083 = vmatpush3.bf16.xpose.msra.mxu1 %v1877_v24  ;;  %11143 = vmatpush3.bf16.xpose.msra.mxu0 %v2347_v6  ;;  %v13327_v24 = vpack.c.bf16 %v1206_v58, %v1203_v38  ;;  %v1219_v38 = vpop.f32.mrb[61].mxu0 }
 0x1dd   :  { %v10938_v45 = vpop.f32.mrb[76].mxu1  ;;  %11084 = vmatprep.mubr.msk.bf16.mxu1 %vm12792_vm2, %v16175_v17  ;;  %11144 = vmatprep.mubr.msk.bf16.mxu0 %vm12792_vm2, %v16175_v17  ;;  %16188 = vst [vmem:[#allocation85_spill] sm:$0xff] %v13325_v49 }
 0x1de   :  { %v958_v47 = vpop.f32.mrb[77].mxu1  ;;  %11088 = vmatprep.subr.bf16.mxu1 %v16175_v17  ;;  %11154 = vmatprep.subr.bf16.mxu0 %v16175_v17  ;;  %16189 = vst [vmem:[#allocation86_spill] sm:$0xff] %v13327_v24 }
 0x1df   :  { %v10939_v21 = vpop.f32.mrb[78].mxu1 }
 0x1e0   :  { %v13329_v6 = vpack.c.bf16 %v10939_v21, %v10938_v45  ;;  %v961_v50 = vpop.f32.mrb[79].mxu1 }
 0x1e1   :  { %v13331_v43 = vpack.c.bf16 %v961_v50, %v958_v47  ;;  %v10989_v50 = vpop.f32.mrb[62].mxu0 }
 0x1e2   :  { %16190 = vst [vmem:[#allocation87_spill] sm:$0xff] %v13329_v6  ;;  %v1222_v58 = vpop.f32.mrb[63].mxu0 }
 0x1e3   :  { %16191 = vst [vmem:[#allocation88_spill] sm:$0xff] %v13331_v43  ;;  %11085 = vmatmul.mubr.msk.bf16.vlgmr.msra.gmra.mrb[136].mxu1 %vm1402_vm3, %v13155_v2  ;;  %11145 = vmatmul.mubr.msk.bf16.vlgmr.msra.gmra.mrb[104].mxu0 %vm1402_vm3, %v13117_v62  ;;  %v2441_v1 = vsel %vm1402_vm3, %v13331_v43, 0  ;;  %v13347_v43 = vpack.c.bf16 %v10989_v50, %v10988_v44  ;;  %v10992_v50 = vpop.f32.mrb[64].mxu0 }
 0x1e4   :  { %11089 = vmatpush3.bf16.xpose.msra.mxu1 %v1924_v63  ;;  %11155 = vmatpush3.bf16.xpose.msra.mxu0 %v2441_v1  ;;  %v13349_v63 = vpack.c.bf16 %v1222_v58, %v1219_v38  ;;  %v1235_v38 = vpop.f32.mrb[65].mxu0 }
 0x1e5   :  { %v10942_v45 = vpop.f32.mrb[80].mxu1  ;;  %11090 = vmatprep.mubr.msk.bf16.mxu1 %vm12792_vm2, %v16175_v17  ;;  %11156 = vmatprep.mubr.msk.bf16.mxu0 %vm12792_vm2, %v16175_v17  ;;  %16192 = vst [vmem:[#allocation89_spill] sm:$0xff] %v13347_v43 }
 0x1e6   :  { %v974_v47 = vpop.f32.mrb[81].mxu1  ;;  %11094 = vmatprep.subr.bf16.mxu1 %v16175_v17  ;;  %11166 = vmatprep.subr.bf16.mxu0 %v16175_v17  ;;  %16193 = vst [vmem:[#allocation90_spill] sm:$0xff] %v13349_v63  ;;  %v2018_v63 = vsel %vm1402_vm3, %v13237_v30, 0 }
 0x1e7   :  { %v10943_v21 = vpop.f32.mrb[82].mxu1 }
 0x1e8   :  { %v13351_v1 = vpack.c.bf16 %v10943_v21, %v10942_v45  ;;  %v977_v62 = vpop.f32.mrb[83].mxu1 }
 0x1e9   :  { %v13353_v2 = vpack.c.bf16 %v977_v62, %v974_v47  ;;  %v10993_v62 = vpop.f32.mrb[66].mxu0 }
 0x1ea   :  { %16194 = vst [vmem:[#allocation91_spill] sm:$0xff] %v13351_v1  ;;  %v1238_v58 = vpop.f32.mrb[67].mxu0 }
 0x1eb   :  { %16195 = vst [vmem:[#allocation92_spill] sm:$0xff] %v13353_v2  ;;  %11091 = vmatmul.mubr.msk.bf16.vlgmr.msra.gmra.mrb[140].mxu1 %vm1402_vm3, %v13151_v60  ;;  %11157 = vmatmul.mubr.msk.bf16.vlgmr.msra.gmra.mrb[108].mxu0 %vm1402_vm3, %v13125_v10  ;;  %v2535_v44 = vsel %vm1402_vm3, %v13353_v2, 0  ;;  %v13369_v2 = vpack.c.bf16 %v10993_v62, %v10992_v50  ;;  %v10996_v62 = vpop.f32.mrb[68].mxu0 }
 0x1ec   :  { %11095 = vmatpush3.bf16.xpose.msra.mxu1 %v1971_v55  ;;  %11167 = vmatpush3.bf16.xpose.msra.mxu0 %v2535_v44  ;;  %v13371_v55 = vpack.c.bf16 %v1238_v58, %v1235_v38  ;;  %v1251_v38 = vpop.f32.mrb[69].mxu0 }
 0x1ed   :  { %v10946_v45 = vpop.f32.mrb[84].mxu1  ;;  %11096 = vmatprep.mubr.msk.bf16.mxu1 %vm12792_vm2, %v16175_v17  ;;  %11168 = vmatprep.mubr.msk.bf16.mxu0 %vm12792_vm2, %v16175_v17  ;;  %16196 = vst [vmem:[#allocation93_spill] sm:$0xff] %v13369_v2 }
 0x1ee   :  { %v990_v47 = vpop.f32.mrb[85].mxu1  ;;  %11100 = vmatprep.subr.bf16.mxu1 %v16175_v17  ;;  %11178 = vmatprep.subr.bf16.mxu0 %v16175_v17  ;;  %16197 = vst [vmem:[#allocation94_spill] sm:$0xff] %v13371_v55  ;;  %v2065_v55 = vsel %vm1402_vm3, %v13254_v32, 0 }
 0x1ef   :  { %v10947_v21 = vpop.f32.mrb[86].mxu1 }
 0x1f0   :  { %v13373_v44 = vpack.c.bf16 %v10947_v21, %v10946_v45  ;;  %v993_v10 = vpop.f32.mrb[87].mxu1 }
 0x1f1   :  { %v13375_v43 = vpack.c.bf16 %v993_v10, %v990_v47  ;;  %v10997_v10 = vpop.f32.mrb[70].mxu0 }
 0x1f2   :  { %16198 = vst [vmem:[#allocation95_spill] sm:$0xff] %v13373_v44  ;;  %v1254_v58 = vpop.f32.mrb[71].mxu0 }
 0x1f3   :  { %16199 = vst [vmem:[#allocation96_spill] sm:$0xff] %v13375_v43  ;;  %11097 = vmatmul.mubr.msk.bf16.vlgmr.msra.gmra.mrb[144].mxu1 %vm1402_vm3, %v13163_v20  ;;  %11169 = vmatmul.mubr.msk.bf16.vlgmr.msra.gmra.mrb[112].mxu0 %vm1402_vm3, %v13133_v22  ;;  %v2629_v50 = vsel %vm1402_vm3, %v13375_v43, 0  ;;  %v13391_v43 = vpack.c.bf16 %v10997_v10, %v10996_v62  ;;  %v11000_v10 = vpop.f32.mrb[72].mxu0 }
 0x1f4   :  { %11101 = vmatpush3.bf16.xpose.msra.mxu1 %v2018_v63  ;;  %11179 = vmatpush3.bf16.xpose.msra.mxu0 %v2629_v50  ;;  %v13393_v63 = vpack.c.bf16 %v1254_v58, %v1251_v38  ;;  %v1267_v38 = vpop.f32.mrb[73].mxu0 }
 0x1f5   :  { %v10950_v45 = vpop.f32.mrb[88].mxu1  ;;  %11102 = vmatprep.mubr.msk.bf16.mxu1 %vm12792_vm2, %v16175_v17  ;;  %11180 = vmatprep.mubr.msk.bf16.mxu0 %vm12792_vm2, %v16175_v17  ;;  %16200 = vst [vmem:[#allocation97_spill] sm:$0xff] %v13391_v43 }
 0x1f6   :  { %v1006_v47 = vpop.f32.mrb[89].mxu1  ;;  %11106 = vmatprep.subr.bf16.mxu1 %v16175_v17  ;;  %11190 = vmatprep.subr.bf16.mxu0 %v16175_v17  ;;  %16201 = vst [vmem:[#allocation98_spill] sm:$0xff] %v13393_v63  ;;  %v2112_v63 = vsel %vm1402_vm3, %v13252_v18, 0 }
 0x1f7   :  { %v10951_v21 = vpop.f32.mrb[90].mxu1 }
 0x1f8   :  { %v13395_v50 = vpack.c.bf16 %v10951_v21, %v10950_v45  ;;  %v1009_v22 = vpop.f32.mrb[91].mxu1 }
 0x1f9   :  { %v13397_v2 = vpack.c.bf16 %v1009_v22, %v1006_v47  ;;  %v11001_v22 = vpop.f32.mrb[74].mxu0 }
 0x1fa   :  { %16202 = vst [vmem:[#allocation99_spill] sm:$0xff] %v13395_v50  ;;  %v1270_v58 = vpop.f32.mrb[75].mxu0 }
 0x1fb   :  { %16203 = vst [vmem:[#allocation100_spill] sm:$0xff] %v13397_v2  ;;  %11103 = vmatmul.mubr.msk.bf16.vlgmr.msra.gmra.mrb[148].mxu1 %vm1402_vm3, %v13159_v14  ;;  %11181 = vmatmul.mubr.msk.bf16.vlgmr.msra.gmra.mrb[116].mxu0 %vm1402_vm3, %v13141_v34  ;;  %v2723_v62 = vsel %vm1402_vm3, %v13397_v2, 0  ;;  %v13413_v2 = vpack.c.bf16 %v11001_v22, %v11000_v10  ;;  %v11004_v22 = vpop.f32.mrb[76].mxu0 }
 0x1fc   :  { %11107 = vmatpush3.bf16.xpose.msra.mxu1 %v2065_v55  ;;  %11191 = vmatpush3.bf16.xpose.msra.mxu0 %v2723_v62  ;;  %v13415_v55 = vpack.c.bf16 %v1270_v58, %v1267_v38  ;;  %v1283_v38 = vpop.f32.mrb[77].mxu0 }
 0x1fd   :  { %v10954_v45 = vpop.f32.mrb[92].mxu1  ;;  %11108 = vmatprep.mubr.msk.bf16.mxu1 %vm12792_vm2, %v16175_v17  ;;  %11192 = vmatprep.mubr.msk.bf16.mxu0 %vm12792_vm2, %v16175_v17  ;;  %16204 = vst [vmem:[#allocation101_spill] sm:$0xff] %v13413_v2 }
 0x1fe   :  { %v1022_v47 = vpop.f32.mrb[93].mxu1  ;;  %11112 = vmatprep.subr.bf16.mxu1 %v16175_v17  ;;  %11202 = vmatprep.subr.bf16.mxu0 %v16175_v17  ;;  %16205 = vst [vmem:[#allocation102_spill] sm:$0xff] %v13415_v55 }
 0x1ff   :  { %v10955_v21 = vpop.f32.mrb[94].mxu1 }
 0x200   :  { %v13417_v62 = vpack.c.bf16 %v10955_v21, %v10954_v45  ;;  %v1025_v34 = vpop.f32.mrb[95].mxu1 }
 0x201   :  { %v13419_v43 = vpack.c.bf16 %v1025_v34, %v1022_v47  ;;  %v11005_v34 = vpop.f32.mrb[78].mxu0 }
 0x202   :  { %16206 = vst [vmem:[#allocation103_spill] sm:$0xff] %v13417_v62  ;;  %v1286_v45 = vpop.f32.mrb[79].mxu0  ;;  %v13435_v47 = vpack.c.bf16 %v11005_v34, %v11004_v22 }
 0x203   :  { %16207 = vst [vmem:[#allocation104_spill] sm:$0xff] %v13419_v43  ;;  %11109 = vmatmul.mubr.msk.bf16.vlgmr.msra.gmra.mrb[152].mxu1 %vm1402_vm3, %v13174_v40  ;;  %11193 = vmatmul.mubr.msk.bf16.vlgmr.msra.gmra.mrb[120].mxu0 %vm1402_vm3, %v13149_v51  ;;  %v2817_v10 = vsel %vm1402_vm3, %v13419_v43, 0  ;;  %v13437_v58 = vpack.c.bf16 %v1286_v45, %v1283_v38  ;;  %v11008_v21 = vpop.f32.mrb[80].mxu0 }
 0x204   :  { %11113 = vmatpush3.bf16.xpose.msra.mxu1 %v2112_v63  ;;  %11203 = vmatpush3.bf16.xpose.msra.mxu0 %v2817_v10  ;;  %16208 = vst [vmem:[#allocation105_spill] sm:$0xff] %v13435_v47  ;;  %v2206_v63 = vsel %vm1402_vm3, %v13267_v33, 0  ;;  %v1299_v10 = vpop.f32.mrb[81].mxu0 }
 0x205   :  { %11114 = vmatprep.mubr.msk.bf16.mxu1 %vm12792_vm2, %v16175_v17  ;;  %11204 = vmatprep.mubr.msk.bf16.mxu0 %vm12792_vm2, %v16175_v17  ;;  %16209 = vst [vmem:[#allocation106_spill] sm:$0xff] %v13437_v58  ;;  %v11009_v22 = vpop.f32.mrb[82].mxu0 }
 0x206   :  { %11124 = vmatprep.subr.bf16.mxu1 %v16175_v17  ;;  %11214 = vmatprep.subr.bf16.mxu0 %v16175_v17  ;;  %v1302_v38 = vpop.f32.mrb[83].mxu0  ;;  %v13452_v34 = vpack.c.bf16 %v11009_v22, %v11008_v21 }
 0x207   :  { %v13454_v45 = vpack.c.bf16 %v1302_v38, %v1299_v10  ;;  %v2394_v38 = vsel %vm1402_vm3, %v13307_v54, 0 }
 0x208   :  { %16210 = vst [vmem:[#allocation107_spill] sm:$0xff] %v13452_v34 }
 0x209   :  { %16211 = vst [vmem:[#allocation108_spill] sm:$0xff] %v13454_v45 }
 0x20b   :  { %11115 = vmatmul.mubr.msk.bf16.vlgmr.msra.gmra.mrb[156].mxu1 %vm1402_vm3, %v13170_v35  ;;  %11205 = vmatmul.mubr.msk.bf16.vlgmr.msra.gmra.mrb[124].mxu0 %vm1402_vm3, %v13157_v3  ;;  %v11012_v3 = vpop.f32.mrb[84].mxu0 }
 0x20c   :  { %11125 = vmatpush3.bf16.xpose.msra.mxu1 %v2206_v63  ;;  %11126 = vmatprep.mubr.msk.bf16.mxu1 %vm12792_vm2, %v16175_v17  ;;  %v2300_v63 = vsel %vm1402_vm3, %v13285_v11, 0 }
 0x20d   :  { %11136 = vmatprep.subr.bf16.mxu1 %v16175_v17  ;;  %11215 = vmatpush3.bf16.msra.mxu0 %v13220_v53  ;;  %v1315_v53 = vpop.f32.mrb[85].mxu0 }
 0x20e   :  { %11216 = vmatprep.mubr.msk.bf16.mxu0 %vm12792_vm2, %v16175_v17  ;;  %11226 = vmatprep.subr.bf16.mxu0 %v16175_v17  ;;  %v11013_v43 = vpop.f32.mrb[86].mxu0 }
 0x20f   :  { %v1318_v51 = vpop.f32.mrb[87].mxu0  ;;  %v13463_v21 = vpack.c.bf16 %v11013_v43, %v11012_v3 }
 0x210   :  { %v13465_v10 = vpack.c.bf16 %v1318_v51, %v1315_v53  ;;  %v11016_v22 = vpop.f32.mrb[88].mxu0  ;;  %v2488_v53 = vsel %vm1402_vm3, %v13329_v6, 0 }
 0x211   :  { %16212 = vst [vmem:[#allocation109_spill] sm:$0xff] %v13463_v21 }
 0x212   :  { %16213 = vst [vmem:[#allocation110_spill] sm:$0xff] %v13465_v10 }
 0x213   :  { %11127 = vmatmul.mubr.msk.bf16.vlgmr.msra.gmra.mrb[160].mxu1 %vm1402_vm3, %v13099_v42 }
 0x214   :  { %11137 = vmatpush3.bf16.xpose.msra.mxu1 %v2300_v63  ;;  %11138 = vmatprep.mubr.msk.bf16.mxu1 %vm12792_vm2, %v16175_v17  ;;  %v1331_v63 = vpop.f32.mrb[89].mxu0 }
 0x215   :  { %11148 = vmatprep.subr.bf16.mxu1 %v16175_v17  ;;  %v11017_v34 = vpop.f32.mrb[90].mxu0 }
 0x216   :  { %v1334_v45 = vpop.f32.mrb[91].mxu0  ;;  %v13474_v43 = vpack.c.bf16 %v11017_v34, %v11016_v22  ;;  %v2582_v22 = vsel %vm1402_vm3, %v13351_v1, 0 }
 0x217   :  { %v13476_v51 = vpack.c.bf16 %v1334_v45, %v1331_v63  ;;  %v11020_v3 = vpop.f32.mrb[92].mxu0  ;;  %v2770_v63 = vsel %vm1402_vm3, %v13395_v50, 0 }
 0x218   :  { %16214 = vst [vmem:[#allocation111_spill] sm:$0xff] %v13474_v43 }
 0x219   :  { %16215 = vst [vmem:[#allocation112_spill] sm:$0xff] %v13476_v51 }
 0x21b   :  { %11139 = vmatmul.mubr.msk.bf16.vlgmr.msra.gmra.mrb[164].mxu1 %vm1402_vm3, %v13107_v48 }
 0x21c   :  { %11149 = vmatpush3.bf16.xpose.msra.mxu1 %v2394_v38  ;;  %11150 = vmatprep.mubr.msk.bf16.mxu1 %vm12792_vm2, %v16175_v17  ;;  %v1347_v38 = vpop.f32.mrb[93].mxu0 }
 0x21d   :  { %11160 = vmatprep.subr.bf16.mxu1 %v16175_v17  ;;  %v11021_v21 = vpop.f32.mrb[94].mxu0 }
 0x21e   :  { %v13485_v10 = vpack.c.bf16 %v11021_v21, %v11020_v3  ;;  %v1350_v34 = vpop.f32.mrb[95].mxu0  ;;  %v2676_v21 = vsel %vm1402_vm3, %v13373_v44, 0  ;;  %v2864_v3 = vsel %vm1402_vm3, %v13417_v62, 0 }
 0x21f   :  { %v13487_v45 = vpack.c.bf16 %v1350_v34, %v1347_v38 }
 0x220   :  { %16216 = vst [vmem:[#allocation113_spill] sm:$0xff] %v13485_v10 }
 0x221   :  { %16217 = vst [vmem:[#allocation114_spill] sm:$0xff] %v13487_v45 }
 0x223   :  { %11151 = vmatmul.mubr.msk.bf16.vlgmr.msra.gmra.mrb[168].mxu1 %vm1402_vm3, %v13113_v59 }
 0x224   :  { %11161 = vmatpush3.bf16.xpose.msra.mxu1 %v2488_v53  ;;  %11162 = vmatprep.mubr.msk.bf16.mxu1 %vm12792_vm2, %v16175_v17 }
 0x225   :  { %11172 = vmatprep.subr.bf16.mxu1 %v16175_v17 }
 0x22b   :  { %11163 = vmatmul.mubr.msk.bf16.vlgmr.msra.gmra.mrb[172].mxu1 %vm1402_vm3, %v13121_v7 }
 0x22c   :  { %11173 = vmatpush3.bf16.xpose.msra.mxu1 %v2582_v22  ;;  %11174 = vmatprep.mubr.msk.bf16.mxu1 %vm12792_vm2, %v16175_v17 }
 0x22d   :  { %11184 = vmatprep.subr.bf16.mxu1 %v16175_v17 }
 0x233   :  { %11175 = vmatmul.mubr.msk.bf16.vlgmr.msra.gmra.mrb[176].mxu1 %vm1402_vm3, %v13129_v19 }
 0x234   :  { %11185 = vmatpush3.bf16.xpose.msra.mxu1 %v2676_v21  ;;  %11186 = vmatprep.mubr.msk.bf16.mxu1 %vm12792_vm2, %v16175_v17 }
 0x235   :  { %11196 = vmatprep.subr.bf16.mxu1 %v16175_v17 }
 0x23b   :  { %11187 = vmatmul.mubr.msk.bf16.vlgmr.msra.gmra.mrb[180].mxu1 %vm1402_vm3, %v13137_v31 }
 0x23c   :  { %11197 = vmatpush3.bf16.xpose.msra.mxu1 %v2770_v63  ;;  %11198 = vmatprep.mubr.msk.bf16.mxu1 %vm12792_vm2, %v16175_v17 }
 0x23d   :  { %11208 = vmatprep.subr.bf16.mxu1 %v16175_v17 }
 0x243   :  { %11199 = vmatmul.mubr.msk.bf16.vlgmr.msra.gmra.mrb[184].mxu1 %vm1402_vm3, %v13145_v46 }
 0x244   :  { %11209 = vmatpush3.bf16.xpose.msra.mxu1 %v2864_v3  ;;  %11210 = vmatprep.mubr.msk.bf16.mxu1 %vm12792_vm2, %v16175_v17 }
 0x245   :  { %11220 = vmatprep.subr.bf16.mxu1 %v16175_v17 }
 0x24b   :  { %11211 = vmatmul.mubr.msk.bf16.vlgmr.msra.gmra.mrb[188].mxu1 %vm1402_vm3, %v13153_v0 }
 0x24c   :  { %11221 = vmatpush3.bf16.msra.mxu1 %v13218_v52  ;;  %11222 = vmatprep.mubr.msk.bf16.mxu1 %vm12792_vm2, %v16175_v17 }
 0x24d   :  { %11232 = vmatprep.subr.bf16.mxu1 %v16175_v17 }
 0x266   :  { %v13523_v53 = vpop.f32.mrb[96].mxu1 }
 0x267   :  { %v2908_v38 = vsel %vm2907_vm4, %v13523_v53, -inf  ;;  %v11026_v34 = vpop.f32.mrb[97].mxu1 }
 0x268   :  { %2909 = vmax.xlane.f32.xlu0 %v2908_v38  ;;  %v13527_v22 = vpop.f32.mrb[98].mxu1 }
 0x269   :  { %v11027_v21 = vpop.f32.mrb[99].mxu1  ;;  %v2911_v63 = vsel %vm2907_vm4, %v13527_v22, -inf }
 0x26c   :  { %2912 = vmax.xlane.f32.xlu0 %v2911_v63 }
 0x26e   :  { %v13531_v3 = vpop.f32.mrb[100].mxu1 }
 0x26f   :  { %v2914_v10 = vsel %vm2907_vm4, %v13531_v3, -inf  ;;  %v11032_v52 = vpop.f32.mrb[101].mxu1 }
 0x270   :  { %2915 = vmax.xlane.f32.xlu1 %v2914_v10  ;;  %v13535_v45 = vpop.f32.mrb[102].mxu1 }
 0x271   :  { %v11033_v0 = vpop.f32.mrb[103].mxu1  ;;  %v2917_v38 = vsel %vm2907_vm4, %v13535_v45, -inf }
 0x274   :  { %2918 = vmax.xlane.f32.xlu1 %v2917_v38 }
 0x276   :  { %v13539_v34 = vpop.f32.mrb[104].mxu1 }
 0x277   :  { %v11038_v21 = vpop.f32.mrb[105].mxu1  ;;  %v2920_v63 = vsel %vm2907_vm4, %v13539_v34, -inf }
 0x278   :  { %2921 = vmax.xlane.f32.xlu0 %v2920_v63  ;;  %v13543_v43 = vpop.f32.mrb[106].mxu1 }
 0x279   :  { %v2923_v52 = vsel %vm2907_vm4, %v13543_v43, -inf  ;;  %v11039_v10 = vpop.f32.mrb[107].mxu1 }
 0x27a   :  { %2924 = vmax.xlane.f32.xlu1 %v2923_v52 }
 0x27e   :  { %v13547_v62 = vpop.f32.mrb[108].mxu1 }
 0x27f   :  { %v11044_v0 = vpop.f32.mrb[109].mxu1  ;;  %v2926_v38 = vsel %vm2907_vm4, %v13547_v62, -inf }
 0x280   :  { %2927 = vmax.xlane.f32.xlu0 %v2926_v38  ;;  %v13551_v51 = vpop.f32.mrb[110].mxu1 }
 0x281   :  { %v2929_v21 = vsel %vm2907_vm4, %v13551_v51, -inf  ;;  %v11045_v63 = vpop.f32.mrb[111].mxu1 }
 0x282   :  { %2930 = vmax.xlane.f32.xlu1 %v2929_v21 }
 0x286   :  { %v13555_v46 = vpop.f32.mrb[112].mxu1 }
 0x287   :  { %v11050_v50 = vpop.f32.mrb[113].mxu1  ;;  %v2932_v52 = vsel %vm2907_vm4, %v13555_v46, -inf }
 0x288   :  { %2933 = vmax.xlane.f32.xlu0 %v2932_v52  ;;  %v13559_v10 = vpop.f32.mrb[114].mxu1 }
 0x289   :  { %v2935_v0 = vsel %vm2907_vm4, %v13559_v10, -inf  ;;  %v11051_v38 = vpop.f32.mrb[115].mxu1 }
 0x28a   :  { %2936 = vmax.xlane.f32.xlu1 %v2935_v0 }
 0x28e   :  { %v13563_v31 = vpop.f32.mrb[116].mxu1 }
 0x28f   :  { %v11056_v44 = vpop.f32.mrb[117].mxu1  ;;  %v2938_v21 = vsel %vm2907_vm4, %v13563_v31, -inf }
 0x290   :  { %2939 = vmax.xlane.f32.xlu0 %v2938_v21  ;;  %v13567_v63 = vpop.f32.mrb[118].mxu1 }
 0x291   :  { %v2941_v50 = vsel %vm2907_vm4, %v13567_v63, -inf  ;;  %v11057_v52 = vpop.f32.mrb[119].mxu1 }
 0x292   :  { %2942 = vmax.xlane.f32.xlu1 %v2941_v50 }
 0x296   :  { %v13571_v19 = vpop.f32.mrb[120].mxu1 }
 0x297   :  { %v11062_v1 = vpop.f32.mrb[121].mxu1  ;;  %v2944_v0 = vsel %vm2907_vm4, %v13571_v19, -inf }
 0x298   :  { %2945 = vmax.xlane.f32.xlu0 %v2944_v0  ;;  %v13575_v38 = vpop.f32.mrb[122].mxu1 }
 0x299   :  { %v2947_v44 = vsel %vm2907_vm4, %v13575_v38, -inf  ;;  %v11063_v21 = vpop.f32.mrb[123].mxu1 }
 0x29a   :  { %2948 = vmax.xlane.f32.xlu1 %v2947_v44 }
 0x29e   :  { %v13579_v47 = vpop.f32.mrb[124].mxu1 }
 0x29f   :  { %v11068_v7 = vpop.f32.mrb[125].mxu1  ;;  %v2950_v50 = vsel %vm2907_vm4, %v13579_v47, -inf }
 0x2a0   :  { %2951 = vmax.xlane.f32.xlu0 %v2950_v50  ;;  %v13583_v52 = vpop.f32.mrb[126].mxu1 }
 0x2a1   :  { %v2953_v1 = vsel %vm2907_vm4, %v13583_v52, -inf  ;;  %v11069_v0 = vpop.f32.mrb[127].mxu1 }
 0x2a2   :  { %2954 = vmax.xlane.f32.xlu1 %v2953_v1 }
 0x2a6   :  { %v13587_v58 = vpop.f32.mrb[128].mxu1  ;;  %v13589_v6 = vpop.f32.mrb[96].mxu0 }
 0x2a7   :  { %v11074_v21 = vpop.f32.mrb[129].mxu1  ;;  %v11122_v44 = vpop.f32.mrb[97].mxu0  ;;  %v2956_v7 = vsel %vm2907_vm4, %v13587_v58, -inf  ;;  %v3004_v1 = vsel %vm2907_vm4, %v13589_v6, -inf }
 0x2a8   :  { %2957 = vmax.xlane.f32.xlu0 %v2956_v7  ;;  %v13593_v2 = vpop.f32.mrb[130].mxu1  ;;  %v13595_v50 = vpop.f32.mrb[98].mxu0 }
 0x2a9   :  { %v11123_v59 = vpop.f32.mrb[99].mxu0  ;;  %v2959_v55 = vsel %vm2907_vm4, %v13593_v2, -inf  ;;  %v11075_v0 = vpop.f32.mrb[131].mxu1  ;;  %v3007_v21 = vsel %vm2907_vm4, %v13595_v50, -inf }
 0x2aa   :  { %2960 = vmax.xlane.f32.xlu1 %v2959_v55 }
 0x2ac   :  { %3005 = vmax.xlane.f32.xlu0 %v3004_v1 }
 0x2ae   :  { %v13603_v44 = vpop.f32.mrb[132].mxu1  ;;  %3008 = vmax.xlane.f32.xlu1 %v3007_v21  ;;  %v13605_v7 = vpop.f32.mrb[100].mxu0 }
 0x2af   :  { %v11080_v54 = vpop.f32.mrb[133].mxu1  ;;  %v11134_v48 = vpop.f32.mrb[101].mxu0  ;;  %v2962_v59 = vsel %vm2907_vm4, %v13603_v44, -inf  ;;  %v3016_v21 = vsel %vm2907_vm4, %v13605_v7, -inf }
 0x2b0   :  { %v13609_v11 = vpop.f32.mrb[134].mxu1  ;;  %2963 = vmax.xlane.f32.xlu0 %v2962_v59  ;;  %v13611_v55 = vpop.f32.mrb[102].mxu0 }
 0x2b1   :  { %v11135_v0 = vpop.f32.mrb[103].mxu0  ;;  %v2965_v1 = vsel %vm2907_vm4, %v13609_v11, -inf  ;;  %v11081_v42 = vpop.f32.mrb[135].mxu1  ;;  %v3019_v48 = vsel %vm2907_vm4, %v13611_v55, -inf }
 0x2b2   :  { %2966 = vmax.xlane.f32.xlu1 %v2965_v1 }
 0x2b4   :  { %3017 = vmax.xlane.f32.xlu0 %v3016_v21 }
 0x2b6   :  { %v13619_v54 = vpop.f32.mrb[136].mxu1  ;;  %3020 = vmax.xlane.f32.xlu1 %v3019_v48  ;;  %v13621_v33 = vpop.f32.mrb[104].mxu0 }
 0x2b7   :  { %v11086_v59 = vpop.f32.mrb[137].mxu1  ;;  %v11146_v35 = vpop.f32.mrb[105].mxu0  ;;  %v2968_v0 = vsel %vm2907_vm4, %v13619_v54, -inf  ;;  %v3028_v48 = vsel %vm2907_vm4, %v13621_v33, -inf }
 0x2b8   :  { %v13625_v40 = vpop.f32.mrb[138].mxu1  ;;  %2969 = vmax.xlane.f32.xlu0 %v2968_v0  ;;  %v13627_v42 = vpop.f32.mrb[106].mxu0 }
 0x2b9   :  { %v11147_v1 = vpop.f32.mrb[107].mxu0  ;;  %v2971_v21 = vsel %vm2907_vm4, %v13625_v40, -inf  ;;  %v11087_v18 = vpop.f32.mrb[139].mxu1  ;;  %v3031_v35 = vsel %vm2907_vm4, %v13627_v42, -inf }
 0x2ba   :  { %2972 = vmax.xlane.f32.xlu1 %v2971_v21 }
 0x2bc   :  { %3029 = vmax.xlane.f32.xlu0 %v3028_v48 }
 0x2be   :  { %v13635_v59 = vpop.f32.mrb[140].mxu1  ;;  %3032 = vmax.xlane.f32.xlu1 %v3031_v35  ;;  %v13637_v14 = vpop.f32.mrb[108].mxu0 }
 0x2bf   :  { %v11092_v0 = vpop.f32.mrb[141].mxu1  ;;  %v11158_v32 = vpop.f32.mrb[109].mxu0  ;;  %v2974_v1 = vsel %vm2907_vm4, %v13635_v59, -inf  ;;  %v3040_v35 = vsel %vm2907_vm4, %v13637_v14, -inf }
 0x2c0   :  { %v13641_v20 = vpop.f32.mrb[142].mxu1  ;;  %2975 = vmax.xlane.f32.xlu0 %v2974_v1  ;;  %v13643_v18 = vpop.f32.mrb[110].mxu0 }
 0x2c1   :  { %v11159_v21 = vpop.f32.mrb[111].mxu0  ;;  %v2977_v48 = vsel %vm2907_vm4, %v13641_v20, -inf  ;;  %v11093_v30 = vpop.f32.mrb[143].mxu1  ;;  %v3043_v32 = vsel %vm2907_vm4, %v13643_v18, -inf }
 0x2c2   :  { %2978 = vmax.xlane.f32.xlu1 %v2977_v48 }
 0x2c4   :  { %3041 = vmax.xlane.f32.xlu0 %v3040_v35 }
 0x2c6   :  { %v13651_v0 = vpop.f32.mrb[144].mxu1  ;;  %3044 = vmax.xlane.f32.xlu1 %v3043_v32  ;;  %v13653_v60 = vpop.f32.mrb[112].mxu0 }
 0x2c7   :  { %v11098_v1 = vpop.f32.mrb[145].mxu1  ;;  %v11170_v36 = vpop.f32.mrb[113].mxu0  ;;  %v2980_v21 = vsel %vm2907_vm4, %v13651_v0, -inf  ;;  %v3052_v32 = vsel %vm2907_vm4, %v13653_v60, -inf }
 0x2c8   :  { %v13657_v49 = vpop.f32.mrb[146].mxu1  ;;  %2981 = vmax.xlane.f32.xlu0 %v2980_v21  ;;  %v13659_v30 = vpop.f32.mrb[114].mxu0 }
 0x2c9   :  { %v11171_v48 = vpop.f32.mrb[115].mxu0  ;;  %v2983_v35 = vsel %vm2907_vm4, %v13657_v49, -inf  ;;  %v11099_v24 = vpop.f32.mrb[147].mxu1  ;;  %v3055_v36 = vsel %vm2907_vm4, %v13659_v30, -inf }
 0x2ca   :  { %2984 = vmax.xlane.f32.xlu1 %v2983_v35 }
 0x2cc   :  { %3053 = vmax.xlane.f32.xlu0 %v3052_v32 }
 0x2ce   :  { %v13667_v1 = vpop.f32.mrb[148].mxu1  ;;  %3056 = vmax.xlane.f32.xlu1 %v3055_v36  ;;  %v13669_v26 = vpop.f32.mrb[116].mxu0 }
 0x2cf   :  { %v11104_v21 = vpop.f32.mrb[149].mxu1  ;;  %v11182_v39 = vpop.f32.mrb[117].mxu0  ;;  %v2986_v48 = vsel %vm2907_vm4, %v13667_v1, -inf  ;;  %v3064_v36 = vsel %vm2907_vm4, %v13669_v26, -inf }
 0x2d0   :  { %v13673_v29 = vpop.f32.mrb[150].mxu1  ;;  %2987 = vmax.xlane.f32.xlu0 %v2986_v48  ;;  %v13675_v24 = vpop.f32.mrb[118].mxu0 }
 0x2d1   :  { %v11183_v35 = vpop.f32.mrb[119].mxu0  ;;  %v2989_v32 = vsel %vm2907_vm4, %v13673_v29, -inf  ;;  %v11105_v5 = vpop.f32.mrb[151].mxu1  ;;  %v3067_v39 = vsel %vm2907_vm4, %v13675_v24, -inf }
 0x2d2   :  { %2990 = vmax.xlane.f32.xlu1 %v2989_v32 }
 0x2d4   :  { %3065 = vmax.xlane.f32.xlu0 %v3064_v36 }
 0x2d6   :  { %3068 = vmax.xlane.f32.xlu1 %v3067_v39  ;;  %v13683_v21 = vpop.f32.mrb[152].mxu1  ;;  %v13685_v56 = vpop.f32.mrb[120].mxu0 }
 0x2d7   :  { %v11110_v48 = vpop.f32.mrb[153].mxu1  ;;  %v11194_v9 = vpop.f32.mrb[121].mxu0  ;;  %v2992_v35 = vsel %vm2907_vm4, %v13683_v21, -inf  ;;  %v3076_v39 = vsel %vm2907_vm4, %v13685_v56, -inf }
 0x2d8   :  { %v13689_v37 = vpop.f32.mrb[122].mxu0  ;;  %2993 = vmax.xlane.f32.xlu0 %v2992_v35  ;;  %v13691_v5 = vpop.f32.mrb[154].mxu1 }
 0x2d9   :  { %v11195_v32 = vpop.f32.mrb[123].mxu0  ;;  %v2995_v36 = vsel %vm2907_vm4, %v13691_v5, -inf  ;;  %v11111_v8 = vpop.f32.mrb[155].mxu1  ;;  %v3079_v9 = vsel %vm2907_vm4, %v13689_v37, -inf }
 0x2da   :  { %2996 = vmax.xlane.f32.xlu1 %v2995_v36 }
 0x2dc   :  { %3077 = vmax.xlane.f32.xlu0 %v3076_v39 }
 0x2de   :  { %v13699_v48 = vpop.f32.mrb[124].mxu0  ;;  %3080 = vmax.xlane.f32.xlu1 %v3079_v9  ;;  %v13701_v57 = vpop.f32.mrb[156].mxu1 }
 0x2df   :  { %16218 = vst [vmem:[#allocation115_spill] sm:$0xff] %v13699_v48  ;;  %v11116_v35 = vpop.f32.mrb[157].mxu1  ;;  %v11206_v41 = vpop.f32.mrb[125].mxu0  ;;  %v2998_v32 = vsel %vm2907_vm4, %v13701_v57, -inf  ;;  %v3088_v9 = vsel %vm2907_vm4, %v13699_v48, -inf }
 0x2e0   :  { %v13705_v16 = vpop.f32.mrb[126].mxu0  ;;  %2999 = vmax.xlane.f32.xlu0 %v2998_v32  ;;  %v13707_v8 = vpop.f32.mrb[158].mxu1 }
 0x2e1   :  { %16219 = vst [vmem:[#allocation116_spill] sm:$0xff] %v13705_v16  ;;  %v11207_v36 = vpop.f32.mrb[127].mxu0  ;;  %v3001_v39 = vsel %vm2907_vm4, %v13707_v8, -inf  ;;  %v11117_v23 = vpop.f32.mrb[159].mxu1  ;;  %v3091_v41 = vsel %vm2907_vm4, %v13705_v16, -inf }
 0x2e2   :  { %3002 = vmax.xlane.f32.xlu1 %v3001_v39 }
 0x2e4   :  { %3089 = vmax.xlane.f32.xlu0 %v3088_v9 }
 0x2e6   :  { %3092 = vmax.xlane.f32.xlu1 %v3091_v41  ;;  %v13715_v35 = vpop.f32.mrb[160].mxu1 }
 0x2e7   :  { %v11128_v4 = vpop.f32.mrb[161].mxu1  ;;  %v3010_v32 = vsel %vm2907_vm4, %v13715_v35, -inf }
 0x2e8   :  { %3011 = vmax.xlane.f32.xlu0 %v3010_v32  ;;  %v13719_v36 = vpop.f32.mrb[162].mxu1 }
 0x2e9   :  { %v11129_v61 = vpop.f32.mrb[163].mxu1  ;;  %v3013_v23 = vsel %vm2907_vm4, %v13719_v36, -inf }
 0x2ea   :  { %3014 = vmax.xlane.f32.xlu1 %v3013_v23 }
 0x2ee   :  { %v13723_v39 = vpop.f32.mrb[164].mxu1 }
 0x2ef   :  { %v11140_v9 = vpop.f32.mrb[165].mxu1  ;;  %v3022_v41 = vsel %vm2907_vm4, %v13723_v39, -inf }
 0x2f0   :  { %3023 = vmax.xlane.f32.xlu0 %v3022_v41  ;;  %v13727_v12 = vpop.f32.mrb[166].mxu1 }
 0x2f1   :  { %v11141_v4 = vpop.f32.mrb[167].mxu1  ;;  %v3025_v32 = vsel %vm2907_vm4, %v13727_v12, -inf }
 0x2f2   :  { %3026 = vmax.xlane.f32.xlu1 %v3025_v32 }
 0x2f5   :  { %v2910_v25 = vpop.xlane.xlu0 %2909 }
 0x2f6   :  { %v3100_v61 = vsub.f32 %v13523_v53, %v2910_v25  ;;  %v13732_v13 = vpop.f32.mrb[168].mxu1 }
 0x2f7   :  { %v11152_v23 = vpop.f32.mrb[169].mxu1  ;;  %v3034_v9 = vsel %vm2907_vm4, %v13732_v13, -inf }
 0x2f8   :  { %v3164_v15 = vmul.f32 1.442695, %v3100_v61  ;;  %3035 = vmax.xlane.f32.xlu0 %v3034_v9  ;;  %v13736_v27 = vpop.f32.mrb[170].mxu1 }
 0x2f9   :  { %v2913_v41 = vpop.xlane.xlu0 %2912  ;;  %v11153_v16 = vpop.f32.mrb[171].mxu1  ;;  %v3037_v4 = vsel %vm2907_vm4, %v13736_v27, -inf }
 0x2fa   :  { %12105 = vpow2.f32 %v3164_v15  ;;  %v3101_v32 = vsub.f32 %v13527_v22, %v2913_v41  ;;  %3038 = vmax.xlane.f32.xlu1 %v3037_v4 }
 0x2fc   :  { %v3166_v25 = vmul.f32 1.442695, %v3101_v32 }
 0x2fd   :  { %v2916_v53 = vpop.xlane.xlu1 %2915 }
 0x2fe   :  { %12107 = vpow2.f32 %v3166_v25  ;;  %v3102_v23 = vsub.f32 %v13531_v3, %v2916_v53  ;;  %v13742_v17 = vpop.f32.mrb[172].mxu1 }
 0x2ff   :  { %v11164_v61 = vpop.f32.mrb[173].mxu1  ;;  %v3046_v9 = vsel %vm2907_vm4, %v13742_v17, -inf }
 0x300   :  { %v3168_v28 = vmul.f32 1.442695, %v3102_v23  ;;  %3047 = vmax.xlane.f32.xlu0 %v3046_v9  ;;  %v13746_v16 = vpop.f32.mrb[174].mxu1 }
 0x301   :  { %v2919_v48 = vpop.xlane.xlu1 %2918  ;;  %v11165_v15 = vpop.f32.mrb[175].mxu1  ;;  %v3049_v22 = vsel %vm2907_vm4, %v13746_v16, -inf }
 0x302   :  { %12109 = vpow2.f32 %v3168_v28  ;;  %v3103_v41 = vsub.f32 %v13535_v45, %v2919_v48  ;;  %3050 = vmax.xlane.f32.xlu1 %v3049_v22 }
 0x304   :  { %v13751_v3 = vpop.eup %12105  ;;  %v3170_v4 = vmul.f32 1.442695, %v3103_v41 }
 0x305   :  { %v2922_v32 = vpop.xlane.xlu0 %2921  ;;  %v3292_v25 = vsel %vm2907_vm4, %v13751_v3, 0.0 }
 0x306   :  { %12111 = vpow2.f32 %v3170_v4  ;;  %v3104_v53 = vsub.f32 %v13539_v34, %v2922_v32  ;;  %3293 = vadd.xlane.f32.xlu0 %v3292_v25  ;;  %v13756_v23 = vpop.f32.mrb[176].mxu1 }
 0x307   :  { %v2925_v61 = vpop.xlane.xlu1 %2924  ;;  %v11176_v9 = vpop.f32.mrb[177].mxu1  ;;  %v3058_v4 = vsel %vm2907_vm4, %v13756_v23, -inf }
 0x308   :  { %v13758_v15 = vpop.eup %12107  ;;  %v3172_v28 = vmul.f32 1.442695, %v3104_v53  ;;  %v3105_v45 = vsub.f32 %v13543_v43, %v2925_v61  ;;  %v13761_v48 = vpop.f32.mrb[178].mxu1 }
 0x309   :  { %16220 = vst [vmem:[#allocation117_spill] sm:$0xff] %v13758_v15  ;;  %v11177_v22 = vpop.f32.mrb[179].mxu1  ;;  %v3295_v41 = vsel %vm2907_vm4, %v13758_v15, 0.0  ;;  %v3061_v53 = vsel %vm2907_vm4, %v13761_v48, -inf }
 0x30a   :  { %12113 = vpow2.f32 %v3172_v28  ;;  %v3174_v34 = vmul.f32 1.442695, %v3105_v45  ;;  %3296 = vadd.xlane.f32.xlu1 %v3295_v41  ;;  %3059 = vmax.xlane.f32.xlu0 %v3058_v4 }
 0x30c   :  { %v13767_v32 = vpop.eup %12109  ;;  %12115 = vpow2.f32 %v3174_v34 }
 0x30d   :  { %16221 = vst [vmem:[#allocation118_spill] sm:$0xff] %v13767_v32  ;;  %v2928_v25 = vpop.xlane.xlu0 %2927  ;;  %v3298_v43 = vsel %vm2907_vm4, %v13767_v32, 0.0 }
 0x30e   :  { %v3106_v61 = vsub.f32 %v13547_v62, %v2928_v25  ;;  %3299 = vadd.xlane.f32.xlu0 %v3298_v43  ;;  %3062 = vmax.xlane.f32.xlu1 %v3061_v53  ;;  %v13774_v9 = vpop.f32.mrb[180].mxu1 }
 0x30f   :  { %v2931_v28 = vpop.xlane.xlu1 %2930  ;;  %v11188_v45 = vpop.f32.mrb[181].mxu1  ;;  %v3070_v62 = vsel %vm2907_vm4, %v13774_v9, -inf }
 0x310   :  { %v13776_v22 = vpop.eup %12111  ;;  %v3176_v41 = vmul.f32 1.442695, %v3106_v61  ;;  %v3107_v4 = vsub.f32 %v13551_v51, %v2931_v28  ;;  %v13779_v34 = vpop.f32.mrb[182].mxu1 }
 0x311   :  { %16222 = vst [vmem:[#allocation119_spill] sm:$0xff] %v13776_v22  ;;  %16223 = vst [vmem:[#allocation120_spill] sm:$0xff] %v13779_v34  ;;  %v11189_v15 = vpop.f32.mrb[183].mxu1  ;;  %v3301_v32 = vsel %vm2907_vm4, %v13776_v22, 0.0 }
 0x312   :  { %12117 = vpow2.f32 %v3176_v41  ;;  %v3178_v25 = vmul.f32 1.442695, %v3107_v4  ;;  %3302 = vadd.xlane.f32.xlu1 %v3301_v32  ;;  %3071 = vmax.xlane.f32.xlu0 %v3070_v62  ;;  %v3073_v15 = vsel %vm2907_vm4, %v13779_v34, -inf }
 0x314   :  { %v13785_v43 = vpop.eup %12113  ;;  %12119 = vpow2.f32 %v3178_v25 }
 0x315   :  { %16224 = vst [vmem:[#allocation121_spill] sm:$0xff] %v13785_v43  ;;  %v2934_v53 = vpop.xlane.xlu0 %2933  ;;  %v3304_v51 = vsel %vm2907_vm4, %v13785_v43, 0.0 }
 0x316   :  { %v13791_v61 = vpop.eup %12115  ;;  %v3108_v28 = vsub.f32 %v13555_v46, %v2934_v53  ;;  %3305 = vadd.xlane.f32.xlu0 %v3304_v51  ;;  %3074 = vmax.xlane.f32.xlu1 %v3073_v15  ;;  %v13794_v45 = vpop.f32.mrb[184].mxu1 }
 0x317   :  { %16225 = vst [vmem:[#allocation122_spill] sm:$0xff] %v13791_v61  ;;  %v2937_v32 = vpop.xlane.xlu1 %2936  ;;  %v11200_v41 = vpop.f32.mrb[185].mxu1  ;;  %v3307_v43 = vsel %vm2907_vm4, %v13791_v61, 0.0  ;;  %v3082_v34 = vsel %vm2907_vm4, %v13794_v45, -inf }
 0x318   :  { %v3180_v4 = vmul.f32 1.442695, %v3108_v28  ;;  %v3109_v62 = vsub.f32 %v13559_v10, %v2937_v32  ;;  %v13797_v25 = vpop.f32.mrb[186].mxu1 }
 0x319   :  { %v11201_v22 = vpop.f32.mrb[187].mxu1 }
 0x31a   :  { %12121 = vpow2.f32 %v3180_v4  ;;  %v3182_v46 = vmul.f32 1.442695, %v3109_v62  ;;  %3308 = vadd.xlane.f32.xlu1 %v3307_v43  ;;  %3083 = vmax.xlane.f32.xlu0 %v3082_v34  ;;  %v3085_v22 = vsel %vm2907_vm4, %v13797_v25, -inf }
 0x31c   :  { %v13803_v53 = vpop.eup %12117  ;;  %12123 = vpow2.f32 %v3182_v46 }
 0x31d   :  { %16226 = vst [vmem:[#allocation123_spill] sm:$0xff] %v13803_v53  ;;  %v2940_v51 = vpop.xlane.xlu0 %2939  ;;  %v3310_v10 = vsel %vm2907_vm4, %v13803_v53, 0.0 }
 0x31e   :  { %v13809_v15 = vpop.eup %12119  ;;  %v3110_v28 = vsub.f32 %v13563_v31, %v2940_v51  ;;  %3311 = vadd.xlane.f32.xlu0 %v3310_v10  ;;  %3086 = vmax.xlane.f32.xlu1 %v3085_v22  ;;  %v13812_v32 = vpop.f32.mrb[188].mxu1 }
 0x31f   :  { %v2943_v43 = vpop.xlane.xlu1 %2942  ;;  %v11212_v34 = vpop.f32.mrb[189].mxu1  ;;  %v3313_v53 = vsel %vm2907_vm4, %v13809_v15, 0.0  ;;  %v3094_v61 = vsel %vm2907_vm4, %v13812_v32, -inf }
 0x320   :  { %v3184_v41 = vmul.f32 1.442695, %v3110_v28  ;;  %v3111_v4 = vsub.f32 %v13567_v63, %v2943_v43  ;;  %v13815_v62 = vpop.f32.mrb[190].mxu1 }
 0x321   :  { %v11213_v46 = vpop.f32.mrb[191].mxu1  ;;  %v3097_v22 = vsel %vm2907_vm4, %v13815_v62, -inf }
 0x322   :  { %12125 = vpow2.f32 %v3184_v41  ;;  %v3186_v31 = vmul.f32 1.442695, %v3111_v4  ;;  %3314 = vadd.xlane.f32.xlu1 %v3313_v53  ;;  %3095 = vmax.xlane.f32.xlu0 %v3094_v61 }
 0x324   :  { %v13821_v51 = vpop.eup %12121  ;;  %12127 = vpow2.f32 %v3186_v31 }
 0x325   :  { %16227 = vst [vmem:[#allocation124_spill] sm:$0xff] %v13821_v51  ;;  %v2946_v10 = vpop.xlane.xlu0 %2945  ;;  %v3316_v63 = vsel %vm2907_vm4, %v13821_v51, 0.0 }
 0x326   :  { %v13827_v28 = vpop.eup %12123  ;;  %v3112_v43 = vsub.f32 %v13571_v19, %v2946_v10  ;;  %3317 = vadd.xlane.f32.xlu0 %v3316_v63  ;;  %3098 = vmax.xlane.f32.xlu1 %v3097_v22 }
 0x327   :  { %v2949_v34 = vpop.xlane.xlu1 %2948  ;;  %v3319_v53 = vsel %vm2907_vm4, %v13827_v28, 0.0 }
 0x328   :  { %v3188_v41 = vmul.f32 1.442695, %v3112_v43  ;;  %v3113_v61 = vsub.f32 %v13575_v38, %v2949_v34 }
 0x32a   :  { %12129 = vpow2.f32 %v3188_v41  ;;  %v3190_v4 = vmul.f32 1.442695, %v3113_v61  ;;  %3320 = vadd.xlane.f32.xlu1 %v3319_v53 }
 0x32c   :  { %v13833_v46 = vpop.eup %12125  ;;  %12131 = vpow2.f32 %v3190_v4 }
 0x32d   :  { %v2952_v31 = vpop.xlane.xlu0 %2951  ;;  %v3322_v51 = vsel %vm2907_vm4, %v13833_v46, 0.0 }
 0x32e   :  { %v13837_v19 = vpop.eup %12127  ;;  %v3114_v10 = vsub.f32 %v13579_v47, %v2952_v31  ;;  %3323 = vadd.xlane.f32.xlu0 %v3322_v51 }
 0x32f   :  { %v2955_v63 = vpop.xlane.xlu1 %2954  ;;  %v3325_v38 = vsel %vm2907_vm4, %v13837_v19, 0.0 }
 0x330   :  { %v3192_v22 = vmul.f32 1.442695, %v3114_v10  ;;  %v3115_v43 = vsub.f32 %v13583_v52, %v2955_v63  ;;  %3326 = vadd.xlane.f32.xlu1 %v3325_v38 }
 0x332   :  { %12133 = vpow2.f32 %v3192_v22  ;;  %v3194_v34 = vmul.f32 1.442695, %v3115_v43 }
 0x334   :  { %v13843_v41 = vpop.eup %12129  ;;  %12135 = vpow2.f32 %v3194_v34 }
 0x335   :  { %v2958_v61 = vpop.xlane.xlu0 %2957  ;;  %v3328_v53 = vsel %vm2907_vm4, %v13843_v41, 0.0 }
 0x336   :  { %v13847_v4 = vpop.eup %12131  ;;  %v3116_v47 = vsub.f32 %v13587_v58, %v2958_v61  ;;  %3329 = vadd.xlane.f32.xlu0 %v3328_v53 }
 0x337   :  { %16228 = vst [vmem:[#allocation125_spill] sm:$0xff] %v13847_v4  ;;  %v2961_v51 = vpop.xlane.xlu1 %2960  ;;  %v3331_v31 = vsel %vm2907_vm4, %v13847_v4, 0.0 }
 0x338   :  { %v3196_v52 = vmul.f32 1.442695, %v3116_v47  ;;  %v3117_v10 = vsub.f32 %v13593_v2, %v2961_v51  ;;  %3332 = vadd.xlane.f32.xlu1 %v3331_v31 }
 0x339   :  { %v13853_v63 = vpop.xlane.xlu0 %3005 }
 0x33a   :  { %12137 = vpow2.f32 %v3196_v52  ;;  %v3198_v38 = vmul.f32 1.442695, %v3117_v10 }
 0x33b   :  { %v13855_v22 = vpop.xlane.xlu1 %3008 }
 0x33c   :  { %v13857_v43 = vpop.eup %12133  ;;  %12139 = vpow2.f32 %v3198_v38 }
 0x33d   :  { %16229 = vst [vmem:[#allocation126_spill] sm:$0xff] %v13857_v43  ;;  %v2964_v34 = vpop.xlane.xlu0 %2963  ;;  %v3334_v58 = vsel %vm2907_vm4, %v13857_v43, 0.0 }
 0x33e   :  { %v13861_v61 = vpop.eup %12135  ;;  %v3118_v53 = vsub.f32 %v13603_v44, %v2964_v34  ;;  %3335 = vadd.xlane.f32.xlu0 %v3334_v58 }
 0x33f   :  { %16230 = vst [vmem:[#allocation127_spill] sm:$0xff] %v13861_v61  ;;  %v2967_v2 = vpop.xlane.xlu1 %2966  ;;  %v3337_v47 = vsel %vm2907_vm4, %v13861_v61, 0.0 }
 0x340   :  { %v3200_v51 = vmul.f32 1.442695, %v3118_v53  ;;  %v3119_v31 = vsub.f32 %v13609_v11, %v2967_v2  ;;  %3338 = vadd.xlane.f32.xlu1 %v3337_v47 }
 0x341   :  { %v13867_v52 = vpop.xlane.xlu0 %3017 }
 0x342   :  { %12141 = vpow2.f32 %v3200_v51  ;;  %v3202_v10 = vmul.f32 1.442695, %v3119_v31 }
 0x343   :  { %v13869_v38 = vpop.xlane.xlu1 %3020 }
 0x344   :  { %v13871_v43 = vpop.eup %12137  ;;  %12143 = vpow2.f32 %v3202_v10 }
 0x345   :  { %16231 = vst [vmem:[#allocation128_spill] sm:$0xff] %v13871_v43  ;;  %v2970_v4 = vpop.xlane.xlu0 %2969  ;;  %v3340_v44 = vsel %vm2907_vm4, %v13871_v43, 0.0 }
 0x346   :  { %v13875_v34 = vpop.eup %12139  ;;  %v3120_v58 = vsub.f32 %v13619_v54, %v2970_v4  ;;  %3341 = vadd.xlane.f32.xlu0 %v3340_v44 }
 0x347   :  { %16232 = vst [vmem:[#allocation129_spill] sm:$0xff] %v13875_v34  ;;  %v2973_v11 = vpop.xlane.xlu1 %2972  ;;  %v3343_v53 = vsel %vm2907_vm4, %v13875_v34, 0.0 }
 0x348   :  { %v3204_v2 = vmul.f32 1.442695, %v3120_v58  ;;  %v3121_v47 = vsub.f32 %v13625_v40, %v2973_v11  ;;  %3344 = vadd.xlane.f32.xlu1 %v3343_v53 }
 0x349   :  { %v13881_v51 = vpop.xlane.xlu0 %3029 }
 0x34a   :  { %12145 = vpow2.f32 %v3204_v2  ;;  %v3206_v31 = vmul.f32 1.442695, %v3121_v47 }
 0x34b   :  { %v13883_v10 = vpop.xlane.xlu1 %3032 }
 0x34c   :  { %v13885_v43 = vpop.eup %12141  ;;  %12147 = vpow2.f32 %v3206_v31 }
 0x34d   :  { %16233 = vst [vmem:[#allocation130_spill] sm:$0xff] %v13885_v43  ;;  %v2976_v61 = vpop.xlane.xlu0 %2975  ;;  %v3346_v54 = vsel %vm2907_vm4, %v13885_v43, 0.0 }
 0x34e   :  { %v13889_v4 = vpop.eup %12143  ;;  %v3122_v44 = vsub.f32 %v13635_v59, %v2976_v61  ;;  %3347 = vadd.xlane.f32.xlu0 %v3346_v54 }
 0x34f   :  { %16234 = vst [vmem:[#allocation131_spill] sm:$0xff] %v13889_v4  ;;  %v2979_v40 = vpop.xlane.xlu1 %2978  ;;  %v3349_v58 = vsel %vm2907_vm4, %v13889_v4, 0.0 }
 0x350   :  { %v3208_v11 = vmul.f32 1.442695, %v3122_v44  ;;  %v3123_v53 = vsub.f32 %v13641_v20, %v2979_v40  ;;  %3350 = vadd.xlane.f32.xlu1 %v3349_v58 }
 0x351   :  { %v13895_v2 = vpop.xlane.xlu0 %3041 }
 0x352   :  { %12149 = vpow2.f32 %v3208_v11  ;;  %v3210_v47 = vmul.f32 1.442695, %v3123_v53 }
 0x353   :  { %v13897_v31 = vpop.xlane.xlu1 %3044 }
 0x354   :  { %v13899_v43 = vpop.eup %12145  ;;  %12151 = vpow2.f32 %v3210_v47 }
 0x355   :  { %16235 = vst [vmem:[#allocation132_spill] sm:$0xff] %v13899_v43  ;;  %v2982_v34 = vpop.xlane.xlu0 %2981  ;;  %v3352_v59 = vsel %vm2907_vm4, %v13899_v43, 0.0 }
 0x356   :  { %v13903_v61 = vpop.eup %12147  ;;  %v3124_v54 = vsub.f32 %v13651_v0, %v2982_v34  ;;  %3353 = vadd.xlane.f32.xlu0 %v3352_v59 }
 0x357   :  { %16236 = vst [vmem:[#allocation133_spill] sm:$0xff] %v13903_v61  ;;  %v2985_v20 = vpop.xlane.xlu1 %2984  ;;  %v3355_v44 = vsel %vm2907_vm4, %v13903_v61, 0.0 }
 0x358   :  { %v3212_v40 = vmul.f32 1.442695, %v3124_v54  ;;  %v3125_v58 = vsub.f32 %v13657_v49, %v2985_v20  ;;  %3356 = vadd.xlane.f32.xlu1 %v3355_v44 }
 0x359   :  { %v13909_v11 = vpop.xlane.xlu0 %3053 }
 0x35a   :  { %12153 = vpow2.f32 %v3212_v40  ;;  %v3214_v53 = vmul.f32 1.442695, %v3125_v58 }
 0x35b   :  { %v13911_v47 = vpop.xlane.xlu1 %3056 }
 0x35c   :  { %v13913_v43 = vpop.eup %12149  ;;  %12155 = vpow2.f32 %v3214_v53 }
 0x35d   :  { %16237 = vst [vmem:[#allocation134_spill] sm:$0xff] %v13913_v43  ;;  %v2988_v4 = vpop.xlane.xlu0 %2987  ;;  %v3358_v0 = vsel %vm2907_vm4, %v13913_v43, 0.0 }
 0x35e   :  { %v13917_v34 = vpop.eup %12151  ;;  %v3126_v59 = vsub.f32 %v13667_v1, %v2988_v4  ;;  %3359 = vadd.xlane.f32.xlu0 %v3358_v0 }
 0x35f   :  { %16238 = vst [vmem:[#allocation135_spill] sm:$0xff] %v13917_v34  ;;  %v2991_v49 = vpop.xlane.xlu1 %2990  ;;  %v3361_v54 = vsel %vm2907_vm4, %v13917_v34, 0.0 }
 0x360   :  { %v3216_v20 = vmul.f32 1.442695, %v3126_v59  ;;  %v3127_v44 = vsub.f32 %v13673_v29, %v2991_v49  ;;  %3362 = vadd.xlane.f32.xlu1 %v3361_v54 }
 0x361   :  { %v13923_v40 = vpop.xlane.xlu0 %3065 }
 0x362   :  { %12157 = vpow2.f32 %v3216_v20  ;;  %v3218_v58 = vmul.f32 1.442695, %v3127_v44 }
 0x363   :  { %v13925_v53 = vpop.xlane.xlu1 %3068 }
 0x364   :  { %v13927_v43 = vpop.eup %12153  ;;  %12159 = vpow2.f32 %v3218_v58  ;;  %v3132_v58 = vsub.f32 %v13589_v6, %v13853_v63 }
 0x365   :  { %16239 = vst [vmem:[#allocation136_spill] sm:$0xff] %v13927_v43  ;;  %v2994_v61 = vpop.xlane.xlu0 %2993  ;;  %v3364_v1 = vsel %vm2907_vm4, %v13927_v43, 0.0 }
 0x366   :  { %v13931_v4 = vpop.eup %12155  ;;  %v3128_v0 = vsub.f32 %v13683_v21, %v2994_v61  ;;  %3365 = vadd.xlane.f32.xlu0 %v3364_v1 }
 0x367   :  { %v2997_v29 = vpop.xlane.xlu1 %2996  ;;  %v3367_v59 = vsel %vm2907_vm4, %v13931_v4, 0.0 }
 0x368   :  { %v3220_v49 = vmul.f32 1.442695, %v3128_v0  ;;  %v3129_v54 = vsub.f32 %v13691_v5, %v2997_v29  ;;  %3368 = vadd.xlane.f32.xlu1 %v3367_v59  ;;  %v3133_v5 = vsub.f32 %v13595_v50, %v13855_v22  ;;  %v3228_v29 = vmul.f32 1.442695, %v3132_v58 }
 0x369   :  { %v13937_v20 = vpop.xlane.xlu0 %3077  ;;  %v3136_v50 = vsub.f32 %v13605_v7, %v13867_v52 }
 0x36a   :  { %12161 = vpow2.f32 %v3220_v49  ;;  %v3222_v44 = vmul.f32 1.442695, %v3129_v54 }
 0x36b   :  { %v13941_v43 = vpop.xlane.xlu1 %3080 }
 0x36c   :  { %v13943_v34 = vpop.eup %12157  ;;  %12163 = vpow2.f32 %v3222_v44  ;;  %v3230_v44 = vmul.f32 1.442695, %v3133_v5 }
 0x36d   :  { %16240 = vst [vmem:[#allocation137_spill] sm:$0xff] %v13943_v34  ;;  %v3000_v21 = vpop.xlane.xlu0 %2999  ;;  %v3370_v61 = vsel %vm2907_vm4, %v13943_v34, 0.0 }
 0x36e   :  { %v13947_v1 = vpop.eup %12159  ;;  %v3130_v0 = vsub.f32 %v13701_v57, %v3000_v21  ;;  %3371 = vadd.xlane.f32.xlu0 %v3370_v61  ;;  %v3137_v61 = vsub.f32 %v13611_v55, %v13869_v38 }
 0x36f   :  { %v3003_v59 = vpop.xlane.xlu1 %3002  ;;  %v3373_v6 = vsel %vm2907_vm4, %v13947_v1, 0.0 }
 0x370   :  { %v3224_v63 = vmul.f32 1.442695, %v3130_v0  ;;  %v3131_v49 = vsub.f32 %v13707_v8, %v3003_v59  ;;  %3374 = vadd.xlane.f32.xlu1 %v3373_v6  ;;  %v3236_v0 = vmul.f32 1.442695, %v3136_v50  ;;  %v3238_v59 = vmul.f32 1.442695, %v3137_v61 }
 0x371   :  { %v13955_v54 = vpop.xlane.xlu0 %3089 }
 0x372   :  { %12165 = vpow2.f32 %v3224_v63  ;;  %v3226_v34 = vmul.f32 1.442695, %v3131_v49  ;;  %v3140_v63 = vsub.f32 %v13621_v33, %v13881_v51 }
 0x373   :  { %12167 = vpow2.f32 %v3228_v29  ;;  %v13959_v57 = vpop.xlane.xlu1 %3092 }
 0x374   :  { %v13961_v22 = vpop.eup %12161  ;;  %12169 = vpow2.f32 %v3226_v34 }
 0x375   :  { %v3012_v58 = vpop.xlane.xlu0 %3011  ;;  %v3376_v21 = vsel %vm2907_vm4, %v13961_v22, 0.0  ;;  %12171 = vpow2.f32 %v3230_v44 }
 0x376   :  { %v13965_v8 = vpop.eup %12163  ;;  %v3134_v5 = vsub.f32 %v13715_v35, %v3012_v58  ;;  %3377 = vadd.xlane.f32.xlu0 %v3376_v21  ;;  %v3244_v58 = vmul.f32 1.442695, %v3140_v63 }
 0x377   :  { %v3015_v7 = vpop.xlane.xlu1 %3014  ;;  %v3379_v52 = vsel %vm2907_vm4, %v13965_v8, 0.0 }
 0x378   :  { %v3232_v29 = vmul.f32 1.442695, %v3134_v5  ;;  %v3135_v34 = vsub.f32 %v13719_v36, %v3015_v7  ;;  %3380 = vadd.xlane.f32.xlu1 %v3379_v52  ;;  %v3141_v36 = vsub.f32 %v13627_v42, %v13883_v10 }
 0x37a   :  { %12173 = vpow2.f32 %v3232_v29  ;;  %v3234_v6 = vmul.f32 1.442695, %v3135_v34  ;;  %v3246_v7 = vmul.f32 1.442695, %v3141_v36 }
 0x37b   :  { %12175 = vpow2.f32 %v3236_v0 }
 0x37c   :  { %v13975_v55 = vpop.eup %12165  ;;  %12177 = vpow2.f32 %v3234_v6  ;;  %v3145_v6 = vsub.f32 %v13643_v18, %v13897_v31 }
 0x37d   :  { %v13977_v35 = vpop.eup %12167  ;;  %v3024_v38 = vpop.xlane.xlu0 %3023  ;;  %v3382_v49 = vsel %vm2907_vm4, %v13975_v55, 0.0  ;;  %12179 = vpow2.f32 %v3238_v59 }
 0x37e   :  { %v13981_v44 = vpop.eup %12169  ;;  %v3138_v50 = vsub.f32 %v13723_v39, %v3024_v38  ;;  %3383 = vadd.xlane.f32.xlu0 %v3382_v49  ;;  %v3388_v0 = vsel %vm2907_vm4, %v13977_v35, 0.0  ;;  %v3144_v39 = vsub.f32 %v13637_v14, %v13895_v2 }
 0x37f   :  { %v3027_v33 = vpop.xlane.xlu1 %3026  ;;  %v3385_v51 = vsel %vm2907_vm4, %v13981_v44, 0.0  ;;  %v13988_v21 = vpop.eup %12171 }
 0x380   :  { %v3240_v61 = vmul.f32 1.442695, %v3138_v50  ;;  %v3139_v5 = vsub.f32 %v13727_v12, %v3027_v33  ;;  %3386 = vadd.xlane.f32.xlu1 %v3385_v51  ;;  %v3391_v10 = vsel %vm2907_vm4, %v13988_v21, 0.0  ;;  %v3252_v2 = vmul.f32 1.442695, %v3144_v39 }
 0x381   :  { %v3254_v33 = vmul.f32 1.442695, %v3145_v6 }
 0x382   :  { %12181 = vpow2.f32 %v3240_v61  ;;  %v3242_v42 = vmul.f32 1.442695, %v3139_v5  ;;  %3389 = vadd.xlane.f32.xlu0 %v3388_v0  ;;  %v3149_v61 = vsub.f32 %v13659_v30, %v13911_v47 }
 0x383   :  { %12183 = vpow2.f32 %v3244_v58 }
 0x384   :  { %v13997_v52 = vpop.eup %12173  ;;  %12185 = vpow2.f32 %v3242_v42  ;;  %3392 = vadd.xlane.f32.xlu1 %v3391_v10  ;;  %v3262_v47 = vmul.f32 1.442695, %v3149_v61 }
 0x385   :  { %v13999_v12 = vpop.eup %12175  ;;  %v3036_v29 = vpop.xlane.xlu0 %3035  ;;  %v3394_v34 = vsel %vm2907_vm4, %v13997_v52, 0.0  ;;  %12187 = vpow2.f32 %v3246_v7 }
 0x386   :  { %v14003_v59 = vpop.eup %12177  ;;  %v3142_v14 = vsub.f32 %v13732_v13, %v3036_v29  ;;  %3395 = vadd.xlane.f32.xlu0 %v3394_v34  ;;  %v3400_v58 = vsel %vm2907_vm4, %v13999_v12, 0.0  ;;  %v3148_v13 = vsub.f32 %v13653_v60, %v13909_v11 }
 0x387   :  { %v3039_v63 = vpop.xlane.xlu1 %3038  ;;  %v3397_v38 = vsel %vm2907_vm4, %v14003_v59, 0.0  ;;  %v14010_v49 = vpop.eup %12179 }
 0x388   :  { %v3248_v36 = vmul.f32 1.442695, %v3142_v14  ;;  %v3143_v50 = vsub.f32 %v13736_v27, %v3039_v63  ;;  %3398 = vadd.xlane.f32.xlu1 %v3397_v38  ;;  %v3403_v31 = vsel %vm2907_vm4, %v14010_v49, 0.0  ;;  %v3260_v11 = vmul.f32 1.442695, %v3148_v13 }
 0x38a   :  { %12189 = vpow2.f32 %v3248_v36  ;;  %v3250_v18 = vmul.f32 1.442695, %v3143_v50  ;;  %3401 = vadd.xlane.f32.xlu0 %v3400_v58  ;;  %v3152_v36 = vsub.f32 %v13669_v26, %v13923_v40  ;;  %v3153_v26 = vsub.f32 %v13675_v24, %v13925_v53 }
 0x38b   :  { %12191 = vpow2.f32 %v3252_v2  ;;  %v3156_v53 = vsub.f32 %v13685_v56, %v13937_v20 }
 0x38c   :  { %v14019_v51 = vpop.eup %12181  ;;  %12193 = vpow2.f32 %v3250_v18  ;;  %3404 = vadd.xlane.f32.xlu1 %v3403_v31  ;;  %v3268_v61 = vmul.f32 1.442695, %v3152_v36  ;;  %v3270_v24 = vmul.f32 1.442695, %v3153_v26  ;;  %v16242_v26 = vld [vmem:[#allocation120_spill] sm:$0xff] }
 0x38d   :  { %v14021_v27 = vpop.eup %12183  ;;  %v3048_v5 = vpop.xlane.xlu0 %3047  ;;  %v3406_v0 = vsel %vm2907_vm4, %v14019_v51, 0.0  ;;  %12195 = vpow2.f32 %v3254_v33  ;;  %v3276_v20 = vmul.f32 1.442695, %v3156_v53 }
 0x38e   :  { %v14027_v7 = vpop.eup %12185  ;;  %v3146_v60 = vsub.f32 %v13742_v17, %v3048_v5  ;;  %3407 = vadd.xlane.f32.xlu0 %v3406_v0  ;;  %v3412_v34 = vsel %vm2907_vm4, %v14021_v27, 0.0 }
 0x38f   :  { %v3051_v42 = vpop.xlane.xlu1 %3050  ;;  %v3409_v39 = vsel %vm2907_vm4, %v14027_v7, 0.0  ;;  %v14032_v10 = vpop.eup %12187 }
 0x390   :  { %v3256_v29 = vmul.f32 1.442695, %v3146_v60  ;;  %v3147_v30 = vsub.f32 %v13746_v16, %v3051_v42  ;;  %3410 = vadd.xlane.f32.xlu1 %v3409_v39  ;;  %v3415_v14 = vsel %vm2907_vm4, %v14032_v10, 0.0 }
 0x392   :  { %12197 = vpow2.f32 %v3256_v29  ;;  %v3258_v6 = vmul.f32 1.442695, %v3147_v30  ;;  %3413 = vadd.xlane.f32.xlu0 %v3412_v34 }
 0x393   :  { %12199 = vpow2.f32 %v3260_v11  ;;  %v3294_v17 = vpop.xlane.xlu0 %3293 }
 0x394   :  { %v14039_v2 = vpop.eup %12189  ;;  %12201 = vpow2.f32 %v3258_v6  ;;  %3416 = vadd.xlane.f32.xlu1 %v3415_v14 }
 0x395   :  { %v14041_v63 = vpop.eup %12191  ;;  %12203 = vpow2.f32 %v3262_v47  ;;  %v3418_v16 = vsel %vm2907_vm4, %v14039_v2, 0.0 }
 0x396   :  { %v14045_v38 = vpop.eup %12193  ;;  %12205 = vrcp.f32 %v3294_v17  ;;  %3419 = vadd.xlane.f32.xlu0 %v3418_v16  ;;  %v3424_v31 = vsel %vm2907_vm4, %v14041_v63, 0.0 }
 0x397   :  { %v3297_v50 = vpop.xlane.xlu1 %3296  ;;  %v3060_v58 = vpop.xlane.xlu0 %3059  ;;  %v3421_v33 = vsel %vm2907_vm4, %v14045_v38, 0.0 }
 0x398   :  { %v14051_v18 = vpop.eup %12195  ;;  %12207 = vrcp.f32 %v3297_v50  ;;  %v3150_v13 = vsub.f32 %v13756_v23, %v3060_v58  ;;  %3422 = vadd.xlane.f32.xlu1 %v3421_v33  ;;  %v3157_v50 = vsub.f32 %v13689_v37, %v13941_v43  ;;  %v16241_v33 = vld [vmem:[#allocation117_spill] sm:$0xff] }
 0x399   :  { %v3427_v60 = vsel %vm2907_vm4, %v14051_v18, 0.0 }
 0x39a   :  { %v3264_v40 = vmul.f32 1.442695, %v3150_v13  ;;  %3425 = vadd.xlane.f32.xlu0 %v3424_v31 }
 0x39b   :  { %v3300_v5 = vpop.xlane.xlu0 %3299  ;;  %v3063_v0 = vpop.xlane.xlu1 %3062 }
 0x39c   :  { %v14060_v11 = vpop.eup %12197  ;;  %12209 = vpow2.f32 %v3264_v40  ;;  %v3151_v23 = vsub.f32 %v13761_v48, %v3063_v0  ;;  %3428 = vadd.xlane.f32.xlu1 %v3427_v60  ;;  %v16243_v60 = vld [vmem:[#allocation115_spill] sm:$0xff] }
 0x39d   :  { %v14063_v42 = vpop.eup %12199  ;;  %v3430_v39 = vsel %vm2907_vm4, %v14060_v11, 0.0  ;;  %12211 = vpow2.f32 %v3268_v61  ;;  %v3160_v37 = vsub.f32 %v16243_v60, %v13955_v54  ;;  %v16245_v54 = vmov 0.0  }
 0x39e   :  { %v14067_v29 = vpop.eup %12201  ;;  %v3266_v30 = vmul.f32 1.442695, %v3151_v23  ;;  %3431 = vadd.xlane.f32.xlu0 %v3430_v39  ;;  %12213 = vrcp.f32 %v3300_v5  ;;  %v3436_v16 = vsel %vm2907_vm4, %v14063_v42, 0.0 }
 0x39f   :  { %v14071_v47 = vpop.eup %12203  ;;  %v3303_v34 = vpop.xlane.xlu1 %3302  ;;  %v3433_v6 = vsel %vm2907_vm4, %v14067_v29, 0.0 }
 0x3a0   :  { %v3072_v48 = vpop.xlane.xlu0 %3071  ;;  %v12206_v17 = vpop.eup %12205  ;;  %12215 = vpow2.f32 %v3266_v30  ;;  %3434 = vadd.xlane.f32.xlu1 %v3433_v6  ;;  %v16244_v30 = vld [vmem:[#allocation66_spill] sm:$0xff] }
 0x3a1   :  { %v3154_v14 = vsub.f32 %v13774_v9, %v3072_v48  ;;  %12217 = vrcp.f32 %v3303_v34  ;;  %v3548_v58 = vmul.f32 %v12206_v17, %v13751_v3  ;;  %v3439_v9 = vsel %vm2907_vm4, %v14071_v47, 0.0 }
 0x3a2   :  { %v12208_v56 = vpop.eup %12207  ;;  %12219 = vpow2.f32 %v3270_v24  ;;  %3437 = vadd.xlane.f32.xlu0 %v3436_v16  ;;  %v3278_v3 = vmul.f32 1.442695, %v3157_v50  ;;  %v3284_v17 = vmul.f32 1.442695, %v3160_v37 }
 0x3a3   :  { %v3272_v36 = vmul.f32 1.442695, %v3154_v14  ;;  %v3549_v13 = vmul.f32 %v12208_v56, %v16241_v33  ;;  %v3075_v61 = vpop.xlane.xlu1 %3074  ;;  %v16246_v56 = vld [vmem:[#allocation116_spill] sm:$0xff] }
 0x3a4   :  { %v3306_v31 = vpop.xlane.xlu0 %3305  ;;  %v3155_v40 = vsub.f32 %v16242_v26, %v3075_v61  ;;  %3440 = vadd.xlane.f32.xlu1 %v3439_v9  ;;  %v16248_v61 = vld [vmem:[#allocation119_spill] sm:$0xff] }
 0x3a5   :  { %12221 = vpow2.f32 %v3272_v36  ;;  %v3612_v5 = vpack.c.bf16 %v3549_v13, %v3548_v58  ;;  %v16247_v13 = vld [vmem:[#allocation118_spill] sm:$0xff] }
 0x3a6   :  { %v14085_v0 = vpop.eup %12209  ;;  %12223 = vpow2.f32 %v3276_v20  ;;  %v3274_v43 = vmul.f32 1.442695, %v3155_v40  ;;  %v3161_v20 = vsub.f32 %v16246_v56, %v13959_v57 }
 0x3a7   :  { %12225 = vrcp.f32 %v3306_v31  ;;  %11217 = vmatmul.mubr.msk.bf16.vlgmr.msra.gmra.mrb[128].mxu0 %vm2907_vm4, %v3612_v5  ;;  %v3309_v23 = vpop.xlane.xlu1 %3308  ;;  %v3442_v24 = vsel %vm2907_vm4, %v14085_v0, 0.0  ;;  %v14092_v53 = vpop.eup %12211 }
 0x3a8   :  { %v3084_v39 = vpop.xlane.xlu0 %3083  ;;  %12227 = vpow2.f32 %v3274_v43  ;;  %11227 = vmatpush3.bf16.msra.mxu0 %v16244_v30  ;;  %3443 = vadd.xlane.f32.xlu0 %v3442_v24  ;;  %v12214_v48 = vpop.eup %12213  ;;  %v3286_v60 = vmul.f32 1.442695, %v3161_v20  ;;  %v16250_v20 = vld [vmem:[#allocation121_spill] sm:$0xff] }
 0x3a9   :  { %v3158_v34 = vsub.f32 %v13794_v45, %v3084_v39  ;;  %12229 = vrcp.f32 %v3309_v23  ;;  %11228 = vmatprep.mubr.msk.bf16.mxu0 %vm12792_vm2, %v16245_v54  ;;  %11238 = vmatprep.subr.bf16.mxu0 %v16245_v54  ;;  %v3448_v45 = vsel %vm2907_vm4, %v14092_v53, 0.0  ;;  %v3550_v31 = vmul.f32 %v12214_v48, %v16247_v13 }
 0x3aa   :  { %v14099_v6 = vpop.eup %12215  ;;  %12231 = vpow2.f32 %v3278_v3 }
 0x3ab   :  { %v3280_v14 = vmul.f32 1.442695, %v3158_v34  ;;  %v12218_v16 = vpop.eup %12217  ;;  %v3087_v50 = vpop.xlane.xlu1 %3086  ;;  %v3445_v58 = vsel %vm2907_vm4, %v14099_v6, 0.0  ;;  %v16249_v34 = vld [vmem:[#allocation65_spill] sm:$0xff] }
 0x3ac   :  { %v3312_v36 = vpop.xlane.xlu0 %3311  ;;  %v14107_v33 = vpop.eup %12219  ;;  %v3551_v9 = vmul.f32 %v12218_v16, %v16248_v61  ;;  %v3159_v26 = vsub.f32 %v13797_v25, %v3087_v50  ;;  %3449 = vadd.xlane.f32.xlu0 %v3448_v45  ;;  %3446 = vadd.xlane.f32.xlu1 %v3445_v58  ;;  %v16251_v50 = vld [vmem:[#allocation122_spill] sm:$0xff] }
 0x3ad   :  { %12233 = vpow2.f32 %v3280_v14  ;;  %v3451_v39 = vsel %vm2907_vm4, %v14107_v33, 0.0 }
 0x3ae   :  { %12235 = vpow2.f32 %v3284_v17  ;;  %v3282_v40 = vmul.f32 1.442695, %v3159_v26  ;;  %v3613_v5 = vpack.c.bf16 %v3551_v9, %v3550_v31 }
 0x3af   :  { %v14112_v57 = vpop.eup %12221  ;;  %12237 = vrcp.f32 %v3312_v36  ;;  %v3315_v37 = vpop.xlane.xlu1 %3314 }
 0x3b0   :  { %v3096_v43 = vpop.xlane.xlu0 %3095  ;;  %v3454_v3 = vsel %vm2907_vm4, %v14112_v57, 0.0  ;;  %v14116_v23 = vpop.eup %12223  ;;  %12239 = vpow2.f32 %v3282_v40  ;;  %11223 = vmatmul.mubr.msk.bf16.vlgmr.msra.gmra.mrb[192].mxu1 %vm2907_vm4, %v3613_v5  ;;  %3452 = vadd.xlane.f32.xlu1 %v3451_v39 }
 0x3b1   :  { %v3162_v25 = vsub.f32 %v13812_v32, %v3096_v43  ;;  %3455 = vadd.xlane.f32.xlu0 %v3454_v3  ;;  %v12226_v24 = vpop.eup %12225  ;;  %11233 = vmatpush3.bf16.msra.mxu1 %v16249_v34  ;;  %12241 = vrcp.f32 %v3315_v37  ;;  %v3460_v16 = vsel %vm2907_vm4, %v14116_v23, 0.0  ;;  %v16252_v43 = vld [vmem:[#allocation70_spill] sm:$0xff] }
 0x3b2   :  { %v14123_v48 = vpop.eup %12227  ;;  %11234 = vmatprep.mubr.msk.bf16.mxu1 %vm12792_vm2, %v16245_v54  ;;  %11244 = vmatprep.subr.bf16.mxu1 %v16245_v54  ;;  %12243 = vpow2.f32 %v3286_v60  ;;  %v3552_v36 = vmul.f32 %v12226_v24, %v16250_v20 }
 0x3b3   :  { %v3288_v17 = vmul.f32 1.442695, %v3162_v25  ;;  %v12230_v14 = vpop.eup %12229  ;;  %v3099_v32 = vpop.xlane.xlu1 %3098  ;;  %v3457_v56 = vsel %vm2907_vm4, %v14123_v48, 0.0 }
 0x3b4   :  { %v3553_v45 = vmul.f32 %v12230_v14, %v16251_v50  ;;  %v3318_v58 = vpop.xlane.xlu0 %3317  ;;  %v3163_v13 = vsub.f32 %v13815_v62, %v3099_v32  ;;  %v14135_v31 = vpop.eup %12231  ;;  %3458 = vadd.xlane.f32.xlu1 %v3457_v56  ;;  %v16253_v14 = vld [vmem:[#allocation123_spill] sm:$0xff] }
 0x3b5   :  { %12245 = vpow2.f32 %v3288_v17  ;;  %3461 = vadd.xlane.f32.xlu0 %v3460_v16  ;;  %v3463_v62 = vsel %vm2907_vm4, %v14135_v31, 0.0 }
 0x3b6   :  { %v3290_v9 = vmul.f32 1.442695, %v3163_v13  ;;  %v3614_v26 = vpack.c.bf16 %v3553_v45, %v3552_v36  ;;  %12247 = vrcp.f32 %v3318_v58  ;;  %v16254_v13 = vld [vmem:[#allocation69_spill] sm:$0xff] }
 0x3b7   :  { %v14137_v61 = vpop.eup %12233  ;;  %v3321_v40 = vpop.xlane.xlu1 %3320 }
 0x3b8   :  { %v3466_v5 = vsel %vm2907_vm4, %v14137_v61, 0.0  ;;  %v14141_v60 = vpop.eup %12235  ;;  %12249 = vpow2.f32 %v3290_v9  ;;  %11229 = vmatmul.mubr.msk.bf16.vlgmr.msra.gmra.mrb[132].mxu0 %vm2907_vm4, %v3614_v26  ;;  %3464 = vadd.xlane.f32.xlu1 %v3463_v62  ;;  %v16255_v62 = vld [vmem:[#allocation124_spill] sm:$0xff] }
 0x3b9   :  { %3467 = vadd.xlane.f32.xlu0 %v3466_v5  ;;  %v12238_v37 = vpop.eup %12237  ;;  %11239 = vmatpush3.bf16.msra.mxu0 %v16252_v43  ;;  %12251 = vrcp.f32 %v3321_v40  ;;  %v3472_v24 = vsel %vm2907_vm4, %v14141_v60, 0.0 }
 0x3ba   :  { %v14147_v3 = vpop.eup %12239  ;;  %11240 = vmatprep.mubr.msk.bf16.mxu0 %vm12792_vm2, %v16245_v54  ;;  %11250 = vmatprep.subr.bf16.mxu0 %v16245_v54  ;;  %v3554_v32 = vmul.f32 %v12238_v37, %v16253_v14 }
 0x3bb   :  { %v12242_v25 = vpop.eup %12241  ;;  %v3324_v39 = vpop.xlane.xlu0 %3323  ;;  %v3469_v17 = vsel %vm2907_vm4, %v14147_v3, 0.0 }
 0x3bc   :  { %v3555_v16 = vmul.f32 %v12242_v25, %v13809_v15  ;;  %12253 = vrcp.f32 %v3324_v39  ;;  %v14158_v56 = vpop.eup %12243  ;;  %3470 = vadd.xlane.f32.xlu1 %v3469_v17 }
 0x3bd   :  { %3473 = vadd.xlane.f32.xlu0 %v3472_v24  ;;  %v3327_v20 = vpop.xlane.xlu1 %3326  ;;  %v3475_v58 = vsel %vm2907_vm4, %v14158_v56, 0.0 }
 0x3be   :  { %12255 = vrcp.f32 %v3327_v20  ;;  %v3615_v50 = vpack.c.bf16 %v3555_v16, %v3554_v32  ;;  %v16256_v20 = vld [vmem:[#allocation74_spill] sm:$0xff] }
 0x3bf   :  { %v14160_v36 = vpop.eup %12245 }
 0x3c0   :  { %v3478_v45 = vsel %vm2907_vm4, %v14160_v36, 0.0  ;;  %11235 = vmatmul.mubr.msk.bf16.vlgmr.msra.gmra.mrb[196].mxu1 %vm2907_vm4, %v3615_v50  ;;  %v12248_v15 = vpop.eup %12247  ;;  %3476 = vadd.xlane.f32.xlu1 %v3475_v58 }
 0x3c1   :  { %3479 = vadd.xlane.f32.xlu0 %v3478_v45  ;;  %11245 = vmatpush3.bf16.msra.mxu1 %v16254_v13  ;;  %v3556_v37 = vmul.f32 %v12248_v15, %v16255_v62  ;;  %v16257_v15 = vld [vmem:[#allocation73_spill] sm:$0xff] }
 0x3c2   :  { %v14168_v9 = vpop.eup %12249  ;;  %11246 = vmatprep.mubr.msk.bf16.mxu1 %vm12792_vm2, %v16245_v54  ;;  %11256 = vmatprep.subr.bf16.mxu1 %v16245_v54 }
 0x3c3   :  { %v12252_v26 = vpop.eup %12251  ;;  %v3330_v40 = vpop.xlane.xlu0 %3329  ;;  %v3481_v5 = vsel %vm2907_vm4, %v14168_v9, 0.0 }
 0x3c4   :  { %v3557_v25 = vmul.f32 %v12252_v26, %v13827_v28  ;;  %12257 = vrcp.f32 %v3330_v40  ;;  %3482 = vadd.xlane.f32.xlu1 %v3481_v5  ;;  %v16258_v26 = vld [vmem:[#allocation125_spill] sm:$0xff] }
 0x3c5   :  { %v3333_v39 = vpop.xlane.xlu1 %3332 }
 0x3c6   :  { %v12254_v24 = vpop.eup %12253  ;;  %12259 = vrcp.f32 %v3333_v39  ;;  %v3616_v17 = vpack.c.bf16 %v3557_v25, %v3556_v37  ;;  %v16259_v39 = vld [vmem:[#allocation25_spill] sm:$0xff] }
 0x3c7   :  { %v3558_v32 = vmul.f32 %v12254_v24, %v13833_v46  ;;  %v16260_v24 = vld [vmem:[#allocation78_spill] sm:$0xff] }
 0x3c8   :  { %v12256_v14 = vpop.eup %12255  ;;  %11241 = vmatmul.mubr.msk.bf16.vlgmr.msra.gmra.mrb[136].mxu0 %vm2907_vm4, %v3616_v17  ;;  %v16261_v17 = vld [vmem:[#allocation50_spill] sm:$0xff] }
 0x3c9   :  { %v3559_v16 = vmul.f32 %v12256_v14, %v13837_v19  ;;  %11251 = vmatpush3.bf16.msra.mxu0 %v16256_v20  ;;  %11252 = vmatprep.mubr.msk.bf16.mxu0 %vm12792_vm2, %v16245_v54  ;;  %v16262_v14 = vld [vmem:[#allocation126_spill] sm:$0xff] }
 0x3ca   :  { %11262 = vmatprep.subr.bf16.mxu0 %v16245_v54 }
 0x3cb   :  { %v3336_v28 = vpop.xlane.xlu0 %3335  ;;  %v3617_v50 = vpack.c.bf16 %v3559_v16, %v3558_v32  ;;  %v16263_v16 = vld [vmem:[#allocation127_spill] sm:$0xff] }
 0x3cc   :  { %12261 = vrcp.f32 %v3336_v28 }
 0x3cd   :  { %11247 = vmatmul.mubr.msk.bf16.vlgmr.msra.gmra.mrb[200].mxu1 %vm2907_vm4, %v3617_v50  ;;  %v3339_v45 = vpop.xlane.xlu1 %3338  ;;  %v16264_v50 = vld [vmem:[#allocation48_spill] sm:$0xff] }
 0x3ce   :  { %v12258_v58 = vpop.eup %12257  ;;  %11257 = vmatpush3.bf16.msra.mxu1 %v16257_v15  ;;  %12263 = vrcp.f32 %v3339_v45  ;;  %11258 = vmatprep.mubr.msk.bf16.mxu1 %vm12792_vm2, %v16245_v54  ;;  %v16265_v45 = vld [vmem:[#allocation54_spill] sm:$0xff] }
 0x3cf   :  { %11268 = vmatprep.subr.bf16.mxu1 %v16245_v54  ;;  %v3560_v19 = vmul.f32 %v12258_v58, %v13843_v41 }
 0x3d0   :  { %v12260_v46 = vpop.eup %12259 }
 0x3d1   :  { %v3561_v40 = vmul.f32 %v12260_v46, %v16258_v26 }
 0x3d3   :  { %v3342_v5 = vpop.xlane.xlu0 %3341  ;;  %v3618_v62 = vpack.c.bf16 %v3561_v40, %v3560_v19  ;;  %v16266_v40 = vld [vmem:[#allocation23_spill] sm:$0xff] }
 0x3d4   :  { %12265 = vrcp.f32 %v3342_v5  ;;  %v16267_v5 = vld [vmem:[#allocation77_spill] sm:$0xff] }
 0x3d5   :  { %11253 = vmatmul.mubr.msk.bf16.vlgmr.msra.gmra.mrb[140].mxu0 %vm2907_vm4, %v3618_v62  ;;  %v3345_v37 = vpop.xlane.xlu1 %3344  ;;  %5538 = vrot.lane.b32.xlu1 %v16259_v39, %s12793_s5  ;;  %v16268_v62 = vld [vmem:[#allocation52_spill] sm:$0xff] }
 0x3d6   :  { %v12262_v25 = vpop.eup %12261  ;;  %11263 = vmatpush3.bf16.msra.mxu0 %v16260_v24  ;;  %12267 = vrcp.f32 %v3345_v37  ;;  %11264 = vmatprep.mubr.msk.bf16.mxu0 %vm12792_vm2, %v16245_v54 }
 0x3d7   :  { %5541 = vrot.lane.b32.xlu0 %v16261_v17, %s12793_s5  ;;  %11274 = vmatprep.subr.bf16.mxu0 %v16245_v54  ;;  %v3562_v32 = vmul.f32 %v12262_v25, %v16262_v14  ;;  %v16269_v25 = vld [vmem:[#allocation128_spill] sm:$0xff]  ;;  %v16270_v17 = vld [vmem:[#allocation129_spill] sm:$0xff] }
 0x3d8   :  { %v12264_v41 = vpop.eup %12263  ;;  %v16271_v14 = vld [vmem:[#allocation29_spill] sm:$0xff] }
 0x3d9   :  { %v3563_v28 = vmul.f32 %v12264_v41, %v16263_v16  ;;  %5594 = vrot.lane.b32.xlu1 %v16264_v50, %s12793_s5 }
 0x3db   :  { %5647 = vrot.lane.b32.xlu0 %v16265_v45, %s12793_s5  ;;  %v3348_v58 = vpop.xlane.xlu0 %3347  ;;  %v3619_v46 = vpack.c.bf16 %v3563_v28, %v3562_v32  ;;  %v16272_v32 = vld [vmem:[#allocation56_spill] sm:$0xff] }
 0x3dc   :  { %12269 = vrcp.f32 %v3348_v58  ;;  %v16273_v58 = vld [vmem:[#allocation27_spill] sm:$0xff] }
 0x3dd   :  { %11259 = vmatmul.mubr.msk.bf16.vlgmr.msra.gmra.mrb[204].mxu1 %vm2907_vm4, %v3619_v46  ;;  %v3351_v19 = vpop.xlane.xlu1 %3350  ;;  %5591 = vrot.lane.b32.xlu1 %v16266_v40, %s12793_s5  ;;  %v16274_v46 = vld [vmem:[#allocation82_spill] sm:$0xff] }
 0x3de   :  { %v12266_v26 = vpop.eup %12265  ;;  %11269 = vmatpush3.bf16.msra.mxu1 %v16267_v5  ;;  %12271 = vrcp.f32 %v3351_v19  ;;  %11270 = vmatprep.mubr.msk.bf16.mxu1 %vm12792_vm2, %v16245_v54  ;;  %v16275_v19 = vld [vmem:[#allocation55_spill] sm:$0xff]  ;;  %v16276_v40 = vld [vmem:[#allocation130_spill] sm:$0xff] }
 0x3df   :  { %5700 = vrot.lane.b32.xlu0 %v16268_v62, %s12793_s5  ;;  %11280 = vmatprep.subr.bf16.mxu1 %v16245_v54  ;;  %v3564_v39 = vmul.f32 %v12266_v26, %v16269_v25 }
 0x3e0   :  { %v12268_v37 = vpop.eup %12267 }
 0x3e1   :  { %v3565_v41 = vmul.f32 %v12268_v37, %v16270_v17  ;;  %5644 = vrot.lane.b32.xlu1 %v16271_v14, %s12793_s5  ;;  %v16277_v37 = vld [vmem:[#allocation131_spill] sm:$0xff]  ;;  %v16279_v17 = vld [vmem:[#allocation58_spill] sm:$0xff] }
 0x3e3   :  { %5753 = vrot.lane.b32.xlu0 %v16272_v32, %s12793_s5  ;;  %v3354_v16 = vpop.xlane.xlu0 %3353  ;;  %v3620_v28 = vpack.c.bf16 %v3565_v41, %v3564_v39  ;;  %v16278_v39 = vld [vmem:[#allocation33_spill] sm:$0xff] }
 0x3e4   :  { %12273 = vrcp.f32 %v3354_v16 }
 0x3e5   :  { %11265 = vmatmul.mubr.msk.bf16.vlgmr.msra.gmra.mrb[144].mxu0 %vm2907_vm4, %v3620_v28  ;;  %v3357_v50 = vpop.xlane.xlu1 %3356  ;;  %5697 = vrot.lane.b32.xlu1 %v16273_v58, %s12793_s5  ;;  %v16280_v28 = vld [vmem:[#allocation31_spill] sm:$0xff] }
 0x3e6   :  { %v12270_v45 = vpop.eup %12269  ;;  %11275 = vmatpush3.bf16.msra.mxu0 %v16274_v46  ;;  %12275 = vrcp.f32 %v3357_v50  ;;  %11276 = vmatprep.mubr.msk.bf16.mxu0 %vm12792_vm2, %v16245_v54  ;;  %v16281_v50 = vld [vmem:[#allocation81_spill] sm:$0xff] }
 0x3e7   :  { %5806 = vrot.lane.b32.xlu0 %v16275_v19, %s12793_s5  ;;  %11286 = vmatprep.subr.bf16.mxu0 %v16245_v54  ;;  %v3566_v62 = vmul.f32 %v12270_v45, %v16276_v40  ;;  %v16282_v45 = vld [vmem:[#allocation57_spill] sm:$0xff]  ;;  %v16283_v19 = vld [vmem:[#allocation132_spill] sm:$0xff] }
 0x3e8   :  { %v12272_v26 = vpop.eup %12271  ;;  %v16284_v40 = vld [vmem:[#allocation133_spill] sm:$0xff] }
 0x3e9   :  { %v3567_v25 = vmul.f32 %v12272_v26, %v16277_v37  ;;  %5750 = vrot.lane.b32.xlu1 %v16278_v39, %s12793_s5  ;;  %v16285_v37 = vld [vmem:[#allocation37_spill] sm:$0xff] }
 0x3eb   :  { %5859 = vrot.lane.b32.xlu0 %v16279_v17, %s12793_s5  ;;  %v3360_v41 = vpop.xlane.xlu0 %3359  ;;  %v3621_v14 = vpack.c.bf16 %v3567_v25, %v3566_v62  ;;  %v16286_v25 = vld [vmem:[#allocation60_spill] sm:$0xff] }
 0x3ec   :  { %12277 = vrcp.f32 %v3360_v41 }
 0x3ed   :  { %11271 = vmatmul.mubr.msk.bf16.vlgmr.msra.gmra.mrb[208].mxu1 %vm2907_vm4, %v3621_v14  ;;  %v3363_v32 = vpop.xlane.xlu1 %3362  ;;  %5803 = vrot.lane.b32.xlu1 %v16280_v28, %s12793_s5  ;;  %v16288_v28 = vld [vmem:[#allocation86_spill] sm:$0xff] }
 0x3ee   :  { %v12274_v16 = vpop.eup %12273  ;;  %11281 = vmatpush3.bf16.msra.mxu1 %v16281_v50  ;;  %12279 = vrcp.f32 %v3363_v32  ;;  %11282 = vmatprep.mubr.msk.bf16.mxu1 %vm12792_vm2, %v16245_v54  ;;  %v16287_v32 = vld [vmem:[#allocation35_spill] sm:$0xff] }
 0x3ef   :  { %5912 = vrot.lane.b32.xlu0 %v16282_v45, %s12793_s5  ;;  %11292 = vmatprep.subr.bf16.mxu1 %v16245_v54  ;;  %v3568_v26 = vmul.f32 %v12274_v16, %v16283_v19  ;;  %v16289_v16 = vld [vmem:[#allocation59_spill] sm:$0xff] }
 0x3f0   :  { %v12276_v58 = vpop.eup %12275 }
 0x3f1   :  { %v3569_v62 = vmul.f32 %v12276_v58, %v16284_v40  ;;  %5856 = vrot.lane.b32.xlu1 %v16285_v37, %s12793_s5  ;;  %v16290_v58 = vld [vmem:[#allocation134_spill] sm:$0xff]  ;;  %v16293_v37 = vld [vmem:[#allocation64_spill] sm:$0xff] }
 0x3f3   :  { %5965 = vrot.lane.b32.xlu0 %v16286_v25, %s12793_s5  ;;  %v3366_v39 = vpop.xlane.xlu0 %3365  ;;  %v3622_v17 = vpack.c.bf16 %v3569_v62, %v3568_v26  ;;  %v16291_v26 = vld [vmem:[#allocation135_spill] sm:$0xff]  ;;  %v16292_v62 = vld [vmem:[#allocation41_spill] sm:$0xff] }
 0x3f4   :  { %12281 = vrcp.f32 %v3366_v39 }
 0x3f5   :  { %11277 = vmatmul.mubr.msk.bf16.vlgmr.msra.gmra.mrb[148].mxu0 %vm2907_vm4, %v3622_v17  ;;  %v3369_v41 = vpop.xlane.xlu1 %3368  ;;  %5909 = vrot.lane.b32.xlu1 %v16287_v32, %s12793_s5  ;;  %v16294_v32 = vld [vmem:[#allocation39_spill] sm:$0xff] }
 0x3f6   :  { %v12278_v14 = vpop.eup %12277  ;;  %11287 = vmatpush3.bf16.msra.mxu0 %v16288_v28  ;;  %12283 = vrcp.f32 %v3369_v41  ;;  %11288 = vmatprep.mubr.msk.bf16.mxu0 %vm12792_vm2, %v16245_v54 }
 0x3f7   :  { %6018 = vrot.lane.b32.xlu0 %v16289_v16, %s12793_s5  ;;  %11298 = vmatprep.subr.bf16.mxu0 %v16245_v54  ;;  %v3570_v19 = vmul.f32 %v12278_v14, %v16290_v58  ;;  %v16295_v16 = vld [vmem:[#allocation85_spill] sm:$0xff]  ;;  %v16296_v14 = vld [vmem:[#allocation63_spill] sm:$0xff]  ;;  %v16297_v58 = vld [vmem:[#allocation136_spill] sm:$0xff] }
 0x3f8   :  { %v12280_v45 = vpop.eup %12279 }
 0x3f9   :  { %v3571_v40 = vmul.f32 %v12280_v45, %v16291_v26  ;;  %5962 = vrot.lane.b32.xlu1 %v16292_v62, %s12793_s5  ;;  %v16299_v62 = vld [vmem:[#allocation68_spill] sm:$0xff] }
 0x3fb   :  { %6071 = vrot.lane.b32.xlu0 %v16293_v37, %s12793_s5  ;;  %v3372_v25 = vpop.xlane.xlu0 %3371  ;;  %v3623_v39 = vpack.c.bf16 %v3571_v40, %v3570_v19  ;;  %v16298_v40 = vld [vmem:[#allocation45_spill] sm:$0xff] }
 0x3fc   :  { %12285 = vrcp.f32 %v3372_v25 }
 0x3fd   :  { %11283 = vmatmul.mubr.msk.bf16.vlgmr.msra.gmra.mrb[212].mxu1 %vm2907_vm4, %v3623_v39  ;;  %v3375_v17 = vpop.xlane.xlu1 %3374  ;;  %6015 = vrot.lane.b32.xlu1 %v16294_v32, %s12793_s5  ;;  %v16300_v32 = vld [vmem:[#allocation43_spill] sm:$0xff] }
 0x3fe   :  { %v12282_v41 = vpop.eup %12281  ;;  %11293 = vmatpush3.bf16.msra.mxu1 %v16295_v16  ;;  %12287 = vrcp.f32 %v3375_v17  ;;  %11294 = vmatprep.mubr.msk.bf16.mxu1 %vm12792_vm2, %v16245_v54 }
 0x3ff   :  { %6124 = vrot.lane.b32.xlu0 %v16296_v14, %s12793_s5  ;;  %11304 = vmatprep.subr.bf16.mxu1 %v16245_v54  ;;  %v3572_v19 = vmul.f32 %v12282_v41, %v16297_v58  ;;  %v16301_v14 = vld [vmem:[#allocation90_spill] sm:$0xff] }
 0x400   :  { %v12284_v45 = vpop.eup %12283 }
 0x401   :  { %v3573_v26 = vmul.f32 %v12284_v45, %v13931_v4  ;;  %6068 = vrot.lane.b32.xlu1 %v16298_v40, %s12793_s5  ;;  %v16302_v4 = vld [vmem:[#allocation67_spill] sm:$0xff]  ;;  %v16303_v45 = vld [vmem:[#allocation137_spill] sm:$0xff]  ;;  %v16305_v40 = vld [vmem:[#allocation72_spill] sm:$0xff] }
 0x403   :  { %6177 = vrot.lane.b32.xlu0 %v16299_v62, %s12793_s5  ;;  %v3378_v37 = vpop.xlane.xlu0 %3377  ;;  %v3624_v25 = vpack.c.bf16 %v3573_v26, %v3572_v19  ;;  %v16304_v26 = vld [vmem:[#allocation49_spill] sm:$0xff] }
 0x404   :  { %12289 = vrcp.f32 %v3378_v37 }
 0x405   :  { %11289 = vmatmul.mubr.msk.bf16.vlgmr.msra.gmra.mrb[152].mxu0 %vm2907_vm4, %v3624_v25  ;;  %v3381_v39 = vpop.xlane.xlu1 %3380  ;;  %6121 = vrot.lane.b32.xlu1 %v16300_v32, %s12793_s5  ;;  %v16306_v32 = vld [vmem:[#allocation47_spill] sm:$0xff] }
 0x406   :  { %v12286_v17 = vpop.eup %12285  ;;  %11299 = vmatpush3.bf16.msra.mxu0 %v16301_v14  ;;  %12291 = vrcp.f32 %v3381_v39  ;;  %11300 = vmatprep.mubr.msk.bf16.mxu0 %vm12792_vm2, %v16245_v54 }
 0x407   :  { %6230 = vrot.lane.b32.xlu0 %v16302_v4, %s12793_s5  ;;  %11310 = vmatprep.subr.bf16.mxu0 %v16245_v54  ;;  %v3574_v58 = vmul.f32 %v12286_v17, %v16303_v45  ;;  %v16307_v4 = vld [vmem:[#allocation89_spill] sm:$0xff] }
 0x408   :  { %v12288_v41 = vpop.eup %12287 }
 0x409   :  { %v3575_v19 = vmul.f32 %v12288_v41, %v13947_v1  ;;  %6174 = vrot.lane.b32.xlu1 %v16304_v26, %s12793_s5  ;;  %v16308_v1 = vld [vmem:[#allocation71_spill] sm:$0xff]  ;;  %v16309_v26 = vld [vmem:[#allocation53_spill] sm:$0xff] }
 0x40b   :  { %6283 = vrot.lane.b32.xlu0 %v16305_v40, %s12793_s5  ;;  %v3384_v62 = vpop.xlane.xlu0 %3383  ;;  %v3625_v37 = vpack.c.bf16 %v3575_v19, %v3574_v58  ;;  %v16310_v40 = vld [vmem:[#allocation51_spill] sm:$0xff] }
 0x40c   :  { %12293 = vrcp.f32 %v3384_v62 }
 0x40d   :  { %11295 = vmatmul.mubr.msk.bf16.vlgmr.msra.gmra.mrb[216].mxu1 %vm2907_vm4, %v3625_v37  ;;  %v3387_v25 = vpop.xlane.xlu1 %3386  ;;  %6227 = vrot.lane.b32.xlu1 %v16306_v32, %s12793_s5 }
 0x40e   :  { %v12290_v39 = vpop.eup %12289  ;;  %11305 = vmatpush3.bf16.msra.mxu1 %v16307_v4  ;;  %12295 = vrcp.f32 %v3387_v25  ;;  %11306 = vmatprep.mubr.msk.bf16.mxu1 %vm12792_vm2, %v16245_v54 }
 0x40f   :  { %6336 = vrot.lane.b32.xlu0 %v16308_v1, %s12793_s5  ;;  %v3390_v17 = vpop.xlane.xlu0 %3389  ;;  %11316 = vmatprep.subr.bf16.mxu1 %v16245_v54  ;;  %v3576_v45 = vmul.f32 %v12290_v39, %v13961_v22  ;;  %v16311_v1 = vld [vmem:[#allocation76_spill] sm:$0xff]  ;;  %v16312_v22 = vld [vmem:[#allocation94_spill] sm:$0xff] }
 0x410   :  { %v12292_v41 = vpop.eup %12291  ;;  %12297 = vrcp.f32 %v3390_v17 }
 0x411   :  { %v3577_v58 = vmul.f32 %v12292_v41, %v13965_v8  ;;  %v3393_v19 = vpop.xlane.xlu1 %3392  ;;  %6280 = vrot.lane.b32.xlu1 %v16309_v26, %s12793_s5  ;;  %v16313_v8 = vld [vmem:[#allocation20_spill] sm:$0xff]  ;;  %v16314_v26 = vld [vmem:[#allocation75_spill] sm:$0xff] }
 0x412   :  { %12299 = vrcp.f32 %v3393_v19 }
 0x413   :  { %6333 = vrot.lane.b32.xlu0 %v16310_v40, %s12793_s5  ;;  %v3396_v62 = vpop.xlane.xlu0 %3395  ;;  %v3626_v37 = vpack.c.bf16 %v3577_v58, %v3576_v45  ;;  %v16315_v40 = vld [vmem:[#allocation19_spill] sm:$0xff] }
 0x414   :  { %12301 = vrcp.f32 %v3396_v62 }
 0x415   :  { %11301 = vmatmul.mubr.msk.bf16.vlgmr.msra.gmra.mrb[156].mxu0 %vm2907_vm4, %v3626_v37  ;;  %v3399_v25 = vpop.xlane.xlu1 %3398  ;;  %6389 = vrot.lane.b32.xlu1 %v16311_v1, %s12793_s5 }
 0x416   :  { %v12294_v32 = vpop.eup %12293  ;;  %11311 = vmatpush3.bf16.msra.mxu0 %v16312_v22  ;;  %12303 = vrcp.f32 %v3399_v25  ;;  %11312 = vmatprep.mubr.msk.bf16.mxu0 %vm12792_vm2, %v16245_v54 }
 0x417   :  { %6386 = vrot.lane.b32.xlu0 %v16313_v8, %s12793_s5  ;;  %v3402_v39 = vpop.xlane.xlu0 %3401  ;;  %11322 = vmatprep.subr.bf16.mxu0 %v16245_v54  ;;  %v3578_v41 = vmul.f32 %v12294_v32, %v13975_v55  ;;  %v16316_v32 = vld [vmem:[#allocation80_spill] sm:$0xff] }
 0x418   :  { %v12296_v17 = vpop.eup %12295  ;;  %12305 = vrcp.f32 %v3402_v39  ;;  %v16317_v39 = vld [vmem:[#allocation93_spill] sm:$0xff] }
 0x419   :  { %v3579_v45 = vmul.f32 %v12296_v17, %v13981_v44  ;;  %v3405_v58 = vpop.xlane.xlu1 %3404  ;;  %6442 = vrot.lane.b32.xlu1 %v16314_v26, %s12793_s5  ;;  %v16318_v17 = vld [vmem:[#allocation22_spill] sm:$0xff] }
 0x41a   :  { %v12298_v19 = vpop.eup %12297  ;;  %12307 = vrcp.f32 %v3405_v58 }
 0x41b   :  { %6439 = vrot.lane.b32.xlu0 %v16315_v40, %s12793_s5  ;;  %v3408_v62 = vpop.xlane.xlu0 %3407  ;;  %v3627_v37 = vpack.c.bf16 %v3579_v45, %v3578_v41  ;;  %v3580_v1 = vmul.f32 %v12298_v19, %v13977_v35  ;;  %v16319_v40 = vld [vmem:[#allocation79_spill] sm:$0xff] }
 0x41c   :  { %v12300_v25 = vpop.eup %12299  ;;  %12309 = vrcp.f32 %v3408_v62  ;;  %v16320_v62 = vld [vmem:[#allocation98_spill] sm:$0xff] }
 0x41d   :  { %v3581_v8 = vmul.f32 %v12300_v25, %v13988_v21  ;;  %11307 = vmatmul.mubr.msk.bf16.vlgmr.msra.gmra.mrb[220].mxu1 %vm2907_vm4, %v3627_v37  ;;  %v3411_v55 = vpop.xlane.xlu1 %3410  ;;  %6495 = vrot.lane.b32.xlu1 %v16316_v32, %s12793_s5  ;;  %v16321_v37 = vld [vmem:[#allocation21_spill] sm:$0xff]  ;;  %v16322_v32 = vld [vmem:[#allocation84_spill] sm:$0xff] }
 0x41e   :  { %v12302_v44 = vpop.eup %12301  ;;  %11317 = vmatpush3.bf16.msra.mxu1 %v16317_v39  ;;  %12311 = vrcp.f32 %v3411_v55  ;;  %11318 = vmatprep.mubr.msk.bf16.mxu1 %vm12792_vm2, %v16245_v54 }
 0x41f   :  { %6492 = vrot.lane.b32.xlu0 %v16318_v17, %s12793_s5  ;;  %v3414_v41 = vpop.xlane.xlu0 %3413  ;;  %v3628_v45 = vpack.c.bf16 %v3581_v8, %v3580_v1  ;;  %11328 = vmatprep.subr.bf16.mxu1 %v16245_v54  ;;  %v3582_v21 = vmul.f32 %v12302_v44, %v13997_v52  ;;  %v16323_v17 = vld [vmem:[#allocation97_spill] sm:$0xff] }
 0x420   :  { %v12304_v35 = vpop.eup %12303  ;;  %12313 = vrcp.f32 %v3414_v41  ;;  %v16324_v41 = vld [vmem:[#allocation26_spill] sm:$0xff] }
 0x421   :  { %v3583_v58 = vmul.f32 %v12304_v35, %v14003_v59  ;;  %11313 = vmatmul.mubr.msk.bf16.vlgmr.msra.gmra.mrb[160].mxu0 %vm2907_vm4, %v3628_v45  ;;  %v3417_v19 = vpop.xlane.xlu1 %3416  ;;  %6548 = vrot.lane.b32.xlu1 %v16319_v40, %s12793_s5  ;;  %v16326_v40 = vld [vmem:[#allocation102_spill] sm:$0xff] }
 0x422   :  { %v12306_v26 = vpop.eup %12305  ;;  %11323 = vmatpush3.bf16.msra.mxu0 %v16320_v62  ;;  %12315 = vrcp.f32 %v3417_v19  ;;  %11324 = vmatprep.mubr.msk.bf16.mxu0 %vm12792_vm2, %v16245_v54 }
 0x423   :  { %6545 = vrot.lane.b32.xlu0 %v16321_v37, %s12793_s5  ;;  %v3420_v25 = vpop.xlane.xlu0 %3419  ;;  %v3629_v1 = vpack.c.bf16 %v3583_v58, %v3582_v21  ;;  %11334 = vmatprep.subr.bf16.mxu0 %v16245_v54  ;;  %v3584_v59 = vmul.f32 %v12306_v26, %v13999_v12  ;;  %v16325_v26 = vld [vmem:[#allocation83_spill] sm:$0xff]  ;;  %v16327_v37 = vld [vmem:[#allocation24_spill] sm:$0xff] }
 0x424   :  { %v12308_v52 = vpop.eup %12307  ;;  %12317 = vrcp.f32 %v3420_v25 }
 0x425   :  { %v3585_v8 = vmul.f32 %v12308_v52, %v14010_v49  ;;  %11319 = vmatmul.mubr.msk.bf16.vlgmr.msra.gmra.mrb[224].mxu1 %vm2907_vm4, %v3629_v1  ;;  %v3423_v55 = vpop.xlane.xlu1 %3422  ;;  %6601 = vrot.lane.b32.xlu1 %v16322_v32, %s12793_s5  ;;  %v16330_v32 = vld [vmem:[#allocation30_spill] sm:$0xff] }
 0x426   :  { %v12310_v44 = vpop.eup %12309  ;;  %11329 = vmatpush3.bf16.msra.mxu1 %v16323_v17  ;;  %12319 = vrcp.f32 %v3423_v55  ;;  %11330 = vmatprep.mubr.msk.bf16.mxu1 %vm12792_vm2, %v16245_v54  ;;  %v16328_v55 = vld [vmem:[#allocation88_spill] sm:$0xff] }
 0x427   :  { %6598 = vrot.lane.b32.xlu0 %v16324_v41, %s12793_s5  ;;  %v3426_v45 = vpop.xlane.xlu0 %3425  ;;  %v3630_v35 = vpack.c.bf16 %v3585_v8, %v3584_v59  ;;  %11340 = vmatprep.subr.bf16.mxu1 %v16245_v54  ;;  %v3586_v49 = vmul.f32 %v12310_v44, %v14019_v51  ;;  %v16329_v44 = vld [vmem:[#allocation101_spill] sm:$0xff] }
 0x428   :  { %v12312_v12 = vpop.eup %12311  ;;  %12321 = vrcp.f32 %v3426_v45 }
 0x429   :  { %v3587_v21 = vmul.f32 %v12312_v12, %v14027_v7  ;;  %11325 = vmatmul.mubr.msk.bf16.vlgmr.msra.gmra.mrb[164].mxu0 %vm2907_vm4, %v3630_v35  ;;  %v3429_v58 = vpop.xlane.xlu1 %3428  ;;  %6654 = vrot.lane.b32.xlu1 %v16325_v26, %s12793_s5 }
 0x42a   :  { %v12314_v19 = vpop.eup %12313  ;;  %11335 = vmatpush3.bf16.msra.mxu0 %v16326_v40  ;;  %12323 = vrcp.f32 %v3429_v58  ;;  %11336 = vmatprep.mubr.msk.bf16.mxu0 %vm12792_vm2, %v16245_v54  ;;  %v16332_v58 = vld [vmem:[#allocation106_spill] sm:$0xff] }
 0x42b   :  { %6651 = vrot.lane.b32.xlu0 %v16327_v37, %s12793_s5  ;;  %v3432_v25 = vpop.xlane.xlu0 %3431  ;;  %v3631_v1 = vpack.c.bf16 %v3587_v21, %v3586_v49  ;;  %11346 = vmatprep.subr.bf16.mxu0 %v16245_v54  ;;  %v3588_v7 = vmul.f32 %v12314_v19, %v14021_v27  ;;  %v16331_v21 = vld [vmem:[#allocation87_spill] sm:$0xff]  ;;  %v16333_v19 = vld [vmem:[#allocation28_spill] sm:$0xff] }
 0x42c   :  { %v12316_v51 = vpop.eup %12315  ;;  %12325 = vrcp.f32 %v3432_v25 }
 0x42d   :  { %v3589_v52 = vmul.f32 %v12316_v51, %v14032_v10  ;;  %11331 = vmatmul.mubr.msk.bf16.vlgmr.msra.gmra.mrb[228].mxu1 %vm2907_vm4, %v3631_v1  ;;  %v3435_v59 = vpop.xlane.xlu1 %3434  ;;  %6707 = vrot.lane.b32.xlu1 %v16328_v55, %s12793_s5  ;;  %v16334_v51 = vld [vmem:[#allocation92_spill] sm:$0xff] }
 0x42e   :  { %v12318_v8 = vpop.eup %12317  ;;  %11341 = vmatpush3.bf16.msra.mxu1 %v16329_v44  ;;  %12327 = vrcp.f32 %v3435_v59  ;;  %11342 = vmatprep.mubr.msk.bf16.mxu1 %vm12792_vm2, %v16245_v54 }
 0x42f   :  { %6704 = vrot.lane.b32.xlu0 %v16330_v32, %s12793_s5  ;;  %v3438_v41 = vpop.xlane.xlu0 %3437  ;;  %v3632_v45 = vpack.c.bf16 %v3589_v52, %v3588_v7  ;;  %11352 = vmatprep.subr.bf16.mxu1 %v16245_v54  ;;  %v3590_v10 = vmul.f32 %v12318_v8, %v14039_v2  ;;  %v16335_v7 = vld [vmem:[#allocation105_spill] sm:$0xff]  ;;  %v16336_v52 = vld [vmem:[#allocation34_spill] sm:$0xff] }
 0x430   :  { %v12320_v27 = vpop.eup %12319  ;;  %12329 = vrcp.f32 %v3438_v41 }
 0x431   :  { %v3591_v35 = vmul.f32 %v12320_v27, %v14045_v38  ;;  %11337 = vmatmul.mubr.msk.bf16.vlgmr.msra.gmra.mrb[168].mxu0 %vm2907_vm4, %v3632_v45  ;;  %v3441_v12 = vpop.xlane.xlu1 %3440  ;;  %6760 = vrot.lane.b32.xlu1 %v16331_v21, %s12793_s5  ;;  %v16337_v45 = vld [vmem:[#allocation91_spill] sm:$0xff]  ;;  %v16338_v27 = vld [vmem:[#allocation108_spill] sm:$0xff] }
 0x432   :  { %v12322_v49 = vpop.eup %12321  ;;  %11347 = vmatpush3.bf16.msra.mxu0 %v16332_v58  ;;  %12331 = vrcp.f32 %v3441_v12  ;;  %11348 = vmatprep.mubr.msk.bf16.mxu0 %vm12792_vm2, %v16245_v54  ;;  %v16340_v21 = vld [vmem:[#allocation96_spill] sm:$0xff] }
 0x433   :  { %6757 = vrot.lane.b32.xlu0 %v16333_v19, %s12793_s5  ;;  %v3633_v26 = vpack.c.bf16 %v3591_v35, %v3590_v10  ;;  %11358 = vmatprep.subr.bf16.mxu0 %v16245_v54  ;;  %v3592_v38 = vmul.f32 %v12322_v49, %v14041_v63  ;;  %v16339_v10 = vld [vmem:[#allocation32_spill] sm:$0xff]  ;;  %v16341_v19 = vld [vmem:[#allocation107_spill] sm:$0xff] }
 0x434   :  { %v12324_v2 = vpop.eup %12323 }
 0x435   :  { %v3593_v37 = vmul.f32 %v12324_v2, %v14051_v18  ;;  %v3444_v25 = vpop.xlane.xlu0 %3443  ;;  %11343 = vmatmul.mubr.msk.bf16.vlgmr.msra.gmra.mrb[232].mxu1 %vm2907_vm4, %v3633_v26  ;;  %6813 = vrot.lane.b32.xlu1 %v16334_v51, %s12793_s5  ;;  %v16342_v2 = vld [vmem:[#allocation38_spill] sm:$0xff]  ;;  %v16345_v51 = vld [vmem:[#allocation36_spill] sm:$0xff] }
 0x436   :  { %v12326_v1 = vpop.eup %12325  ;;  %11353 = vmatpush3.bf16.msra.mxu1 %v16335_v7  ;;  %11354 = vmatprep.mubr.msk.bf16.mxu1 %vm12792_vm2, %v16245_v54  ;;  %12333 = vrcp.f32 %v3444_v25 }
 0x437   :  { %6810 = vrot.lane.b32.xlu0 %v16336_v52, %s12793_s5  ;;  %v3634_v59 = vpack.c.bf16 %v3593_v37, %v3592_v38  ;;  %11364 = vmatprep.subr.bf16.mxu1 %v16245_v54  ;;  %v3594_v63 = vmul.f32 %v12326_v1, %v14060_v11  ;;  %v16344_v37 = vld [vmem:[#allocation110_spill] sm:$0xff] }
 0x438   :  { %v12328_v8 = vpop.eup %12327 }
 0x439   :  { %v3595_v18 = vmul.f32 %v12328_v8, %v14067_v29  ;;  %v3450_v55 = vpop.xlane.xlu0 %3449  ;;  %11349 = vmatmul.mubr.msk.bf16.vlgmr.msra.gmra.mrb[172].mxu0 %vm2907_vm4, %v3634_v59  ;;  %v3447_v32 = vpop.xlane.xlu1 %3446  ;;  %6866 = vrot.lane.b32.xlu1 %v16337_v45, %s12793_s5 }
 0x43a   :  { %v12330_v41 = vpop.eup %12329  ;;  %11359 = vmatpush3.bf16.msra.mxu0 %v16338_v27  ;;  %12335 = vrcp.f32 %v3447_v32  ;;  %11360 = vmatprep.mubr.msk.bf16.mxu0 %vm12792_vm2, %v16245_v54 }
 0x43b   :  { %6863 = vrot.lane.b32.xlu0 %v16339_v10, %s12793_s5  ;;  %v3635_v35 = vpack.c.bf16 %v3595_v18, %v3594_v63  ;;  %11370 = vmatprep.subr.bf16.mxu0 %v16245_v54  ;;  %v3596_v29 = vmul.f32 %v12330_v41, %v14063_v42  ;;  %12337 = vrcp.f32 %v3450_v55  ;;  %v16346_v18 = vld [vmem:[#allocation100_spill] sm:$0xff]  ;;  %v16347_v41 = vld [vmem:[#allocation42_spill] sm:$0xff] }
 0x43c   :  { %v12332_v11 = vpop.eup %12331 }
 0x43d   :  { %v3597_v12 = vmul.f32 %v12332_v11, %v14071_v47  ;;  %11355 = vmatmul.mubr.msk.bf16.vlgmr.msra.gmra.mrb[236].mxu1 %vm2907_vm4, %v3635_v35  ;;  %6919 = vrot.lane.b32.xlu1 %v16340_v21, %s12793_s5  ;;  %v3453_v26 = vpop.xlane.xlu1 %3452  ;;  %v16343_v47 = vld [vmem:[#allocation95_spill] sm:$0xff]  ;;  %v16350_v21 = vld [vmem:[#allocation40_spill] sm:$0xff] }
 0x43e   :  { %v3456_v49 = vpop.xlane.xlu0 %3455  ;;  %11365 = vmatpush3.bf16.msra.mxu1 %v16341_v19  ;;  %12339 = vrcp.f32 %v3453_v26  ;;  %11366 = vmatprep.mubr.msk.bf16.mxu1 %vm12792_vm2, %v16245_v54 }
 0x43f   :  { %6916 = vrot.lane.b32.xlu0 %v16342_v2, %s12793_s5  ;;  %v3636_v38 = vpack.c.bf16 %v3597_v12, %v3596_v29  ;;  %11376 = vmatprep.subr.bf16.mxu1 %v16245_v54  ;;  %12341 = vrcp.f32 %v3456_v49  ;;  %v16349_v49 = vld [vmem:[#allocation109_spill] sm:$0xff] }
 0x440   :  { %v12334_v1 = vpop.eup %12333 }
 0x441   :  { %11361 = vmatmul.mubr.msk.bf16.vlgmr.msra.gmra.mrb[176].mxu0 %vm2907_vm4, %v3636_v38  ;;  %6972 = vrot.lane.b32.xlu1 %v16343_v47, %s12793_s5  ;;  %v3459_v25 = vpop.xlane.xlu1 %3458  ;;  %v3598_v8 = vmul.f32 %v12334_v1, %v14085_v0  ;;  %v16348_v0 = vld [vmem:[#allocation99_spill] sm:$0xff]  ;;  %v16352_v1 = vld [vmem:[#allocation112_spill] sm:$0xff] }
 0x442   :  { %v3462_v42 = vpop.xlane.xlu0 %3461  ;;  %11371 = vmatpush3.bf16.msra.mxu0 %v16344_v37  ;;  %12343 = vrcp.f32 %v3459_v25  ;;  %11372 = vmatprep.mubr.msk.bf16.mxu0 %vm12792_vm2, %v16245_v54 }
 0x443   :  { %6969 = vrot.lane.b32.xlu0 %v16345_v51, %s12793_s5  ;;  %11382 = vmatprep.subr.bf16.mxu0 %v16245_v54  ;;  %12345 = vrcp.f32 %v3462_v42  ;;  %v16351_v42 = vld [vmem:[#allocation104_spill] sm:$0xff]  ;;  %v16353_v51 = vld [vmem:[#allocation46_spill] sm:$0xff] }
 0x444   :  { %v12336_v52 = vpop.eup %12335 }
 0x445   :  { %v3599_v63 = vmul.f32 %v12336_v52, %v14099_v6  ;;  %7025 = vrot.lane.b32.xlu1 %v16346_v18, %s12793_s5  ;;  %v3465_v55 = vpop.xlane.xlu1 %3464  ;;  %v12338_v32 = vpop.eup %12337 }
 0x446   :  { %v3468_v59 = vpop.xlane.xlu0 %3467  ;;  %12347 = vrcp.f32 %v3465_v55  ;;  %v3600_v11 = vmul.f32 %v12338_v32, %v14092_v53  ;;  %v16355_v55 = vld [vmem:[#allocation111_spill] sm:$0xff]  ;;  %v16356_v32 = vld [vmem:[#allocation62_spill] sm:$0xff] }
 0x447   :  { %7022 = vrot.lane.b32.xlu0 %v16347_v41, %s12793_s5  ;;  %v3637_v45 = vpack.c.bf16 %v3599_v63, %v3598_v8  ;;  %12349 = vrcp.f32 %v3468_v59  ;;  %v16354_v8 = vld [vmem:[#allocation103_spill] sm:$0xff] }
 0x448   :  { %v12340_v10 = vpop.eup %12339 }
 0x449   :  { %v3601_v29 = vmul.f32 %v12340_v10, %v14107_v33  ;;  %7078 = vrot.lane.b32.xlu1 %v16348_v0, %s12793_s5  ;;  %11367 = vmatmul.mubr.msk.bf16.vlgmr.msra.gmra.mrb[240].mxu1 %vm2907_vm4, %v3637_v45  ;;  %v3471_v6 = vpop.xlane.xlu1 %3470  ;;  %v12342_v12 = vpop.eup %12341  ;;  %v16358_v0 = vld [vmem:[#allocation114_spill] sm:$0xff] }
 0x44a   :  { %v3474_v35 = vpop.xlane.xlu0 %3473  ;;  %11377 = vmatpush3.bf16.msra.mxu1 %v16349_v49  ;;  %12351 = vrcp.f32 %v3471_v6  ;;  %11378 = vmatprep.mubr.msk.bf16.mxu1 %vm12792_vm2, %v16245_v54  ;;  %v3602_v33 = vmul.f32 %v12342_v12, %v14112_v57 }
 0x44b   :  { %7075 = vrot.lane.b32.xlu0 %v16350_v21, %s12793_s5  ;;  %v3638_v26 = vpack.c.bf16 %v3601_v29, %v3600_v11  ;;  %11388 = vmatprep.subr.bf16.mxu1 %v16245_v54  ;;  %12353 = vrcp.f32 %v3474_v35  ;;  %v16357_v35 = vld [vmem:[#allocation44_spill] sm:$0xff]  ;;  %v16359_v21 = vld [vmem:[#allocation61_spill] sm:$0xff] }
 0x44c   :  { %v12344_v53 = vpop.eup %12343 }
 0x44d   :  { %v3603_v2 = vmul.f32 %v12344_v53, %v14123_v48  ;;  %7131 = vrot.lane.b32.xlu1 %v16351_v42, %s12793_s5  ;;  %11373 = vmatmul.mubr.msk.bf16.vlgmr.msra.gmra.mrb[180].mxu0 %vm2907_vm4, %v3638_v26  ;;  %v3477_v47 = vpop.xlane.xlu1 %3476  ;;  %v12346_v25 = vpop.eup %12345 }
 0x44e   :  { %v3480_v38 = vpop.xlane.xlu0 %3479  ;;  %11383 = vmatpush3.bf16.msra.mxu0 %v16352_v1  ;;  %12355 = vrcp.f32 %v3477_v47  ;;  %11384 = vmatprep.mubr.msk.bf16.mxu0 %vm12792_vm2, %v16245_v54  ;;  %v3604_v48 = vmul.f32 %v12346_v25, %v14116_v23 }
 0x44f   :  { %7128 = vrot.lane.b32.xlu0 %v16353_v51, %s12793_s5  ;;  %v3639_v52 = vpack.c.bf16 %v3603_v2, %v3602_v33  ;;  %11394 = vmatprep.subr.bf16.mxu0 %v16245_v54  ;;  %12357 = vrcp.f32 %v3480_v38  ;;  %v16360_v33 = vld [vmem:[#allocation113_spill] sm:$0xff] }
 0x450   :  { %v12348_v57 = vpop.eup %12347 }
 0x451   :  { %v3605_v59 = vmul.f32 %v12348_v57, %v14135_v31  ;;  %7184 = vrot.lane.b32.xlu1 %v16354_v8, %s12793_s5  ;;  %11379 = vmatmul.mubr.msk.bf16.vlgmr.msra.gmra.mrb[244].mxu1 %vm2907_vm4, %v3639_v52  ;;  %v3483_v63 = vpop.xlane.xlu1 %3482  ;;  %v12350_v18 = vpop.eup %12349  ;;  %v1394_v31 = vld [vmem:[#allocation10] sm:$0x3] }
 0x452   :  { %11389 = vmatpush3.bf16.msra.mxu1 %v16355_v55  ;;  %12359 = vrcp.f32 %v3483_v63  ;;  %11390 = vmatprep.mubr.msk.bf16.mxu1 %vm12792_vm2, %v16245_v54  ;;  %v3606_v45 = vmul.f32 %v12350_v18, %v14137_v61 }
 0x453   :  { %7970 = vrot.lane.b32.xlu0 %v16356_v32, %s12793_s5  ;;  %v3640_v41 = vpack.c.bf16 %v3605_v59, %v3604_v48  ;;  %11400 = vmatprep.subr.bf16.mxu1 %v16245_v54 }
 0x454   :  { %v12352_v23 = vpop.eup %12351 }
 0x455   :  { %v3607_v10 = vmul.f32 %v12352_v23, %v14147_v3  ;;  %7181 = vrot.lane.b32.xlu1 %v16357_v35, %s12793_s5  ;;  %11385 = vmatmul.mubr.msk.bf16.vlgmr.msra.gmra.mrb[184].mxu0 %vm2907_vm4, %v3640_v41  ;;  %v5539_v11 = vpop.permute.xlu1 %5538  ;;  %v12354_v29 = vpop.eup %12353 }
 0x456   :  { %11395 = vmatpush3.bf16.msra.mxu0 %v16358_v0  ;;  %11396 = vmatprep.mubr.msk.bf16.mxu0 %vm12792_vm2, %v16245_v54  ;;  %v3608_v3 = vmul.f32 %v12354_v29, %v14141_v60  ;;  %v5182_v60 = vsel %vm5180_vm5, %v1394_v31, 0 }
 0x457   :  { %8066 = vrot.lane.b32.xlu0 %v16244_v30, %s12793_s5  ;;  %v3641_v6 = vpack.c.bf16 %v3607_v10, %v3606_v45  ;;  %12056 = vmatprep.subr.msk.bf16.mxu0 %vm5180_vm5, %v1394_v31 }
 0x458   :  { %v12356_v61 = vpop.eup %12355 }
 0x459   :  { %v3609_v12 = vmul.f32 %v12356_v61, %v14158_v56  ;;  %8018 = vrot.lane.b32.xlu1 %v16359_v21, %s12793_s5  ;;  %11391 = vmatmul.mubr.msk.bf16.vlgmr.msra.gmra.mrb[248].mxu1 %vm2907_vm4, %v3641_v6  ;;  %v5595_v26 = vpop.permute.xlu1 %5594  ;;  %v12358_v53 = vpop.eup %12357 }
 0x45a   :  { %11401 = vmatpush3.bf16.msra.mxu1 %v16360_v33  ;;  %11402 = vmatprep.mubr.msk.bf16.mxu1 %vm12792_vm2, %v16245_v54  ;;  %v3610_v2 = vmul.f32 %v12358_v53, %v14160_v36 }
 0x45b   :  { %8162 = vrot.lane.b32.xlu0 %v16252_v43, %s12793_s5  ;;  %v3642_v30 = vpack.c.bf16 %v3609_v12, %v3608_v3  ;;  %11472 = vmatprep.subr.bf16.mxu1 %v16245_v54  ;;  %v5542_v43 = vpop.permute.xlu0 %5541 }
 0x45c   :  { %v12360_v56 = vpop.eup %12359 }
 0x45d   :  { %v3611_v38 = vmul.f32 %v12360_v56, %v14168_v9  ;;  %8114 = vrot.lane.b32.xlu1 %v16249_v34, %s12793_s5  ;;  %11397 = vmatmul.mubr.msk.bf16.vlgmr.msra.gmra.mrb[188].mxu0 %vm2907_vm4, %v3642_v30  ;;  %v5592_v42 = vpop.permute.xlu1 %5591  ;;  %v5547_v9 = vsel %vm1402_vm3, %v5542_v43, 0 }
 0x45e   :  { %11407 = vmatpush3.bf16.msra.mxu0 %v5182_v60 }
 0x45f   :  { %8258 = vrot.lane.b32.xlu0 %v16256_v20, %s12793_s5  ;;  %v3643_v47 = vpack.c.bf16 %v3611_v38, %v3610_v2  ;;  %11568 = vmatprep.subr.bf16.mxu0 %v16245_v54  ;;  %v5600_v20 = vsel %vm1402_vm3, %v5595_v26, 0 }
 0x461   :  { %8210 = vrot.lane.b32.xlu1 %v16254_v13, %s12793_s5  ;;  %11403 = vmatmul.mubr.msk.bf16.vlgmr.msra.gmra.mrb[252].mxu1 %vm2907_vm4, %v3643_v47  ;;  %v5645_v36 = vpop.permute.xlu1 %5644 }
 0x462   :  { %11474 = vmatprep.mubr.msk.bf16.mxu1 %vm12792_vm2, %v16245_v54 }
 0x463   :  { %8354 = vrot.lane.b32.xlu0 %v16260_v24, %s12793_s5  ;;  %11473 = vmatpush3.bf16.xpose.msra.mxu1 %v5547_v9  ;;  %v5648_v24 = vpop.permute.xlu0 %5647 }
 0x464   :  { %11478 = vmatprep.subr.bf16.mxu1 %v16245_v54 }
 0x465   :  { %8306 = vrot.lane.b32.xlu1 %v16257_v15, %s12793_s5  ;;  %v5698_v34 = vpop.permute.xlu1 %5697 }
 0x467   :  { %8450 = vrot.lane.b32.xlu0 %v16274_v46, %s12793_s5  ;;  %v5653_v46 = vsel %vm1402_vm3, %v5648_v24, 0 }
 0x469   :  { %8402 = vrot.lane.b32.xlu1 %v16267_v5, %s12793_s5  ;;  %v5751_v13 = vpop.permute.xlu1 %5750 }
 0x46a   :  { %11475 = vmatmul.mubr.msk.bf16.vlgmr.msra.gmra.mrb[0].mxu1 %vm1402_vm3, %v5539_v11 }
 0x46b   :  { %8546 = vrot.lane.b32.xlu0 %v16288_v28, %s12793_s5  ;;  %11479 = vmatpush3.bf16.xpose.msra.mxu1 %v5600_v20  ;;  %v5701_v28 = vpop.permute.xlu0 %5700 }
 0x46c   :  { %11480 = vmatprep.mubr.msk.bf16.mxu1 %vm12792_vm2, %v16245_v54  ;;  %11484 = vmatprep.subr.bf16.mxu1 %v16245_v54 }
 0x46d   :  { %8498 = vrot.lane.b32.xlu1 %v16281_v50, %s12793_s5  ;;  %v14528_v15 = vpop.permute.xlu1 %5803 }
 0x46f   :  { %8642 = vrot.lane.b32.xlu0 %v16301_v14, %s12793_s5 }
 0x471   :  { %8594 = vrot.lane.b32.xlu1 %v16295_v16, %s12793_s5  ;;  %v14534_v5 = vpop.permute.xlu1 %5856 }
 0x472   :  { %11481 = vmatmul.mubr.msk.bf16.vlgmr.msra.gmra.mrb[4].mxu1 %vm1402_vm3, %v5592_v42 }
 0x473   :  { %8738 = vrot.lane.b32.xlu0 %v16312_v22, %s12793_s5  ;;  %11485 = vmatpush3.bf16.xpose.msra.mxu1 %v5653_v46  ;;  %v5706_v22 = vsel %vm1402_vm3, %v5701_v28, 0 }
 0x474   :  { %11486 = vmatprep.mubr.msk.bf16.mxu1 %vm12792_vm2, %v16245_v54  ;;  %11490 = vmatprep.subr.bf16.mxu1 %v16245_v54 }
 0x475   :  { %8690 = vrot.lane.b32.xlu1 %v16307_v4, %s12793_s5  ;;  %v14545_v50 = vpop.permute.xlu1 %5909 }
 0x477   :  { %8834 = vrot.lane.b32.xlu0 %v16320_v62, %s12793_s5  ;;  %v5754_v62 = vpop.permute.xlu0 %5753 }
 0x478   :  { %v5759_v57 = vsel %vm1402_vm3, %v5754_v62, 0 }
 0x479   :  { %8786 = vrot.lane.b32.xlu1 %v16317_v39, %s12793_s5  ;;  %v14551_v16 = vpop.permute.xlu1 %5962 }
 0x47a   :  { %v3681_v14 = vpop.f32.mrb[128].mxu0  ;;  %11487 = vmatmul.mubr.msk.bf16.vlgmr.msra.gmra.mrb[8].mxu1 %vm1402_vm3, %v5645_v36 }
 0x47b   :  { %8930 = vrot.lane.b32.xlu0 %v16326_v40, %s12793_s5  ;;  %v11218_v4 = vpop.f32.mrb[129].mxu0  ;;  %11491 = vmatpush3.bf16.xpose.msra.mxu1 %v5706_v22  ;;  %v5807_v48 = vpop.permute.xlu0 %5806 }
 0x47c   :  { %v3684_v25 = vpop.f32.mrb[130].mxu0  ;;  %11492 = vmatprep.mubr.msk.bf16.mxu1 %vm12792_vm2, %v16245_v54  ;;  %11496 = vmatprep.subr.bf16.mxu1 %v16245_v54  ;;  %v5812_v32 = vsel %vm1402_vm3, %v5807_v48, 0 }
 0x47d   :  { %v5052_v51 = vpack.c.bf16 %v3684_v25, %v3681_v14  ;;  %v11219_v52 = vpop.f32.mrb[131].mxu0  ;;  %8882 = vrot.lane.b32.xlu1 %v16323_v17, %s12793_s5  ;;  %v14562_v39 = vpop.permute.xlu1 %6015 }
 0x47f   :  { %9026 = vrot.lane.b32.xlu0 %v16332_v58, %s12793_s5  ;;  %11408 = vmatprep.mubr.msk.bf16.mxu0 %vm1402_vm3, %v5052_v51  ;;  %v5860_v18 = vpop.permute.xlu0 %5859 }
 0x480   :  { %v5865_v11 = vsel %vm1402_vm3, %v5860_v18, 0 }
 0x481   :  { %8978 = vrot.lane.b32.xlu1 %v16329_v44, %s12793_s5  ;;  %v14569_v40 = vpop.permute.xlu1 %6068 }
 0x482   :  { %11493 = vmatmul.mubr.msk.bf16.vlgmr.msra.gmra.mrb[12].mxu1 %vm1402_vm3, %v5698_v34 }
 0x483   :  { %9122 = vrot.lane.b32.xlu0 %v16338_v27, %s12793_s5  ;;  %v3725_v17 = vpop.f32.mrb[192].mxu1  ;;  %11497 = vmatpush3.bf16.xpose.msra.mxu1 %v5759_v57  ;;  %v5913_v10 = vpop.permute.xlu0 %5912 }
 0x484   :  { %v11224_v59 = vpop.f32.mrb[193].mxu1  ;;  %11498 = vmatprep.mubr.msk.bf16.mxu1 %vm12792_vm2, %v16245_v54  ;;  %11502 = vmatprep.subr.bf16.mxu1 %v16245_v54  ;;  %v5918_v26 = vsel %vm1402_vm3, %v5913_v10, 0 }
 0x485   :  { %v3728_v58 = vpop.f32.mrb[194].mxu1  ;;  %9074 = vrot.lane.b32.xlu1 %v16335_v7, %s12793_s5  ;;  %v14580_v8 = vpop.permute.xlu1 %6121 }
 0x486   :  { %v5053_v44 = vpack.c.bf16 %v3728_v58, %v3725_v17  ;;  %v11225_v63 = vpop.f32.mrb[195].mxu1 }
 0x488   :  { %11409 = vmatmul.mubr.msk.bf16.vlgmr.msra.gmra.mrb[192].mxu0 %vm1402_vm3, %v5053_v44 }
 0x489   :  { %9170 = vrot.lane.b32.xlu1 %v16341_v19, %s12793_s5  ;;  %v14585_v27 = vpop.permute.xlu1 %6174 }
 0x48a   :  { %11499 = vmatmul.mubr.msk.bf16.vlgmr.msra.gmra.mrb[16].mxu1 %vm1402_vm3, %v5751_v13 }
 0x48b   :  { %v3769_v41 = vpop.f32.mrb[132].mxu0  ;;  %11503 = vmatpush3.bf16.xpose.msra.mxu1 %v5812_v32  ;;  %11504 = vmatprep.mubr.msk.bf16.mxu1 %vm12792_vm2, %v16245_v54 }
 0x48c   :  { %v11230_v23 = vpop.f32.mrb[133].mxu0  ;;  %11508 = vmatprep.subr.bf16.mxu1 %v16245_v54 }
 0x48d   :  { %v3772_v7 = vpop.f32.mrb[134].mxu0  ;;  %9218 = vrot.lane.b32.xlu1 %v16344_v37, %s12793_s5  ;;  %v14594_v19 = vpop.permute.xlu1 %6227 }
 0x48e   :  { %v5054_v31 = vpack.c.bf16 %v3772_v7, %v3769_v41  ;;  %v11231_v45 = vpop.f32.mrb[135].mxu0  ;;  %v5966_v37 = vpop.permute.xlu0 %5965 }
 0x48f   :  { %v5971_v9 = vsel %vm1402_vm3, %v5966_v37, 0 }
 0x490   :  { %11412 = vmatprep.mubr.msk.bf16.mxu0 %vm1402_vm3, %v5054_v31 }
 0x491   :  { %9266 = vrot.lane.b32.xlu1 %v16349_v49, %s12793_s5  ;;  %v14599_v35 = vpop.permute.xlu1 %6280 }
 0x492   :  { %11505 = vmatmul.mubr.msk.bf16.vlgmr.msra.gmra.mrb[20].mxu1 %vm1402_vm3, %v14528_v15  ;;  %v6019_v30 = vpop.permute.xlu0 %6018 }
 0x493   :  { %v3813_v29 = vpop.f32.mrb[196].mxu1  ;;  %11509 = vmatpush3.bf16.xpose.msra.mxu1 %v5865_v11  ;;  %11510 = vmatprep.mubr.msk.bf16.mxu1 %vm12792_vm2, %v16245_v54  ;;  %v6024_v46 = vsel %vm1402_vm3, %v6019_v30, 0 }
 0x494   :  { %v11236_v6 = vpop.f32.mrb[197].mxu1  ;;  %11514 = vmatprep.subr.bf16.mxu1 %v16245_v54 }
 0x495   :  { %v3816_v61 = vpop.f32.mrb[198].mxu1  ;;  %v6390_v12 = vpop.permute.xlu1 %6389 }
 0x496   :  { %v5055_v3 = vpack.c.bf16 %v3816_v61, %v3813_v29  ;;  %v11237_v49 = vpop.f32.mrb[199].mxu1  ;;  %v6395_v21 = vsel %vm1402_vm3, %v6390_v12, 0  ;;  %v6072_v47 = vpop.permute.xlu0 %6071 }
 0x497   :  { %11569 = vmatpush3.bf16.xpose.msra.mxu0 %v6395_v21  ;;  %v6077_v62 = vsel %vm1402_vm3, %v6072_v47, 0 }
 0x498   :  { %11413 = vmatmul.mubr.msk.bf16.gmra.mrb[196].mxu0 %vm1402_vm3, %v5055_v3  ;;  %11580 = vmatprep.subr.bf16.mxu0 %v16245_v54 }
 0x499   :  { %v6443_v7 = vpop.permute.xlu1 %6442 }
 0x49a   :  { %11511 = vmatmul.mubr.msk.bf16.vlgmr.msra.gmra.mrb[24].mxu1 %vm1402_vm3, %v14534_v5  ;;  %v6125_v20 = vpop.permute.xlu0 %6124 }
 0x49b   :  { %v3857_v53 = vpop.f32.mrb[136].mxu0  ;;  %11515 = vmatpush3.bf16.xpose.msra.mxu1 %v5918_v26  ;;  %11516 = vmatprep.mubr.msk.bf16.mxu1 %vm12792_vm2, %v16245_v54  ;;  %v6130_v58 = vsel %vm1402_vm3, %v6125_v20, 0 }
 0x49c   :  { %v11242_v60 = vpop.f32.mrb[137].mxu0  ;;  %11520 = vmatprep.subr.bf16.mxu1 %v16245_v54 }
 0x49d   :  { %v3860_v56 = vpop.f32.mrb[138].mxu0  ;;  %v14652_v11 = vpop.permute.xlu1 %6495 }
 0x49e   :  { %v5056_v2 = vpack.c.bf16 %v3860_v56, %v3857_v53  ;;  %v11243_v38 = vpop.f32.mrb[139].mxu0  ;;  %v6178_v14 = vpop.permute.xlu0 %6177 }
 0x49f   :  { %v6183_v23 = vsel %vm1402_vm3, %v6178_v14, 0 }
 0x4a0   :  { %11416 = vmatprep.mubr.msk.bf16.mxu0 %vm1402_vm3, %v5056_v2  ;;  %v3901_v42 = vpop.f32.mrb[200].mxu1 }
 0x4a1   :  { %v11248_v43 = vpop.f32.mrb[201].mxu1  ;;  %v6549_v12 = vpop.permute.xlu1 %6548 }
 0x4a2   :  { %v3904_v36 = vpop.f32.mrb[202].mxu1  ;;  %11517 = vmatmul.mubr.msk.bf16.vlgmr.msra.gmra.mrb[28].mxu1 %vm1402_vm3, %v14545_v50  ;;  %v6231_v52 = vpop.permute.xlu0 %6230 }
 0x4a3   :  { %v5057_v34 = vpack.c.bf16 %v3904_v36, %v3901_v42  ;;  %v11249_v13 = vpop.f32.mrb[203].mxu1  ;;  %11521 = vmatpush3.bf16.xpose.msra.mxu1 %v5971_v9  ;;  %11522 = vmatprep.mubr.msk.bf16.mxu1 %vm12792_vm2, %v16245_v54  ;;  %v6236_v37 = vsel %vm1402_vm3, %v6231_v52, 0 }
 0x4a4   :  { %11526 = vmatprep.subr.bf16.mxu1 %v16245_v54 }
 0x4a5   :  { %11417 = vmatmul.mubr.msk.bf16.gmra.mrb[200].mxu0 %vm1402_vm3, %v5057_v34  ;;  %v14668_v56 = vpop.permute.xlu1 %6601 }
 0x4a6   :  { %v6284_v17 = vpop.permute.xlu0 %6283 }
 0x4a7   :  { %v6289_v30 = vsel %vm1402_vm3, %v6284_v17, 0 }
 0x4a8   :  { %v3945_v15 = vpop.f32.mrb[140].mxu0 }
 0x4a9   :  { %v11254_v24 = vpop.f32.mrb[141].mxu0 }
 0x4aa   :  { %v3948_v5 = vpop.f32.mrb[142].mxu0  ;;  %11523 = vmatmul.mubr.msk.bf16.vlgmr.msra.gmra.mrb[32].mxu1 %vm1402_vm3, %v14551_v16  ;;  %v6337_v63 = vpop.permute.xlu0 %6336 }
 0x4ab   :  { %v5058_v50 = vpack.c.bf16 %v3948_v5, %v3945_v15  ;;  %v11255_v28 = vpop.f32.mrb[143].mxu0  ;;  %11527 = vmatpush3.bf16.xpose.msra.mxu1 %v6024_v46  ;;  %11528 = vmatprep.mubr.msk.bf16.mxu1 %vm12792_vm2, %v16245_v54  ;;  %v6342_v47 = vsel %vm1402_vm3, %v6337_v63, 0  ;;  %v6448_v5 = vsel %vm1402_vm3, %v6443_v7, 0 }
 0x4ac   :  { %11532 = vmatprep.subr.bf16.mxu1 %v16245_v54 }
 0x4ad   :  { %11420 = vmatprep.mubr.msk.bf16.mxu0 %vm1402_vm3, %v5058_v50 }
 0x4ae   :  { %v6334_v45 = vpop.permute.xlu0 %6333 }
 0x4b0   :  { %v3989_v22 = vpop.f32.mrb[204].mxu1 }
 0x4b1   :  { %v11260_v4 = vpop.f32.mrb[205].mxu1 }
 0x4b2   :  { %v3992_v25 = vpop.f32.mrb[206].mxu1  ;;  %11529 = vmatmul.mubr.msk.bf16.vlgmr.msra.gmra.mrb[36].mxu1 %vm1402_vm3, %v14562_v39  ;;  %v14657_v3 = vpop.permute.xlu0 %6386 }
 0x4b3   :  { %v5059_v16 = vpack.c.bf16 %v3992_v25, %v3989_v22  ;;  %v11261_v51 = vpop.f32.mrb[207].mxu1  ;;  %11533 = vmatpush3.bf16.xpose.msra.mxu1 %v6077_v62  ;;  %11534 = vmatprep.mubr.msk.bf16.mxu1 %vm12792_vm2, %v16245_v54  ;;  %v6554_v62 = vsel %vm1402_vm3, %v6549_v12, 0 }
 0x4b4   :  { %11538 = vmatprep.subr.bf16.mxu1 %v16245_v54 }
 0x4b5   :  { %11421 = vmatmul.mubr.msk.bf16.gmra.mrb[204].mxu0 %vm1402_vm3, %v5059_v16 }
 0x4b6   :  { %v6440_v26 = vpop.permute.xlu0 %6439 }
 0x4b8   :  { %v4033_v57 = vpop.f32.mrb[144].mxu0 }
 0x4b9   :  { %v11266_v48 = vpop.f32.mrb[145].mxu0 }
 0x4ba   :  { %v4036_v59 = vpop.f32.mrb[146].mxu0  ;;  %11535 = vmatmul.mubr.msk.bf16.vlgmr.msra.gmra.mrb[40].mxu1 %vm1402_vm3, %v14569_v40  ;;  %v14672_v2 = vpop.permute.xlu0 %6492 }
 0x4bb   :  { %v5060_v39 = vpack.c.bf16 %v4036_v59, %v4033_v57  ;;  %v11267_v44 = vpop.f32.mrb[147].mxu0  ;;  %11539 = vmatpush3.bf16.xpose.msra.mxu1 %v6130_v58  ;;  %11540 = vmatprep.mubr.msk.bf16.mxu1 %vm12792_vm2, %v16245_v54 }
 0x4bc   :  { %11544 = vmatprep.subr.bf16.mxu1 %v16245_v54 }
 0x4bd   :  { %11424 = vmatprep.mubr.msk.bf16.mxu0 %vm1402_vm3, %v5060_v39 }
 0x4be   :  { %v6546_v34 = vpop.permute.xlu0 %6545 }
 0x4c0   :  { %v4077_v18 = vpop.f32.mrb[208].mxu1 }
 0x4c1   :  { %v11272_v32 = vpop.f32.mrb[209].mxu1 }
 0x4c2   :  { %v4080_v41 = vpop.f32.mrb[210].mxu1  ;;  %11541 = vmatmul.mubr.msk.bf16.vlgmr.msra.gmra.mrb[44].mxu1 %vm1402_vm3, %v14580_v8  ;;  %v14685_v50 = vpop.permute.xlu0 %6598 }
 0x4c3   :  { %v5061_v40 = vpack.c.bf16 %v4080_v41, %v4077_v18  ;;  %v11273_v31 = vpop.f32.mrb[211].mxu1  ;;  %11545 = vmatpush3.bf16.xpose.msra.mxu1 %v6183_v23  ;;  %11546 = vmatprep.mubr.msk.bf16.mxu1 %vm12792_vm2, %v16245_v54 }
 0x4c4   :  { %11550 = vmatprep.subr.bf16.mxu1 %v16245_v54 }
 0x4c5   :  { %11425 = vmatmul.mubr.msk.bf16.gmra.mrb[208].mxu0 %vm1402_vm3, %v5061_v40 }
 0x4c6   :  { %v6652_v4 = vpop.permute.xlu0 %6651 }
 0x4c8   :  { %v4121_v10 = vpop.f32.mrb[148].mxu0 }
 0x4c9   :  { %v11278_v29 = vpop.f32.mrb[149].mxu0 }
 0x4ca   :  { %v4124_v6 = vpop.f32.mrb[150].mxu0  ;;  %11547 = vmatmul.mubr.msk.bf16.vlgmr.msra.gmra.mrb[48].mxu1 %vm1402_vm3, %v14585_v27  ;;  %v14699_v57 = vpop.permute.xlu0 %6704 }
 0x4cb   :  { %v5062_v8 = vpack.c.bf16 %v4124_v6, %v4121_v10  ;;  %v11279_v61 = vpop.f32.mrb[151].mxu0  ;;  %11551 = vmatpush3.bf16.xpose.msra.mxu1 %v6236_v37  ;;  %11552 = vmatprep.mubr.msk.bf16.mxu1 %vm12792_vm2, %v16245_v54 }
 0x4cc   :  { %11556 = vmatprep.subr.bf16.mxu1 %v16245_v54 }
 0x4cd   :  { %11428 = vmatprep.mubr.msk.bf16.mxu0 %vm1402_vm3, %v5062_v8 }
 0x4ce   :  { %v6758_v41 = vpop.permute.xlu0 %6757 }
 0x4d0   :  { %v4165_v49 = vpop.f32.mrb[212].mxu1 }
 0x4d1   :  { %v11284_v21 = vpop.f32.mrb[213].mxu1 }
 0x4d2   :  { %v4168_v53 = vpop.f32.mrb[214].mxu1  ;;  %11553 = vmatmul.mubr.msk.bf16.vlgmr.msra.gmra.mrb[52].mxu1 %vm1402_vm3, %v14594_v19  ;;  %v6655_v19 = vpop.permute.xlu1 %6654 }
 0x4d3   :  { %v5063_v27 = vpack.c.bf16 %v4168_v53, %v4165_v49  ;;  %v11285_v60 = vpop.f32.mrb[215].mxu1  ;;  %11557 = vmatpush3.bf16.xpose.msra.mxu1 %v6289_v30  ;;  %11558 = vmatprep.mubr.msk.bf16.mxu1 %vm12792_vm2, %v16245_v54  ;;  %v6660_v58 = vsel %vm1402_vm3, %v6655_v19, 0  ;;  %v14712_v61 = vpop.permute.xlu0 %6810 }
 0x4d4   :  { %11562 = vmatprep.subr.bf16.mxu1 %v16245_v54 }
 0x4d5   :  { %11429 = vmatmul.mubr.msk.bf16.gmra.mrb[212].mxu0 %vm1402_vm3, %v5063_v27 }
 0x4d6   :  { %v14681_v20 = vpop.permute.xlu1 %6707 }
 0x4d8   :  { %v4209_v38 = vpop.f32.mrb[152].mxu0 }
 0x4d9   :  { %v11290_v42 = vpop.f32.mrb[153].mxu0 }
 0x4da   :  { %v4212_v43 = vpop.f32.mrb[154].mxu0  ;;  %11559 = vmatmul.mubr.msk.bf16.vlgmr.msra.gmra.mrb[56].mxu1 %vm1402_vm3, %v14599_v35  ;;  %v6761_v28 = vpop.permute.xlu1 %6760 }
 0x4db   :  { %v5064_v36 = vpack.c.bf16 %v4212_v43, %v4209_v38  ;;  %v11291_v9 = vpop.f32.mrb[155].mxu0  ;;  %11563 = vmatpush3.bf16.xpose.msra.mxu1 %v6342_v47  ;;  %11564 = vmatprep.mubr.msk.bf16.mxu1 %vm12792_vm2, %v16245_v54  ;;  %v6766_v6 = vsel %vm1402_vm3, %v6761_v28, 0  ;;  %v6864_v38 = vpop.permute.xlu0 %6863 }
 0x4dc   :  { %11574 = vmatprep.subr.bf16.mxu1 %v16245_v54 }
 0x4dd   :  { %11432 = vmatprep.mubr.msk.bf16.mxu0 %vm1402_vm3, %v5064_v36 }
 0x4de   :  { %v14695_v52 = vpop.permute.xlu1 %6813 }
 0x4e0   :  { %v4253_v13 = vpop.f32.mrb[216].mxu1 }
 0x4e1   :  { %v11296_v15 = vpop.f32.mrb[217].mxu1 }
 0x4e2   :  { %v4256_v24 = vpop.f32.mrb[218].mxu1  ;;  %11565 = vmatmul.mubr.msk.bf16.vlgmr.msra.gmra.mrb[60].mxu1 %vm1402_vm3, %v6334_v45  ;;  %v6867_v39 = vpop.permute.xlu1 %6866 }
 0x4e3   :  { %v5065_v35 = vpack.c.bf16 %v4256_v24, %v4253_v13  ;;  %v11297_v46 = vpop.f32.mrb[219].mxu1  ;;  %11575 = vmatpush3.bf16.xpose.msra.mxu1 %v6448_v5  ;;  %11576 = vmatprep.mubr.msk.bf16.mxu1 %vm12792_vm2, %v16245_v54  ;;  %v6872_v43 = vsel %vm1402_vm3, %v6867_v39, 0  ;;  %v14727_v5 = vpop.permute.xlu0 %6916 }
 0x4e4   :  { %11586 = vmatprep.subr.bf16.mxu1 %v16245_v54 }
 0x4e5   :  { %11433 = vmatmul.mubr.msk.bf16.gmra.mrb[216].mxu0 %vm1402_vm3, %v5065_v35 }
 0x4e6   :  { %v14707_v45 = vpop.permute.xlu1 %6919 }
 0x4e8   :  { %v4297_v14 = vpop.f32.mrb[156].mxu0 }
 0x4e9   :  { %v11302_v22 = vpop.f32.mrb[157].mxu0 }
 0x4ea   :  { %v4300_v25 = vpop.f32.mrb[158].mxu0  ;;  %11577 = vmatmul.mubr.msk.bf16.vlgmr.msra.gmra.mrb[64].mxu1 %vm1402_vm3, %v6440_v26  ;;  %v6973_v26 = vpop.permute.xlu1 %6972 }
 0x4eb   :  { %v5066_v16 = vpack.c.bf16 %v4300_v25, %v4297_v14  ;;  %v11303_v51 = vpop.f32.mrb[159].mxu0  ;;  %11587 = vmatpush3.bf16.xpose.msra.mxu1 %v6554_v62  ;;  %11588 = vmatprep.mubr.msk.bf16.mxu1 %vm12792_vm2, %v16245_v54  ;;  %v6978_v14 = vsel %vm1402_vm3, %v6973_v26, 0 }
 0x4ec   :  { %11598 = vmatprep.subr.bf16.mxu1 %v16245_v54  ;;  %v6970_v51 = vpop.permute.xlu0 %6969 }
 0x4ed   :  { %11436 = vmatprep.mubr.msk.bf16.mxu0 %vm1402_vm3, %v5066_v16 }
 0x4ee   :  { %v14723_v9 = vpop.permute.xlu1 %7025 }
 0x4f0   :  { %v4341_v48 = vpop.f32.mrb[220].mxu1 }
 0x4f1   :  { %v11308_v17 = vpop.f32.mrb[221].mxu1 }
 0x4f2   :  { %v4344_v59 = vpop.f32.mrb[222].mxu1  ;;  %11589 = vmatmul.mubr.msk.bf16.vlgmr.msra.gmra.mrb[68].mxu1 %vm1402_vm3, %v6546_v34  ;;  %v7079_v22 = vpop.permute.xlu1 %7078 }
 0x4f3   :  { %v5067_v44 = vpack.c.bf16 %v4344_v59, %v4341_v48  ;;  %v11309_v63 = vpop.f32.mrb[223].mxu1  ;;  %11599 = vmatpush3.bf16.xpose.msra.mxu1 %v6660_v58  ;;  %11600 = vmatprep.mubr.msk.bf16.mxu1 %vm12792_vm2, %v16245_v54 }
 0x4f4   :  { %v4385_v18 = vpop.f32.mrb[160].mxu0  ;;  %11610 = vmatprep.subr.bf16.mxu1 %v16245_v54 }
 0x4f5   :  { %v11314_v32 = vpop.f32.mrb[161].mxu0  ;;  %11437 = vmatmul.mubr.msk.bf16.gmra.mrb[220].mxu0 %vm1402_vm3, %v5067_v44 }
 0x4f6   :  { %v4388_v23 = vpop.f32.mrb[162].mxu0  ;;  %v14736_v39 = vpop.permute.xlu1 %7131 }
 0x4f7   :  { %v5068_v7 = vpack.c.bf16 %v4388_v23, %v4385_v18  ;;  %v11315_v40 = vpop.f32.mrb[163].mxu0  ;;  %v7084_v18 = vsel %vm1402_vm3, %v7079_v22, 0  ;;  %v14741_v23 = vpop.permute.xlu0 %7022 }
 0x4f8   :  { %v4429_v31 = vpop.f32.mrb[224].mxu1 }
 0x4f9   :  { %v11320_v10 = vpop.f32.mrb[225].mxu1  ;;  %11440 = vmatprep.mubr.msk.bf16.mxu0 %vm1402_vm3, %v5068_v7 }
 0x4fa   :  { %v4432_v29 = vpop.f32.mrb[226].mxu1  ;;  %11601 = vmatmul.mubr.msk.bf16.vlgmr.msra.gmra.mrb[72].mxu1 %vm1402_vm3, %v6652_v4  ;;  %v7185_v10 = vpop.permute.xlu1 %7184 }
 0x4fb   :  { %v5069_v37 = vpack.c.bf16 %v4432_v29, %v4429_v31  ;;  %v11321_v8 = vpop.f32.mrb[227].mxu1  ;;  %11611 = vmatpush3.bf16.xpose.msra.mxu1 %v6766_v6  ;;  %11612 = vmatprep.mubr.msk.bf16.mxu1 %vm12792_vm2, %v16245_v54 }
 0x4fc   :  { %v4473_v12 = vpop.f32.mrb[164].mxu0  ;;  %11622 = vmatprep.subr.bf16.mxu1 %v16245_v54  ;;  %v7190_v8 = vsel %vm1402_vm3, %v7185_v10, 0 }
 0x4fd   :  { %v11326_v49 = vpop.f32.mrb[165].mxu0  ;;  %11441 = vmatmul.mubr.msk.bf16.gmra.mrb[224].mxu0 %vm1402_vm3, %v5069_v37  ;;  %v7076_v37 = vpop.permute.xlu0 %7075 }
 0x4fe   :  { %v4476_v21 = vpop.f32.mrb[166].mxu0 }
 0x4ff   :  { %v5070_v53 = vpack.c.bf16 %v4476_v21, %v4473_v12  ;;  %v11327_v30 = vpop.f32.mrb[167].mxu0  ;;  %v7182_v12 = vpop.permute.xlu1 %7181 }
 0x500   :  { %v4517_v27 = vpop.f32.mrb[228].mxu1 }
 0x501   :  { %v11332_v60 = vpop.f32.mrb[229].mxu1  ;;  %11444 = vmatprep.mubr.msk.bf16.mxu0 %vm1402_vm3, %v5070_v53 }
 0x502   :  { %v4520_v42 = vpop.f32.mrb[230].mxu1  ;;  %11613 = vmatmul.mubr.msk.bf16.vlgmr.msra.gmra.mrb[76].mxu1 %vm1402_vm3, %v6758_v41 }
 0x503   :  { %v5071_v47 = vpack.c.bf16 %v4520_v42, %v4517_v27  ;;  %v11333_v19 = vpop.f32.mrb[231].mxu1  ;;  %11623 = vmatpush3.bf16.xpose.msra.mxu1 %v6872_v43  ;;  %11624 = vmatprep.mubr.msk.bf16.mxu1 %vm12792_vm2, %v16245_v54 }
 0x504   :  { %v4561_v36 = vpop.f32.mrb[168].mxu0  ;;  %11634 = vmatprep.subr.bf16.mxu1 %v16245_v54 }
 0x505   :  { %v11338_v34 = vpop.f32.mrb[169].mxu0  ;;  %11445 = vmatmul.mubr.msk.bf16.gmra.mrb[228].mxu0 %vm1402_vm3, %v5071_v47 }
 0x506   :  { %v4564_v13 = vpop.f32.mrb[170].mxu0 }
 0x507   :  { %v5072_v15 = vpack.c.bf16 %v4564_v13, %v4561_v36  ;;  %v11339_v24 = vpop.f32.mrb[171].mxu0 }
 0x508   :  { %v4605_v35 = vpop.f32.mrb[232].mxu1 }
 0x509   :  { %v11344_v46 = vpop.f32.mrb[233].mxu1  ;;  %11448 = vmatprep.mubr.msk.bf16.mxu0 %vm1402_vm3, %v5072_v15 }
 0x50a   :  { %v4608_v28 = vpop.f32.mrb[234].mxu1  ;;  %11625 = vmatmul.mubr.msk.bf16.vlgmr.msra.gmra.mrb[80].mxu1 %vm1402_vm3, %v6864_v38  ;;  %v8019_v38 = vpop.permute.xlu1 %8018 }
 0x50b   :  { %v5073_v4 = vpack.c.bf16 %v4608_v28, %v4605_v35  ;;  %v11345_v25 = vpop.f32.mrb[235].mxu1  ;;  %11635 = vmatpush3.bf16.xpose.msra.mxu1 %v6978_v14  ;;  %11636 = vmatprep.mubr.msk.bf16.mxu1 %vm12792_vm2, %v16245_v54 }
 0x50c   :  { %v4649_v62 = vpop.f32.mrb[172].mxu0  ;;  %11646 = vmatprep.subr.bf16.mxu1 %v16245_v54 }
 0x50d   :  { %v11350_v16 = vpop.f32.mrb[173].mxu0  ;;  %11449 = vmatmul.mubr.msk.bf16.gmra.mrb[232].mxu0 %vm1402_vm3, %v5073_v4 }
 0x50e   :  { %v4652_v48 = vpop.f32.mrb[174].mxu0 }
 0x50f   :  { %v5074_v17 = vpack.c.bf16 %v4652_v48, %v4649_v62  ;;  %v11351_v59 = vpop.f32.mrb[175].mxu0 }
 0x510   :  { %v4693_v58 = vpop.f32.mrb[236].mxu1 }
 0x511   :  { %v11356_v44 = vpop.f32.mrb[237].mxu1  ;;  %11452 = vmatprep.mubr.msk.bf16.mxu0 %vm1402_vm3, %v5074_v17 }
 0x512   :  { %v4696_v63 = vpop.f32.mrb[238].mxu1  ;;  %11637 = vmatmul.mubr.msk.bf16.vlgmr.msra.gmra.mrb[84].mxu1 %vm1402_vm3, %v6970_v51 }
 0x513   :  { %v5075_v32 = vpack.c.bf16 %v4696_v63, %v4693_v58  ;;  %v11357_v41 = vpop.f32.mrb[239].mxu1  ;;  %11647 = vmatpush3.bf16.xpose.msra.mxu1 %v7084_v18  ;;  %11648 = vmatprep.mubr.msk.bf16.mxu1 %vm12792_vm2, %v16245_v54 }
 0x514   :  { %v4737_v7 = vpop.f32.mrb[176].mxu0  ;;  %11658 = vmatprep.subr.bf16.mxu1 %v16245_v54 }
 0x515   :  { %v11362_v40 = vpop.f32.mrb[177].mxu0  ;;  %11453 = vmatmul.mubr.msk.bf16.gmra.mrb[236].mxu0 %vm1402_vm3, %v5075_v32 }
 0x516   :  { %v4740_v31 = vpop.f32.mrb[178].mxu0 }
 0x517   :  { %v5076_v29 = vpack.c.bf16 %v4740_v31, %v4737_v7  ;;  %v11363_v6 = vpop.f32.mrb[179].mxu0 }
 0x519   :  { %11456 = vmatprep.mubr.msk.bf16.mxu0 %vm1402_vm3, %v5076_v29 }
 0x51a   :  { %11649 = vmatmul.mubr.msk.bf16.vlgmr.msra.gmra.mrb[88].mxu1 %vm1402_vm3, %v7076_v37  ;;  %v6501_v37 = vsel %vm1402_vm3, %v14652_v11, 0 }
 0x51b   :  { %11659 = vmatpush3.bf16.xpose.msra.mxu1 %v7190_v8  ;;  %11660 = vmatprep.mubr.msk.bf16.mxu1 %vm12792_vm2, %v16245_v54 }
 0x51c   :  { %v4781_v49 = vpop.f32.mrb[240].mxu1  ;;  %11670 = vmatprep.subr.bf16.mxu1 %v16245_v54 }
 0x51d   :  { %v11368_v21 = vpop.f32.mrb[241].mxu1 }
 0x51e   :  { %v4784_v26 = vpop.f32.mrb[242].mxu1 }
 0x51f   :  { %v5077_v53 = vpack.c.bf16 %v4784_v26, %v4781_v49  ;;  %v11369_v30 = vpop.f32.mrb[243].mxu1  ;;  %v6607_v26 = vsel %vm1402_vm3, %v14668_v56, 0 }
 0x520   :  { %v4825_v27 = vpop.f32.mrb[180].mxu0 }
 0x521   :  { %v11374_v60 = vpop.f32.mrb[181].mxu0  ;;  %11457 = vmatmul.mubr.msk.bf16.gmra.mrb[240].mxu0 %vm1402_vm3, %v5077_v53 }
 0x522   :  { %11661 = vmatmul.mubr.msk.bf16.vlgmr.msra.gmra.mrb[92].mxu1 %vm1402_vm3, %v7182_v12  ;;  %v4828_v42 = vpop.f32.mrb[182].mxu0 }
 0x523   :  { %v5078_v43 = vpack.c.bf16 %v4828_v42, %v4825_v27  ;;  %11671 = vmatpush3.bf16.msra.mxu1 %v8019_v38  ;;  %v11375_v47 = vpop.f32.mrb[183].mxu0  ;;  %11672 = vmatprep.mubr.msk.bf16.mxu1 %vm12792_vm2, %v16245_v54  ;;  %v6713_v38 = vsel %vm1402_vm3, %v14681_v20, 0 }
 0x524   :  { %v4869_v19 = vpop.f32.mrb[244].mxu1  ;;  %11682 = vmatprep.subr.bf16.mxu1 %v16245_v54 }
 0x525   :  { %v11380_v36 = vpop.f32.mrb[245].mxu1  ;;  %11460 = vmatprep.mubr.msk.bf16.mxu0 %vm1402_vm3, %v5078_v43 }
 0x526   :  { %v4872_v34 = vpop.f32.mrb[246].mxu1 }
 0x527   :  { %v5079_v13 = vpack.c.bf16 %v4872_v34, %v4869_v19  ;;  %v11381_v15 = vpop.f32.mrb[247].mxu1 }
 0x528   :  { %v4913_v24 = vpop.f32.mrb[184].mxu0 }
 0x529   :  { %v11386_v35 = vpop.f32.mrb[185].mxu0  ;;  %11461 = vmatmul.mubr.msk.bf16.gmra.mrb[244].mxu0 %vm1402_vm3, %v5079_v13 }
 0x52a   :  { %v4916_v46 = vpop.f32.mrb[186].mxu0 }
 0x52b   :  { %v5080_v28 = vpack.c.bf16 %v4916_v46, %v4913_v24  ;;  %v11387_v14 = vpop.f32.mrb[187].mxu0 }
 0x52c   :  { %v4957_v22 = vpop.f32.mrb[248].mxu1 }
 0x52d   :  { %v11392_v4 = vpop.f32.mrb[249].mxu1  ;;  %11464 = vmatprep.mubr.msk.bf16.mxu0 %vm1402_vm3, %v5080_v28 }
 0x52e   :  { %v4960_v25 = vpop.f32.mrb[250].mxu1 }
 0x52f   :  { %v5081_v62 = vpack.c.bf16 %v4960_v25, %v4957_v22  ;;  %v11393_v16 = vpop.f32.mrb[251].mxu1 }
 0x530   :  { %v5001_v51 = vpop.f32.mrb[188].mxu0 }
 0x531   :  { %v11398_v48 = vpop.f32.mrb[189].mxu0  ;;  %11465 = vmatmul.mubr.msk.bf16.gmra.mrb[248].mxu0 %vm1402_vm3, %v5081_v62 }
 0x532   :  { %v5004_v17 = vpop.f32.mrb[190].mxu0 }
 0x533   :  { %v5082_v59 = vpack.c.bf16 %v5004_v17, %v5001_v51  ;;  %v11399_v58 = vpop.f32.mrb[191].mxu0  ;;  %v7129_v17 = vpop.permute.xlu0 %7128 }
 0x534   :  { %v5045_v44 = vpop.f32.mrb[252].mxu1 }
 0x535   :  { %v11404_v63 = vpop.f32.mrb[253].mxu1  ;;  %11468 = vmatprep.mubr.msk.bf16.mxu0 %vm1402_vm3, %v5082_v59 }
 0x536   :  { %v5048_v18 = vpop.f32.mrb[254].mxu1 }
 0x537   :  { %v5083_v32 = vpack.c.bf16 %v5048_v18, %v5045_v44  ;;  %v11405_v41 = vpop.f32.mrb[255].mxu1  ;;  %v7971_v18 = vpop.permute.xlu0 %7970 }
 0x539   :  { %11469 = vmatmul.mubr.msk.bf16.gmra.mrb[252].mxu0 %vm1402_vm3, %v5083_v32  ;;  %v14883_v32 = vpop.permute.xlu1 %8114 }
 0x53a   :  { %11570 = vmatprep.mubr.msk.bf16.mxu0 %vm12792_vm2, %v16245_v54 }
 0x53d   :  { %v14766_v7 = vpop.f32.mrb[0].mxu1 }
 0x53e   :  { %v11476_v40 = vpop.f32.mrb[1].mxu1  ;;  %v7233_v31 = vsel %vm2907_vm4, %v14766_v7, -inf }
 0x53f   :  { %7234 = vmax.xlane.f32.xlu0 %v7233_v31  ;;  %v14770_v10 = vpop.f32.mrb[2].mxu1 }
 0x540   :  { %v11477_v29 = vpop.f32.mrb[3].mxu1  ;;  %v7236_v6 = vsel %vm2907_vm4, %v14770_v10, -inf }
 0x541   :  { %7237 = vmax.xlane.f32.xlu1 %v7236_v6  ;;  %11571 = vmatmul.mubr.msk.bf16.vlgmr.msra.gmra.mrb[0].mxu0 %vm1402_vm3, %v14657_v3 }
 0x542   :  { %11581 = vmatpush3.bf16.xpose.msra.mxu0 %v6501_v37  ;;  %11582 = vmatprep.mubr.msk.bf16.mxu0 %vm12792_vm2, %v16245_v54 }
 0x543   :  { %11592 = vmatprep.subr.bf16.mxu0 %v16245_v54 }
 0x545   :  { %v14781_v8 = vpop.f32.mrb[4].mxu1 }
 0x546   :  { %v11482_v12 = vpop.f32.mrb[5].mxu1  ;;  %v7239_v49 = vsel %vm2907_vm4, %v14781_v8, -inf }
 0x547   :  { %7240 = vmax.xlane.f32.xlu0 %v7239_v49  ;;  %v14785_v21 = vpop.f32.mrb[6].mxu1  ;;  %v14893_v12 = vpop.permute.xlu1 %8210 }
 0x548   :  { %v11483_v11 = vpop.f32.mrb[7].mxu1  ;;  %v7242_v3 = vsel %vm2907_vm4, %v14785_v21, -inf }
 0x549   :  { %11583 = vmatmul.mubr.msk.bf16.vlgmr.msra.gmra.mrb[4].mxu0 %vm1402_vm3, %v14672_v2  ;;  %v14897_v11 = vpop.permute.xlu0 %8066 }
 0x54a   :  { %11593 = vmatpush3.bf16.xpose.msra.mxu0 %v6607_v26  ;;  %11594 = vmatprep.mubr.msk.bf16.mxu0 %vm12792_vm2, %v16245_v54 }
 0x54b   :  { %7243 = vmax.xlane.f32.xlu0 %v7242_v3  ;;  %11604 = vmatprep.subr.bf16.mxu0 %v16245_v54 }
 0x54d   :  { %v14796_v53 = vpop.f32.mrb[8].mxu1 }
 0x54e   :  { %v11488_v30 = vpop.f32.mrb[9].mxu1  ;;  %v7245_v27 = vsel %vm2907_vm4, %v14796_v53, -inf }
 0x54f   :  { %7246 = vmax.xlane.f32.xlu0 %v7245_v27  ;;  %v14800_v56 = vpop.f32.mrb[10].mxu1  ;;  %v14903_v27 = vpop.permute.xlu1 %8306 }
 0x550   :  { %v11489_v2 = vpop.f32.mrb[11].mxu1  ;;  %v7248_v60 = vsel %vm2907_vm4, %v14800_v56, -inf  ;;  %16361 = vst [vmem:[#allocation117_spill] sm:$0xff] %v14903_v27 }
 0x551   :  { %7249 = vmax.xlane.f32.xlu1 %v7248_v60  ;;  %11595 = vmatmul.mubr.msk.bf16.vlgmr.msra.gmra.mrb[8].mxu0 %vm1402_vm3, %v14685_v50  ;;  %v6819_v50 = vsel %vm1402_vm3, %v14695_v52, 0 }
 0x552   :  { %11605 = vmatpush3.bf16.xpose.msra.mxu0 %v6713_v38  ;;  %11606 = vmatprep.mubr.msk.bf16.mxu0 %vm12792_vm2, %v16245_v54  ;;  %v14907_v38 = vpop.permute.xlu0 %8162 }
 0x553   :  { %11616 = vmatprep.subr.bf16.mxu0 %v16245_v54 }
 0x555   :  { %v14811_v42 = vpop.f32.mrb[12].mxu1 }
 0x556   :  { %v11494_v43 = vpop.f32.mrb[13].mxu1  ;;  %v7251_v47 = vsel %vm2907_vm4, %v14811_v42, -inf }
 0x557   :  { %7252 = vmax.xlane.f32.xlu0 %v7251_v47  ;;  %v14815_v19 = vpop.f32.mrb[14].mxu1  ;;  %v14911_v47 = vpop.permute.xlu1 %8402 }
 0x558   :  { %v11495_v20 = vpop.f32.mrb[15].mxu1  ;;  %v7254_v36 = vsel %vm2907_vm4, %v14815_v19, -inf  ;;  %16362 = vst [vmem:[#allocation120_spill] sm:$0xff] %v14911_v47 }
 0x559   :  { %7255 = vmax.xlane.f32.xlu1 %v7254_v36  ;;  %11607 = vmatmul.mubr.msk.bf16.vlgmr.msra.gmra.mrb[12].mxu0 %vm1402_vm3, %v14699_v57  ;;  %v6925_v57 = vsel %vm1402_vm3, %v14707_v45, 0 }
 0x55a   :  { %11617 = vmatpush3.bf16.xpose.msra.mxu0 %v6819_v50  ;;  %11618 = vmatprep.mubr.msk.bf16.mxu0 %vm12792_vm2, %v16245_v54 }
 0x55b   :  { %11628 = vmatprep.subr.bf16.mxu0 %v16245_v54 }
 0x55d   :  { %v14826_v34 = vpop.f32.mrb[16].mxu1 }
 0x55e   :  { %v11500_v13 = vpop.f32.mrb[17].mxu1  ;;  %v7257_v15 = vsel %vm2907_vm4, %v14826_v34, -inf }
 0x55f   :  { %7258 = vmax.xlane.f32.xlu0 %v7257_v15  ;;  %v14830_v24 = vpop.f32.mrb[18].mxu1 }
 0x560   :  { %v11501_v52 = vpop.f32.mrb[19].mxu1  ;;  %v7260_v35 = vsel %vm2907_vm4, %v14830_v24, -inf }
 0x561   :  { %7261 = vmax.xlane.f32.xlu1 %v7260_v35  ;;  %11619 = vmatmul.mubr.msk.bf16.vlgmr.msra.gmra.mrb[16].mxu0 %vm1402_vm3, %v14712_v61  ;;  %v7031_v61 = vsel %vm1402_vm3, %v14723_v9, 0  ;;  %v14919_v52 = vpop.permute.xlu0 %8258  ;;  %v14921_v35 = vpop.permute.xlu1 %8498 }
 0x562   :  { %11629 = vmatpush3.bf16.xpose.msra.mxu0 %v6925_v57  ;;  %11630 = vmatprep.mubr.msk.bf16.mxu0 %vm12792_vm2, %v16245_v54  ;;  %16363 = vst [vmem:[#allocation115_spill] sm:$0xff] %v14921_v35 }
 0x563   :  { %11640 = vmatprep.subr.bf16.mxu0 %v16245_v54 }
 0x565   :  { %v14841_v46 = vpop.f32.mrb[20].mxu1 }
 0x566   :  { %v11506_v28 = vpop.f32.mrb[21].mxu1  ;;  %v7263_v14 = vsel %vm2907_vm4, %v14841_v46, -inf }
 0x567   :  { %7264 = vmax.xlane.f32.xlu0 %v7263_v14  ;;  %v14845_v22 = vpop.f32.mrb[22].mxu1 }
 0x568   :  { %v11507_v45 = vpop.f32.mrb[23].mxu1  ;;  %v7266_v4 = vsel %vm2907_vm4, %v14845_v22, -inf }
 0x569   :  { %7267 = vmax.xlane.f32.xlu1 %v7266_v4  ;;  %11631 = vmatmul.mubr.msk.bf16.vlgmr.msra.gmra.mrb[20].mxu0 %vm1402_vm3, %v14727_v5  ;;  %v7137_v5 = vsel %vm1402_vm3, %v14736_v39, 0  ;;  %v14929_v4 = vpop.permute.xlu0 %8354 }
 0x56a   :  { %11641 = vmatpush3.bf16.xpose.msra.mxu0 %v7031_v61  ;;  %11642 = vmatprep.mubr.msk.bf16.mxu0 %vm12792_vm2, %v16245_v54  ;;  %16364 = vst [vmem:[#allocation66_spill] sm:$0xff] %v14929_v4 }
 0x56b   :  { %11652 = vmatprep.subr.bf16.mxu0 %v16245_v54 }
 0x56d   :  { %v14856_v25 = vpop.f32.mrb[24].mxu1 }
 0x56e   :  { %v11512_v62 = vpop.f32.mrb[25].mxu1  ;;  %v7269_v16 = vsel %vm2907_vm4, %v14856_v25, -inf }
 0x56f   :  { %7270 = vmax.xlane.f32.xlu0 %v7269_v16  ;;  %v14860_v51 = vpop.f32.mrb[26].mxu1  ;;  %v14933_v16 = vpop.permute.xlu1 %8594 }
 0x570   :  { %v11513_v9 = vpop.f32.mrb[27].mxu1  ;;  %v7272_v48 = vsel %vm2907_vm4, %v14860_v51, -inf  ;;  %16365 = vst [vmem:[#allocation116_spill] sm:$0xff] %v14933_v16 }
 0x571   :  { %7273 = vmax.xlane.f32.xlu1 %v7272_v48  ;;  %11643 = vmatmul.mubr.msk.bf16.vlgmr.msra.gmra.mrb[24].mxu0 %vm1402_vm3, %v14741_v23  ;;  %v14937_v48 = vpop.permute.xlu0 %8450 }
 0x572   :  { %11653 = vmatpush3.bf16.xpose.msra.mxu0 %v7137_v5  ;;  %11654 = vmatprep.mubr.msk.bf16.mxu0 %vm12792_vm2, %v16245_v54  ;;  %16366 = vst [vmem:[#allocation118_spill] sm:$0xff] %v14937_v48 }
 0x573   :  { %11664 = vmatprep.subr.bf16.mxu0 %v16245_v54 }
 0x575   :  { %v14871_v59 = vpop.f32.mrb[28].mxu1 }
 0x576   :  { %v11518_v58 = vpop.f32.mrb[29].mxu1  ;;  %v7275_v44 = vsel %vm2907_vm4, %v14871_v59, -inf }
 0x577   :  { %7276 = vmax.xlane.f32.xlu0 %v7275_v44  ;;  %v14875_v63 = vpop.f32.mrb[30].mxu1  ;;  %v14943_v44 = vpop.permute.xlu1 %8690 }
 0x578   :  { %v11519_v39 = vpop.f32.mrb[31].mxu1  ;;  %v7278_v23 = vsel %vm2907_vm4, %v14875_v63, -inf  ;;  %16367 = vst [vmem:[#allocation119_spill] sm:$0xff] %v14943_v44 }
 0x579   :  { %7279 = vmax.xlane.f32.xlu1 %v7278_v23  ;;  %11655 = vmatmul.mubr.msk.bf16.vlgmr.msra.gmra.mrb[28].mxu0 %vm1402_vm3, %v7129_v17 }
 0x57a   :  { %11665 = vmatpush3.bf16.msra.mxu0 %v7971_v18  ;;  %11666 = vmatprep.mubr.msk.bf16.mxu0 %vm12792_vm2, %v16245_v54  ;;  %v14947_v18 = vpop.permute.xlu0 %8546 }
 0x57b   :  { %11676 = vmatprep.subr.bf16.mxu0 %v16245_v54  ;;  %16368 = vst [vmem:[#allocation65_spill] sm:$0xff] %v14947_v18 }
 0x57d   :  { %v14885_v41 = vpop.f32.mrb[32].mxu1 }
 0x57e   :  { %v11524_v40 = vpop.f32.mrb[33].mxu1  ;;  %v7281_v31 = vsel %vm2907_vm4, %v14885_v41, -inf }
 0x57f   :  { %7282 = vmax.xlane.f32.xlu0 %v7281_v31  ;;  %v14889_v29 = vpop.f32.mrb[34].mxu1  ;;  %v14951_v31 = vpop.permute.xlu1 %8786 }
 0x580   :  { %v11525_v6 = vpop.f32.mrb[35].mxu1  ;;  %v7284_v37 = vsel %vm2907_vm4, %v14889_v29, -inf  ;;  %16369 = vst [vmem:[#allocation121_spill] sm:$0xff] %v14951_v31 }
 0x581   :  { %7285 = vmax.xlane.f32.xlu1 %v7284_v37 }
 0x585   :  { %v14895_v49 = vpop.f32.mrb[36].mxu1 }
 0x586   :  { %v11530_v26 = vpop.f32.mrb[37].mxu1  ;;  %v7287_v3 = vsel %vm2907_vm4, %v14895_v49, -inf }
 0x587   :  { %7288 = vmax.xlane.f32.xlu0 %v7287_v3  ;;  %v14901_v30 = vpop.f32.mrb[38].mxu1 }
 0x588   :  { %v11531_v2 = vpop.f32.mrb[39].mxu1  ;;  %v7290_v60 = vsel %vm2907_vm4, %v14901_v30, -inf }
 0x589   :  { %7291 = vmax.xlane.f32.xlu1 %v7290_v60  ;;  %v14959_v60 = vpop.permute.xlu0 %8642 }
 0x58a   :  { %16370 = vst [vmem:[#allocation122_spill] sm:$0xff] %v14959_v60 }
 0x58d   :  { %v14909_v43 = vpop.f32.mrb[40].mxu1 }
 0x58e   :  { %v11536_v20 = vpop.f32.mrb[41].mxu1  ;;  %v7293_v36 = vsel %vm2907_vm4, %v14909_v43, -inf }
 0x58f   :  { %7294 = vmax.xlane.f32.xlu0 %v7293_v36  ;;  %v14915_v50 = vpop.f32.mrb[42].mxu1  ;;  %v14961_v20 = vpop.permute.xlu1 %8882 }
 0x590   :  { %v11537_v13 = vpop.f32.mrb[43].mxu1  ;;  %v7296_v15 = vsel %vm2907_vm4, %v14915_v50, -inf  ;;  %16371 = vst [vmem:[#allocation70_spill] sm:$0xff] %v14961_v20 }
 0x591   :  { %7297 = vmax.xlane.f32.xlu1 %v7296_v15 }
 0x595   :  { %v14923_v57 = vpop.f32.mrb[44].mxu1 }
 0x596   :  { %v11542_v28 = vpop.f32.mrb[45].mxu1  ;;  %v7299_v14 = vsel %vm2907_vm4, %v14923_v57, -inf }
 0x597   :  { %7300 = vmax.xlane.f32.xlu0 %v7299_v14  ;;  %v14927_v45 = vpop.f32.mrb[46].mxu1  ;;  %v14969_v14 = vpop.permute.xlu0 %8738 }
 0x598   :  { %v11543_v61 = vpop.f32.mrb[47].mxu1  ;;  %v7302_v62 = vsel %vm2907_vm4, %v14927_v45, -inf  ;;  %16372 = vst [vmem:[#allocation123_spill] sm:$0xff] %v14969_v14 }
 0x599   :  { %7303 = vmax.xlane.f32.xlu1 %v7302_v62 }
 0x59d   :  { %v14935_v9 = vpop.f32.mrb[48].mxu1 }
 0x59e   :  { %v11548_v5 = vpop.f32.mrb[49].mxu1  ;;  %v7305_v17 = vsel %vm2907_vm4, %v14935_v9, -inf }
 0x59f   :  { %7306 = vmax.xlane.f32.xlu0 %v7305_v17  ;;  %v14941_v58 = vpop.f32.mrb[50].mxu1  ;;  %v14973_v5 = vpop.permute.xlu1 %8978 }
 0x5a0   :  { %v11549_v39 = vpop.f32.mrb[51].mxu1  ;;  %v7308_v23 = vsel %vm2907_vm4, %v14941_v58, -inf  ;;  %16373 = vst [vmem:[#allocation69_spill] sm:$0xff] %v14973_v5 }
 0x5a1   :  { %7309 = vmax.xlane.f32.xlu1 %v7308_v23  ;;  %v14977_v39 = vpop.permute.xlu0 %8834 }
 0x5a2   :  { %16374 = vst [vmem:[#allocation124_spill] sm:$0xff] %v14977_v39 }
 0x5a5   :  { %v14949_v40 = vpop.f32.mrb[52].mxu1 }
 0x5a6   :  { %v11554_v6 = vpop.f32.mrb[53].mxu1  ;;  %v7311_v37 = vsel %vm2907_vm4, %v14949_v40, -inf }
 0x5a7   :  { %7312 = vmax.xlane.f32.xlu0 %v7311_v37  ;;  %v14955_v26 = vpop.f32.mrb[54].mxu1 }
 0x5a8   :  { %v11555_v3 = vpop.f32.mrb[55].mxu1  ;;  %v7314_v2 = vsel %vm2907_vm4, %v14955_v26, -inf }
 0x5a9   :  { %7315 = vmax.xlane.f32.xlu1 %v7314_v2  ;;  %v14983_v3 = vpop.permute.xlu1 %9074 }
 0x5aa   :  { %16375 = vst [vmem:[#allocation74_spill] sm:$0xff] %v14983_v3 }
 0x5ad   :  { %v14963_v36 = vpop.f32.mrb[56].mxu1 }
 0x5ae   :  { %v11560_v13 = vpop.f32.mrb[57].mxu1  ;;  %v7317_v15 = vsel %vm2907_vm4, %v14963_v36, -inf }
 0x5af   :  { %7318 = vmax.xlane.f32.xlu0 %v7317_v15  ;;  %v14967_v28 = vpop.f32.mrb[58].mxu1  ;;  %v14987_v15 = vpop.permute.xlu0 %8930 }
 0x5b0   :  { %v11561_v61 = vpop.f32.mrb[59].mxu1  ;;  %v7320_v62 = vsel %vm2907_vm4, %v14967_v28, -inf  ;;  %16376 = vst [vmem:[#allocation73_spill] sm:$0xff] %v14987_v15 }
 0x5b1   :  { %7321 = vmax.xlane.f32.xlu1 %v7320_v62  ;;  %v14991_v62 = vpop.permute.xlu1 %9170 }
 0x5b2   :  { %16377 = vst [vmem:[#allocation125_spill] sm:$0xff] %v14991_v62 }
 0x5b3   :  { %v14999_v33 = vpop.permute.xlu0 %9026 }
 0x5b4   :  { %16378 = vst [vmem:[#allocation25_spill] sm:$0xff] %v14999_v33 }
 0x5b5   :  { %v14975_v17 = vpop.f32.mrb[60].mxu1 }
 0x5b6   :  { %v11566_v23 = vpop.f32.mrb[61].mxu1  ;;  %v7323_v6 = vsel %vm2907_vm4, %v14975_v17, -inf }
 0x5b7   :  { %7324 = vmax.xlane.f32.xlu0 %v7323_v6  ;;  %v14981_v37 = vpop.f32.mrb[62].mxu1 }
 0x5b8   :  { %v11567_v2 = vpop.f32.mrb[63].mxu1  ;;  %v7326_v13 = vsel %vm2907_vm4, %v14981_v37, -inf }
 0x5b9   :  { %7327 = vmax.xlane.f32.xlu1 %v7326_v13  ;;  %v15001_v13 = vpop.permute.xlu1 %9218 }
 0x5ba   :  { %16379 = vst [vmem:[#allocation78_spill] sm:$0xff] %v15001_v13 }
 0x5bd   :  { %v14989_v61 = vpop.f32.mrb[64].mxu1 }
 0x5be   :  { %v11578_v23 = vpop.f32.mrb[65].mxu1  ;;  %v7335_v39 = vsel %vm2907_vm4, %v14989_v61, -inf }
 0x5bf   :  { %7336 = vmax.xlane.f32.xlu0 %v7335_v39  ;;  %v14995_v6 = vpop.f32.mrb[66].mxu1  ;;  %v15009_v39 = vpop.permute.xlu0 %9122 }
 0x5c0   :  { %v11579_v0 = vpop.f32.mrb[67].mxu1  ;;  %v7338_v2 = vsel %vm2907_vm4, %v14995_v6, -inf  ;;  %16380 = vst [vmem:[#allocation50_spill] sm:$0xff] %v15009_v39 }
 0x5c1   :  { %7339 = vmax.xlane.f32.xlu1 %v7338_v2  ;;  %v15013_v2 = vpop.permute.xlu1 %9266 }
 0x5c2   :  { %16381 = vst [vmem:[#allocation126_spill] sm:$0xff] %v15013_v2 }
 0x5c5   :  { %v15003_v15 = vpop.f32.mrb[68].mxu1 }
 0x5c6   :  { %v11590_v3 = vpop.f32.mrb[69].mxu1  ;;  %v7347_v23 = vsel %vm2907_vm4, %v15003_v15, -inf }
 0x5c7   :  { %7348 = vmax.xlane.f32.xlu0 %v7347_v23  ;;  %v15007_v62 = vpop.f32.mrb[70].mxu1 }
 0x5c8   :  { %v11591_v0 = vpop.f32.mrb[71].mxu1  ;;  %v7350_v5 = vsel %vm2907_vm4, %v15007_v62, -inf }
 0x5c9   :  { %7351 = vmax.xlane.f32.xlu1 %v7350_v5 }
 0x5cc   :  { %v7235_v33 = vpop.xlane.xlu0 %7234 }
 0x5cd   :  { %v7425_v13 = vsub.f32 %v14766_v7, %v7235_v33  ;;  %v15016_v20 = vpop.f32.mrb[72].mxu1 }
 0x5ce   :  { %v7238_v3 = vpop.xlane.xlu1 %7237  ;;  %v11602_v31 = vpop.f32.mrb[73].mxu1  ;;  %v7359_v23 = vsel %vm2907_vm4, %v15016_v20, -inf }
 0x5cf   :  { %v7489_v1 = vmul.f32 1.442695, %v7425_v13  ;;  %v7426_v39 = vsub.f32 %v14770_v10, %v7238_v3  ;;  %7360 = vmax.xlane.f32.xlu0 %v7359_v23  ;;  %v15021_v0 = vpop.f32.mrb[74].mxu1 }
 0x5d0   :  { %v11603_v14 = vpop.f32.mrb[75].mxu1  ;;  %v7362_v5 = vsel %vm2907_vm4, %v15021_v0, -inf }
 0x5d1   :  { %12361 = vpow2.f32 %v7489_v1  ;;  %v7491_v2 = vmul.f32 1.442695, %v7426_v39  ;;  %7363 = vmax.xlane.f32.xlu1 %v7362_v5 }
 0x5d3   :  { %12363 = vpow2.f32 %v7491_v2 }
 0x5d4   :  { %v7241_v33 = vpop.xlane.xlu0 %7240 }
 0x5d5   :  { %v7427_v7 = vsub.f32 %v14781_v8, %v7241_v33  ;;  %v15026_v31 = vpop.f32.mrb[76].mxu1 }
 0x5d6   :  { %v11614_v55 = vpop.f32.mrb[77].mxu1  ;;  %v7371_v10 = vsel %vm2907_vm4, %v15026_v31, -inf }
 0x5d7   :  { %v7493_v13 = vmul.f32 1.442695, %v7427_v7  ;;  %7372 = vmax.xlane.f32.xlu0 %v7371_v10  ;;  %v15030_v3 = vpop.f32.mrb[78].mxu1 }
 0x5d8   :  { %v7244_v14 = vpop.xlane.xlu0 %7243  ;;  %v11615_v23 = vpop.f32.mrb[79].mxu1  ;;  %v7374_v1 = vsel %vm2907_vm4, %v15030_v3, -inf }
 0x5d9   :  { %12365 = vpow2.f32 %v7493_v13  ;;  %v7428_v39 = vsub.f32 %v14785_v21, %v7244_v14  ;;  %7375 = vmax.xlane.f32.xlu1 %v7374_v1 }
 0x5db   :  { %v15035_v8 = vpop.eup %12361  ;;  %v7495_v2 = vmul.f32 1.442695, %v7428_v39 }
 0x5dc   :  { %v7247_v55 = vpop.xlane.xlu0 %7246  ;;  %v7617_v5 = vsel %vm2907_vm4, %v15035_v8, 0.0 }
 0x5dd   :  { %v15039_v33 = vpop.eup %12363  ;;  %12367 = vpow2.f32 %v7495_v2  ;;  %v7429_v7 = vsub.f32 %v14796_v53, %v7247_v55  ;;  %7618 = vadd.xlane.f32.xlu0 %v7617_v5  ;;  %v15042_v10 = vpop.f32.mrb[80].mxu1 }
 0x5de   :  { %v7250_v23 = vpop.xlane.xlu1 %7249  ;;  %v11626_v13 = vpop.f32.mrb[81].mxu1  ;;  %v7620_v21 = vsel %vm2907_vm4, %v15039_v33, 0.0  ;;  %v7383_v2 = vsel %vm2907_vm4, %v15042_v10, -inf }
 0x5df   :  { %v7497_v14 = vmul.f32 1.442695, %v7429_v7  ;;  %v7430_v1 = vsub.f32 %v14800_v56, %v7250_v23  ;;  %7621 = vadd.xlane.f32.xlu1 %v7620_v21  ;;  %v15047_v39 = vpop.f32.mrb[82].mxu1 }
 0x5e0   :  { %v11627_v44 = vpop.f32.mrb[83].mxu1  ;;  %v7386_v55 = vsel %vm2907_vm4, %v15047_v39, -inf }
 0x5e1   :  { %12369 = vpow2.f32 %v7497_v14  ;;  %v7499_v53 = vmul.f32 1.442695, %v7430_v1  ;;  %7384 = vmax.xlane.f32.xlu0 %v7383_v2 }
 0x5e3   :  { %v15053_v5 = vpop.eup %12365  ;;  %12371 = vpow2.f32 %v7499_v53  ;;  %7387 = vmax.xlane.f32.xlu1 %v7386_v55 }
 0x5e4   :  { %v7253_v7 = vpop.xlane.xlu0 %7252  ;;  %v7623_v56 = vsel %vm2907_vm4, %v15053_v5, 0.0 }
 0x5e5   :  { %v7431_v23 = vsub.f32 %v14811_v42, %v7253_v7  ;;  %7624 = vadd.xlane.f32.xlu0 %v7623_v56  ;;  %v15058_v44 = vpop.f32.mrb[84].mxu1 }
 0x5e6   :  { %v7256_v13 = vpop.xlane.xlu1 %7255  ;;  %v11638_v21 = vpop.f32.mrb[85].mxu1  ;;  %v7395_v16 = vsel %vm2907_vm4, %v15058_v44, -inf }
 0x5e7   :  { %v15060_v14 = vpop.eup %12367  ;;  %v7501_v1 = vmul.f32 1.442695, %v7431_v23  ;;  %v7432_v2 = vsub.f32 %v14815_v19, %v7256_v13  ;;  %v15063_v60 = vpop.f32.mrb[86].mxu1 }
 0x5e8   :  { %v11639_v53 = vpop.f32.mrb[87].mxu1  ;;  %v7626_v55 = vsel %vm2907_vm4, %v15060_v14, 0.0  ;;  %v7398_v23 = vsel %vm2907_vm4, %v15063_v60, -inf }
 0x5e9   :  { %12373 = vpow2.f32 %v7501_v1  ;;  %v7503_v42 = vmul.f32 1.442695, %v7432_v2  ;;  %7627 = vadd.xlane.f32.xlu1 %v7626_v55  ;;  %7396 = vmax.xlane.f32.xlu0 %v7395_v16 }
 0x5eb   :  { %v15069_v7 = vpop.eup %12369  ;;  %12375 = vpow2.f32 %v7503_v42 }
 0x5ec   :  { %v7259_v56 = vpop.xlane.xlu0 %7258  ;;  %v7629_v19 = vsel %vm2907_vm4, %v15069_v7, 0.0 }
 0x5ed   :  { %v15075_v13 = vpop.eup %12371  ;;  %v7433_v21 = vsub.f32 %v14826_v34, %v7259_v56  ;;  %7630 = vadd.xlane.f32.xlu0 %v7629_v19  ;;  %7399 = vmax.xlane.f32.xlu1 %v7398_v23  ;;  %v15078_v1 = vpop.f32.mrb[88].mxu1 }
 0x5ee   :  { %v7262_v2 = vpop.xlane.xlu1 %7261  ;;  %v11650_v16 = vpop.f32.mrb[89].mxu1  ;;  %v7632_v35 = vsel %vm2907_vm4, %v15075_v13, 0.0  ;;  %v7407_v48 = vsel %vm2907_vm4, %v15078_v1, -inf }
 0x5ef   :  { %v7505_v53 = vmul.f32 1.442695, %v7433_v21  ;;  %v7434_v55 = vsub.f32 %v14830_v24, %v7262_v2  ;;  %v15081_v42 = vpop.f32.mrb[90].mxu1 }
 0x5f0   :  { %v11651_v18 = vpop.f32.mrb[91].mxu1 }
 0x5f1   :  { %12377 = vpow2.f32 %v7505_v53  ;;  %v7507_v34 = vmul.f32 1.442695, %v7434_v55  ;;  %7633 = vadd.xlane.f32.xlu1 %v7632_v35  ;;  %7408 = vmax.xlane.f32.xlu0 %v7407_v48  ;;  %v7410_v18 = vsel %vm2907_vm4, %v15081_v42, -inf }
 0x5f3   :  { %v15087_v56 = vpop.eup %12373  ;;  %12379 = vpow2.f32 %v7507_v34 }
 0x5f4   :  { %v7265_v19 = vpop.xlane.xlu0 %7264  ;;  %v7635_v24 = vsel %vm2907_vm4, %v15087_v56, 0.0 }
 0x5f5   :  { %v15093_v23 = vpop.eup %12375  ;;  %v7435_v21 = vsub.f32 %v14841_v46, %v7265_v19  ;;  %7636 = vadd.xlane.f32.xlu0 %v7635_v24  ;;  %7411 = vmax.xlane.f32.xlu1 %v7410_v18  ;;  %v15096_v2 = vpop.f32.mrb[92].mxu1 }
 0x5f6   :  { %v7268_v35 = vpop.xlane.xlu1 %7267  ;;  %v11662_v48 = vpop.f32.mrb[93].mxu1  ;;  %v7638_v47 = vsel %vm2907_vm4, %v15093_v23, 0.0  ;;  %v7419_v4 = vsel %vm2907_vm4, %v15096_v2, -inf }
 0x5f7   :  { %v7509_v16 = vmul.f32 1.442695, %v7435_v21  ;;  %v7436_v53 = vsub.f32 %v14845_v22, %v7268_v35  ;;  %v15099_v55 = vpop.f32.mrb[94].mxu1 }
 0x5f8   :  { %v11663_v34 = vpop.f32.mrb[95].mxu1  ;;  %v7422_v18 = vsel %vm2907_vm4, %v15099_v55, -inf }
 0x5f9   :  { %12381 = vpow2.f32 %v7509_v16  ;;  %v7511_v46 = vmul.f32 1.442695, %v7436_v53  ;;  %7639 = vadd.xlane.f32.xlu1 %v7638_v47  ;;  %7420 = vmax.xlane.f32.xlu0 %v7419_v4 }
 0x5fb   :  { %v15105_v19 = vpop.eup %12377  ;;  %12383 = vpow2.f32 %v7511_v46 }
 0x5fc   :  { %v7271_v24 = vpop.xlane.xlu0 %7270  ;;  %v7641_v22 = vsel %vm2907_vm4, %v15105_v19, 0.0 }
 0x5fd   :  { %v15111_v21 = vpop.eup %12379  ;;  %v7437_v35 = vsub.f32 %v14856_v25, %v7271_v24  ;;  %7642 = vadd.xlane.f32.xlu0 %v7641_v22  ;;  %7423 = vmax.xlane.f32.xlu1 %v7422_v18 }
 0x5fe   :  { %v7274_v48 = vpop.xlane.xlu1 %7273  ;;  %v7644_v4 = vsel %vm2907_vm4, %v15111_v21, 0.0 }
 0x5ff   :  { %v7513_v16 = vmul.f32 1.442695, %v7437_v35  ;;  %v7438_v47 = vsub.f32 %v14860_v51, %v7274_v48 }
 0x601   :  { %12385 = vpow2.f32 %v7513_v16  ;;  %v7515_v53 = vmul.f32 1.442695, %v7438_v47  ;;  %7645 = vadd.xlane.f32.xlu1 %v7644_v4 }
 0x603   :  { %v15117_v34 = vpop.eup %12381  ;;  %12387 = vpow2.f32 %v7515_v53 }
 0x604   :  { %v7277_v46 = vpop.xlane.xlu0 %7276  ;;  %v7647_v27 = vsel %vm2907_vm4, %v15117_v34, 0.0 }
 0x605   :  { %v15121_v25 = vpop.eup %12383  ;;  %v7439_v24 = vsub.f32 %v14871_v59, %v7277_v46  ;;  %7648 = vadd.xlane.f32.xlu0 %v7647_v27 }
 0x606   :  { %v7280_v22 = vpop.xlane.xlu1 %7279  ;;  %v7650_v51 = vsel %vm2907_vm4, %v15121_v25, 0.0 }
 0x607   :  { %v7517_v18 = vmul.f32 1.442695, %v7439_v24  ;;  %v7440_v35 = vsub.f32 %v14875_v63, %v7280_v22  ;;  %7651 = vadd.xlane.f32.xlu1 %v7650_v51 }
 0x609   :  { %12389 = vpow2.f32 %v7517_v18  ;;  %v7519_v48 = vmul.f32 1.442695, %v7440_v35 }
 0x60b   :  { %v15127_v16 = vpop.eup %12385  ;;  %12391 = vpow2.f32 %v7519_v48 }
 0x60c   :  { %v7283_v47 = vpop.xlane.xlu0 %7282  ;;  %v7653_v4 = vsel %vm2907_vm4, %v15127_v16, 0.0 }
 0x60d   :  { %v15131_v53 = vpop.eup %12387  ;;  %v7441_v59 = vsub.f32 %v14885_v41, %v7283_v47  ;;  %7654 = vadd.xlane.f32.xlu0 %v7653_v4 }
 0x60e   :  { %v7286_v27 = vpop.xlane.xlu1 %7285  ;;  %v7656_v46 = vsel %vm2907_vm4, %v15131_v53, 0.0 }
 0x60f   :  { %v7521_v63 = vmul.f32 1.442695, %v7441_v59  ;;  %v7442_v24 = vsub.f32 %v14889_v29, %v7286_v27  ;;  %7657 = vadd.xlane.f32.xlu1 %v7656_v46 }
 0x611   :  { %12393 = vpow2.f32 %v7521_v63  ;;  %v7523_v22 = vmul.f32 1.442695, %v7442_v24 }
 0x613   :  { %v15137_v51 = vpop.eup %12389  ;;  %12395 = vpow2.f32 %v7523_v22 }
 0x614   :  { %16382 = vst [vmem:[#allocation127_spill] sm:$0xff] %v15137_v51  ;;  %v7289_v18 = vpop.xlane.xlu0 %7288  ;;  %v15139_v35 = vpop.f32.mrb[0].mxu0  ;;  %v7659_v41 = vsel %vm2907_vm4, %v15137_v51, 0.0 }
 0x615   :  { %v15143_v48 = vpop.eup %12391  ;;  %v7443_v47 = vsub.f32 %v14895_v49, %v7289_v18  ;;  %7660 = vadd.xlane.f32.xlu0 %v7659_v41  ;;  %v11572_v4 = vpop.f32.mrb[1].mxu0  ;;  %v7329_v22 = vsel %vm2907_vm4, %v15139_v35, -inf }
 0x616   :  { %16383 = vst [vmem:[#allocation48_spill] sm:$0xff] %v15143_v48  ;;  %v7292_v59 = vpop.xlane.xlu1 %7291  ;;  %v15146_v29 = vpop.f32.mrb[2].mxu0  ;;  %v7662_v27 = vsel %vm2907_vm4, %v15143_v48, 0.0 }
 0x617   :  { %v7525_v46 = vmul.f32 1.442695, %v7443_v47  ;;  %v7444_v63 = vsub.f32 %v14901_v30, %v7292_v59  ;;  %7663 = vadd.xlane.f32.xlu1 %v7662_v27  ;;  %v11573_v24 = vpop.f32.mrb[3].mxu0  ;;  %v7332_v49 = vsel %vm2907_vm4, %v15146_v29, -inf }
 0x619   :  { %12397 = vpow2.f32 %v7525_v46  ;;  %v7527_v51 = vmul.f32 1.442695, %v7444_v63  ;;  %7330 = vmax.xlane.f32.xlu0 %v7329_v22 }
 0x61b   :  { %v15155_v18 = vpop.eup %12393  ;;  %12399 = vpow2.f32 %v7527_v51  ;;  %7333 = vmax.xlane.f32.xlu1 %v7332_v49 }
 0x61c   :  { %16384 = vst [vmem:[#allocation54_spill] sm:$0xff] %v15155_v18  ;;  %v7295_v41 = vpop.xlane.xlu0 %7294  ;;  %v15157_v4 = vpop.f32.mrb[4].mxu0  ;;  %v7665_v30 = vsel %vm2907_vm4, %v15155_v18, 0.0 }
 0x61d   :  { %v15161_v47 = vpop.eup %12395  ;;  %v7445_v59 = vsub.f32 %v14909_v43, %v7295_v41  ;;  %7666 = vadd.xlane.f32.xlu0 %v7665_v30  ;;  %v11584_v27 = vpop.f32.mrb[5].mxu0  ;;  %v7341_v18 = vsel %vm2907_vm4, %v15157_v4, -inf }
 0x61e   :  { %16385 = vst [vmem:[#allocation23_spill] sm:$0xff] %v15161_v47  ;;  %v7298_v46 = vpop.xlane.xlu1 %7297  ;;  %v15164_v63 = vpop.f32.mrb[6].mxu0  ;;  %v7668_v24 = vsel %vm2907_vm4, %v15161_v47, 0.0 }
 0x61f   :  { %v7529_v51 = vmul.f32 1.442695, %v7445_v59  ;;  %v7446_v22 = vsub.f32 %v14915_v50, %v7298_v46  ;;  %7669 = vadd.xlane.f32.xlu1 %v7668_v24  ;;  %v11585_v49 = vpop.f32.mrb[7].mxu0  ;;  %v7344_v43 = vsel %vm2907_vm4, %v15164_v63, -inf }
 0x621   :  { %12401 = vpow2.f32 %v7529_v51  ;;  %v7531_v48 = vmul.f32 1.442695, %v7446_v22  ;;  %7342 = vmax.xlane.f32.xlu0 %v7341_v18 }
 0x623   :  { %v15173_v41 = vpop.eup %12397  ;;  %7345 = vmax.xlane.f32.xlu1 %v7344_v43  ;;  %12403 = vpow2.f32 %v7531_v48 }
 0x624   :  { %16386 = vst [vmem:[#allocation77_spill] sm:$0xff] %v15173_v41  ;;  %v7301_v30 = vpop.xlane.xlu0 %7300  ;;  %v15175_v27 = vpop.f32.mrb[8].mxu0  ;;  %v7671_v50 = vsel %vm2907_vm4, %v15173_v41, 0.0 }
 0x625   :  { %v15179_v59 = vpop.eup %12399  ;;  %v7447_v46 = vsub.f32 %v14923_v57, %v7301_v30  ;;  %7672 = vadd.xlane.f32.xlu0 %v7671_v50  ;;  %v11596_v24 = vpop.f32.mrb[9].mxu0  ;;  %v7353_v41 = vsel %vm2907_vm4, %v15175_v27, -inf }
 0x626   :  { %16387 = vst [vmem:[#allocation52_spill] sm:$0xff] %v15179_v59  ;;  %v7304_v18 = vpop.xlane.xlu1 %7303  ;;  %v15182_v51 = vpop.f32.mrb[10].mxu0  ;;  %v7674_v22 = vsel %vm2907_vm4, %v15179_v59, 0.0 }
 0x627   :  { %v7533_v49 = vmul.f32 1.442695, %v7447_v46  ;;  %v7448_v48 = vsub.f32 %v14927_v45, %v7304_v18  ;;  %7675 = vadd.xlane.f32.xlu1 %v7674_v22  ;;  %v11597_v43 = vpop.f32.mrb[11].mxu0  ;;  %v7356_v57 = vsel %vm2907_vm4, %v15182_v51, -inf }
 0x629   :  { %12405 = vpow2.f32 %v7533_v49  ;;  %v7535_v47 = vmul.f32 1.442695, %v7448_v48  ;;  %7354 = vmax.xlane.f32.xlu0 %v7353_v41 }
 0x62b   :  { %v15191_v30 = vpop.eup %12401  ;;  %12407 = vpow2.f32 %v7535_v47  ;;  %7357 = vmax.xlane.f32.xlu1 %v7356_v57 }
 0x62c   :  { %16388 = vst [vmem:[#allocation128_spill] sm:$0xff] %v15191_v30  ;;  %v7307_v50 = vpop.xlane.xlu0 %7306  ;;  %v15193_v24 = vpop.f32.mrb[12].mxu0  ;;  %v7677_v48 = vsel %vm2907_vm4, %v15191_v30, 0.0 }
 0x62d   :  { %v7449_v45 = vsub.f32 %v14935_v9, %v7307_v50  ;;  %v11608_v46 = vpop.f32.mrb[13].mxu0  ;;  %v7365_v18 = vsel %vm2907_vm4, %v15193_v24, -inf  ;;  %v15198_v22 = vpop.eup %12403 }
 0x62e   :  { %16389 = vst [vmem:[#allocation129_spill] sm:$0xff] %v15198_v22  ;;  %v7310_v49 = vpop.xlane.xlu1 %7309  ;;  %v15200_v41 = vpop.f32.mrb[14].mxu0  ;;  %7366 = vmax.xlane.f32.xlu0 %v7365_v18  ;;  %v7680_v50 = vsel %vm2907_vm4, %v15198_v22, 0.0 }
 0x62f   :  { %v7537_v47 = vmul.f32 1.442695, %v7449_v45  ;;  %v7450_v43 = vsub.f32 %v14941_v58, %v7310_v49  ;;  %7678 = vadd.xlane.f32.xlu1 %v7677_v48  ;;  %v11609_v57 = vpop.f32.mrb[15].mxu0  ;;  %v7368_v46 = vsel %vm2907_vm4, %v15200_v41, -inf }
 0x631   :  { %12409 = vpow2.f32 %v7537_v47  ;;  %v7539_v9 = vmul.f32 1.442695, %v7450_v43 }
 0x632   :  { %7681 = vadd.xlane.f32.xlu0 %v7680_v50 }
 0x633   :  { %v15209_v59 = vpop.eup %12405  ;;  %7369 = vmax.xlane.f32.xlu1 %v7368_v46  ;;  %12411 = vpow2.f32 %v7539_v9 }
 0x634   :  { %16390 = vst [vmem:[#allocation29_spill] sm:$0xff] %v15209_v59  ;;  %v7313_v18 = vpop.xlane.xlu0 %7312  ;;  %v15211_v30 = vpop.f32.mrb[16].mxu0  ;;  %v7683_v48 = vsel %vm2907_vm4, %v15209_v59, 0.0 }
 0x635   :  { %v15213_v45 = vpop.eup %12407  ;;  %v7451_v58 = vsub.f32 %v14949_v40, %v7313_v18  ;;  %v11620_v49 = vpop.f32.mrb[17].mxu0  ;;  %v7377_v40 = vsel %vm2907_vm4, %v15211_v30, -inf }
 0x636   :  { %16391 = vst [vmem:[#allocation56_spill] sm:$0xff] %v15213_v45  ;;  %v7316_v47 = vpop.xlane.xlu1 %7315  ;;  %v15218_v43 = vpop.f32.mrb[18].mxu0  ;;  %7684 = vadd.xlane.f32.xlu0 %v7683_v48  ;;  %v7686_v57 = vsel %vm2907_vm4, %v15213_v45, 0.0 }
 0x637   :  { %v7541_v50 = vmul.f32 1.442695, %v7451_v58  ;;  %v7452_v9 = vsub.f32 %v14955_v26, %v7316_v47  ;;  %7687 = vadd.xlane.f32.xlu1 %v7686_v57  ;;  %v11621_v46 = vpop.f32.mrb[19].mxu0  ;;  %v7380_v18 = vsel %vm2907_vm4, %v15218_v43, -inf }
 0x639   :  { %12413 = vpow2.f32 %v7541_v50  ;;  %v7543_v22 = vmul.f32 1.442695, %v7452_v9 }
 0x63a   :  { %7378 = vmax.xlane.f32.xlu0 %v7377_v40 }
 0x63b   :  { %v15227_v49 = vpop.eup %12409  ;;  %12415 = vpow2.f32 %v7543_v22  ;;  %7381 = vmax.xlane.f32.xlu1 %v7380_v18 }
 0x63c   :  { %16392 = vst [vmem:[#allocation27_spill] sm:$0xff] %v15227_v49  ;;  %v7319_v48 = vpop.xlane.xlu0 %7318  ;;  %v15229_v45 = vpop.f32.mrb[20].mxu0  ;;  %v7689_v46 = vsel %vm2907_vm4, %v15227_v49, 0.0 }
 0x63d   :  { %v7453_v26 = vsub.f32 %v14963_v36, %v7319_v48  ;;  %v11632_v58 = vpop.f32.mrb[21].mxu0  ;;  %v7389_v47 = vsel %vm2907_vm4, %v15229_v45, -inf  ;;  %v15234_v57 = vpop.eup %12411 }
 0x63e   :  { %16393 = vst [vmem:[#allocation82_spill] sm:$0xff] %v15234_v57  ;;  %v7322_v50 = vpop.xlane.xlu1 %7321  ;;  %v15236_v9 = vpop.f32.mrb[22].mxu0  ;;  %7390 = vmax.xlane.f32.xlu0 %v7389_v47  ;;  %v7692_v48 = vsel %vm2907_vm4, %v15234_v57, 0.0 }
 0x63f   :  { %v7545_v22 = vmul.f32 1.442695, %v7453_v26  ;;  %v7454_v40 = vsub.f32 %v14967_v28, %v7322_v50  ;;  %7690 = vadd.xlane.f32.xlu1 %v7689_v46  ;;  %v11633_v18 = vpop.f32.mrb[23].mxu0  ;;  %v7392_v58 = vsel %vm2907_vm4, %v15236_v9, -inf }
 0x641   :  { %12417 = vpow2.f32 %v7545_v22  ;;  %v7547_v36 = vmul.f32 1.442695, %v7454_v40 }
 0x642   :  { %7693 = vadd.xlane.f32.xlu0 %v7692_v48 }
 0x643   :  { %v15245_v59 = vpop.eup %12413  ;;  %12419 = vpow2.f32 %v7547_v36  ;;  %7393 = vmax.xlane.f32.xlu1 %v7392_v58 }
 0x644   :  { %v7325_v47 = vpop.xlane.xlu0 %7324  ;;  %v15247_v49 = vpop.f32.mrb[24].mxu0  ;;  %v7695_v46 = vsel %vm2907_vm4, %v15245_v59, 0.0 }
 0x645   :  { %16394 = vst [vmem:[#allocation55_spill] sm:$0xff] %v15247_v49  ;;  %v15249_v26 = vpop.eup %12415  ;;  %v7455_v28 = vsub.f32 %v14975_v17, %v7325_v47  ;;  %v11644_v50 = vpop.f32.mrb[25].mxu0  ;;  %v7401_v17 = vsel %vm2907_vm4, %v15247_v49, -inf }
 0x646   :  { %16395 = vst [vmem:[#allocation130_spill] sm:$0xff] %v15249_v26  ;;  %v7328_v22 = vpop.xlane.xlu1 %7327  ;;  %v15254_v40 = vpop.f32.mrb[26].mxu0  ;;  %7696 = vadd.xlane.f32.xlu0 %v7695_v46  ;;  %v7698_v18 = vsel %vm2907_vm4, %v15249_v26, 0.0 }
 0x647   :  { %16396 = vst [vmem:[#allocation131_spill] sm:$0xff] %v15254_v40  ;;  %v7549_v36 = vmul.f32 1.442695, %v7455_v28  ;;  %v7456_v48 = vsub.f32 %v14981_v37, %v7328_v22  ;;  %7699 = vadd.xlane.f32.xlu1 %v7698_v18  ;;  %v11645_v58 = vpop.f32.mrb[27].mxu0  ;;  %v7404_v47 = vsel %vm2907_vm4, %v15254_v40, -inf }
 0x649   :  { %12421 = vpow2.f32 %v7549_v36  ;;  %v7551_v57 = vmul.f32 1.442695, %v7456_v48 }
 0x64a   :  { %7402 = vmax.xlane.f32.xlu0 %v7401_v17 }
 0x64b   :  { %v15263_v50 = vpop.eup %12417  ;;  %12423 = vpow2.f32 %v7551_v57  ;;  %7405 = vmax.xlane.f32.xlu1 %v7404_v47 }
 0x64c   :  { %v7337_v46 = vpop.xlane.xlu0 %7336  ;;  %v15265_v26 = vpop.f32.mrb[28].mxu0  ;;  %v7701_v58 = vsel %vm2907_vm4, %v15263_v50, 0.0 }
 0x64d   :  { %v15267_v28 = vpop.eup %12419  ;;  %v7459_v37 = vsub.f32 %v14989_v61, %v7337_v46  ;;  %v11656_v22 = vpop.f32.mrb[29].mxu0  ;;  %v7413_v46 = vsel %vm2907_vm4, %v15265_v26, -inf }
 0x64e   :  { %v7340_v18 = vpop.xlane.xlu1 %7339  ;;  %v15270_v36 = vpop.f32.mrb[30].mxu0  ;;  %v7704_v48 = vsel %vm2907_vm4, %v15267_v28, 0.0 }
 0x64f   :  { %16397 = vst [vmem:[#allocation33_spill] sm:$0xff] %v15270_v36  ;;  %v7557_v17 = vmul.f32 1.442695, %v7459_v37  ;;  %v7460_v57 = vsub.f32 %v14995_v6, %v7340_v18  ;;  %7705 = vadd.xlane.f32.xlu0 %v7704_v48  ;;  %7702 = vadd.xlane.f32.xlu1 %v7701_v58  ;;  %v11657_v47 = vpop.f32.mrb[31].mxu0  ;;  %v7416_v61 = vsel %vm2907_vm4, %v15270_v36, -inf }
 0x651   :  { %12425 = vpow2.f32 %v7557_v17  ;;  %v7559_v40 = vmul.f32 1.442695, %v7460_v57 }
 0x653   :  { %v15281_v22 = vpop.eup %12421  ;;  %12427 = vpow2.f32 %v7559_v40  ;;  %7417 = vmax.xlane.f32.xlu0 %v7416_v61  ;;  %7414 = vmax.xlane.f32.xlu1 %v7413_v46 }
 0x654   :  { %v7349_v49 = vpop.xlane.xlu0 %7348  ;;  %v7707_v48 = vsel %vm2907_vm4, %v15281_v22, 0.0 }
 0x655   :  { %v15283_v37 = vpop.eup %12423  ;;  %v7463_v6 = vsub.f32 %v15003_v15, %v7349_v49 }
 0x656   :  { %v7352_v18 = vpop.xlane.xlu1 %7351  ;;  %v7710_v58 = vsel %vm2907_vm4, %v15283_v37, 0.0 }
 0x657   :  { %v7565_v17 = vmul.f32 1.442695, %v7463_v6  ;;  %v7464_v57 = vsub.f32 %v15007_v62, %v7352_v18  ;;  %7708 = vadd.xlane.f32.xlu0 %v7707_v48  ;;  %7711 = vadd.xlane.f32.xlu1 %v7710_v58 }
 0x659   :  { %12429 = vpow2.f32 %v7565_v17  ;;  %v7567_v40 = vmul.f32 1.442695, %v7464_v57 }
 0x65b   :  { %v15291_v47 = vpop.eup %12425  ;;  %12431 = vpow2.f32 %v7567_v40 }
 0x65c   :  { %v7361_v61 = vpop.xlane.xlu0 %7360  ;;  %v7719_v15 = vsel %vm2907_vm4, %v15291_v47, 0.0 }
 0x65d   :  { %v15295_v49 = vpop.eup %12427  ;;  %v7467_v46 = vsub.f32 %v15016_v20, %v7361_v61  ;;  %7720 = vadd.xlane.f32.xlu0 %v7719_v15 }
 0x65e   :  { %v7364_v36 = vpop.xlane.xlu1 %7363  ;;  %v7722_v62 = vsel %vm2907_vm4, %v15295_v49, 0.0 }
 0x65f   :  { %v7573_v6 = vmul.f32 1.442695, %v7467_v46  ;;  %v7468_v18 = vsub.f32 %v15021_v0, %v7364_v36  ;;  %7723 = vadd.xlane.f32.xlu1 %v7722_v62 }
 0x661   :  { %12433 = vpow2.f32 %v7573_v6  ;;  %v7575_v48 = vmul.f32 1.442695, %v7468_v18 }
 0x663   :  { %v15301_v58 = vpop.eup %12429  ;;  %12435 = vpow2.f32 %v7575_v48 }
 0x664   :  { %v7373_v17 = vpop.xlane.xlu0 %7372  ;;  %v7731_v57 = vsel %vm2907_vm4, %v15301_v58, 0.0 }
 0x665   :  { %v15305_v40 = vpop.eup %12431  ;;  %v7471_v20 = vsub.f32 %v15026_v31, %v7373_v17  ;;  %7732 = vadd.xlane.f32.xlu0 %v7731_v57 }
 0x666   :  { %v7376_v61 = vpop.xlane.xlu1 %7375  ;;  %v7734_v15 = vsel %vm2907_vm4, %v15305_v40, 0.0 }
 0x667   :  { %v7581_v0 = vmul.f32 1.442695, %v7471_v20  ;;  %v7472_v36 = vsub.f32 %v15030_v3, %v7376_v61  ;;  %7735 = vadd.xlane.f32.xlu1 %v7734_v15 }
 0x669   :  { %12437 = vpow2.f32 %v7581_v0  ;;  %v7583_v46 = vmul.f32 1.442695, %v7472_v36 }
 0x66a   :  { %v7619_v62 = vpop.xlane.xlu0 %7618 }
 0x66b   :  { %v15311_v6 = vpop.eup %12433  ;;  %12439 = vpow2.f32 %v7583_v46 }
 0x66c   :  { %16398 = vst [vmem:[#allocation58_spill] sm:$0xff] %v15311_v6  ;;  %12441 = vrcp.f32 %v7619_v62  ;;  %v7622_v18 = vpop.xlane.xlu1 %7621  ;;  %v7743_v31 = vsel %vm2907_vm4, %v15311_v6, 0.0 }
 0x66d   :  { %v15315_v48 = vpop.eup %12435  ;;  %12443 = vrcp.f32 %v7622_v18  ;;  %7744 = vadd.xlane.f32.xlu0 %v7743_v31 }
 0x66e   :  { %v7385_v17 = vpop.xlane.xlu0 %7384  ;;  %v7746_v3 = vsel %vm2907_vm4, %v15315_v48, 0.0 }
 0x66f   :  { %v7475_v57 = vsub.f32 %v15042_v10, %v7385_v17  ;;  %7747 = vadd.xlane.f32.xlu1 %v7746_v3 }
 0x670   :  { %v7388_v20 = vpop.xlane.xlu1 %7387 }
 0x671   :  { %v7589_v61 = vmul.f32 1.442695, %v7475_v57  ;;  %v7476_v15 = vsub.f32 %v15047_v39, %v7388_v20 }
 0x672   :  { %v7625_v0 = vpop.xlane.xlu0 %7624 }
 0x673   :  { %v15321_v36 = vpop.eup %12437  ;;  %12445 = vpow2.f32 %v7589_v61  ;;  %v7591_v46 = vmul.f32 1.442695, %v7476_v15 }
 0x674   :  { %16399 = vst [vmem:[#allocation31_spill] sm:$0xff] %v15321_v36  ;;  %12447 = vrcp.f32 %v7625_v0  ;;  %v7755_v62 = vsel %vm2907_vm4, %v15321_v36, 0.0 }
 0x675   :  { %v15325_v18 = vpop.eup %12439  ;;  %12449 = vpow2.f32 %v7591_v46  ;;  %7756 = vadd.xlane.f32.xlu0 %v7755_v62 }
 0x676   :  { %16400 = vst [vmem:[#allocation81_spill] sm:$0xff] %v15325_v18  ;;  %v12442_v31 = vpop.eup %12441  ;;  %v7628_v10 = vpop.xlane.xlu1 %7627  ;;  %v7758_v3 = vsel %vm2907_vm4, %v15325_v18, 0.0 }
 0x677   :  { %v7397_v17 = vpop.xlane.xlu0 %7396  ;;  %v12444_v39 = vpop.eup %12443  ;;  %12451 = vrcp.f32 %v7628_v10  ;;  %7759 = vadd.xlane.f32.xlu1 %v7758_v3  ;;  %v7873_v20 = vmul.f32 %v12442_v31, %v15035_v8 }
 0x678   :  { %v7479_v57 = vsub.f32 %v15058_v44, %v7397_v17  ;;  %v7874_v61 = vmul.f32 %v12444_v39, %v15039_v33 }
 0x67a   :  { %v7597_v15 = vmul.f32 1.442695, %v7479_v57  ;;  %v7937_v0 = vpack.c.bf16 %v7874_v61, %v7873_v20  ;;  %v7400_v46 = vpop.xlane.xlu1 %7399 }
 0x67b   :  { %v7631_v36 = vpop.xlane.xlu0 %7630  ;;  %v7480_v62 = vsub.f32 %v15063_v60, %v7400_v46 }
 0x67c   :  { %12453 = vpow2.f32 %v7597_v15  ;;  %11667 = vmatmul.mubr.msk.bf16.vlgmr.msra.gmra.mrb[32].mxu0 %vm2907_vm4, %v7937_v0 }
 0x67d   :  { %v15334_v6 = vpop.eup %12445  ;;  %v7599_v18 = vmul.f32 1.442695, %v7480_v62  ;;  %11677 = vmatpush3.bf16.msra.mxu0 %v14897_v11  ;;  %11678 = vmatprep.mubr.msk.bf16.mxu0 %vm12792_vm2, %v16245_v54  ;;  %12455 = vrcp.f32 %v7631_v36 }
 0x67e   :  { %v12448_v8 = vpop.eup %12447  ;;  %v7634_v33 = vpop.xlane.xlu1 %7633  ;;  %v7767_v31 = vsel %vm2907_vm4, %v15334_v6, 0.0  ;;  %11688 = vmatprep.subr.bf16.mxu0 %v16245_v54 }
 0x67f   :  { %v7409_v44 = vpop.xlane.xlu0 %7408  ;;  %v15342_v60 = vpop.eup %12449  ;;  %12457 = vpow2.f32 %v7599_v18  ;;  %7768 = vadd.xlane.f32.xlu0 %v7767_v31  ;;  %v7875_v36 = vmul.f32 %v12448_v8, %v15053_v5 }
 0x680   :  { %v7483_v10 = vsub.f32 %v15078_v1, %v7409_v44  ;;  %12459 = vrcp.f32 %v7634_v33  ;;  %v7770_v11 = vsel %vm2907_vm4, %v15342_v60, 0.0 }
 0x681   :  { %v12452_v17 = vpop.eup %12451  ;;  %7771 = vadd.xlane.f32.xlu1 %v7770_v11 }
 0x682   :  { %v7605_v3 = vmul.f32 1.442695, %v7483_v10  ;;  %v7876_v39 = vmul.f32 %v12452_v17, %v15060_v14  ;;  %v7412_v20 = vpop.xlane.xlu1 %7411 }
 0x683   :  { %v7637_v57 = vpop.xlane.xlu0 %7636  ;;  %v7484_v61 = vsub.f32 %v15081_v42, %v7412_v20 }
 0x684   :  { %12461 = vpow2.f32 %v7605_v3  ;;  %v7938_v18 = vpack.c.bf16 %v7876_v39, %v7875_v36 }
 0x685   :  { %v7607_v1 = vmul.f32 1.442695, %v7484_v61  ;;  %12463 = vrcp.f32 %v7637_v57 }
 0x686   :  { %v15350_v15 = vpop.eup %12453  ;;  %11673 = vmatmul.mubr.msk.bf16.vlgmr.msra.gmra.mrb[96].mxu1 %vm2907_vm4, %v7938_v18  ;;  %v7640_v0 = vpop.xlane.xlu1 %7639 }
 0x687   :  { %v7421_v46 = vpop.xlane.xlu0 %7420  ;;  %v7779_v62 = vsel %vm2907_vm4, %v15350_v15, 0.0  ;;  %12465 = vpow2.f32 %v7607_v1  ;;  %11683 = vmatpush3.bf16.msra.mxu1 %v14883_v32  ;;  %v12456_v14 = vpop.eup %12455  ;;  %11684 = vmatprep.mubr.msk.bf16.mxu1 %vm12792_vm2, %v16245_v54 }
 0x688   :  { %v7487_v5 = vsub.f32 %v15096_v2, %v7421_v46  ;;  %7780 = vadd.xlane.f32.xlu0 %v7779_v62  ;;  %12467 = vrcp.f32 %v7640_v0  ;;  %11694 = vmatprep.subr.bf16.mxu1 %v16245_v54  ;;  %v7877_v32 = vmul.f32 %v12456_v14, %v15069_v7 }
 0x689   :  { %v15360_v42 = vpop.eup %12457 }
 0x68a   :  { %v7613_v8 = vmul.f32 1.442695, %v7487_v5  ;;  %v12460_v33 = vpop.eup %12459  ;;  %v7424_v44 = vpop.xlane.xlu1 %7423  ;;  %v7782_v31 = vsel %vm2907_vm4, %v15360_v42, 0.0 }
 0x68b   :  { %v7878_v2 = vmul.f32 %v12460_v33, %v15075_v13  ;;  %v7643_v10 = vpop.xlane.xlu0 %7642  ;;  %v7488_v11 = vsub.f32 %v15099_v55, %v7424_v44  ;;  %7783 = vadd.xlane.f32.xlu1 %v7782_v31 }
 0x68c   :  { %12469 = vpow2.f32 %v7613_v8 }
 0x68d   :  { %v7939_v3 = vpack.c.bf16 %v7878_v2, %v7877_v32  ;;  %v7615_v36 = vmul.f32 1.442695, %v7488_v11  ;;  %12471 = vrcp.f32 %v7643_v10 }
 0x68e   :  { %v15367_v17 = vpop.eup %12461  ;;  %v7646_v39 = vpop.xlane.xlu1 %7645 }
 0x68f   :  { %v7791_v57 = vsel %vm2907_vm4, %v15367_v17, 0.0  ;;  %12473 = vpow2.f32 %v7615_v36  ;;  %11679 = vmatmul.mubr.msk.bf16.vlgmr.msra.gmra.mrb[36].mxu0 %vm2907_vm4, %v7939_v3  ;;  %v12464_v7 = vpop.eup %12463 }
 0x690   :  { %7792 = vadd.xlane.f32.xlu0 %v7791_v57  ;;  %11689 = vmatpush3.bf16.msra.mxu0 %v14907_v38  ;;  %12475 = vrcp.f32 %v7646_v39  ;;  %v7879_v18 = vmul.f32 %v12464_v7, %v15087_v56  ;;  %v16401_v39 = vld [vmem:[#allocation117_spill] sm:$0xff] }
 0x691   :  { %11690 = vmatprep.mubr.msk.bf16.mxu0 %vm12792_vm2, %v16245_v54  ;;  %v15375_v13 = vpop.eup %12465  ;;  %11700 = vmatprep.subr.bf16.mxu0 %v16245_v54 }
 0x692   :  { %v12468_v55 = vpop.eup %12467  ;;  %v7649_v20 = vpop.xlane.xlu0 %7648  ;;  %v7794_v61 = vsel %vm2907_vm4, %v15375_v13, 0.0 }
 0x693   :  { %v7880_v1 = vmul.f32 %v12468_v55, %v15093_v23  ;;  %12477 = vrcp.f32 %v7649_v20  ;;  %7795 = vadd.xlane.f32.xlu1 %v7794_v61 }
 0x694   :  { %v7652_v38 = vpop.xlane.xlu1 %7651 }
 0x695   :  { %v7940_v46 = vpack.c.bf16 %v7880_v1, %v7879_v18  ;;  %12479 = vrcp.f32 %v7652_v38 }
 0x696   :  { %v15382_v0 = vpop.eup %12469 }
 0x697   :  { %v7803_v62 = vsel %vm2907_vm4, %v15382_v0, 0.0  ;;  %11685 = vmatmul.mubr.msk.bf16.vlgmr.msra.gmra.mrb[100].mxu1 %vm2907_vm4, %v7940_v46  ;;  %v12472_v5 = vpop.eup %12471 }
 0x698   :  { %7804 = vadd.xlane.f32.xlu0 %v7803_v62  ;;  %11695 = vmatpush3.bf16.msra.mxu1 %v14893_v12  ;;  %v7881_v33 = vmul.f32 %v12472_v5, %v15105_v19  ;;  %v16402_v5 = vld [vmem:[#allocation66_spill] sm:$0xff] }
 0x699   :  { %11696 = vmatprep.mubr.msk.bf16.mxu1 %vm12792_vm2, %v16245_v54  ;;  %v15390_v56 = vpop.eup %12473  ;;  %11706 = vmatprep.subr.bf16.mxu1 %v16245_v54 }
 0x69a   :  { %v12476_v23 = vpop.eup %12475  ;;  %v7655_v14 = vpop.xlane.xlu0 %7654  ;;  %v7806_v8 = vsel %vm2907_vm4, %v15390_v56, 0.0 }
 0x69b   :  { %v7882_v44 = vmul.f32 %v12476_v23, %v15111_v21  ;;  %12481 = vrcp.f32 %v7655_v14  ;;  %7807 = vadd.xlane.f32.xlu1 %v7806_v8  ;;  %v16404_v14 = vld [vmem:[#allocation48_spill] sm:$0xff] }
 0x69c   :  { %v7658_v31 = vpop.xlane.xlu1 %7657 }
 0x69d   :  { %v12478_v12 = vpop.eup %12477  ;;  %v7941_v32 = vpack.c.bf16 %v7882_v44, %v7881_v33  ;;  %12483 = vrcp.f32 %v7658_v31 }
 0x69e   :  { %v7883_v10 = vmul.f32 %v12478_v12, %v15117_v34 }
 0x69f   :  { %v12480_v2 = vpop.eup %12479  ;;  %11691 = vmatmul.mubr.msk.bf16.vlgmr.msra.gmra.mrb[40].mxu0 %vm2907_vm4, %v7941_v32 }
 0x6a0   :  { %v7884_v11 = vmul.f32 %v12480_v2, %v15121_v25  ;;  %11701 = vmatpush3.bf16.msra.mxu0 %v14919_v52  ;;  %11702 = vmatprep.mubr.msk.bf16.mxu0 %vm12792_vm2, %v16245_v54 }
 0x6a1   :  { %11712 = vmatprep.subr.bf16.mxu0 %v16245_v54 }
 0x6a2   :  { %v7942_v19 = vpack.c.bf16 %v7884_v11, %v7883_v10  ;;  %v7661_v21 = vpop.xlane.xlu0 %7660 }
 0x6a3   :  { %12485 = vrcp.f32 %v7661_v21 }
 0x6a4   :  { %11697 = vmatmul.mubr.msk.bf16.vlgmr.msra.gmra.mrb[104].mxu1 %vm2907_vm4, %v7942_v19  ;;  %v7664_v3 = vpop.xlane.xlu1 %7663 }
 0x6a5   :  { %v12482_v36 = vpop.eup %12481  ;;  %11707 = vmatpush3.bf16.msra.mxu1 %v16401_v39  ;;  %12487 = vrcp.f32 %v7664_v3  ;;  %11708 = vmatprep.mubr.msk.bf16.mxu1 %vm12792_vm2, %v16245_v54 }
 0x6a6   :  { %v7331_v34 = vpop.xlane.xlu0 %7330  ;;  %11718 = vmatprep.subr.bf16.mxu1 %v16245_v54  ;;  %v7885_v57 = vmul.f32 %v12482_v36, %v15127_v16 }
 0x6a7   :  { %v12484_v52 = vpop.eup %12483  ;;  %v7457_v25 = vsub.f32 %v15139_v35, %v7331_v34 }
 0x6a8   :  { %v7886_v7 = vmul.f32 %v12484_v52, %v15131_v53  ;;  %v7334_v55 = vpop.xlane.xlu1 %7333 }
 0x6a9   :  { %v7553_v20 = vmul.f32 1.442695, %v7457_v25  ;;  %v7458_v61 = vsub.f32 %v15146_v29, %v7334_v55  ;;  %v16403_v29 = vld [vmem:[#allocation127_spill] sm:$0xff]  ;;  %v16406_v25 = vld [vmem:[#allocation54_spill] sm:$0xff] }
 0x6aa   :  { %v7943_v18 = vpack.c.bf16 %v7886_v7, %v7885_v57  ;;  %v7667_v1 = vpop.xlane.xlu0 %7666  ;;  %v16407_v7 = vld [vmem:[#allocation23_spill] sm:$0xff] }
 0x6ab   :  { %12489 = vpow2.f32 %v7553_v20  ;;  %v7555_v38 = vmul.f32 1.442695, %v7458_v61 }
 0x6ac   :  { %12491 = vrcp.f32 %v7667_v1  ;;  %11703 = vmatmul.mubr.msk.bf16.vlgmr.msra.gmra.mrb[44].mxu0 %vm2907_vm4, %v7943_v18  ;;  %v7670_v46 = vpop.xlane.xlu1 %7669 }
 0x6ad   :  { %v12486_v62 = vpop.eup %12485  ;;  %12493 = vpow2.f32 %v7555_v38  ;;  %11713 = vmatpush3.bf16.msra.mxu0 %v16402_v5  ;;  %11714 = vmatprep.mubr.msk.bf16.mxu0 %vm12792_vm2, %v16245_v54 }
 0x6ae   :  { %12495 = vrcp.f32 %v7670_v46  ;;  %v7343_v16 = vpop.xlane.xlu0 %7342  ;;  %11724 = vmatprep.subr.bf16.mxu0 %v16245_v54  ;;  %v7887_v23 = vmul.f32 %v12486_v62, %v16403_v29 }
 0x6af   :  { %v12488_v53 = vpop.eup %12487  ;;  %v7461_v35 = vsub.f32 %v15157_v4, %v7343_v16  ;;  %v16405_v4 = vld [vmem:[#allocation120_spill] sm:$0xff] }
 0x6b0   :  { %v7888_v8 = vmul.f32 %v12488_v53, %v16404_v14  ;;  %v7346_v33 = vpop.xlane.xlu1 %7345  ;;  %v16408_v53 = vld [vmem:[#allocation118_spill] sm:$0xff] }
 0x6b1   :  { %v7561_v44 = vmul.f32 1.442695, %v7461_v35  ;;  %v7462_v31 = vsub.f32 %v15164_v63, %v7346_v33 }
 0x6b2   :  { %v7944_v12 = vpack.c.bf16 %v7888_v8, %v7887_v23  ;;  %v7673_v32 = vpop.xlane.xlu0 %7672  ;;  %v16409_v8 = vld [vmem:[#allocation77_spill] sm:$0xff] }
 0x6b3   :  { %12497 = vpow2.f32 %v7561_v44  ;;  %v7563_v2 = vmul.f32 1.442695, %v7462_v31  ;;  %v16410_v44 = vld [vmem:[#allocation52_spill] sm:$0xff] }
 0x6b4   :  { %12499 = vrcp.f32 %v7673_v32  ;;  %11709 = vmatmul.mubr.msk.bf16.vlgmr.msra.gmra.mrb[108].mxu1 %vm2907_vm4, %v7944_v12  ;;  %v7676_v10 = vpop.xlane.xlu1 %7675 }
 0x6b5   :  { %v15423_v11 = vpop.eup %12489  ;;  %12501 = vpow2.f32 %v7563_v2  ;;  %11719 = vmatpush3.bf16.msra.mxu1 %v16405_v4  ;;  %11720 = vmatprep.mubr.msk.bf16.mxu1 %vm12792_vm2, %v16245_v54 }
 0x6b6   :  { %v12492_v19 = vpop.eup %12491  ;;  %12503 = vrcp.f32 %v7676_v10  ;;  %v7355_v21 = vpop.xlane.xlu0 %7354  ;;  %v7713_v63 = vsel %vm2907_vm4, %v15423_v11, 0.0  ;;  %11730 = vmatprep.subr.bf16.mxu1 %v16245_v54 }
 0x6b7   :  { %v15431_v3 = vpop.eup %12493  ;;  %v7465_v36 = vsub.f32 %v15175_v27, %v7355_v21  ;;  %7714 = vadd.xlane.f32.xlu1 %v7713_v63  ;;  %v7889_v57 = vmul.f32 %v12492_v19, %v16406_v25  ;;  %v16411_v21 = vld [vmem:[#allocation115_spill] sm:$0xff] }
 0x6b8   :  { %v12496_v39 = vpop.eup %12495  ;;  %v7358_v34 = vpop.xlane.xlu1 %7357  ;;  %v7716_v52 = vsel %vm2907_vm4, %v15431_v3, 0.0 }
 0x6b9   :  { %v7890_v55 = vmul.f32 %v12496_v39, %v16407_v7  ;;  %v7569_v20 = vmul.f32 1.442695, %v7465_v36  ;;  %v7466_v61 = vsub.f32 %v15182_v51, %v7358_v34  ;;  %7717 = vadd.xlane.f32.xlu0 %v7716_v52 }
 0x6bb   :  { %v7945_v18 = vpack.c.bf16 %v7890_v55, %v7889_v57  ;;  %12505 = vpow2.f32 %v7569_v20  ;;  %v7571_v1 = vmul.f32 1.442695, %v7466_v61  ;;  %v7367_v38 = vpop.xlane.xlu0 %7366 }
 0x6bc   :  { %v7469_v27 = vsub.f32 %v15193_v24, %v7367_v38  ;;  %v7679_v46 = vpop.xlane.xlu1 %7678  ;;  %v16412_v38 = vld [vmem:[#allocation128_spill] sm:$0xff] }
 0x6bd   :  { %v15440_v62 = vpop.eup %12497  ;;  %12507 = vpow2.f32 %v7571_v1  ;;  %11715 = vmatmul.mubr.msk.bf16.vlgmr.msra.gmra.mrb[48].mxu0 %vm2907_vm4, %v7945_v18 }
 0x6be   :  { %v12500_v5 = vpop.eup %12499  ;;  %v7577_v16 = vmul.f32 1.442695, %v7469_v27  ;;  %11725 = vmatpush3.bf16.msra.mxu0 %v16408_v53  ;;  %v7725_v51 = vsel %vm2907_vm4, %v15440_v62, 0.0  ;;  %11726 = vmatprep.mubr.msk.bf16.mxu0 %vm12792_vm2, %v16245_v54  ;;  %12509 = vrcp.f32 %v7679_v46 }
 0x6bf   :  { %v15448_v35 = vpop.eup %12501  ;;  %7726 = vadd.xlane.f32.xlu1 %v7725_v51  ;;  %v7682_v24 = vpop.xlane.xlu0 %7681  ;;  %11736 = vmatprep.subr.bf16.mxu0 %v16245_v54  ;;  %v7891_v33 = vmul.f32 %v12500_v5, %v16409_v8 }
 0x6c0   :  { %v12504_v29 = vpop.eup %12503  ;;  %12511 = vpow2.f32 %v7577_v16  ;;  %v7370_v23 = vpop.xlane.xlu1 %7369  ;;  %v7728_v14 = vsel %vm2907_vm4, %v15448_v35, 0.0 }
 0x6c1   :  { %v7892_v31 = vmul.f32 %v12504_v29, %v16410_v44  ;;  %12513 = vrcp.f32 %v7682_v24  ;;  %v7470_v12 = vsub.f32 %v15200_v41, %v7370_v23  ;;  %7729 = vadd.xlane.f32.xlu0 %v7728_v14  ;;  %v16414_v29 = vld [vmem:[#allocation29_spill] sm:$0xff]  ;;  %v16415_v44 = vld [vmem:[#allocation56_spill] sm:$0xff] }
 0x6c3   :  { %v7946_v32 = vpack.c.bf16 %v7892_v31, %v7891_v33  ;;  %v7579_v2 = vmul.f32 1.442695, %v7470_v12  ;;  %v7685_v10 = vpop.xlane.xlu0 %7684  ;;  %v16416_v12 = vld [vmem:[#allocation65_spill] sm:$0xff] }
 0x6c4   :  { %12515 = vrcp.f32 %v7685_v10  ;;  %v7688_v4 = vpop.xlane.xlu1 %7687 }
 0x6c5   :  { %v15456_v19 = vpop.eup %12505  ;;  %12517 = vpow2.f32 %v7579_v2  ;;  %11721 = vmatmul.mubr.msk.bf16.vlgmr.msra.gmra.mrb[112].mxu1 %vm2907_vm4, %v7946_v32 }
 0x6c6   :  { %11731 = vmatpush3.bf16.msra.mxu1 %v16411_v21  ;;  %12519 = vrcp.f32 %v7688_v4  ;;  %v7737_v63 = vsel %vm2907_vm4, %v15456_v19, 0.0  ;;  %11732 = vmatprep.mubr.msk.bf16.mxu1 %vm12792_vm2, %v16245_v54 }
 0x6c7   :  { %v15464_v41 = vpop.eup %12507  ;;  %7738 = vadd.xlane.f32.xlu1 %v7737_v63  ;;  %v7379_v36 = vpop.xlane.xlu0 %7378  ;;  %11742 = vmatprep.subr.bf16.mxu1 %v16245_v54 }
 0x6c8   :  { %v7473_v39 = vsub.f32 %v15211_v30, %v7379_v36  ;;  %v7382_v34 = vpop.xlane.xlu1 %7381  ;;  %v7740_v52 = vsel %vm2907_vm4, %v15464_v41, 0.0  ;;  %v12510_v25 = vpop.eup %12509  ;;  %v16413_v30 = vld [vmem:[#allocation129_spill] sm:$0xff]  ;;  %v16417_v36 = vld [vmem:[#allocation116_spill] sm:$0xff] }
 0x6c9   :  { %v7474_v57 = vsub.f32 %v15218_v43, %v7382_v34  ;;  %7741 = vadd.xlane.f32.xlu0 %v7740_v52  ;;  %v7893_v27 = vmul.f32 %v12510_v25, %v16412_v38  ;;  %v16419_v38 = vld [vmem:[#allocation82_spill] sm:$0xff] }
 0x6ca   :  { %v15471_v7 = vpop.eup %12511  ;;  %v7585_v55 = vmul.f32 1.442695, %v7473_v39 }
 0x6cb   :  { %v12514_v20 = vpop.eup %12513  ;;  %v7587_v61 = vmul.f32 1.442695, %v7474_v57  ;;  %v7391_v18 = vpop.xlane.xlu0 %7390  ;;  %v7749_v1 = vsel %vm2907_vm4, %v15471_v7, 0.0 }
 0x6cc   :  { %v7894_v46 = vmul.f32 %v12514_v20, %v16413_v30  ;;  %12521 = vpow2.f32 %v7585_v55  ;;  %v7477_v5 = vsub.f32 %v15229_v45, %v7391_v18  ;;  %v7691_v16 = vpop.xlane.xlu1 %7690  ;;  %7750 = vadd.xlane.f32.xlu1 %v7749_v1  ;;  %v16418_v18 = vld [vmem:[#allocation27_spill] sm:$0xff] }
 0x6cd   :  { %12523 = vpow2.f32 %v7587_v61 }
 0x6ce   :  { %v12516_v43 = vpop.eup %12515  ;;  %v7947_v53 = vpack.c.bf16 %v7894_v46, %v7893_v27  ;;  %v7593_v51 = vmul.f32 1.442695, %v7477_v5  ;;  %12525 = vrcp.f32 %v7691_v16 }
 0x6cf   :  { %v15478_v24 = vpop.eup %12517  ;;  %v7895_v23 = vmul.f32 %v12516_v43, %v16414_v29  ;;  %v7694_v14 = vpop.xlane.xlu0 %7693 }
 0x6d0   :  { %v12520_v8 = vpop.eup %12519  ;;  %12527 = vpow2.f32 %v7593_v51  ;;  %11727 = vmatmul.mubr.msk.bf16.vlgmr.msra.gmra.mrb[52].mxu0 %vm2907_vm4, %v7947_v53  ;;  %v7394_v33 = vpop.xlane.xlu1 %7393  ;;  %v7752_v45 = vsel %vm2907_vm4, %v15478_v24, 0.0 }
 0x6d1   :  { %v7896_v31 = vmul.f32 %v12520_v8, %v16415_v44  ;;  %12529 = vrcp.f32 %v7694_v14  ;;  %11737 = vmatpush3.bf16.msra.mxu0 %v16416_v12  ;;  %v7478_v32 = vsub.f32 %v15236_v9, %v7394_v33  ;;  %7753 = vadd.xlane.f32.xlu0 %v7752_v45  ;;  %v16420_v8 = vld [vmem:[#allocation130_spill] sm:$0xff]  ;;  %v16422_v12 = vld [vmem:[#allocation119_spill] sm:$0xff] }
 0x6d2   :  { %11738 = vmatprep.mubr.msk.bf16.mxu0 %vm12792_vm2, %v16245_v54  ;;  %11748 = vmatprep.subr.bf16.mxu0 %v16245_v54  ;;  %v16421_v45 = vld [vmem:[#allocation122_spill] sm:$0xff] }
 0x6d3   :  { %v7948_v2 = vpack.c.bf16 %v7896_v31, %v7895_v23  ;;  %v7595_v10 = vmul.f32 1.442695, %v7478_v32  ;;  %v7697_v4 = vpop.xlane.xlu0 %7696 }
 0x6d4   :  { %12531 = vrcp.f32 %v7697_v4  ;;  %v7700_v21 = vpop.xlane.xlu1 %7699 }
 0x6d5   :  { %12533 = vpow2.f32 %v7595_v10  ;;  %11733 = vmatmul.mubr.msk.bf16.vlgmr.msra.gmra.mrb[116].mxu1 %vm2907_vm4, %v7948_v2 }
 0x6d6   :  { %v15491_v63 = vpop.eup %12521  ;;  %11743 = vmatpush3.bf16.msra.mxu1 %v16417_v36  ;;  %12535 = vrcp.f32 %v7700_v21  ;;  %11744 = vmatprep.mubr.msk.bf16.mxu1 %vm12792_vm2, %v16245_v54 }
 0x6d7   :  { %v15496_v9 = vpop.eup %12523  ;;  %v15498_v39 = vpop.xlane.xlu0 %7402  ;;  %v7761_v34 = vsel %vm2907_vm4, %v15491_v63, 0.0  ;;  %11754 = vmatprep.subr.bf16.mxu1 %v16245_v54 }
 0x6d8   :  { %v15503_v52 = vpop.xlane.xlu1 %7405  ;;  %7762 = vadd.xlane.f32.xlu1 %v7761_v34  ;;  %v7764_v25 = vsel %vm2907_vm4, %v15496_v9, 0.0  ;;  %v12526_v57 = vpop.eup %12525 }
 0x6d9   :  { %7765 = vadd.xlane.f32.xlu0 %v7764_v25  ;;  %v7897_v1 = vmul.f32 %v12526_v57, %v16418_v18  ;;  %v16423_v25 = vld [vmem:[#allocation111_spill] sm:$0xff] }
 0x6da   :  { %v15507_v55 = vpop.eup %12527  ;;  %v16424_v57 = vld [vmem:[#allocation123_spill] sm:$0xff] }
 0x6db   :  { %v12530_v20 = vpop.eup %12529  ;;  %v7773_v61 = vsel %vm2907_vm4, %v15507_v55, 0.0 }
 0x6dc   :  { %v7898_v27 = vmul.f32 %v12530_v20, %v16419_v38  ;;  %v7706_v30 = vpop.xlane.xlu0 %7705  ;;  %v7703_v46 = vpop.xlane.xlu1 %7702  ;;  %7774 = vadd.xlane.f32.xlu1 %v7773_v61 }
 0x6dd   :  { %12537 = vrcp.f32 %v7706_v30 }
 0x6de   :  { %v12532_v5 = vpop.eup %12531  ;;  %v7949_v16 = vpack.c.bf16 %v7898_v27, %v7897_v1  ;;  %12539 = vrcp.f32 %v7703_v46  ;;  %v16425_v46 = vld [vmem:[#allocation112_spill] sm:$0xff] }
 0x6df   :  { %v15513_v43 = vpop.eup %12533  ;;  %v7899_v53 = vmul.f32 %v12532_v5, %v15245_v59 }
 0x6e0   :  { %v12536_v51 = vpop.eup %12535  ;;  %v15516_v29 = vpop.xlane.xlu0 %7417  ;;  %11739 = vmatmul.mubr.msk.bf16.vlgmr.msra.gmra.mrb[56].mxu0 %vm2907_vm4, %v7949_v16  ;;  %v7776_v14 = vsel %vm2907_vm4, %v15513_v43, 0.0  ;;  %v16426_v16 = vld [vmem:[#allocation121_spill] sm:$0xff] }
 0x6e1   :  { %v15519_v23 = vpop.xlane.xlu1 %7414  ;;  %v7900_v33 = vmul.f32 %v12536_v51, %v16420_v8  ;;  %11749 = vmatpush3.bf16.msra.mxu0 %v16421_v45  ;;  %7777 = vadd.xlane.f32.xlu0 %v7776_v14 }
 0x6e2   :  { %11750 = vmatprep.mubr.msk.bf16.mxu0 %vm12792_vm2, %v16245_v54  ;;  %11760 = vmatprep.subr.bf16.mxu0 %v16245_v54 }
 0x6e3   :  { %v7950_v59 = vpack.c.bf16 %v7900_v33, %v7899_v53  ;;  %v16427_v53 = vld [vmem:[#allocation55_spill] sm:$0xff] }
 0x6e4   :  { %v7709_v44 = vpop.xlane.xlu0 %7708  ;;  %v7481_v51 = vsub.f32 %v16427_v53, %v15498_v39 }
 0x6e5   :  { %11745 = vmatmul.mubr.msk.bf16.vlgmr.msra.gmra.mrb[120].mxu1 %vm2907_vm4, %v7950_v59  ;;  %v7712_v31 = vpop.xlane.xlu1 %7711  ;;  %12541 = vrcp.f32 %v7709_v44  ;;  %v7485_v59 = vsub.f32 %v15265_v26, %v15519_v23 }
 0x6e6   :  { %11755 = vmatpush3.bf16.msra.mxu1 %v16422_v12  ;;  %11756 = vmatprep.mubr.msk.bf16.mxu1 %vm12792_vm2, %v16245_v54  ;;  %12543 = vrcp.f32 %v7712_v31  ;;  %v16429_v12 = vld [vmem:[#allocation70_spill] sm:$0xff] }
 0x6e7   :  { %11766 = vmatprep.subr.bf16.mxu1 %v16245_v54  ;;  %v12538_v32 = vpop.eup %12537 }
 0x6e8   :  { %v12540_v2 = vpop.eup %12539  ;;  %v7902_v10 = vmul.f32 %v12538_v32, %v15267_v28 }
 0x6e9   :  { %v7901_v4 = vmul.f32 %v12540_v2, %v15263_v50  ;;  %v7609_v2 = vmul.f32 1.442695, %v7485_v59 }
 0x6ea   :  { %v7721_v21 = vpop.xlane.xlu0 %7720 }
 0x6eb   :  { %v7951_v36 = vpack.c.bf16 %v7902_v10, %v7901_v4  ;;  %12545 = vrcp.f32 %v7721_v21  ;;  %v16430_v10 = vld [vmem:[#allocation33_spill] sm:$0xff] }
 0x6ec   :  { %v7724_v34 = vpop.xlane.xlu1 %7723  ;;  %v7486_v4 = vsub.f32 %v16430_v10, %v15516_v29 }
 0x6ed   :  { %12547 = vrcp.f32 %v7724_v34  ;;  %9362 = vrot.lane.b32.xlu1 %v16423_v25, %s12793_s5  ;;  %11751 = vmatmul.mubr.msk.bf16.vlgmr.msra.gmra.mrb[60].mxu0 %vm2907_vm4, %v7951_v36  ;;  %v16431_v34 = vld [vmem:[#allocation69_spill] sm:$0xff]  ;;  %v16432_v25 = vld [vmem:[#allocation58_spill] sm:$0xff] }
 0x6ee   :  { %11761 = vmatpush3.bf16.msra.mxu0 %v16424_v57  ;;  %11762 = vmatprep.mubr.msk.bf16.mxu0 %vm12792_vm2, %v16245_v54 }
 0x6ef   :  { %11772 = vmatprep.subr.bf16.mxu0 %v16245_v54  ;;  %v12542_v28 = vpop.eup %12541 }
 0x6f0   :  { %v12544_v20 = vpop.eup %12543  ;;  %v7903_v50 = vmul.f32 %v12542_v28, %v15281_v22 }
 0x6f1   :  { %v7904_v18 = vmul.f32 %v12544_v20, %v15283_v37 }
 0x6f2   :  { %v7733_v61 = vpop.xlane.xlu0 %7732 }
 0x6f3   :  { %12549 = vrcp.f32 %v7733_v61  ;;  %v7952_v38 = vpack.c.bf16 %v7904_v18, %v7903_v50 }
 0x6f4   :  { %v7736_v1 = vpop.xlane.xlu1 %7735 }
 0x6f5   :  { %12551 = vrcp.f32 %v7736_v1  ;;  %v12546_v27 = vpop.eup %12545  ;;  %11757 = vmatmul.mubr.msk.bf16.vlgmr.msra.gmra.mrb[124].mxu1 %vm2907_vm4, %v7952_v38  ;;  %v16434_v38 = vld [vmem:[#allocation74_spill] sm:$0xff] }
 0x6f6   :  { %11767 = vmatpush3.bf16.msra.mxu1 %v16426_v16  ;;  %11768 = vmatprep.mubr.msk.bf16.mxu1 %vm12792_vm2, %v16245_v54  ;;  %v7907_v22 = vmul.f32 %v12546_v27, %v15291_v47  ;;  %v16428_v47 = vld [vmem:[#allocation131_spill] sm:$0xff] }
 0x6f7   :  { %v12548_v30 = vpop.eup %12547  ;;  %9314 = vrot.lane.b32.xlu0 %v16425_v46, %s12793_s5  ;;  %11778 = vmatprep.subr.bf16.mxu1 %v16245_v54  ;;  %v7482_v44 = vsub.f32 %v16428_v47, %v15503_v52  ;;  %v16435_v46 = vld [vmem:[#allocation31_spill] sm:$0xff] }
 0x6f8   :  { %v7908_v5 = vmul.f32 %v12548_v30, %v15295_v49  ;;  %v7601_v49 = vmul.f32 1.442695, %v7481_v51 }
 0x6f9   :  { %v7603_v23 = vmul.f32 1.442695, %v7482_v44 }
 0x6fa   :  { %v7745_v37 = vpop.xlane.xlu0 %7744  ;;  %v7954_v14 = vpack.c.bf16 %v7908_v5, %v7907_v22 }
 0x6fb   :  { %12553 = vrcp.f32 %v7745_v37 }
 0x6fc   :  { %v7748_v8 = vpop.xlane.xlu1 %7747 }
 0x6fd   :  { %12555 = vrcp.f32 %v7748_v8  ;;  %v12550_v33 = vpop.eup %12549  ;;  %11769 = vmatmul.mubr.msk.bf16.vlgmr.msra.gmra.mrb[128].mxu1 %vm2907_vm4, %v7954_v14 }
 0x6fe   :  { %11779 = vmatpush3.bf16.msra.mxu1 %v16429_v12  ;;  %11780 = vmatprep.mubr.msk.bf16.mxu1 %vm12792_vm2, %v16245_v54  ;;  %v7911_v39 = vmul.f32 %v12550_v33, %v15301_v58  ;;  %12557 = vpow2.f32 %v7601_v49  ;;  %v7611_v58 = vmul.f32 1.442695, %v7486_v4  ;;  %v16436_v33 = vld [vmem:[#allocation125_spill] sm:$0xff] }
 0x6ff   :  { %v12552_v45 = vpop.eup %12551  ;;  %11790 = vmatprep.subr.bf16.mxu1 %v16245_v54  ;;  %v16438_v4 = vld [vmem:[#allocation113_spill] sm:$0xff] }
 0x700   :  { %v7912_v31 = vmul.f32 %v12552_v45, %v15305_v40 }
 0x702   :  { %v7757_v32 = vpop.xlane.xlu0 %7756  ;;  %v7956_v26 = vpack.c.bf16 %v7912_v31, %v7911_v39  ;;  %v16437_v39 = vld [vmem:[#allocation126_spill] sm:$0xff] }
 0x703   :  { %12559 = vrcp.f32 %v7757_v32 }
 0x704   :  { %v7760_v52 = vpop.xlane.xlu1 %7759 }
 0x705   :  { %12561 = vrcp.f32 %v7760_v52  ;;  %v12554_v40 = vpop.eup %12553  ;;  %11781 = vmatmul.mubr.msk.bf16.vlgmr.msra.gmra.mrb[132].mxu1 %vm2907_vm4, %v7956_v26 }
 0x706   :  { %12563 = vpow2.f32 %v7609_v2  ;;  %11791 = vmatpush3.bf16.msra.mxu1 %v16431_v34  ;;  %11792 = vmatprep.mubr.msk.bf16.mxu1 %vm12792_vm2, %v16245_v54  ;;  %v7915_v57 = vmul.f32 %v12554_v40, %v16432_v25  ;;  %v16439_v40 = vld [vmem:[#allocation114_spill] sm:$0xff] }
 0x707   :  { %v12556_v21 = vpop.eup %12555  ;;  %12565 = vpow2.f32 %v7603_v23  ;;  %11802 = vmatprep.subr.bf16.mxu1 %v16245_v54 }
 0x708   :  { %v7916_v36 = vmul.f32 %v12556_v21, %v15315_v48  ;;  %12567 = vpow2.f32 %v7611_v58  ;;  %v15575_v20 = vpop.eup %12557  ;;  %v16433_v48 = vld [vmem:[#allocation81_spill] sm:$0xff] }
 0x709   :  { %v7785_v27 = vsel %vm2907_vm4, %v15575_v20, 0.0 }
 0x70a   :  { %v7958_v29 = vpack.c.bf16 %v7916_v36, %v7915_v57 }
 0x70c   :  { %v7769_v28 = vpop.xlane.xlu0 %7768 }
 0x70d   :  { %12569 = vrcp.f32 %v7769_v28  ;;  %v12560_v50 = vpop.eup %12559  ;;  %11793 = vmatmul.mubr.msk.bf16.vlgmr.msra.gmra.mrb[136].mxu1 %vm2907_vm4, %v7958_v29 }
 0x70e   :  { %v7772_v61 = vpop.xlane.xlu1 %7771  ;;  %11803 = vmatpush3.bf16.msra.mxu1 %v16434_v38  ;;  %11804 = vmatprep.mubr.msk.bf16.mxu1 %vm12792_vm2, %v16245_v54  ;;  %v7919_v5 = vmul.f32 %v12560_v50, %v16435_v46 }
 0x70f   :  { %v12562_v18 = vpop.eup %12561  ;;  %12571 = vrcp.f32 %v7772_v61  ;;  %11814 = vmatprep.subr.bf16.mxu1 %v16245_v54 }
 0x710   :  { %v7920_v1 = vmul.f32 %v12562_v18, %v16433_v48  ;;  %v15584_v30 = vpop.eup %12563 }
 0x711   :  { %7786 = vadd.xlane.f32.xlu1 %v7785_v27  ;;  %v15588_v16 = vpop.eup %12565  ;;  %v7797_v53 = vsel %vm2907_vm4, %v15584_v30, 0.0 }
 0x712   :  { %v7960_v22 = vpack.c.bf16 %v7920_v1, %v7919_v5  ;;  %v7788_v51 = vsel %vm2907_vm4, %v15588_v16, 0.0  ;;  %v15594_v14 = vpop.eup %12567 }
 0x713   :  { %v7800_v59 = vsel %vm2907_vm4, %v15594_v14, 0.0 }
 0x715   :  { %v7781_v37 = vpop.xlane.xlu0 %7780  ;;  %7798 = vadd.xlane.f32.xlu1 %v7797_v53  ;;  %11805 = vmatmul.mubr.msk.bf16.vlgmr.msra.gmra.mrb[140].mxu1 %vm2907_vm4, %v7960_v22 }
 0x716   :  { %7789 = vadd.xlane.f32.xlu0 %v7788_v51  ;;  %12573 = vrcp.f32 %v7781_v37  ;;  %11815 = vmatpush3.bf16.msra.mxu1 %v16436_v33  ;;  %v16440_v37 = vld [vmem:[#allocation124_spill] sm:$0xff] }
 0x717   :  { %v12570_v8 = vpop.eup %12569  ;;  %11816 = vmatprep.mubr.msk.bf16.mxu1 %vm12792_vm2, %v16245_v54  ;;  %11826 = vmatprep.subr.bf16.mxu1 %v16245_v54 }
 0x718   :  { %v7784_v45 = vpop.xlane.xlu1 %7783  ;;  %v7923_v47 = vmul.f32 %v12570_v8, %v15334_v6 }
 0x719   :  { %v12572_v49 = vpop.eup %12571  ;;  %12575 = vrcp.f32 %v7784_v45 }
 0x71a   :  { %v7924_v44 = vmul.f32 %v12572_v49, %v15342_v60  ;;  %7801 = vadd.xlane.f32.xlu0 %v7800_v59 }
 0x71c   :  { %v7962_v31 = vpack.c.bf16 %v7924_v44, %v7923_v47 }
 0x71d   :  { %v15606_v12 = vpop.xlane.xlu0 %7792 }
 0x71e   :  { %11817 = vmatmul.mubr.msk.bf16.vlgmr.msra.gmra.mrb[144].mxu1 %vm2907_vm4, %v7962_v31 }
 0x71f   :  { %11827 = vmatpush3.bf16.msra.mxu1 %v16437_v39  ;;  %11828 = vmatprep.mubr.msk.bf16.mxu1 %vm12792_vm2, %v16245_v54  ;;  %v16441_v39 = vld [vmem:[#allocation73_spill] sm:$0xff] }
 0x720   :  { %v12574_v32 = vpop.eup %12573  ;;  %11838 = vmatprep.subr.bf16.mxu1 %v16245_v54  ;;  %v7796_v60 = vpop.xlane.xlu1 %7795 }
 0x721   :  { %v7927_v26 = vmul.f32 %v12574_v32, %v15350_v15 }
 0x723   :  { %v12576_v2 = vpop.eup %12575 }
 0x724   :  { %v7928_v6 = vmul.f32 %v12576_v2, %v15360_v42 }
 0x725   :  { %v7805_v23 = vpop.xlane.xlu0 %7804 }
 0x726   :  { %v7964_v10 = vpack.c.bf16 %v7928_v6, %v7927_v26  ;;  %9458 = vrot.lane.b32.xlu1 %v16438_v4, %s12793_s5  ;;  %12577 = vrcp.f32 %v7805_v23 }
 0x728   :  { %11829 = vmatmul.mubr.msk.bf16.vlgmr.msra.gmra.mrb[148].mxu1 %vm2907_vm4, %v7964_v10  ;;  %v7808_v52 = vpop.xlane.xlu1 %7807 }
 0x729   :  { %12579 = vrcp.f32 %v7808_v52  ;;  %11840 = vmatprep.mubr.msk.bf16.mxu1 %vm12792_vm2, %v16245_v54 }
 0x730   :  { %9410 = vrot.lane.b32.xlu0 %v16439_v40, %s12793_s5  ;;  %v12578_v15 = vpop.eup %12577 }
 0x731   :  { %v15622_v42 = vmul.f32 %v12578_v15, %v15382_v0 }
 0x733   :  { %v12580_v21 = vpop.eup %12579 }
 0x734   :  { %v15625_v58 = vmul.f32 %v12580_v21, %v15390_v56 }
 0x736   :  { %v7968_v36 = vpack.c.bf16 %v15625_v58, %v15622_v42 }
 0x744   :  { %v7715_v34 = vpop.xlane.xlu1 %7714 }
 0x745   :  { %12581 = vrcp.f32 %v7715_v34 }
 0x746   :  { %v7718_v25 = vpop.xlane.xlu0 %7717 }
 0x747   :  { %12583 = vrcp.f32 %v7718_v25 }
 0x74c   :  { %v7727_v57 = vpop.xlane.xlu1 %7726 }
 0x74d   :  { %12585 = vrcp.f32 %v7727_v57 }
 0x74e   :  { %v7730_v29 = vpop.xlane.xlu0 %7729 }
 0x74f   :  { %v12582_v28 = vpop.eup %12581  ;;  %12587 = vrcp.f32 %v7730_v29  ;;  %v15629_v50 = vpop.f32.mrb[32].mxu0 }
 0x750   :  { %v11668_v61 = vpop.f32.mrb[33].mxu0  ;;  %v7905_v56 = vmul.f32 %v12582_v28, %v15423_v11 }
 0x751   :  { %v12584_v0 = vpop.eup %12583  ;;  %v15631_v18 = vpop.f32.mrb[34].mxu0 }
 0x752   :  { %v7906_v48 = vmul.f32 %v12584_v0, %v15431_v3  ;;  %v9505_v1 = vpack.c.bf16 %v15631_v18, %v15629_v50  ;;  %v11669_v38 = vpop.f32.mrb[35].mxu0 }
 0x754   :  { %v7953_v27 = vpack.c.bf16 %v7906_v48, %v7905_v56  ;;  %v7739_v46 = vpop.xlane.xlu1 %7738 }
 0x755   :  { %12589 = vrcp.f32 %v7739_v46 }
 0x756   :  { %v7742_v5 = vpop.xlane.xlu0 %7741  ;;  %11763 = vmatmul.mubr.msk.bf16.vlgmr.msra.gmra.mrb[64].mxu0 %vm2907_vm4, %v7953_v27 }
 0x757   :  { %v12586_v22 = vpop.eup %12585  ;;  %12591 = vrcp.f32 %v7742_v5  ;;  %11773 = vmatpush3.bf16.msra.mxu0 %v16440_v37  ;;  %11774 = vmatprep.mubr.msk.bf16.mxu0 %vm12792_vm2, %v16245_v54 }
 0x758   :  { %11784 = vmatprep.subr.bf16.mxu0 %v16245_v54  ;;  %v7909_v53 = vmul.f32 %v12586_v22, %v15440_v62 }
 0x759   :  { %v12588_v11 = vpop.eup %12587  ;;  %v15642_v3 = vpop.f32.mrb[96].mxu1 }
 0x75a   :  { %v7910_v51 = vmul.f32 %v12588_v11, %v15448_v35  ;;  %v7751_v8 = vpop.xlane.xlu1 %7750  ;;  %v11674_v33 = vpop.f32.mrb[97].mxu1 }
 0x75b   :  { %v15646_v45 = vpop.f32.mrb[98].mxu1  ;;  %12593 = vrcp.f32 %v7751_v8 }
 0x75c   :  { %v7955_v49 = vpack.c.bf16 %v7910_v51, %v7909_v53  ;;  %v9506_v59 = vpack.c.bf16 %v15646_v45, %v15642_v3  ;;  %v11675_v47 = vpop.f32.mrb[99].mxu1  ;;  %12595 = vrcp.f32 %v7796_v60 }
 0x75e   :  { %v7754_v44 = vpop.xlane.xlu0 %7753  ;;  %11775 = vmatmul.mubr.msk.bf16.vlgmr.msra.gmra.mrb[68].mxu0 %vm2907_vm4, %v7955_v49  ;;  %v16444_v49 = vld [vmem:[#allocation78_spill] sm:$0xff] }
 0x75f   :  { %v12590_v31 = vpop.eup %12589  ;;  %12597 = vrcp.f32 %v7754_v44  ;;  %11785 = vmatpush3.bf16.msra.mxu0 %v16441_v39  ;;  %11786 = vmatprep.mubr.msk.bf16.mxu0 %vm12792_vm2, %v16245_v54 }
 0x760   :  { %12599 = vrcp.f32 %v15606_v12  ;;  %11796 = vmatprep.subr.bf16.mxu0 %v16245_v54  ;;  %v7913_v35 = vmul.f32 %v12590_v31, %v15456_v19  ;;  %v16442_v19 = vld [vmem:[#allocation25_spill] sm:$0xff] }
 0x761   :  { %v12592_v62 = vpop.eup %12591 }
 0x762   :  { %v7914_v32 = vmul.f32 %v12592_v62, %v15464_v41  ;;  %v15658_v2 = vpop.f32.mrb[36].mxu0 }
 0x763   :  { %v11680_v26 = vpop.f32.mrb[37].mxu0 }
 0x764   :  { %v7957_v6 = vpack.c.bf16 %v7914_v32, %v7913_v35  ;;  %v15660_v60 = vpop.f32.mrb[38].mxu0 }
 0x765   :  { %v9507_v23 = vpack.c.bf16 %v15660_v60, %v15658_v2  ;;  %v11681_v10 = vpop.f32.mrb[39].mxu0  ;;  %v7763_v4 = vpop.xlane.xlu1 %7762 }
 0x766   :  { %v7766_v52 = vpop.xlane.xlu0 %7765  ;;  %11787 = vmatmul.mubr.msk.bf16.vlgmr.msra.gmra.mrb[72].mxu0 %vm2907_vm4, %v7957_v6  ;;  %12601 = vrcp.f32 %v7763_v4  ;;  %v12594_v12 = vpop.eup %12593 }
 0x767   :  { %12603 = vrcp.f32 %v7766_v52  ;;  %11797 = vmatpush3.bf16.msra.mxu0 %v16442_v19  ;;  %11798 = vmatprep.mubr.msk.bf16.mxu0 %vm12792_vm2, %v16245_v54  ;;  %v12596_v41 = vpop.eup %12595  ;;  %v7917_v34 = vmul.f32 %v12594_v12, %v15471_v7 }
 0x768   :  { %11808 = vmatprep.subr.bf16.mxu0 %v16245_v54  ;;  %v7932_v29 = vmul.f32 %v12596_v41, %v15375_v13 }
 0x769   :  { %v12598_v40 = vpop.eup %12597  ;;  %v7775_v15 = vpop.xlane.xlu1 %7774 }
 0x76a   :  { %v12600_v21 = vpop.eup %12599  ;;  %v7918_v25 = vmul.f32 %v12598_v40, %v15478_v24  ;;  %v15671_v57 = vpop.f32.mrb[100].mxu1  ;;  %12605 = vrcp.f32 %v7775_v15  ;;  %v16443_v24 = vld [vmem:[#allocation50_spill] sm:$0xff] }
 0x76b   :  { %v11686_v28 = vpop.f32.mrb[101].mxu1  ;;  %v7931_v56 = vmul.f32 %v12600_v21, %v15367_v17 }
 0x76c   :  { %v7959_v61 = vpack.c.bf16 %v7918_v25, %v7917_v34  ;;  %v15674_v0 = vpop.f32.mrb[102].mxu1 }
 0x76d   :  { %v9508_v48 = vpack.c.bf16 %v15674_v0, %v15671_v57  ;;  %v11687_v38 = vpop.f32.mrb[103].mxu1  ;;  %v9363_v27 = vpop.permute.xlu1 %9362  ;;  %v7966_v7 = vpack.c.bf16 %v7932_v29, %v7931_v56 }
 0x76e   :  { %v7778_v46 = vpop.xlane.xlu0 %7777  ;;  %11799 = vmatmul.mubr.msk.bf16.vlgmr.msra.gmra.mrb[76].mxu0 %vm2907_vm4, %v7959_v61  ;;  %11839 = vmatpush3.bf16.msra.mxu1 %v9363_v27 }
 0x76f   :  { %12607 = vrcp.f32 %v7778_v46  ;;  %11809 = vmatpush3.bf16.msra.mxu0 %v16443_v24  ;;  %11810 = vmatprep.mubr.msk.bf16.mxu0 %vm12792_vm2, %v16245_v54 }
 0x770   :  { %v12602_v13 = vpop.eup %12601  ;;  %11820 = vmatprep.subr.bf16.mxu0 %v16245_v54  ;;  %11850 = vmatprep.subr.bf16.mxu1 %v16245_v54 }
 0x771   :  { %v12604_v17 = vpop.eup %12603  ;;  %v7921_v5 = vmul.f32 %v12602_v13, %v15491_v63  ;;  %11841 = vmatmul.mubr.msk.bf16.vlgmr.msra.gmra.mrb[152].mxu1 %vm2907_vm4, %v7966_v7 }
 0x772   :  { %v7922_v22 = vmul.f32 %v12604_v17, %v15496_v9  ;;  %v15688_v37 = vpop.f32.mrb[40].mxu0  ;;  %11852 = vmatprep.mubr.msk.bf16.mxu1 %vm12792_vm2, %v16245_v54  ;;  %v9315_v6 = vpop.permute.xlu0 %9314 }
 0x773   :  { %v11692_v11 = vpop.f32.mrb[41].mxu0 }
 0x774   :  { %v7961_v53 = vpack.c.bf16 %v7922_v22, %v7921_v5  ;;  %v15692_v51 = vpop.f32.mrb[42].mxu0  ;;  %v12606_v63 = vpop.eup %12605 }
 0x775   :  { %v9509_v8 = vpack.c.bf16 %v15692_v51, %v15688_v37  ;;  %v11693_v33 = vpop.f32.mrb[43].mxu0  ;;  %v7925_v39 = vmul.f32 %v12606_v63, %v15507_v55 }
 0x776   :  { %11811 = vmatmul.mubr.msk.bf16.vlgmr.msra.gmra.mrb[80].mxu0 %vm2907_vm4, %v7961_v53 }
 0x777   :  { %11821 = vmatpush3.bf16.msra.mxu0 %v16444_v49  ;;  %v15698_v47 = vpop.f32.mrb[104].mxu1  ;;  %11822 = vmatprep.mubr.msk.bf16.mxu0 %vm12792_vm2, %v16245_v54 }
 0x778   :  { %v11698_v9 = vpop.f32.mrb[105].mxu1  ;;  %11832 = vmatprep.subr.bf16.mxu0 %v16245_v54 }
 0x779   :  { %v12608_v44 = vpop.eup %12607  ;;  %v15703_v31 = vpop.f32.mrb[106].mxu1 }
 0x77a   :  { %v7926_v62 = vmul.f32 %v12608_v44, %v15513_v43  ;;  %v9510_v35 = vpack.c.bf16 %v15703_v31, %v15698_v47  ;;  %v11699_v32 = vpop.f32.mrb[107].mxu1 }
 0x77c   :  { %v7963_v26 = vpack.c.bf16 %v7926_v62, %v7925_v39 }
 0x77e   :  { %11823 = vmatmul.mubr.msk.bf16.vlgmr.msra.gmra.mrb[84].mxu0 %vm2907_vm4, %v7963_v26  ;;  %v12618_v26 = vld.sshfl [vmem:[#allocation10] sm:$0x3 pattern:$0x76325410] }
 0x77f   :  { %11833 = vmatpush3.bf16.msra.mxu0 %v9315_v6  ;;  %v15710_v10 = vpop.f32.mrb[44].mxu0  ;;  %11834 = vmatprep.mubr.msk.bf16.mxu0 %vm12792_vm2, %v16245_v54 }
 0x780   :  { %v11704_v4 = vpop.f32.mrb[45].mxu0  ;;  %11844 = vmatprep.subr.bf16.mxu0 %v16245_v54 }
 0x781   :  { %v15715_v55 = vpop.f32.mrb[46].mxu0 }
 0x782   :  { %v9511_v43 = vpack.c.bf16 %v15715_v55, %v15710_v10  ;;  %v11705_v52 = vpop.f32.mrb[47].mxu0 }
 0x787   :  { %v15719_v12 = vpop.f32.mrb[108].mxu1 }
 0x788   :  { %v11710_v19 = vpop.f32.mrb[109].mxu1 }
 0x789   :  { %v15721_v41 = vpop.f32.mrb[110].mxu1  ;;  %v9545_v19 = vrot.slane %v12618_v26, 1 }
 0x78a   :  { %v9512_v40 = vpack.c.bf16 %v15721_v41, %v15719_v12  ;;  %v11711_v15 = vpop.f32.mrb[111].mxu1 }
 0x790   :  { %v15725_v21 = vpop.f32.mrb[48].mxu0 }
 0x791   :  { %v11716_v34 = vpop.f32.mrb[49].mxu0 }
 0x792   :  { %v15727_v25 = vpop.f32.mrb[50].mxu0 }
 0x793   :  { %v9513_v29 = vpack.c.bf16 %v15727_v25, %v15725_v21  ;;  %v11717_v28 = vpop.f32.mrb[51].mxu0 }
 0x798   :  { %v15731_v61 = vpop.f32.mrb[112].mxu1 }
 0x799   :  { %v11722_v56 = vpop.f32.mrb[113].mxu1 }
 0x79a   :  { %v15733_v38 = vpop.f32.mrb[114].mxu1 }
 0x79b   :  { %v9514_v27 = vpack.c.bf16 %v15733_v38, %v15731_v61  ;;  %v11723_v46 = vpop.f32.mrb[115].mxu1 }
 0x79e   :  { %v7787_v7 = vpop.xlane.xlu1 %7786 }
 0x79f   :  { %12609 = vrcp.f32 %v7787_v7 }
 0x7a2   :  { %v7799_v24 = vpop.xlane.xlu1 %7798 }
 0x7a3   :  { %v15737_v13 = vpop.f32.mrb[52].mxu0  ;;  %v7790_v17 = vpop.xlane.xlu0 %7789 }
 0x7a4   :  { %12611 = vrcp.f32 %v7790_v17  ;;  %v11728_v5 = vpop.f32.mrb[53].mxu0 }
 0x7a5   :  { %v15739_v22 = vpop.f32.mrb[54].mxu0 }
 0x7a6   :  { %v9515_v11 = vpack.c.bf16 %v15739_v22, %v15737_v13  ;;  %v11729_v53 = vpop.f32.mrb[55].mxu0  ;;  %v9459_v33 = vpop.permute.xlu1 %9458 }
 0x7a7   :  { %v7802_v63 = vpop.xlane.xlu0 %7801  ;;  %11851 = vmatpush3.bf16.msra.mxu1 %v9459_v33  ;;  %v9643_v53 = vsel %vm5180_vm5, %v9545_v19, 0 }
 0x7a8   :  { %12613 = vrcp.f32 %v7802_v63  ;;  %v15743_v49 = vpop.f32.mrb[116].mxu1 }
 0x7a9   :  { %v11734_v9 = vpop.f32.mrb[117].mxu1  ;;  %12615 = vrcp.f32 %v7799_v24  ;;  %v12610_v32 = vpop.eup %12609 }
 0x7aa   :  { %v15745_v44 = vpop.f32.mrb[118].mxu1  ;;  %11853 = vmatmul.mubr.msk.bf16.vlgmr.msra.gmra.mrb[156].mxu1 %vm2907_vm4, %v7968_v36  ;;  %v7929_v4 = vmul.f32 %v12610_v32, %v15575_v20 }
 0x7ab   :  { %v9516_v39 = vpack.c.bf16 %v15745_v44, %v15743_v49  ;;  %v11735_v62 = vpop.f32.mrb[119].mxu1  ;;  %v9411_v28 = vpop.permute.xlu0 %9410 }
 0x7ae   :  { %v12612_v6 = vpop.eup %12611 }
 0x7af   :  { %v7930_v52 = vmul.f32 %v12612_v6, %v15588_v16 }
 0x7b1   :  { %v7965_v15 = vpack.c.bf16 %v7930_v52, %v7929_v4 }
 0x7b2   :  { %v12614_v34 = vpop.eup %12613 }
 0x7b3   :  { %v8586_v56 = vpop.f32.mrb[56].mxu0  ;;  %11835 = vmatmul.mubr.msk.bf16.vlgmr.msra.gmra.mrb[88].mxu0 %vm2907_vm4, %v7965_v15  ;;  %v12616_v42 = vpop.eup %12615  ;;  %v7934_v36 = vmul.f32 %v12614_v34, %v15594_v14 }
 0x7b4   :  { %11845 = vmatpush3.bf16.msra.mxu0 %v9411_v28  ;;  %v11740_v58 = vpop.f32.mrb[57].mxu0  ;;  %11846 = vmatprep.mubr.msk.bf16.mxu0 %vm12792_vm2, %v16245_v54  ;;  %v7933_v7 = vmul.f32 %v12616_v42, %v15584_v30 }
 0x7b5   :  { %v8589_v46 = vpop.f32.mrb[58].mxu0  ;;  %12057 = vmatprep.subr.msk.bf16.mxu0 %vm5180_vm5, %v9545_v19 }
 0x7b6   :  { %v9517_v20 = vpack.c.bf16 %v8589_v46, %v8586_v56  ;;  %v11741_v16 = vpop.f32.mrb[59].mxu0  ;;  %v7967_v17 = vpack.c.bf16 %v7934_v36, %v7933_v7 }
 0x7b8   :  { %v8634_v24 = vpop.f32.mrb[120].mxu1 }
 0x7b9   :  { %v11746_v5 = vpop.f32.mrb[121].mxu1 }
 0x7ba   :  { %v8637_v33 = vpop.f32.mrb[122].mxu1 }
 0x7bb   :  { %v9518_v63 = vpack.c.bf16 %v8637_v33, %v8634_v24  ;;  %v11747_v9 = vpop.f32.mrb[123].mxu1  ;;  %11847 = vmatmul.mubr.msk.bf16.vlgmr.msra.gmra.mrb[92].mxu0 %vm2907_vm4, %v7967_v17 }
 0x7bc   :  { %11858 = vmatprep.mubr.msk.bf16.mxu0 %vm1402_vm3, %v9505_v1  ;;  %11857 = vmatpush3.bf16.msra.mxu0 %v9643_v53 }
 0x7c0   :  { %v8682_v54 = vpop.f32.mrb[60].mxu0 }
 0x7c1   :  { %v11752_v14 = vpop.f32.mrb[61].mxu0 }
 0x7c2   :  { %v8685_v62 = vpop.f32.mrb[62].mxu0 }
 0x7c3   :  { %11859 = vmatmul.mubr.msk.bf16.vlgmr.msra.gmra.mrb[192].mxu0 %vm1402_vm3, %v9506_v59  ;;  %v9519_v30 = vpack.c.bf16 %v8685_v62, %v8682_v54  ;;  %v11753_v32 = vpop.f32.mrb[63].mxu0 }
 0x7c4   :  { %11862 = vmatprep.mubr.msk.bf16.mxu0 %vm1402_vm3, %v9507_v23 }
 0x7c8   :  { %v8730_v26 = vpop.f32.mrb[124].mxu1 }
 0x7c9   :  { %v11758_v50 = vpop.f32.mrb[125].mxu1 }
 0x7ca   :  { %v8733_v18 = vpop.f32.mrb[126].mxu1 }
 0x7cb   :  { %11863 = vmatmul.mubr.msk.bf16.gmra.mrb[196].mxu0 %vm1402_vm3, %v9508_v48  ;;  %v9520_v1 = vpack.c.bf16 %v8733_v18, %v8730_v26  ;;  %v11759_v3 = vpop.f32.mrb[127].mxu1 }
 0x7cc   :  { %11866 = vmatprep.mubr.msk.bf16.mxu0 %vm1402_vm3, %v9509_v8 }
 0x7d0   :  { %v8826_v45 = vpop.f32.mrb[128].mxu1 }
 0x7d1   :  { %v11770_v59 = vpop.f32.mrb[129].mxu1 }
 0x7d2   :  { %v8829_v2 = vpop.f32.mrb[130].mxu1 }
 0x7d3   :  { %11867 = vmatmul.mubr.msk.bf16.gmra.mrb[200].mxu0 %vm1402_vm3, %v9510_v35  ;;  %v9522_v60 = vpack.c.bf16 %v8829_v2, %v8826_v45  ;;  %v11771_v23 = vpop.f32.mrb[131].mxu1 }
 0x7d4   :  { %11870 = vmatprep.mubr.msk.bf16.mxu0 %vm1402_vm3, %v9511_v43 }
 0x7d8   :  { %v8922_v57 = vpop.f32.mrb[132].mxu1 }
 0x7d9   :  { %v11782_v0 = vpop.f32.mrb[133].mxu1 }
 0x7da   :  { %v8925_v48 = vpop.f32.mrb[134].mxu1 }
 0x7db   :  { %11871 = vmatmul.mubr.msk.bf16.gmra.mrb[204].mxu0 %vm1402_vm3, %v9512_v40  ;;  %v9524_v37 = vpack.c.bf16 %v8925_v48, %v8922_v57  ;;  %v11783_v51 = vpop.f32.mrb[135].mxu1 }
 0x7dc   :  { %11874 = vmatprep.mubr.msk.bf16.mxu0 %vm1402_vm3, %v9513_v29 }
 0x7e0   :  { %v9018_v8 = vpop.f32.mrb[136].mxu1 }
 0x7e1   :  { %v11794_v47 = vpop.f32.mrb[137].mxu1 }
 0x7e2   :  { %v9021_v31 = vpop.f32.mrb[138].mxu1 }
 0x7e3   :  { %11875 = vmatmul.mubr.msk.bf16.gmra.mrb[208].mxu0 %vm1402_vm3, %v9514_v27  ;;  %v9526_v35 = vpack.c.bf16 %v9021_v31, %v9018_v8  ;;  %v11795_v10 = vpop.f32.mrb[139].mxu1 }
 0x7e4   :  { %11878 = vmatprep.mubr.msk.bf16.mxu0 %vm1402_vm3, %v9515_v11 }
 0x7e8   :  { %v9114_v55 = vpop.f32.mrb[140].mxu1 }
 0x7e9   :  { %v11806_v43 = vpop.f32.mrb[141].mxu1 }
 0x7ea   :  { %v9117_v12 = vpop.f32.mrb[142].mxu1  ;;  %v15831_v43 = vld [vmem:[#allocation11] ss:$0 sm:$0xff] }
 0x7eb   :  { %11879 = vmatmul.mubr.msk.bf16.gmra.mrb[212].mxu0 %vm1402_vm3, %v9516_v39  ;;  %v9528_v41 = vpack.c.bf16 %v9117_v12, %v9114_v55  ;;  %v11807_v40 = vpop.f32.mrb[143].mxu1 }
 0x7ec   :  { %11882 = vmatprep.mubr.msk.bf16.mxu0 %vm1402_vm3, %v9517_v20 }
 0x7f1   :  { %v9210_v21 = vpop.f32.mrb[144].mxu1 }
 0x7f2   :  { %v11818_v25 = vpop.f32.mrb[145].mxu1 }
 0x7f3   :  { %11883 = vmatmul.mubr.msk.bf16.gmra.mrb[216].mxu0 %vm1402_vm3, %v9518_v63  ;;  %v9213_v29 = vpop.f32.mrb[146].mxu1 }
 0x7f4   :  { %11886 = vmatprep.mubr.msk.bf16.mxu0 %vm1402_vm3, %v9519_v30  ;;  %v9530_v61 = vpack.c.bf16 %v9213_v29, %v9210_v21  ;;  %v11819_v38 = vpop.f32.mrb[147].mxu1 }
 0x7fb   :  { %v9306_v27 = vpop.f32.mrb[148].mxu1  ;;  %11887 = vmatmul.mubr.msk.bf16.gmra.mrb[220].mxu0 %vm1402_vm3, %v9520_v1 }
 0x7fc   :  { %v11830_v13 = vpop.f32.mrb[149].mxu1 }
 0x7fd   :  { %v9309_v22 = vpop.f32.mrb[150].mxu1 }
 0x7fe   :  { %v9532_v11 = vpack.c.bf16 %v9309_v22, %v9306_v27  ;;  %v11831_v49 = vpop.f32.mrb[151].mxu1 }
 0x829   :  { %v8778_v44 = vpop.f32.mrb[64].mxu0 }
 0x82a   :  { %v11764_v39 = vpop.f32.mrb[65].mxu0 }
 0x82b   :  { %v8781_v6 = vpop.f32.mrb[66].mxu0 }
 0x82c   :  { %v9521_v4 = vpack.c.bf16 %v8781_v6, %v8778_v44  ;;  %v11765_v52 = vpop.f32.mrb[67].mxu0 }
 0x82e   :  { %11890 = vmatprep.mubr.msk.bf16.mxu0 %vm1402_vm3, %v9521_v4 }
 0x82f   :  { %11891 = vmatmul.mubr.msk.bf16.gmra.mrb[224].mxu0 %vm1402_vm3, %v9522_v60 }
 0x831   :  { %v8874_v19 = vpop.f32.mrb[68].mxu0 }
 0x832   :  { %v11776_v15 = vpop.f32.mrb[69].mxu0 }
 0x833   :  { %v8877_v34 = vpop.f32.mrb[70].mxu0 }
 0x834   :  { %v9523_v28 = vpack.c.bf16 %v8877_v34, %v8874_v19  ;;  %v11777_v56 = vpop.f32.mrb[71].mxu0 }
 0x836   :  { %11894 = vmatprep.mubr.msk.bf16.mxu0 %vm1402_vm3, %v9523_v28 }
 0x837   :  { %11895 = vmatmul.mubr.msk.bf16.gmra.mrb[228].mxu0 %vm1402_vm3, %v9524_v37 }
 0x839   :  { %v8970_v42 = vpop.f32.mrb[72].mxu0 }
 0x83a   :  { %v11788_v58 = vpop.f32.mrb[73].mxu0 }
 0x83b   :  { %v8973_v36 = vpop.f32.mrb[74].mxu0 }
 0x83c   :  { %v9525_v46 = vpack.c.bf16 %v8973_v36, %v8970_v42  ;;  %v11789_v20 = vpop.f32.mrb[75].mxu0 }
 0x83e   :  { %11898 = vmatprep.mubr.msk.bf16.mxu0 %vm1402_vm3, %v9525_v46 }
 0x83f   :  { %11899 = vmatmul.mubr.msk.bf16.gmra.mrb[232].mxu0 %vm1402_vm3, %v9526_v35 }
 0x841   :  { %v9066_v16 = vpop.f32.mrb[76].mxu0 }
 0x842   :  { %v11800_v7 = vpop.f32.mrb[77].mxu0 }
 0x843   :  { %v9069_v24 = vpop.f32.mrb[78].mxu0 }
 0x844   :  { %v9527_v17 = vpack.c.bf16 %v9069_v24, %v9066_v16  ;;  %v11801_v5 = vpop.f32.mrb[79].mxu0  ;;  %v9402_v53 = vpop.f32.mrb[152].mxu1 }
 0x845   :  { %v11842_v33 = vpop.f32.mrb[153].mxu1 }
 0x846   :  { %11902 = vmatprep.mubr.msk.bf16.mxu0 %vm1402_vm3, %v9527_v17  ;;  %v9405_v63 = vpop.f32.mrb[154].mxu1 }
 0x847   :  { %v9534_v9 = vpack.c.bf16 %v9405_v63, %v9402_v53  ;;  %11903 = vmatmul.mubr.msk.bf16.gmra.mrb[236].mxu0 %vm1402_vm3, %v9528_v41  ;;  %v11843_v54 = vpop.f32.mrb[155].mxu1 }
 0x849   :  { %v9162_v14 = vpop.f32.mrb[80].mxu0 }
 0x84a   :  { %v11812_v62 = vpop.f32.mrb[81].mxu0 }
 0x84b   :  { %v9165_v30 = vpop.f32.mrb[82].mxu0 }
 0x84c   :  { %v9529_v32 = vpack.c.bf16 %v9165_v30, %v9162_v14  ;;  %v11813_v26 = vpop.f32.mrb[83].mxu0 }
 0x84e   :  { %11906 = vmatprep.mubr.msk.bf16.mxu0 %vm1402_vm3, %v9529_v32 }
 0x84f   :  { %11907 = vmatmul.mubr.msk.bf16.gmra.mrb[240].mxu0 %vm1402_vm3, %v9530_v61 }
 0x851   :  { %v9258_v50 = vpop.f32.mrb[84].mxu0 }
 0x852   :  { %v11824_v18 = vpop.f32.mrb[85].mxu0 }
 0x853   :  { %v9261_v1 = vpop.f32.mrb[86].mxu0 }
 0x854   :  { %v9531_v3 = vpack.c.bf16 %v9261_v1, %v9258_v50  ;;  %v11825_v45 = vpop.f32.mrb[87].mxu0 }
 0x856   :  { %11910 = vmatprep.mubr.msk.bf16.mxu0 %vm1402_vm3, %v9531_v3 }
 0x857   :  { %11911 = vmatmul.mubr.msk.bf16.gmra.mrb[244].mxu0 %vm1402_vm3, %v9532_v11 }
 0x87d   :  { %v9498_v59 = vpop.f32.mrb[156].mxu1 }
 0x87e   :  { %v11854_v2 = vpop.f32.mrb[157].mxu1 }
 0x87f   :  { %v9501_v60 = vpop.f32.mrb[158].mxu1 }
 0x880   :  { %v9536_v23 = vpack.c.bf16 %v9501_v60, %v9498_v59  ;;  %v11855_v57 = vpop.f32.mrb[159].mxu1 }
 0x886   :  { %v9354_v0 = vpop.f32.mrb[88].mxu0 }
 0x887   :  { %v11836_v48 = vpop.f32.mrb[89].mxu0 }
 0x888   :  { %v9357_v37 = vpop.f32.mrb[90].mxu0 }
 0x889   :  { %v9533_v51 = vpack.c.bf16 %v9357_v37, %v9354_v0  ;;  %v11837_v8 = vpop.f32.mrb[91].mxu0 }
 0x88b   :  { %11914 = vmatprep.mubr.msk.bf16.mxu0 %vm1402_vm3, %v9533_v51 }
 0x88c   :  { %11915 = vmatmul.mubr.msk.bf16.gmra.mrb[248].mxu0 %vm1402_vm3, %v9534_v9 }
 0x88e   :  { %v9450_v47 = vpop.f32.mrb[92].mxu0 }
 0x88f   :  { %v11848_v31 = vpop.f32.mrb[93].mxu0 }
 0x890   :  { %v9453_v35 = vpop.f32.mrb[94].mxu0 }
 0x891   :  { %v9535_v10 = vpack.c.bf16 %v9453_v35, %v9450_v47  ;;  %v11849_v55 = vpop.f32.mrb[95].mxu0 }
 0x893   :  { %11918 = vmatprep.mubr.msk.bf16.mxu0 %vm1402_vm3, %v9535_v10 }
 0x894   :  { %11919 = vmatmul.mubr.msk.bf16.gmra.mrb[252].mxu0 %vm1402_vm3, %v9536_v23 }
 0x896   :  { %v11860_v12 = vpop.f32.mrb[192].mxu0 }
 0x897   :  { %v11924_v41 = vadd.f32 %v11860_v12, %v15831_v43  ;;  %v9679_v40 = vpop.f32.mrb[193].mxu0 }
 0x898   :  { %v11925_v21 = vadd.f32 %v15831_v43, %v9679_v40  ;;  %v11861_v25 = vpop.f32.mrb[194].mxu0 }
 0x899   :  { %10000 = vst.msk [vmem:[#allocation13 + $0x10] sm:$0xff] %vm322_vm1, %v11924_v41  ;;  %v11926_v29 = vadd.f32 %v11861_v25, %v15831_v43  ;;  %v9682_v61 = vpop.f32.mrb[195].mxu0 }
 0x89a   :  { %9998 = vst.msk [vmem:[#allocation13] sm:$0xff] %vm322_vm1, %v11925_v21  ;;  %v11927_v38 = vadd.f32 %v15831_v43, %v9682_v61 }
 0x89b   :  { %10001 = vst.msk [vmem:[#allocation13 + $0x18] sm:$0xff] %vm322_vm1, %v11926_v29 }
 0x89c   :  { %9999 = vst.msk [vmem:[#allocation13 + $0x8] sm:$0xff] %vm322_vm1, %v11927_v38 }
 0x89e   :  { %v11864_v27 = vpop.f32.mrb[196].mxu0 }
 0x89f   :  { %v11928_v13 = vadd.f32 %v11864_v27, %v15831_v43  ;;  %v9695_v22 = vpop.f32.mrb[197].mxu0 }
 0x8a0   :  { %v11929_v11 = vadd.f32 %v15831_v43, %v9695_v22  ;;  %v11865_v49 = vpop.f32.mrb[198].mxu0 }
 0x8a1   :  { %10004 = vst.msk [vmem:[#allocation13 + $0x30] sm:$0xff] %vm322_vm1, %v11928_v13  ;;  %v11930_v44 = vadd.f32 %v11865_v49, %v15831_v43  ;;  %v9698_v39 = vpop.f32.mrb[199].mxu0 }
 0x8a2   :  { %10002 = vst.msk [vmem:[#allocation13 + $0x20] sm:$0xff] %vm322_vm1, %v11929_v11  ;;  %v11931_v6 = vadd.f32 %v15831_v43, %v9698_v39 }
 0x8a3   :  { %10005 = vst.msk [vmem:[#allocation13 + $0x38] sm:$0xff] %vm322_vm1, %v11930_v44 }
 0x8a4   :  { %10003 = vst.msk [vmem:[#allocation13 + $0x28] sm:$0xff] %vm322_vm1, %v11931_v6 }
 0x8a6   :  { %v11868_v4 = vpop.f32.mrb[200].mxu0 }
 0x8a7   :  { %v11932_v52 = vadd.f32 %v11868_v4, %v15831_v43  ;;  %v9711_v19 = vpop.f32.mrb[201].mxu0 }
 0x8a8   :  { %v11933_v15 = vadd.f32 %v15831_v43, %v9711_v19  ;;  %v11869_v34 = vpop.f32.mrb[202].mxu0 }
 0x8a9   :  { %10008 = vst.msk [vmem:[#allocation13 + $0x50] sm:$0xff] %vm322_vm1, %v11932_v52  ;;  %v11934_v28 = vadd.f32 %v11869_v34, %v15831_v43  ;;  %v9714_v56 = vpop.f32.mrb[203].mxu0 }
 0x8aa   :  { %10006 = vst.msk [vmem:[#allocation13 + $0x40] sm:$0xff] %vm322_vm1, %v11933_v15  ;;  %v11935_v42 = vadd.f32 %v15831_v43, %v9714_v56 }
 0x8ab   :  { %10009 = vst.msk [vmem:[#allocation13 + $0x58] sm:$0xff] %vm322_vm1, %v11934_v28 }
 0x8ac   :  { %10007 = vst.msk [vmem:[#allocation13 + $0x48] sm:$0xff] %vm322_vm1, %v11935_v42 }
 0x8ae   :  { %v11872_v58 = vpop.f32.mrb[204].mxu0 }
 0x8af   :  { %v11936_v36 = vadd.f32 %v11872_v58, %v15831_v43  ;;  %v9727_v46 = vpop.f32.mrb[205].mxu0 }
 0x8b0   :  { %v11937_v20 = vadd.f32 %v15831_v43, %v9727_v46  ;;  %v11873_v16 = vpop.f32.mrb[206].mxu0 }
 0x8b1   :  { %10012 = vst.msk [vmem:[#allocation13 + $0x70] sm:$0xff] %vm322_vm1, %v11936_v36  ;;  %v11938_v7 = vadd.f32 %v11873_v16, %v15831_v43  ;;  %v9730_v24 = vpop.f32.mrb[207].mxu0 }
 0x8b2   :  { %10010 = vst.msk [vmem:[#allocation13 + $0x60] sm:$0xff] %vm322_vm1, %v11937_v20  ;;  %v11939_v17 = vadd.f32 %v15831_v43, %v9730_v24 }
 0x8b3   :  { %10013 = vst.msk [vmem:[#allocation13 + $0x78] sm:$0xff] %vm322_vm1, %v11938_v7 }
 0x8b4   :  { %10011 = vst.msk [vmem:[#allocation13 + $0x68] sm:$0xff] %vm322_vm1, %v11939_v17 }
 0x8b6   :  { %v11876_v5 = vpop.f32.mrb[208].mxu0 }
 0x8b7   :  { %v11940_v53 = vadd.f32 %v11876_v5, %v15831_v43  ;;  %v9743_v33 = vpop.f32.mrb[209].mxu0 }
 0x8b8   :  { %v11941_v63 = vadd.f32 %v15831_v43, %v9743_v33  ;;  %v11877_v9 = vpop.f32.mrb[210].mxu0 }
 0x8b9   :  { %10016 = vst.msk [vmem:[#allocation13 + $0x90] sm:$0xff] %vm322_vm1, %v11940_v53  ;;  %v11942_v54 = vadd.f32 %v11877_v9, %v15831_v43  ;;  %v9746_v14 = vpop.f32.mrb[211].mxu0 }
 0x8ba   :  { %10014 = vst.msk [vmem:[#allocation13 + $0x80] sm:$0xff] %vm322_vm1, %v11941_v63  ;;  %v11943_v62 = vadd.f32 %v15831_v43, %v9746_v14 }
 0x8bb   :  { %10017 = vst.msk [vmem:[#allocation13 + $0x98] sm:$0xff] %vm322_vm1, %v11942_v54 }
 0x8bc   :  { %10015 = vst.msk [vmem:[#allocation13 + $0x88] sm:$0xff] %vm322_vm1, %v11943_v62 }
 0x8be   :  { %v11880_v30 = vpop.f32.mrb[212].mxu0 }
 0x8bf   :  { %v11944_v32 = vadd.f32 %v11880_v30, %v15831_v43  ;;  %v9759_v26 = vpop.f32.mrb[213].mxu0 }
 0x8c0   :  { %v11945_v50 = vadd.f32 %v15831_v43, %v9759_v26  ;;  %v11881_v18 = vpop.f32.mrb[214].mxu0 }
 0x8c1   :  { %10020 = vst.msk [vmem:[#allocation13 + $0xb0] sm:$0xff] %vm322_vm1, %v11944_v32  ;;  %v11946_v1 = vadd.f32 %v11881_v18, %v15831_v43  ;;  %v9762_v3 = vpop.f32.mrb[215].mxu0 }
 0x8c2   :  { %10018 = vst.msk [vmem:[#allocation13 + $0xa0] sm:$0xff] %vm322_vm1, %v11945_v50  ;;  %v11947_v45 = vadd.f32 %v15831_v43, %v9762_v3 }
 0x8c3   :  { %10021 = vst.msk [vmem:[#allocation13 + $0xb8] sm:$0xff] %vm322_vm1, %v11946_v1 }
 0x8c4   :  { %10019 = vst.msk [vmem:[#allocation13 + $0xa8] sm:$0xff] %vm322_vm1, %v11947_v45 }
 0x8c6   :  { %v11884_v59 = vpop.f32.mrb[216].mxu0 }
 0x8c7   :  { %v11948_v2 = vadd.f32 %v11884_v59, %v15831_v43  ;;  %v9775_v60 = vpop.f32.mrb[217].mxu0 }
 0x8c8   :  { %v11949_v23 = vadd.f32 %v15831_v43, %v9775_v60  ;;  %v11885_v57 = vpop.f32.mrb[218].mxu0 }
 0x8c9   :  { %10024 = vst.msk [vmem:[#allocation13 + $0xd0] sm:$0xff] %vm322_vm1, %v11948_v2  ;;  %v11950_v0 = vadd.f32 %v11885_v57, %v15831_v43  ;;  %v9778_v48 = vpop.f32.mrb[219].mxu0 }
 0x8ca   :  { %10022 = vst.msk [vmem:[#allocation13 + $0xc0] sm:$0xff] %vm322_vm1, %v11949_v23  ;;  %v11951_v37 = vadd.f32 %v15831_v43, %v9778_v48 }
 0x8cb   :  { %10025 = vst.msk [vmem:[#allocation13 + $0xd8] sm:$0xff] %vm322_vm1, %v11950_v0 }
 0x8cc   :  { %10023 = vst.msk [vmem:[#allocation13 + $0xc8] sm:$0xff] %vm322_vm1, %v11951_v37 }
 0x8ce   :  { %v11888_v51 = vpop.f32.mrb[220].mxu0 }
 0x8cf   :  { %v11952_v8 = vadd.f32 %v11888_v51, %v15831_v43  ;;  %v9791_v47 = vpop.f32.mrb[221].mxu0 }
 0x8d0   :  { %v11953_v31 = vadd.f32 %v15831_v43, %v9791_v47  ;;  %v11889_v35 = vpop.f32.mrb[222].mxu0 }
 0x8d1   :  { %10028 = vst.msk [vmem:[#allocation13 + $0xf0] sm:$0xff] %vm322_vm1, %v11952_v8  ;;  %v11954_v10 = vadd.f32 %v11889_v35, %v15831_v43  ;;  %v9794_v55 = vpop.f32.mrb[223].mxu0 }
 0x8d2   :  { %10026 = vst.msk [vmem:[#allocation13 + $0xe0] sm:$0xff] %vm322_vm1, %v11953_v31  ;;  %v11955_v12 = vadd.f32 %v15831_v43, %v9794_v55 }
 0x8d3   :  { %10029 = vst.msk [vmem:[#allocation13 + $0xf8] sm:$0xff] %vm322_vm1, %v11954_v10 }
 0x8d4   :  { %10027 = vst.msk [vmem:[#allocation13 + $0xe8] sm:$0xff] %vm322_vm1, %v11955_v12 }
 0x902   :  { %v11892_v41 = vpop.f32.mrb[224].mxu0 }
 0x903   :  { %v11956_v40 = vadd.f32 %v11892_v41, %v15831_v43  ;;  %v9807_v21 = vpop.f32.mrb[225].mxu0 }
 0x904   :  { %v11957_v25 = vadd.f32 %v15831_v43, %v9807_v21  ;;  %v11893_v29 = vpop.f32.mrb[226].mxu0 }
 0x905   :  { %10032 = vst.msk [vmem:[#allocation13 + $0x110] sm:$0xff] %vm322_vm1, %v11956_v40  ;;  %v11958_v61 = vadd.f32 %v11893_v29, %v15831_v43  ;;  %v9810_v38 = vpop.f32.mrb[227].mxu0 }
 0x906   :  { %10030 = vst.msk [vmem:[#allocation13 + $0x100] sm:$0xff] %vm322_vm1, %v11957_v25  ;;  %v11959_v27 = vadd.f32 %v15831_v43, %v9810_v38 }
 0x907   :  { %10033 = vst.msk [vmem:[#allocation13 + $0x118] sm:$0xff] %vm322_vm1, %v11958_v61 }
 0x908   :  { %10031 = vst.msk [vmem:[#allocation13 + $0x108] sm:$0xff] %vm322_vm1, %v11959_v27 }
 0x90a   :  { %v11896_v13 = vpop.f32.mrb[228].mxu0 }
 0x90b   :  { %v11960_v22 = vadd.f32 %v11896_v13, %v15831_v43  ;;  %v9823_v11 = vpop.f32.mrb[229].mxu0 }
 0x90c   :  { %v11961_v49 = vadd.f32 %v15831_v43, %v9823_v11  ;;  %v11897_v44 = vpop.f32.mrb[230].mxu0 }
 0x90d   :  { %10036 = vst.msk [vmem:[#allocation13 + $0x130] sm:$0xff] %vm322_vm1, %v11960_v22  ;;  %v11962_v39 = vadd.f32 %v11897_v44, %v15831_v43  ;;  %v9826_v6 = vpop.f32.mrb[231].mxu0 }
 0x90e   :  { %10034 = vst.msk [vmem:[#allocation13 + $0x120] sm:$0xff] %vm322_vm1, %v11961_v49  ;;  %v11963_v4 = vadd.f32 %v15831_v43, %v9826_v6 }
 0x90f   :  { %10037 = vst.msk [vmem:[#allocation13 + $0x138] sm:$0xff] %vm322_vm1, %v11962_v39 }
 0x910   :  { %10035 = vst.msk [vmem:[#allocation13 + $0x128] sm:$0xff] %vm322_vm1, %v11963_v4 }
 0x912   :  { %v11900_v52 = vpop.f32.mrb[232].mxu0 }
 0x913   :  { %v11964_v19 = vadd.f32 %v11900_v52, %v15831_v43  ;;  %v9839_v15 = vpop.f32.mrb[233].mxu0 }
 0x914   :  { %v11965_v34 = vadd.f32 %v15831_v43, %v9839_v15  ;;  %v11901_v28 = vpop.f32.mrb[234].mxu0 }
 0x915   :  { %10040 = vst.msk [vmem:[#allocation13 + $0x150] sm:$0xff] %vm322_vm1, %v11964_v19  ;;  %v11966_v56 = vadd.f32 %v11901_v28, %v15831_v43  ;;  %v9842_v42 = vpop.f32.mrb[235].mxu0 }
 0x916   :  { %10038 = vst.msk [vmem:[#allocation13 + $0x140] sm:$0xff] %vm322_vm1, %v11965_v34  ;;  %v11967_v58 = vadd.f32 %v15831_v43, %v9842_v42 }
 0x917   :  { %10041 = vst.msk [vmem:[#allocation13 + $0x158] sm:$0xff] %vm322_vm1, %v11966_v56 }
 0x918   :  { %10039 = vst.msk [vmem:[#allocation13 + $0x148] sm:$0xff] %vm322_vm1, %v11967_v58 }
 0x91a   :  { %v11904_v36 = vpop.f32.mrb[236].mxu0 }
 0x91b   :  { %v11968_v46 = vadd.f32 %v11904_v36, %v15831_v43  ;;  %v9855_v20 = vpop.f32.mrb[237].mxu0 }
 0x91c   :  { %v11969_v16 = vadd.f32 %v15831_v43, %v9855_v20  ;;  %v11905_v7 = vpop.f32.mrb[238].mxu0 }
 0x91d   :  { %10044 = vst.msk [vmem:[#allocation13 + $0x170] sm:$0xff] %vm322_vm1, %v11968_v46  ;;  %v11970_v24 = vadd.f32 %v11905_v7, %v15831_v43  ;;  %v9858_v17 = vpop.f32.mrb[239].mxu0 }
 0x91e   :  { %10042 = vst.msk [vmem:[#allocation13 + $0x160] sm:$0xff] %vm322_vm1, %v11969_v16  ;;  %v11971_v5 = vadd.f32 %v15831_v43, %v9858_v17 }
 0x91f   :  { %10045 = vst.msk [vmem:[#allocation13 + $0x178] sm:$0xff] %vm322_vm1, %v11970_v24 }
 0x920   :  { %10043 = vst.msk [vmem:[#allocation13 + $0x168] sm:$0xff] %vm322_vm1, %v11971_v5 }
 0x922   :  { %v11908_v53 = vpop.f32.mrb[240].mxu0 }
 0x923   :  { %v11972_v33 = vadd.f32 %v11908_v53, %v15831_v43  ;;  %v9871_v63 = vpop.f32.mrb[241].mxu0 }
 0x924   :  { %v11973_v9 = vadd.f32 %v15831_v43, %v9871_v63  ;;  %v11909_v54 = vpop.f32.mrb[242].mxu0 }
 0x925   :  { %10048 = vst.msk [vmem:[#allocation13 + $0x190] sm:$0xff] %vm322_vm1, %v11972_v33  ;;  %v11974_v14 = vadd.f32 %v11909_v54, %v15831_v43  ;;  %v9874_v62 = vpop.f32.mrb[243].mxu0 }
 0x926   :  { %10046 = vst.msk [vmem:[#allocation13 + $0x180] sm:$0xff] %vm322_vm1, %v11973_v9  ;;  %v11975_v30 = vadd.f32 %v15831_v43, %v9874_v62 }
 0x927   :  { %10049 = vst.msk [vmem:[#allocation13 + $0x198] sm:$0xff] %vm322_vm1, %v11974_v14 }
 0x928   :  { %10047 = vst.msk [vmem:[#allocation13 + $0x188] sm:$0xff] %vm322_vm1, %v11975_v30 }
 0x92a   :  { %v11912_v32 = vpop.f32.mrb[244].mxu0 }
 0x92b   :  { %v11976_v26 = vadd.f32 %v11912_v32, %v15831_v43  ;;  %v9887_v50 = vpop.f32.mrb[245].mxu0 }
 0x92c   :  { %v11977_v18 = vadd.f32 %v15831_v43, %v9887_v50  ;;  %v11913_v1 = vpop.f32.mrb[246].mxu0 }
 0x92d   :  { %10052 = vst.msk [vmem:[#allocation13 + $0x1b0] sm:$0xff] %vm322_vm1, %v11976_v26  ;;  %v11978_v3 = vadd.f32 %v11913_v1, %v15831_v43  ;;  %v9890_v45 = vpop.f32.mrb[247].mxu0 }
 0x92e   :  { %10050 = vst.msk [vmem:[#allocation13 + $0x1a0] sm:$0xff] %vm322_vm1, %v11977_v18  ;;  %v11979_v59 = vadd.f32 %v15831_v43, %v9890_v45 }
 0x92f   :  { %10053 = vst.msk [vmem:[#allocation13 + $0x1b8] sm:$0xff] %vm322_vm1, %v11978_v3 }
 0x930   :  { %10051 = vst.msk [vmem:[#allocation13 + $0x1a8] sm:$0xff] %vm322_vm1, %v11979_v59 }
 0x95f   :  { %v11916_v2 = vpop.f32.mrb[248].mxu0 }
 0x960   :  { %v11980_v60 = vadd.f32 %v11916_v2, %v15831_v43  ;;  %v9903_v23 = vpop.f32.mrb[249].mxu0 }
 0x961   :  { %v11981_v57 = vadd.f32 %v15831_v43, %v9903_v23  ;;  %v11917_v0 = vpop.f32.mrb[250].mxu0 }
 0x962   :  { %10056 = vst.msk [vmem:[#allocation13 + $0x1d0] sm:$0xff] %vm322_vm1, %v11980_v60  ;;  %v11982_v48 = vadd.f32 %v11917_v0, %v15831_v43  ;;  %v9906_v37 = vpop.f32.mrb[251].mxu0 }
 0x963   :  { %10054 = vst.msk [vmem:[#allocation13 + $0x1c0] sm:$0xff] %vm322_vm1, %v11981_v57  ;;  %v11983_v51 = vadd.f32 %v15831_v43, %v9906_v37 }
 0x964   :  { %10057 = vst.msk [vmem:[#allocation13 + $0x1d8] sm:$0xff] %vm322_vm1, %v11982_v48 }
 0x965   :  { %10055 = vst.msk [vmem:[#allocation13 + $0x1c8] sm:$0xff] %vm322_vm1, %v11983_v51 }
 0x967   :  { %v11920_v8 = vpop.f32.mrb[252].mxu0 }
 0x968   :  { %v11984_v47 = vadd.f32 %v11920_v8, %v15831_v43  ;;  %v9919_v31 = vpop.f32.mrb[253].mxu0 }
 0x969   :  { %v11985_v35 = vadd.f32 %v15831_v43, %v9919_v31  ;;  %v11921_v10 = vpop.f32.mrb[254].mxu0 }
 0x96a   :  { %10060 = vst.msk [vmem:[#allocation13 + $0x1f0] sm:$0xff] %vm322_vm1, %v11984_v47  ;;  %v11986_v55 = vadd.f32 %v11921_v10, %v15831_v43  ;;  %v9922_v12 = vpop.f32.mrb[255].mxu0 }
 0x96b   :  { %10058 = vst.msk [vmem:[#allocation13 + $0x1e0] sm:$0xff] %vm322_vm1, %v11985_v35  ;;  %v11987_v41 = vadd.f32 %v15831_v43, %v9922_v12 }
 0x96c   :  { %10061 = vst.msk [vmem:[#allocation13 + $0x1f8] sm:$0xff] %vm322_vm1, %v11986_v55 }
 0x96d   :  { %10059 = vst.msk [vmem:[#allocation13 + $0x1e8] sm:$0xff] %vm322_vm1, %v11987_v41 }
 0x96e   :  { %12762 = shalt.err (!%p12759_p10)
}
 0x96f   :  { %s12763_s20 = scalar_lea.hbm %s15979_s6, 8192 }
 0x970   :  { %p12764_p11 = scmp.ne.s32.totalorder %s15979_s6, %s12763_s20  ;;  %p12767_p12 = scmp.lt.u32.totalorder %s12763_s20, %s15979_s6 }
 0x972   :  { %p12769_p13 = pnand %p12767_p12, %p12764_p11 }
 0x974   :  { %12772 = shalt.err (!%p12769_p13)
}
 0x975   :  { %s12795_s26 = smov 128   ;;  %s12796_s27 = smov 8  }
 0x976   :  { %10073 = dma.vmem_to_hbm [thread:$0]  %s10068_s18, 8192, %s15979_s6, [#allocation4], %s12795_s26, %s12795_s26, %s12796_s27  }
 0x977   :  { %12781 = dma.done.wait [#allocation4], 8192  }
 0x978   :  { %12782 = vsyncadd [#allocation4], 4294959104 }
 0x979   :  { %10077 = vsyncpa [#allocation3], 1 }
 0x97a   :  { %10078 = vsyncpa [#allocation6], 1 }
 0x97b   :  { %10079 = vsyncpa [#allocation9], 1 }
 0x97c   :  { %10080 = vsyncpa [#allocation12], 1 }
 0x97d   :  { %10081 = vsyncpa [#allocation4], 1 }

</bundles_post_ra>
